<compile_context>
chip_gen: v7x
topology: tpu7x:2x2x1
jax: 0.10.0
libtpu: 0.0.40
codegen_flags: <defaults>
</compile_context>

<pallas_src>
import functools

import jax
import jax.numpy as jnp
from jax.experimental import pallas as pl
from jax.experimental.pallas import tpu as pltpu


# ---------------------------------------------------------------------------
# Fused kernel: featureNet + cache append + LSTM + output Linear
# ---------------------------------------------------------------------------
def _fused_temporal_cnn_kernel(
    n_ref,            # SMEM (1,) int32 : # of previously cached feature rows
    x_ref,            # (BT, D)   bf16  : new frames, flattened NCHW
    cache_ref,        # (CAP, F)  f32   : cached features, oldest first
    wf_ref, bf_ref,   # (D, F) bf16 , (1, F) f32
    wih_ref, bg_ref,  # (F, 4H) bf16, (1, 4H) f32  (b_ih + b_hh precombined)
    whh_ref,          # (H, 4H) f32
    wo_ref, bo_ref,   # (H, OUT_PAD) f32, (1, OUT_PAD) f32
    cache_out_ref,    # (CAP, F) f32  : updated cache == LSTM input sequence
    out_ref,          # (CAP, OUT_PAD) f32 : per-frame logits (lane padded)
    xg_scr,           # (CAP, 4H) f32 scratch : input->hidden gate preacts
    hseq_scr,         # (CAP, H)  f32 scratch : all hidden states
    *, hidden, bt,
):
    cap = cache_out_ref.shape[0]

    # --- featureNet stand-in: ReLU(x @ Wf + bf); bf16 MXU matmul, f32 acc ----
    feats = jnp.dot(x_ref[...], wf_ref[...], preferred_element_type=jnp.float32)
    feats = jnp.maximum(feats + bf_ref[...], 0.0)

    # --- cache append (oldest-first ring buffer).  The output ref doubles as
    #     the LSTM input sequence so features never round-trip through HBM. ---
    cache_out_ref[...] = cache_ref[...]
    n_prev = pl.multiple_of(n_ref[0], bt)
    cache_out_ref[pl.ds(n_prev, bt), :] = feats

    # --- input->hidden gate pre-activations for the whole sequence ----------
    xg_scr[...] = jnp.dot(cache_out_ref[...].astype(jnp.bfloat16), wih_ref[...],
                          preferred_element_type=jnp.float32) + bg_ref[...]

    # --- LSTM recurrence (PyTorch gate order i, f, g, o), fully unrolled.
    #     hidden == 128 => every gate slice is exactly one 128-lane vreg. -----
    h = jnp.zeros((1, hidden), jnp.float32)
    c = jnp.zeros((1, hidden), jnp.float32)
    for t in range(cap):
        g = xg_scr[pl.ds(t, 1), :] + jnp.dot(
            h, whh_ref[...], preferred_element_type=jnp.float32)
        i_g = jax.nn.sigmoid(g[:, 0 * hidden:1 * hidden])
        f_g = jax.nn.sigmoid(g[:, 1 * hidden:2 * hidden])
        g_g = jnp.tanh(g[:, 2 * hidden:3 * hidden])
        o_g = jax.nn.sigmoid(g[:, 3 * hidden:4 * hidden])
        c = f_g * c + i_g * g_g
        h = o_g * jnp.tanh(c)
        hseq_scr[pl.ds(t, 1), :] = h

    # --- output Linear over the whole hidden sequence; lane-dense 128 store --
    out = jnp.dot(hseq_scr[...], wo_ref[...], preferred_element_type=jnp.float32)
    out_ref[...] = out + bo_ref[...]


# ---------------------------------------------------------------------------
# TemporalCNN (LSTM head) wrapper with a static-shape feature ring buffer
# ---------------------------------------------------------------------------
class TemporalCNNPallas:
    OUT_PAD = 128  # lane-pad the output head so the final store is unmasked

    def __init__(self, key, *, in_dim, feature_size, lstm_size, out_size,
                 seq_len, frames_per_call):
        assert lstm_size % 128 == 0, "keep gate slices 128-lane aligned"
        assert feature_size % 128 == 0 and in_dim % 128 == 0
        assert frames_per_call % 8 == 0, "keep the cache insert sublane-aligned"

        k = jax.random.split(key, 8)
        s = 0.05
        # featureNet stand-in (Linear + ReLU); bf16 weights for the MXU
        self.w_feat = (s * jax.random.normal(
            k[0], (in_dim, feature_size), jnp.float32)).astype(jnp.bfloat16)
        self.b_feat = s * jax.random.normal(k[1], (1, feature_size), jnp.float32)
        # LSTM parameters (stored transposed: feature axis last / lane-dense)
        self.w_ih_t = (s * jax.random.normal(
            k[2], (feature_size, 4 * lstm_size), jnp.float32)).astype(jnp.bfloat16)
        self.w_hh_t = s * jax.random.normal(
            k[3], (lstm_size, 4 * lstm_size), jnp.float32)
        b_ih = s * jax.random.normal(k[4], (1, 4 * lstm_size), jnp.float32)
        b_hh = s * jax.random.normal(k[5], (1, 4 * lstm_size), jnp.float32)
        self.b_gates = b_ih + b_hh
        # output Linear, zero-padded from out_size to OUT_PAD lanes
        w_out = s * jax.random.normal(k[6], (lstm_size, out_size), jnp.float32)
        b_out = s * jax.random.normal(k[7], (1, out_size), jnp.float32)
        self.w_out_pad = jnp.zeros((lstm_size, self.OUT_PAD),
                                   jnp.float32).at[:, :out_size].set(w_out)
        self.b_out_pad = jnp.zeros((1, self.OUT_PAD),
                                   jnp.float32).at[:, :out_size].set(b_out)

        self.in_dim = in_dim
        self.feature_size = feature_size
        self.lstm_size = lstm_size
        self.out_size = out_size
        self.seq_len = seq_len
        self.frames_per_call = frames_per_call
        self.cap = seq_len * frames_per_call

        # static-shape feature cache (replaces python-list cache + vstack)
        self.feat_cache = jnp.zeros((self.cap, feature_size), jnp.float32)
        self.n_blocks = 0

        self._call = self._build_pallas_call()

    def _build_pallas_call(self):
        cap, F, H = self.cap, self.feature_size, self.lstm_size
        kernel = functools.partial(_fused_temporal_cnn_kernel,
                                   hidden=H, bt=self.frames_per_call)
        vmem = pl.BlockSpec(memory_space=pltpu.MemorySpace.VMEM)
        smem = pl.BlockSpec(memory_space=pltpu.MemorySpace.SMEM)
        return pl.pallas_call(
            kernel,
            out_shape=(jax.ShapeDtypeStruct((cap, F), jnp.float32),
                       jax.ShapeDtypeStruct((cap, self.OUT_PAD), jnp.float32)),
            in_specs=[smem] + [vmem] * 9,
            out_specs=(vmem, vmem),
            scratch_shapes=[pltpu.VMEM((cap, 4 * H), jnp.float32),  # x gates
                            pltpu.VMEM((cap, H), jnp.float32)],     # h_seq
        )

    # --- TemporalCNN.forward (extract_image_features + LSTMHead.forward) ---
    def forward(self, x):
        B, T, C, Hh, Ww = x.shape
        bt = B * T
        assert bt == self.frames_per_call
        x_flat = x.reshape(bt, C * Hh * Ww).astype(jnp.bfloat16)

        if self.n_blocks == self.seq_len:          # cache full: drop oldest block
            self.feat_cache = jnp.roll(self.feat_cache, -bt, axis=0)
            self.n_blocks -= 1
        n_prev = jnp.array([self.n_blocks * bt], jnp.int32)

        new_cache, out_pad = self._call(
            n_prev, x_flat, self.feat_cache,
            self.w_feat, self.b_feat, self.w_ih_t, self.b_gates,
            self.w_hh_t, self.w_out_pad, self.b_out_pad)

        self.feat_cache = new_cache
        self.n_blocks += 1
        n_rows = self.n_blocks * bt
        # only the first n_rows rows are valid; trailing padded rows are unused
        return [out_pad[:n_rows, :self.out_size][None, ...]]   # (1, N, out_size)

    def cache_reset(self, seq_len=None):
        if seq_len is not None:
            self.seq_len = seq_len
            self.cap = self.seq_len * self.frames_per_call
            self.feat_cache = jnp.zeros((self.cap, self.feature_size), jnp.float32)
            self._call = self._build_pallas_call()
        else:
            self.feat_cache = jnp.zeros_like(self.feat_cache)
        self.n_blocks = 0


# ---------------------------------------------------------------------------
if __name__ == "__main__":
    key = jax.random.PRNGKey(0)
    k_param, k_x = jax.random.split(key)

    B, T = 2, 4            # frames per call; seq_len = 4 cached blocks
    C, H, W = 3, 16, 16    # small NCHW frames -> in_dim = 768
    feature_size = 256
    lstm_size = 128        # gate slices 128-lane aligned
    out_size = 8
    seq_len = 4

    model = TemporalCNNPallas(
        k_param,
        in_dim=C * H * W,
        feature_size=feature_size,
        lstm_size=lstm_size,
        out_size=out_size,
        seq_len=seq_len,
        frames_per_call=B * T,
    )

    x = jax.random.normal(k_x, (B, T, C, H, W), jnp.float32)

    out = model.forward(x)[0]
    out = jax.block_until_ready(out)
    assert out.shape == (1, B * T, out_size), out.shape
    assert jnp.all(jnp.isfinite(out))
    print("KERNEL_OK")
</pallas_src>

<mosaic_0001>
module attributes {stable_mosaic.version = 11 : i64} {
  func.func @_fused_temporal_cnn_kernel(%arg0: memref<1xi32, #tpu.memory_space<smem>>, %arg1: memref<8x768xbf16, #tpu.memory_space<vmem>>, %arg2: memref<32x256xf32, #tpu.memory_space<vmem>>, %arg3: memref<768x256xbf16, #tpu.memory_space<vmem>>, %arg4: memref<1x256xf32, #tpu.memory_space<vmem>>, %arg5: memref<256x512xbf16, #tpu.memory_space<vmem>>, %arg6: memref<1x512xf32, #tpu.memory_space<vmem>>, %arg7: memref<128x512xf32, #tpu.memory_space<vmem>>, %arg8: memref<128x128xf32, #tpu.memory_space<vmem>>, %arg9: memref<1x128xf32, #tpu.memory_space<vmem>>, %arg10: memref<32x256xf32, #tpu.memory_space<vmem>>, %arg11: memref<32x128xf32, #tpu.memory_space<vmem>>, %arg12: memref<32x512xf32, #tpu.memory_space<vmem>>, %arg13: memref<32x128xf32, #tpu.memory_space<vmem>>) attributes {dimension_semantics = [], scalar_prefetch = 0 : i64, scratch_operands = 2 : i64, tpu.core_type = #tpu.core_type<tc>} {
    %c0 = arith.constant 0 : index
    %c0_0 = arith.constant 0 : index
    %0 = vector.load %arg1[%c0, %c0_0] : memref<8x768xbf16, #tpu.memory_space<vmem>>, vector<8x768xbf16>
    %c0_1 = arith.constant 0 : index
    %c0_2 = arith.constant 0 : index
    %1 = vector.load %arg3[%c0_1, %c0_2] : memref<768x256xbf16, #tpu.memory_space<vmem>>, vector<768x256xbf16>
    %cst = arith.constant dense<0.000000e+00> : vector<8x256xf32>
    %2 = tpu.matmul %0, %1, %cst {dimension_numbers = #tpu.dot_dimension_numbers<[1], [0], [0], [1], [0, 0, 1, 1], [], []>} : vector<8x768xbf16>, vector<768x256xbf16>, vector<8x256xf32> -> vector<8x256xf32>
    %c0_3 = arith.constant 0 : index
    %c0_4 = arith.constant 0 : index
    %3 = vector.load %arg4[%c0_3, %c0_4] : memref<1x256xf32, #tpu.memory_space<vmem>>, vector<1x256xf32>
    %4 = vector.broadcast %3 : vector<1x256xf32> to vector<8x256xf32>
    %5 = arith.addf %2, %4 : vector<8x256xf32>
    %cst_5 = arith.constant 0.000000e+00 : f32
    %6 = vector.broadcast %cst_5 : f32 to vector<8x256xf32>
    %7 = arith.maximumf %5, %6 : vector<8x256xf32>
    %c0_6 = arith.constant 0 : index
    %c0_7 = arith.constant 0 : index
    %8 = vector.load %arg2[%c0_6, %c0_7] : memref<32x256xf32, #tpu.memory_space<vmem>>, vector<32x256xf32>
    %c0_8 = arith.constant 0 : index
    %c0_9 = arith.constant 0 : index
    %9 = vector.load %arg10[%c0_8, %c0_9] : memref<32x256xf32, #tpu.memory_space<vmem>>, vector<32x256xf32>
    tpu.vector_store %arg10[%c0_8, %c0_9], %8 {strides = array<i32>} : memref<32x256xf32, #tpu.memory_space<vmem>>, vector<32x256xf32>,
    %c0_10 = arith.constant 0 : index
    %10 = memref.load %arg0[%c0_10] : memref<1xi32, #tpu.memory_space<smem>>
    %11 = tpu.assume_multiple %10, 8 : i32
    %12 = arith.index_cast %11 : i32 to index
    %c0_11 = arith.constant 0 : index
    %13 = vector.load %arg10[%12, %c0_11] : memref<32x256xf32, #tpu.memory_space<vmem>>, vector<8x256xf32>
    tpu.vector_store %arg10[%12, %c0_11], %7 {strides = array<i32>} : memref<32x256xf32, #tpu.memory_space<vmem>>, vector<8x256xf32>,
    %c0_12 = arith.constant 0 : index
    %c0_13 = arith.constant 0 : index
    %14 = vector.load %arg10[%c0_12, %c0_13] : memref<32x256xf32, #tpu.memory_space<vmem>>, vector<32x256xf32>
    %15 = arith.truncf %14 : vector<32x256xf32> to vector<32x256xbf16>
    %c0_14 = arith.constant 0 : index
    %c0_15 = arith.constant 0 : index
    %16 = vector.load %arg5[%c0_14, %c0_15] : memref<256x512xbf16, #tpu.memory_space<vmem>>, vector<256x512xbf16>
    %cst_16 = arith.constant dense<0.000000e+00> : vector<32x512xf32>
    %17 = tpu.matmul %15, %16, %cst_16 {dimension_numbers = #tpu.dot_dimension_numbers<[1], [0], [0], [1], [0, 0, 1, 1], [], []>} : vector<32x256xbf16>, vector<256x512xbf16>, vector<32x512xf32> -> vector<32x512xf32>
    %c0_17 = arith.constant 0 : index
    %c0_18 = arith.constant 0 : index
    %18 = vector.load %arg6[%c0_17, %c0_18] : memref<1x512xf32, #tpu.memory_space<vmem>>, vector<1x512xf32>
    %19 = vector.broadcast %18 : vector<1x512xf32> to vector<32x512xf32>
    %20 = arith.addf %17, %19 : vector<32x512xf32>
    %c0_19 = arith.constant 0 : index
    %c0_20 = arith.constant 0 : index
    %21 = vector.load %arg12[%c0_19, %c0_20] : memref<32x512xf32, #tpu.memory_space<vmem>>, vector<32x512xf32>
    tpu.vector_store %arg12[%c0_19, %c0_20], %20 {strides = array<i32>} : memref<32x512xf32, #tpu.memory_space<vmem>>, vector<32x512xf32>,
    %cst_21 = arith.constant 0.000000e+00 : f32
    %22 = vector.broadcast %cst_21 : f32 to vector<1x128xf32>
    %cst_22 = arith.constant 0.000000e+00 : f32
    %23 = vector.broadcast %cst_22 : f32 to vector<1x128xf32>
    %c0_23 = arith.constant 0 : index
    %c0_24 = arith.constant 0 : index
    %24 = vector.load %arg12[%c0_23, %c0_24] : memref<32x512xf32, #tpu.memory_space<vmem>>, vector<1x512xf32>
    %c0_25 = arith.constant 0 : index
    %c0_26 = arith.constant 0 : index
    %25 = vector.load %arg7[%c0_25, %c0_26] : memref<128x512xf32, #tpu.memory_space<vmem>>, vector<128x512xf32>
    %cst_27 = arith.constant dense<0.000000e+00> : vector<1x512xf32>
    %26 = tpu.matmul %22, %25, %cst_27 {dimension_numbers = #tpu.dot_dimension_numbers<[1], [0], [0], [1], [0, 0, 1, 1], [], []>} : vector<1x128xf32>, vector<128x512xf32>, vector<1x512xf32> -> vector<1x512xf32>
    %27 = arith.addf %24, %26 : vector<1x512xf32>
    %28 = vector.extract_strided_slice %27 {offsets = [0, 0], sizes = [1, 128], strides = [1, 1]} : vector<1x512xf32> to vector<1x128xf32>
    %29 = arith.negf %28 : vector<1x128xf32>
    %30 = math.exp %29 : vector<1x128xf32>
    %cst_28 = arith.constant 1.000000e+00 : f32
    %31 = vector.broadcast %cst_28 : f32 to vector<1x128xf32>
    %32 = arith.addf %31, %30 : vector<1x128xf32>
    %33 = arith.divf %31, %32 : vector<1x128xf32>
    %34 = vector.extract_strided_slice %27 {offsets = [0, 128], sizes = [1, 128], strides = [1, 1]} : vector<1x512xf32> to vector<1x128xf32>
    %35 = arith.negf %34 : vector<1x128xf32>
    %36 = math.exp %35 : vector<1x128xf32>
    %cst_29 = arith.constant 1.000000e+00 : f32
    %37 = vector.broadcast %cst_29 : f32 to vector<1x128xf32>
    %38 = arith.addf %37, %36 : vector<1x128xf32>
    %39 = arith.divf %37, %38 : vector<1x128xf32>
    %40 = vector.extract_strided_slice %27 {offsets = [0, 256], sizes = [1, 128], strides = [1, 1]} : vector<1x512xf32> to vector<1x128xf32>
    %41 = math.tanh %40 : vector<1x128xf32>
    %42 = vector.extract_strided_slice %27 {offsets = [0, 384], sizes = [1, 128], strides = [1, 1]} : vector<1x512xf32> to vector<1x128xf32>
    %43 = arith.negf %42 : vector<1x128xf32>
    %44 = math.exp %43 : vector<1x128xf32>
    %cst_30 = arith.constant 1.000000e+00 : f32
    %45 = vector.broadcast %cst_30 : f32 to vector<1x128xf32>
    %46 = arith.addf %45, %44 : vector<1x128xf32>
    %47 = arith.divf %45, %46 : vector<1x128xf32>
    %48 = arith.mulf %39, %23 : vector<1x128xf32>
    %49 = arith.mulf %33, %41 : vector<1x128xf32>
    %50 = arith.addf %48, %49 : vector<1x128xf32>
    %51 = math.tanh %50 : vector<1x128xf32>
    %52 = arith.mulf %47, %51 : vector<1x128xf32>
    %c0_31 = arith.constant 0 : index
    %c0_32 = arith.constant 0 : index
    %53 = vector.load %arg13[%c0_31, %c0_32] : memref<32x128xf32, #tpu.memory_space<vmem>>, vector<1x128xf32>
    tpu.vector_store %arg13[%c0_31, %c0_32], %52 {strides = array<i32>} : memref<32x128xf32, #tpu.memory_space<vmem>>, vector<1x128xf32>,
    %c1 = arith.constant 1 : index
    %c0_33 = arith.constant 0 : index
    %54 = vector.load %arg12[%c1, %c0_33] : memref<32x512xf32, #tpu.memory_space<vmem>>, vector<1x512xf32>
    %c0_34 = arith.constant 0 : index
    %c0_35 = arith.constant 0 : index
    %55 = vector.load %arg7[%c0_34, %c0_35] : memref<128x512xf32, #tpu.memory_space<vmem>>, vector<128x512xf32>
    %cst_36 = arith.constant dense<0.000000e+00> : vector<1x512xf32>
    %56 = tpu.matmul %52, %55, %cst_36 {dimension_numbers = #tpu.dot_dimension_numbers<[1], [0], [0], [1], [0, 0, 1, 1], [], []>} : vector<1x128xf32>, vector<128x512xf32>, vector<1x512xf32> -> vector<1x512xf32>
    %57 = arith.addf %54, %56 : vector<1x512xf32>
    %58 = vector.extract_strided_slice %57 {offsets = [0, 0], sizes = [1, 128], strides = [1, 1]} : vector<1x512xf32> to vector<1x128xf32>
    %59 = arith.negf %58 : vector<1x128xf32>
    %60 = math.exp %59 : vector<1x128xf32>
    %cst_37 = arith.constant 1.000000e+00 : f32
    %61 = vector.broadcast %cst_37 : f32 to vector<1x128xf32>
    %62 = arith.addf %61, %60 : vector<1x128xf32>
    %63 = arith.divf %61, %62 : vector<1x128xf32>
    %64 = vector.extract_strided_slice %57 {offsets = [0, 128], sizes = [1, 128], strides = [1, 1]} : vector<1x512xf32> to vector<1x128xf32>
    %65 = arith.negf %64 : vector<1x128xf32>
    %66 = math.exp %65 : vector<1x128xf32>
    %cst_38 = arith.constant 1.000000e+00 : f32
    %67 = vector.broadcast %cst_38 : f32 to vector<1x128xf32>
    %68 = arith.addf %67, %66 : vector<1x128xf32>
    %69 = arith.divf %67, %68 : vector<1x128xf32>
    %70 = vector.extract_strided_slice %57 {offsets = [0, 256], sizes = [1, 128], strides = [1, 1]} : vector<1x512xf32> to vector<1x128xf32>
    %71 = math.tanh %70 : vector<1x128xf32>
    %72 = vector.extract_strided_slice %57 {offsets = [0, 384], sizes = [1, 128], strides = [1, 1]} : vector<1x512xf32> to vector<1x128xf32>
    %73 = arith.negf %72 : vector<1x128xf32>
    %74 = math.exp %73 : vector<1x128xf32>
    %cst_39 = arith.constant 1.000000e+00 : f32
    %75 = vector.broadcast %cst_39 : f32 to vector<1x128xf32>
    %76 = arith.addf %75, %74 : vector<1x128xf32>
    %77 = arith.divf %75, %76 : vector<1x128xf32>
    %78 = arith.mulf %69, %50 : vector<1x128xf32>
    %79 = arith.mulf %63, %71 : vector<1x128xf32>
    %80 = arith.addf %78, %79 : vector<1x128xf32>
    %81 = math.tanh %80 : vector<1x128xf32>
    %82 = arith.mulf %77, %81 : vector<1x128xf32>
    %c1_40 = arith.constant 1 : index
    %c0_41 = arith.constant 0 : index
    %83 = vector.load %arg13[%c1_40, %c0_41] : memref<32x128xf32, #tpu.memory_space<vmem>>, vector<1x128xf32>
    tpu.vector_store %arg13[%c1_40, %c0_41], %82 {strides = array<i32>} : memref<32x128xf32, #tpu.memory_space<vmem>>, vector<1x128xf32>,
    %c2 = arith.constant 2 : index
    %c0_42 = arith.constant 0 : index
    %84 = vector.load %arg12[%c2, %c0_42] : memref<32x512xf32, #tpu.memory_space<vmem>>, vector<1x512xf32>
    %c0_43 = arith.constant 0 : index
    %c0_44 = arith.constant 0 : index
    %85 = vector.load %arg7[%c0_43, %c0_44] : memref<128x512xf32, #tpu.memory_space<vmem>>, vector<128x512xf32>
    %cst_45 = arith.constant dense<0.000000e+00> : vector<1x512xf32>
    %86 = tpu.matmul %82, %85, %cst_45 {dimension_numbers = #tpu.dot_dimension_numbers<[1], [0], [0], [1], [0, 0, 1, 1], [], []>} : vector<1x128xf32>, vector<128x512xf32>, vector<1x512xf32> -> vector<1x512xf32>
    %87 = arith.addf %84, %86 : vector<1x512xf32>
    %88 = vector.extract_strided_slice %87 {offsets = [0, 0], sizes = [1, 128], strides = [1, 1]} : vector<1x512xf32> to vector<1x128xf32>
    %89 = arith.negf %88 : vector<1x128xf32>
    %90 = math.exp %89 : vector<1x128xf32>
    %cst_46 = arith.constant 1.000000e+00 : f32
    %91 = vector.broadcast %cst_46 : f32 to vector<1x128xf32>
    %92 = arith.addf %91, %90 : vector<1x128xf32>
    %93 = arith.divf %91, %92 : vector<1x128xf32>
    %94 = vector.extract_strided_slice %87 {offsets = [0, 128], sizes = [1, 128], strides = [1, 1]} : vector<1x512xf32> to vector<1x128xf32>
    %95 = arith.negf %94 : vector<1x128xf32>
    %96 = math.exp %95 : vector<1x128xf32>
    %cst_47 = arith.constant 1.000000e+00 : f32
    %97 = vector.broadcast %cst_47 : f32 to vector<1x128xf32>
    %98 = arith.addf %97, %96 : vector<1x128xf32>
    %99 = arith.divf %97, %98 : vector<1x128xf32>
    %100 = vector.extract_strided_slice %87 {offsets = [0, 256], sizes = [1, 128], strides = [1, 1]} : vector<1x512xf32> to vector<1x128xf32>
    %101 = math.tanh %100 : vector<1x128xf32>
    %102 = vector.extract_strided_slice %87 {offsets = [0, 384], sizes = [1, 128], strides = [1, 1]} : vector<1x512xf32> to vector<1x128xf32>
    %103 = arith.negf %102 : vector<1x128xf32>
    %104 = math.exp %103 : vector<1x128xf32>
    %cst_48 = arith.constant 1.000000e+00 : f32
    %105 = vector.broadcast %cst_48 : f32 to vector<1x128xf32>
    %106 = arith.addf %105, %104 : vector<1x128xf32>
    %107 = arith.divf %105, %106 : vector<1x128xf32>
    %108 = arith.mulf %99, %80 : vector<1x128xf32>
    %109 = arith.mulf %93, %101 : vector<1x128xf32>
    %110 = arith.addf %108, %109 : vector<1x128xf32>
    %111 = math.tanh %110 : vector<1x128xf32>
    %112 = arith.mulf %107, %111 : vector<1x128xf32>
    %c2_49 = arith.constant 2 : index
    %c0_50 = arith.constant 0 : index
    %113 = vector.load %arg13[%c2_49, %c0_50] : memref<32x128xf32, #tpu.memory_space<vmem>>, vector<1x128xf32>
    tpu.vector_store %arg13[%c2_49, %c0_50], %112 {strides = array<i32>} : memref<32x128xf32, #tpu.memory_space<vmem>>, vector<1x128xf32>,
    %c3 = arith.constant 3 : index
    %c0_51 = arith.constant 0 : index
    %114 = vector.load %arg12[%c3, %c0_51] : memref<32x512xf32, #tpu.memory_space<vmem>>, vector<1x512xf32>
    %c0_52 = arith.constant 0 : index
    %c0_53 = arith.constant 0 : index
    %115 = vector.load %arg7[%c0_52, %c0_53] : memref<128x512xf32, #tpu.memory_space<vmem>>, vector<128x512xf32>
    %cst_54 = arith.constant dense<0.000000e+00> : vector<1x512xf32>
    %116 = tpu.matmul %112, %115, %cst_54 {dimension_numbers = #tpu.dot_dimension_numbers<[1], [0], [0], [1], [0, 0, 1, 1], [], []>} : vector<1x128xf32>, vector<128x512xf32>, vector<1x512xf32> -> vector<1x512xf32>
    %117 = arith.addf %114, %116 : vector<1x512xf32>
    %118 = vector.extract_strided_slice %117 {offsets = [0, 0], sizes = [1, 128], strides = [1, 1]} : vector<1x512xf32> to vector<1x128xf32>
    %119 = arith.negf %118 : vector<1x128xf32>
    %120 = math.exp %119 : vector<1x128xf32>
    %cst_55 = arith.constant 1.000000e+00 : f32
    %121 = vector.broadcast %cst_55 : f32 to vector<1x128xf32>
    %122 = arith.addf %121, %120 : vector<1x128xf32>
    %123 = arith.divf %121, %122 : vector<1x128xf32>
    %124 = vector.extract_strided_slice %117 {offsets = [0, 128], sizes = [1, 128], strides = [1, 1]} : vector<1x512xf32> to vector<1x128xf32>
    %125 = arith.negf %124 : vector<1x128xf32>
    %126 = math.exp %125 : vector<1x128xf32>
    %cst_56 = arith.constant 1.000000e+00 : f32
    %127 = vector.broadcast %cst_56 : f32 to vector<1x128xf32>
    %128 = arith.addf %127, %126 : vector<1x128xf32>
    %129 = arith.divf %127, %128 : vector<1x128xf32>
    %130 = vector.extract_strided_slice %117 {offsets = [0, 256], sizes = [1, 128], strides = [1, 1]} : vector<1x512xf32> to vector<1x128xf32>
    %131 = math.tanh %130 : vector<1x128xf32>
    %132 = vector.extract_strided_slice %117 {offsets = [0, 384], sizes = [1, 128], strides = [1, 1]} : vector<1x512xf32> to vector<1x128xf32>
    %133 = arith.negf %132 : vector<1x128xf32>
    %134 = math.exp %133 : vector<1x128xf32>
    %cst_57 = arith.constant 1.000000e+00 : f32
    %135 = vector.broadcast %cst_57 : f32 to vector<1x128xf32>
    %136 = arith.addf %135, %134 : vector<1x128xf32>
    %137 = arith.divf %135, %136 : vector<1x128xf32>
    %138 = arith.mulf %129, %110 : vector<1x128xf32>
    %139 = arith.mulf %123, %131 : vector<1x128xf32>
    %140 = arith.addf %138, %139 : vector<1x128xf32>
    %141 = math.tanh %140 : vector<1x128xf32>
    %142 = arith.mulf %137, %141 : vector<1x128xf32>
    %c3_58 = arith.constant 3 : index
    %c0_59 = arith.constant 0 : index
    %143 = vector.load %arg13[%c3_58, %c0_59] : memref<32x128xf32, #tpu.memory_space<vmem>>, vector<1x128xf32>
    tpu.vector_store %arg13[%c3_58, %c0_59], %142 {strides = array<i32>} : memref<32x128xf32, #tpu.memory_space<vmem>>, vector<1x128xf32>,
    %c4 = arith.constant 4 : index
    %c0_60 = arith.constant 0 : index
    %144 = vector.load %arg12[%c4, %c0_60] : memref<32x512xf32, #tpu.memory_space<vmem>>, vector<1x512xf32>
    %c0_61 = arith.constant 0 : index
    %c0_62 = arith.constant 0 : index
    %145 = vector.load %arg7[%c0_61, %c0_62] : memref<128x512xf32, #tpu.memory_space<vmem>>, vector<128x512xf32>
    %cst_63 = arith.constant dense<0.000000e+00> : vector<1x512xf32>
    %146 = tpu.matmul %142, %145, %cst_63 {dimension_numbers = #tpu.dot_dimension_numbers<[1], [0], [0], [1], [0, 0, 1, 1], [], []>} : vector<1x128xf32>, vector<128x512xf32>, vector<1x512xf32> -> vector<1x512xf32>
    %147 = arith.addf %144, %146 : vector<1x512xf32>
    %148 = vector.extract_strided_slice %147 {offsets = [0, 0], sizes = [1, 128], strides = [1, 1]} : vector<1x512xf32> to vector<1x128xf32>
    %149 = arith.negf %148 : vector<1x128xf32>
    %150 = math.exp %149 : vector<1x128xf32>
    %cst_64 = arith.constant 1.000000e+00 : f32
    %151 = vector.broadcast %cst_64 : f32 to vector<1x128xf32>
    %152 = arith.addf %151, %150 : vector<1x128xf32>
    %153 = arith.divf %151, %152 : vector<1x128xf32>
    %154 = vector.extract_strided_slice %147 {offsets = [0, 128], sizes = [1, 128], strides = [1, 1]} : vector<1x512xf32> to vector<1x128xf32>
    %155 = arith.negf %154 : vector<1x128xf32>
    %156 = math.exp %155 : vector<1x128xf32>
    %cst_65 = arith.constant 1.000000e+00 : f32
    %157 = vector.broadcast %cst_65 : f32 to vector<1x128xf32>
    %158 = arith.addf %157, %156 : vector<1x128xf32>
    %159 = arith.divf %157, %158 : vector<1x128xf32>
    %160 = vector.extract_strided_slice %147 {offsets = [0, 256], sizes = [1, 128], strides = [1, 1]} : vector<1x512xf32> to vector<1x128xf32>
    %161 = math.tanh %160 : vector<1x128xf32>
    %162 = vector.extract_strided_slice %147 {offsets = [0, 384], sizes = [1, 128], strides = [1, 1]} : vector<1x512xf32> to vector<1x128xf32>
    %163 = arith.negf %162 : vector<1x128xf32>
    %164 = math.exp %163 : vector<1x128xf32>
    %cst_66 = arith.constant 1.000000e+00 : f32
    %165 = vector.broadcast %cst_66 : f32 to vector<1x128xf32>
    %166 = arith.addf %165, %164 : vector<1x128xf32>
    %167 = arith.divf %165, %166 : vector<1x128xf32>
    %168 = arith.mulf %159, %140 : vector<1x128xf32>
    %169 = arith.mulf %153, %161 : vector<1x128xf32>
    %170 = arith.addf %168, %169 : vector<1x128xf32>
    %171 = math.tanh %170 : vector<1x128xf32>
    %172 = arith.mulf %167, %171 : vector<1x128xf32>
    %c4_67 = arith.constant 4 : index
    %c0_68 = arith.constant 0 : index
    %173 = vector.load %arg13[%c4_67, %c0_68] : memref<32x128xf32, #tpu.memory_space<vmem>>, vector<1x128xf32>
    tpu.vector_store %arg13[%c4_67, %c0_68], %172 {strides = array<i32>} : memref<32x128xf32, #tpu.memory_space<vmem>>, vector<1x128xf32>,
    %c5 = arith.constant 5 : index
    %c0_69 = arith.constant 0 : index
    %174 = vector.load %arg12[%c5, %c0_69] : memref<32x512xf32, #tpu.memory_space<vmem>>, vector<1x512xf32>
    %c0_70 = arith.constant 0 : index
    %c0_71 = arith.constant 0 : index
    %175 = vector.load %arg7[%c0_70, %c0_71] : memref<128x512xf32, #tpu.memory_space<vmem>>, vector<128x512xf32>
    %cst_72 = arith.constant dense<0.000000e+00> : vector<1x512xf32>
    %176 = tpu.matmul %172, %175, %cst_72 {dimension_numbers = #tpu.dot_dimension_numbers<[1], [0], [0], [1], [0, 0, 1, 1], [], []>} : vector<1x128xf32>, vector<128x512xf32>, vector<1x512xf32> -> vector<1x512xf32>
    %177 = arith.addf %174, %176 : vector<1x512xf32>
    %178 = vector.extract_strided_slice %177 {offsets = [0, 0], sizes = [1, 128], strides = [1, 1]} : vector<1x512xf32> to vector<1x128xf32>
    %179 = arith.negf %178 : vector<1x128xf32>
    %180 = math.exp %179 : vector<1x128xf32>
    %cst_73 = arith.constant 1.000000e+00 : f32
    %181 = vector.broadcast %cst_73 : f32 to vector<1x128xf32>
    %182 = arith.addf %181, %180 : vector<1x128xf32>
    %183 = arith.divf %181, %182 : vector<1x128xf32>
    %184 = vector.extract_strided_slice %177 {offsets = [0, 128], sizes = [1, 128], strides = [1, 1]} : vector<1x512xf32> to vector<1x128xf32>
    %185 = arith.negf %184 : vector<1x128xf32>
    %186 = math.exp %185 : vector<1x128xf32>
    %cst_74 = arith.constant 1.000000e+00 : f32
    %187 = vector.broadcast %cst_74 : f32 to vector<1x128xf32>
    %188 = arith.addf %187, %186 : vector<1x128xf32>
    %189 = arith.divf %187, %188 : vector<1x128xf32>
    %190 = vector.extract_strided_slice %177 {offsets = [0, 256], sizes = [1, 128], strides = [1, 1]} : vector<1x512xf32> to vector<1x128xf32>
    %191 = math.tanh %190 : vector<1x128xf32>
    %192 = vector.extract_strided_slice %177 {offsets = [0, 384], sizes = [1, 128], strides = [1, 1]} : vector<1x512xf32> to vector<1x128xf32>
    %193 = arith.negf %192 : vector<1x128xf32>
    %194 = math.exp %193 : vector<1x128xf32>
    %cst_75 = arith.constant 1.000000e+00 : f32
    %195 = vector.broadcast %cst_75 : f32 to vector<1x128xf32>
    %196 = arith.addf %195, %194 : vector<1x128xf32>
    %197 = arith.divf %195, %196 : vector<1x128xf32>
    %198 = arith.mulf %189, %170 : vector<1x128xf32>
    %199 = arith.mulf %183, %191 : vector<1x128xf32>
    %200 = arith.addf %198, %199 : vector<1x128xf32>
    %201 = math.tanh %200 : vector<1x128xf32>
    %202 = arith.mulf %197, %201 : vector<1x128xf32>
    %c5_76 = arith.constant 5 : index
    %c0_77 = arith.constant 0 : index
    %203 = vector.load %arg13[%c5_76, %c0_77] : memref<32x128xf32, #tpu.memory_space<vmem>>, vector<1x128xf32>
    tpu.vector_store %arg13[%c5_76, %c0_77], %202 {strides = array<i32>} : memref<32x128xf32, #tpu.memory_space<vmem>>, vector<1x128xf32>,
    %c6 = arith.constant 6 : index
    %c0_78 = arith.constant 0 : index
    %204 = vector.load %arg12[%c6, %c0_78] : memref<32x512xf32, #tpu.memory_space<vmem>>, vector<1x512xf32>
    %c0_79 = arith.constant 0 : index
    %c0_80 = arith.constant 0 : index
    %205 = vector.load %arg7[%c0_79, %c0_80] : memref<128x512xf32, #tpu.memory_space<vmem>>, vector<128x512xf32>
    %cst_81 = arith.constant dense<0.000000e+00> : vector<1x512xf32>
    %206 = tpu.matmul %202, %205, %cst_81 {dimension_numbers = #tpu.dot_dimension_numbers<[1], [0], [0], [1], [0, 0, 1, 1], [], []>} : vector<1x128xf32>, vector<128x512xf32>, vector<1x512xf32> -> vector<1x512xf32>
    %207 = arith.addf %204, %206 : vector<1x512xf32>
    %208 = vector.extract_strided_slice %207 {offsets = [0, 0], sizes = [1, 128], strides = [1, 1]} : vector<1x512xf32> to vector<1x128xf32>
    %209 = arith.negf %208 : vector<1x128xf32>
    %210 = math.exp %209 : vector<1x128xf32>
    %cst_82 = arith.constant 1.000000e+00 : f32
    %211 = vector.broadcast %cst_82 : f32 to vector<1x128xf32>
    %212 = arith.addf %211, %210 : vector<1x128xf32>
    %213 = arith.divf %211, %212 : vector<1x128xf32>
    %214 = vector.extract_strided_slice %207 {offsets = [0, 128], sizes = [1, 128], strides = [1, 1]} : vector<1x512xf32> to vector<1x128xf32>
    %215 = arith.negf %214 : vector<1x128xf32>
    %216 = math.exp %215 : vector<1x128xf32>
    %cst_83 = arith.constant 1.000000e+00 : f32
    %217 = vector.broadcast %cst_83 : f32 to vector<1x128xf32>
    %218 = arith.addf %217, %216 : vector<1x128xf32>
    %219 = arith.divf %217, %218 : vector<1x128xf32>
    %220 = vector.extract_strided_slice %207 {offsets = [0, 256], sizes = [1, 128], strides = [1, 1]} : vector<1x512xf32> to vector<1x128xf32>
    %221 = math.tanh %220 : vector<1x128xf32>
    %222 = vector.extract_strided_slice %207 {offsets = [0, 384], sizes = [1, 128], strides = [1, 1]} : vector<1x512xf32> to vector<1x128xf32>
    %223 = arith.negf %222 : vector<1x128xf32>
    %224 = math.exp %223 : vector<1x128xf32>
    %cst_84 = arith.constant 1.000000e+00 : f32
    %225 = vector.broadcast %cst_84 : f32 to vector<1x128xf32>
    %226 = arith.addf %225, %224 : vector<1x128xf32>
    %227 = arith.divf %225, %226 : vector<1x128xf32>
    %228 = arith.mulf %219, %200 : vector<1x128xf32>
    %229 = arith.mulf %213, %221 : vector<1x128xf32>
    %230 = arith.addf %228, %229 : vector<1x128xf32>
    %231 = math.tanh %230 : vector<1x128xf32>
    %232 = arith.mulf %227, %231 : vector<1x128xf32>
    %c6_85 = arith.constant 6 : index
    %c0_86 = arith.constant 0 : index
    %233 = vector.load %arg13[%c6_85, %c0_86] : memref<32x128xf32, #tpu.memory_space<vmem>>, vector<1x128xf32>
    tpu.vector_store %arg13[%c6_85, %c0_86], %232 {strides = array<i32>} : memref<32x128xf32, #tpu.memory_space<vmem>>, vector<1x128xf32>,
    %c7 = arith.constant 7 : index
    %c0_87 = arith.constant 0 : index
    %234 = vector.load %arg12[%c7, %c0_87] : memref<32x512xf32, #tpu.memory_space<vmem>>, vector<1x512xf32>
    %c0_88 = arith.constant 0 : index
    %c0_89 = arith.constant 0 : index
    %235 = vector.load %arg7[%c0_88, %c0_89] : memref<128x512xf32, #tpu.memory_space<vmem>>, vector<128x512xf32>
    %cst_90 = arith.constant dense<0.000000e+00> : vector<1x512xf32>
    %236 = tpu.matmul %232, %235, %cst_90 {dimension_numbers = #tpu.dot_dimension_numbers<[1], [0], [0], [1], [0, 0, 1, 1], [], []>} : vector<1x128xf32>, vector<128x512xf32>, vector<1x512xf32> -> vector<1x512xf32>
    %237 = arith.addf %234, %236 : vector<1x512xf32>
    %238 = vector.extract_strided_slice %237 {offsets = [0, 0], sizes = [1, 128], strides = [1, 1]} : vector<1x512xf32> to vector<1x128xf32>
    %239 = arith.negf %238 : vector<1x128xf32>
    %240 = math.exp %239 : vector<1x128xf32>
    %cst_91 = arith.constant 1.000000e+00 : f32
    %241 = vector.broadcast %cst_91 : f32 to vector<1x128xf32>
    %242 = arith.addf %241, %240 : vector<1x128xf32>
    %243 = arith.divf %241, %242 : vector<1x128xf32>
    %244 = vector.extract_strided_slice %237 {offsets = [0, 128], sizes = [1, 128], strides = [1, 1]} : vector<1x512xf32> to vector<1x128xf32>
    %245 = arith.negf %244 : vector<1x128xf32>
    %246 = math.exp %245 : vector<1x128xf32>
    %cst_92 = arith.constant 1.000000e+00 : f32
    %247 = vector.broadcast %cst_92 : f32 to vector<1x128xf32>
    %248 = arith.addf %247, %246 : vector<1x128xf32>
    %249 = arith.divf %247, %248 : vector<1x128xf32>
    %250 = vector.extract_strided_slice %237 {offsets = [0, 256], sizes = [1, 128], strides = [1, 1]} : vector<1x512xf32> to vector<1x128xf32>
    %251 = math.tanh %250 : vector<1x128xf32>
    %252 = vector.extract_strided_slice %237 {offsets = [0, 384], sizes = [1, 128], strides = [1, 1]} : vector<1x512xf32> to vector<1x128xf32>
    %253 = arith.negf %252 : vector<1x128xf32>
    %254 = math.exp %253 : vector<1x128xf32>
    %cst_93 = arith.constant 1.000000e+00 : f32
    %255 = vector.broadcast %cst_93 : f32 to vector<1x128xf32>
    %256 = arith.addf %255, %254 : vector<1x128xf32>
    %257 = arith.divf %255, %256 : vector<1x128xf32>
    %258 = arith.mulf %249, %230 : vector<1x128xf32>
    %259 = arith.mulf %243, %251 : vector<1x128xf32>
    %260 = arith.addf %258, %259 : vector<1x128xf32>
    %261 = math.tanh %260 : vector<1x128xf32>
    %262 = arith.mulf %257, %261 : vector<1x128xf32>
    %c7_94 = arith.constant 7 : index
    %c0_95 = arith.constant 0 : index
    %263 = vector.load %arg13[%c7_94, %c0_95] : memref<32x128xf32, #tpu.memory_space<vmem>>, vector<1x128xf32>
    tpu.vector_store %arg13[%c7_94, %c0_95], %262 {strides = array<i32>} : memref<32x128xf32, #tpu.memory_space<vmem>>, vector<1x128xf32>,
    %c8 = arith.constant 8 : index
    %c0_96 = arith.constant 0 : index
    %264 = vector.load %arg12[%c8, %c0_96] : memref<32x512xf32, #tpu.memory_space<vmem>>, vector<1x512xf32>
    %c0_97 = arith.constant 0 : index
    %c0_98 = arith.constant 0 : index
    %265 = vector.load %arg7[%c0_97, %c0_98] : memref<128x512xf32, #tpu.memory_space<vmem>>, vector<128x512xf32>
    %cst_99 = arith.constant dense<0.000000e+00> : vector<1x512xf32>
    %266 = tpu.matmul %262, %265, %cst_99 {dimension_numbers = #tpu.dot_dimension_numbers<[1], [0], [0], [1], [0, 0, 1, 1], [], []>} : vector<1x128xf32>, vector<128x512xf32>, vector<1x512xf32> -> vector<1x512xf32>
    %267 = arith.addf %264, %266 : vector<1x512xf32>
    %268 = vector.extract_strided_slice %267 {offsets = [0, 0], sizes = [1, 128], strides = [1, 1]} : vector<1x512xf32> to vector<1x128xf32>
    %269 = arith.negf %268 : vector<1x128xf32>
    %270 = math.exp %269 : vector<1x128xf32>
    %cst_100 = arith.constant 1.000000e+00 : f32
    %271 = vector.broadcast %cst_100 : f32 to vector<1x128xf32>
    %272 = arith.addf %271, %270 : vector<1x128xf32>
    %273 = arith.divf %271, %272 : vector<1x128xf32>
    %274 = vector.extract_strided_slice %267 {offsets = [0, 128], sizes = [1, 128], strides = [1, 1]} : vector<1x512xf32> to vector<1x128xf32>
    %275 = arith.negf %274 : vector<1x128xf32>
    %276 = math.exp %275 : vector<1x128xf32>
    %cst_101 = arith.constant 1.000000e+00 : f32
    %277 = vector.broadcast %cst_101 : f32 to vector<1x128xf32>
    %278 = arith.addf %277, %276 : vector<1x128xf32>
    %279 = arith.divf %277, %278 : vector<1x128xf32>
    %280 = vector.extract_strided_slice %267 {offsets = [0, 256], sizes = [1, 128], strides = [1, 1]} : vector<1x512xf32> to vector<1x128xf32>
    %281 = math.tanh %280 : vector<1x128xf32>
    %282 = vector.extract_strided_slice %267 {offsets = [0, 384], sizes = [1, 128], strides = [1, 1]} : vector<1x512xf32> to vector<1x128xf32>
    %283 = arith.negf %282 : vector<1x128xf32>
    %284 = math.exp %283 : vector<1x128xf32>
    %cst_102 = arith.constant 1.000000e+00 : f32
    %285 = vector.broadcast %cst_102 : f32 to vector<1x128xf32>
    %286 = arith.addf %285, %284 : vector<1x128xf32>
    %287 = arith.divf %285, %286 : vector<1x128xf32>
    %288 = arith.mulf %279, %260 : vector<1x128xf32>
    %289 = arith.mulf %273, %281 : vector<1x128xf32>
    %290 = arith.addf %288, %289 : vector<1x128xf32>
    %291 = math.tanh %290 : vector<1x128xf32>
    %292 = arith.mulf %287, %291 : vector<1x128xf32>
    %c8_103 = arith.constant 8 : index
    %c0_104 = arith.constant 0 : index
    %293 = vector.load %arg13[%c8_103, %c0_104] : memref<32x128xf32, #tpu.memory_space<vmem>>, vector<1x128xf32>
    tpu.vector_store %arg13[%c8_103, %c0_104], %292 {strides = array<i32>} : memref<32x128xf32, #tpu.memory_space<vmem>>, vector<1x128xf32>,
    %c9 = arith.constant 9 : index
    %c0_105 = arith.constant 0 : index
    %294 = vector.load %arg12[%c9, %c0_105] : memref<32x512xf32, #tpu.memory_space<vmem>>, vector<1x512xf32>
    %c0_106 = arith.constant 0 : index
    %c0_107 = arith.constant 0 : index
    %295 = vector.load %arg7[%c0_106, %c0_107] : memref<128x512xf32, #tpu.memory_space<vmem>>, vector<128x512xf32>
    %cst_108 = arith.constant dense<0.000000e+00> : vector<1x512xf32>
    %296 = tpu.matmul %292, %295, %cst_108 {dimension_numbers = #tpu.dot_dimension_numbers<[1], [0], [0], [1], [0, 0, 1, 1], [], []>} : vector<1x128xf32>, vector<128x512xf32>, vector<1x512xf32> -> vector<1x512xf32>
    %297 = arith.addf %294, %296 : vector<1x512xf32>
    %298 = vector.extract_strided_slice %297 {offsets = [0, 0], sizes = [1, 128], strides = [1, 1]} : vector<1x512xf32> to vector<1x128xf32>
    %299 = arith.negf %298 : vector<1x128xf32>
    %300 = math.exp %299 : vector<1x128xf32>
    %cst_109 = arith.constant 1.000000e+00 : f32
    %301 = vector.broadcast %cst_109 : f32 to vector<1x128xf32>
    %302 = arith.addf %301, %300 : vector<1x128xf32>
    %303 = arith.divf %301, %302 : vector<1x128xf32>
    %304 = vector.extract_strided_slice %297 {offsets = [0, 128], sizes = [1, 128], strides = [1, 1]} : vector<1x512xf32> to vector<1x128xf32>
    %305 = arith.negf %304 : vector<1x128xf32>
    %306 = math.exp %305 : vector<1x128xf32>
    %cst_110 = arith.constant 1.000000e+00 : f32
    %307 = vector.broadcast %cst_110 : f32 to vector<1x128xf32>
    %308 = arith.addf %307, %306 : vector<1x128xf32>
    %309 = arith.divf %307, %308 : vector<1x128xf32>
    %310 = vector.extract_strided_slice %297 {offsets = [0, 256], sizes = [1, 128], strides = [1, 1]} : vector<1x512xf32> to vector<1x128xf32>
    %311 = math.tanh %310 : vector<1x128xf32>
    %312 = vector.extract_strided_slice %297 {offsets = [0, 384], sizes = [1, 128], strides = [1, 1]} : vector<1x512xf32> to vector<1x128xf32>
    %313 = arith.negf %312 : vector<1x128xf32>
    %314 = math.exp %313 : vector<1x128xf32>
    %cst_111 = arith.constant 1.000000e+00 : f32
    %315 = vector.broadcast %cst_111 : f32 to vector<1x128xf32>
    %316 = arith.addf %315, %314 : vector<1x128xf32>
    %317 = arith.divf %315, %316 : vector<1x128xf32>
    %318 = arith.mulf %309, %290 : vector<1x128xf32>
    %319 = arith.mulf %303, %311 : vector<1x128xf32>
    %320 = arith.addf %318, %319 : vector<1x128xf32>
    %321 = math.tanh %320 : vector<1x128xf32>
    %322 = arith.mulf %317, %321 : vector<1x128xf32>
    %c9_112 = arith.constant 9 : index
    %c0_113 = arith.constant 0 : index
    %323 = vector.load %arg13[%c9_112, %c0_113] : memref<32x128xf32, #tpu.memory_space<vmem>>, vector<1x128xf32>
    tpu.vector_store %arg13[%c9_112, %c0_113], %322 {strides = array<i32>} : memref<32x128xf32, #tpu.memory_space<vmem>>, vector<1x128xf32>,
    %c10 = arith.constant 10 : index
    %c0_114 = arith.constant 0 : index
    %324 = vector.load %arg12[%c10, %c0_114] : memref<32x512xf32, #tpu.memory_space<vmem>>, vector<1x512xf32>
    %c0_115 = arith.constant 0 : index
    %c0_116 = arith.constant 0 : index
    %325 = vector.load %arg7[%c0_115, %c0_116] : memref<128x512xf32, #tpu.memory_space<vmem>>, vector<128x512xf32>
    %cst_117 = arith.constant dense<0.000000e+00> : vector<1x512xf32>
    %326 = tpu.matmul %322, %325, %cst_117 {dimension_numbers = #tpu.dot_dimension_numbers<[1], [0], [0], [1], [0, 0, 1, 1], [], []>} : vector<1x128xf32>, vector<128x512xf32>, vector<1x512xf32> -> vector<1x512xf32>
    %327 = arith.addf %324, %326 : vector<1x512xf32>
    %328 = vector.extract_strided_slice %327 {offsets = [0, 0], sizes = [1, 128], strides = [1, 1]} : vector<1x512xf32> to vector<1x128xf32>
    %329 = arith.negf %328 : vector<1x128xf32>
    %330 = math.exp %329 : vector<1x128xf32>
    %cst_118 = arith.constant 1.000000e+00 : f32
    %331 = vector.broadcast %cst_118 : f32 to vector<1x128xf32>
    %332 = arith.addf %331, %330 : vector<1x128xf32>
    %333 = arith.divf %331, %332 : vector<1x128xf32>
    %334 = vector.extract_strided_slice %327 {offsets = [0, 128], sizes = [1, 128], strides = [1, 1]} : vector<1x512xf32> to vector<1x128xf32>
    %335 = arith.negf %334 : vector<1x128xf32>
    %336 = math.exp %335 : vector<1x128xf32>
    %cst_119 = arith.constant 1.000000e+00 : f32
    %337 = vector.broadcast %cst_119 : f32 to vector<1x128xf32>
    %338 = arith.addf %337, %336 : vector<1x128xf32>
    %339 = arith.divf %337, %338 : vector<1x128xf32>
    %340 = vector.extract_strided_slice %327 {offsets = [0, 256], sizes = [1, 128], strides = [1, 1]} : vector<1x512xf32> to vector<1x128xf32>
    %341 = math.tanh %340 : vector<1x128xf32>
    %342 = vector.extract_strided_slice %327 {offsets = [0, 384], sizes = [1, 128], strides = [1, 1]} : vector<1x512xf32> to vector<1x128xf32>
    %343 = arith.negf %342 : vector<1x128xf32>
    %344 = math.exp %343 : vector<1x128xf32>
    %cst_120 = arith.constant 1.000000e+00 : f32
    %345 = vector.broadcast %cst_120 : f32 to vector<1x128xf32>
    %346 = arith.addf %345, %344 : vector<1x128xf32>
    %347 = arith.divf %345, %346 : vector<1x128xf32>
    %348 = arith.mulf %339, %320 : vector<1x128xf32>
    %349 = arith.mulf %333, %341 : vector<1x128xf32>
    %350 = arith.addf %348, %349 : vector<1x128xf32>
    %351 = math.tanh %350 : vector<1x128xf32>
    %352 = arith.mulf %347, %351 : vector<1x128xf32>
    %c10_121 = arith.constant 10 : index
    %c0_122 = arith.constant 0 : index
    %353 = vector.load %arg13[%c10_121, %c0_122] : memref<32x128xf32, #tpu.memory_space<vmem>>, vector<1x128xf32>
    tpu.vector_store %arg13[%c10_121, %c0_122], %352 {strides = array<i32>} : memref<32x128xf32, #tpu.memory_space<vmem>>, vector<1x128xf32>,
    %c11 = arith.constant 11 : index
    %c0_123 = arith.constant 0 : index
    %354 = vector.load %arg12[%c11, %c0_123] : memref<32x512xf32, #tpu.memory_space<vmem>>, vector<1x512xf32>
    %c0_124 = arith.constant 0 : index
    %c0_125 = arith.constant 0 : index
    %355 = vector.load %arg7[%c0_124, %c0_125] : memref<128x512xf32, #tpu.memory_space<vmem>>, vector<128x512xf32>
    %cst_126 = arith.constant dense<0.000000e+00> : vector<1x512xf32>
    %356 = tpu.matmul %352, %355, %cst_126 {dimension_numbers = #tpu.dot_dimension_numbers<[1], [0], [0], [1], [0, 0, 1, 1], [], []>} : vector<1x128xf32>, vector<128x512xf32>, vector<1x512xf32> -> vector<1x512xf32>
    %357 = arith.addf %354, %356 : vector<1x512xf32>
    %358 = vector.extract_strided_slice %357 {offsets = [0, 0], sizes = [1, 128], strides = [1, 1]} : vector<1x512xf32> to vector<1x128xf32>
    %359 = arith.negf %358 : vector<1x128xf32>
    %360 = math.exp %359 : vector<1x128xf32>
    %cst_127 = arith.constant 1.000000e+00 : f32
    %361 = vector.broadcast %cst_127 : f32 to vector<1x128xf32>
    %362 = arith.addf %361, %360 : vector<1x128xf32>
    %363 = arith.divf %361, %362 : vector<1x128xf32>
    %364 = vector.extract_strided_slice %357 {offsets = [0, 128], sizes = [1, 128], strides = [1, 1]} : vector<1x512xf32> to vector<1x128xf32>
    %365 = arith.negf %364 : vector<1x128xf32>
    %366 = math.exp %365 : vector<1x128xf32>
    %cst_128 = arith.constant 1.000000e+00 : f32
    %367 = vector.broadcast %cst_128 : f32 to vector<1x128xf32>
    %368 = arith.addf %367, %366 : vector<1x128xf32>
    %369 = arith.divf %367, %368 : vector<1x128xf32>
    %370 = vector.extract_strided_slice %357 {offsets = [0, 256], sizes = [1, 128], strides = [1, 1]} : vector<1x512xf32> to vector<1x128xf32>
    %371 = math.tanh %370 : vector<1x128xf32>
    %372 = vector.extract_strided_slice %357 {offsets = [0, 384], sizes = [1, 128], strides = [1, 1]} : vector<1x512xf32> to vector<1x128xf32>
    %373 = arith.negf %372 : vector<1x128xf32>
    %374 = math.exp %373 : vector<1x128xf32>
    %cst_129 = arith.constant 1.000000e+00 : f32
    %375 = vector.broadcast %cst_129 : f32 to vector<1x128xf32>
    %376 = arith.addf %375, %374 : vector<1x128xf32>
    %377 = arith.divf %375, %376 : vector<1x128xf32>
    %378 = arith.mulf %369, %350 : vector<1x128xf32>
    %379 = arith.mulf %363, %371 : vector<1x128xf32>
    %380 = arith.addf %378, %379 : vector<1x128xf32>
    %381 = math.tanh %380 : vector<1x128xf32>
    %382 = arith.mulf %377, %381 : vector<1x128xf32>
    %c11_130 = arith.constant 11 : index
    %c0_131 = arith.constant 0 : index
    %383 = vector.load %arg13[%c11_130, %c0_131] : memref<32x128xf32, #tpu.memory_space<vmem>>, vector<1x128xf32>
    tpu.vector_store %arg13[%c11_130, %c0_131], %382 {strides = array<i32>} : memref<32x128xf32, #tpu.memory_space<vmem>>, vector<1x128xf32>,
    %c12 = arith.constant 12 : index
    %c0_132 = arith.constant 0 : index
    %384 = vector.load %arg12[%c12, %c0_132] : memref<32x512xf32, #tpu.memory_space<vmem>>, vector<1x512xf32>
    %c0_133 = arith.constant 0 : index
    %c0_134 = arith.constant 0 : index
    %385 = vector.load %arg7[%c0_133, %c0_134] : memref<128x512xf32, #tpu.memory_space<vmem>>, vector<128x512xf32>
    %cst_135 = arith.constant dense<0.000000e+00> : vector<1x512xf32>
    %386 = tpu.matmul %382, %385, %cst_135 {dimension_numbers = #tpu.dot_dimension_numbers<[1], [0], [0], [1], [0, 0, 1, 1], [], []>} : vector<1x128xf32>, vector<128x512xf32>, vector<1x512xf32> -> vector<1x512xf32>
    %387 = arith.addf %384, %386 : vector<1x512xf32>
    %388 = vector.extract_strided_slice %387 {offsets = [0, 0], sizes = [1, 128], strides = [1, 1]} : vector<1x512xf32> to vector<1x128xf32>
    %389 = arith.negf %388 : vector<1x128xf32>
    %390 = math.exp %389 : vector<1x128xf32>
    %cst_136 = arith.constant 1.000000e+00 : f32
    %391 = vector.broadcast %cst_136 : f32 to vector<1x128xf32>
    %392 = arith.addf %391, %390 : vector<1x128xf32>
    %393 = arith.divf %391, %392 : vector<1x128xf32>
    %394 = vector.extract_strided_slice %387 {offsets = [0, 128], sizes = [1, 128], strides = [1, 1]} : vector<1x512xf32> to vector<1x128xf32>
    %395 = arith.negf %394 : vector<1x128xf32>
    %396 = math.exp %395 : vector<1x128xf32>
    %cst_137 = arith.constant 1.000000e+00 : f32
    %397 = vector.broadcast %cst_137 : f32 to vector<1x128xf32>
    %398 = arith.addf %397, %396 : vector<1x128xf32>
    %399 = arith.divf %397, %398 : vector<1x128xf32>
    %400 = vector.extract_strided_slice %387 {offsets = [0, 256], sizes = [1, 128], strides = [1, 1]} : vector<1x512xf32> to vector<1x128xf32>
    %401 = math.tanh %400 : vector<1x128xf32>
    %402 = vector.extract_strided_slice %387 {offsets = [0, 384], sizes = [1, 128], strides = [1, 1]} : vector<1x512xf32> to vector<1x128xf32>
    %403 = arith.negf %402 : vector<1x128xf32>
    %404 = math.exp %403 : vector<1x128xf32>
    %cst_138 = arith.constant 1.000000e+00 : f32
    %405 = vector.broadcast %cst_138 : f32 to vector<1x128xf32>
    %406 = arith.addf %405, %404 : vector<1x128xf32>
    %407 = arith.divf %405, %406 : vector<1x128xf32>
    %408 = arith.mulf %399, %380 : vector<1x128xf32>
    %409 = arith.mulf %393, %401 : vector<1x128xf32>
    %410 = arith.addf %408, %409 : vector<1x128xf32>
    %411 = math.tanh %410 : vector<1x128xf32>
    %412 = arith.mulf %407, %411 : vector<1x128xf32>
    %c12_139 = arith.constant 12 : index
    %c0_140 = arith.constant 0 : index
    %413 = vector.load %arg13[%c12_139, %c0_140] : memref<32x128xf32, #tpu.memory_space<vmem>>, vector<1x128xf32>
    tpu.vector_store %arg13[%c12_139, %c0_140], %412 {strides = array<i32>} : memref<32x128xf32, #tpu.memory_space<vmem>>, vector<1x128xf32>,
    %c13 = arith.constant 13 : index
    %c0_141 = arith.constant 0 : index
    %414 = vector.load %arg12[%c13, %c0_141] : memref<32x512xf32, #tpu.memory_space<vmem>>, vector<1x512xf32>
    %c0_142 = arith.constant 0 : index
    %c0_143 = arith.constant 0 : index
    %415 = vector.load %arg7[%c0_142, %c0_143] : memref<128x512xf32, #tpu.memory_space<vmem>>, vector<128x512xf32>
    %cst_144 = arith.constant dense<0.000000e+00> : vector<1x512xf32>
    %416 = tpu.matmul %412, %415, %cst_144 {dimension_numbers = #tpu.dot_dimension_numbers<[1], [0], [0], [1], [0, 0, 1, 1], [], []>} : vector<1x128xf32>, vector<128x512xf32>, vector<1x512xf32> -> vector<1x512xf32>
    %417 = arith.addf %414, %416 : vector<1x512xf32>
    %418 = vector.extract_strided_slice %417 {offsets = [0, 0], sizes = [1, 128], strides = [1, 1]} : vector<1x512xf32> to vector<1x128xf32>
    %419 = arith.negf %418 : vector<1x128xf32>
    %420 = math.exp %419 : vector<1x128xf32>
    %cst_145 = arith.constant 1.000000e+00 : f32
    %421 = vector.broadcast %cst_145 : f32 to vector<1x128xf32>
    %422 = arith.addf %421, %420 : vector<1x128xf32>
    %423 = arith.divf %421, %422 : vector<1x128xf32>
    %424 = vector.extract_strided_slice %417 {offsets = [0, 128], sizes = [1, 128], strides = [1, 1]} : vector<1x512xf32> to vector<1x128xf32>
    %425 = arith.negf %424 : vector<1x128xf32>
    %426 = math.exp %425 : vector<1x128xf32>
    %cst_146 = arith.constant 1.000000e+00 : f32
    %427 = vector.broadcast %cst_146 : f32 to vector<1x128xf32>
    %428 = arith.addf %427, %426 : vector<1x128xf32>
    %429 = arith.divf %427, %428 : vector<1x128xf32>
    %430 = vector.extract_strided_slice %417 {offsets = [0, 256], sizes = [1, 128], strides = [1, 1]} : vector<1x512xf32> to vector<1x128xf32>
    %431 = math.tanh %430 : vector<1x128xf32>
    %432 = vector.extract_strided_slice %417 {offsets = [0, 384], sizes = [1, 128], strides = [1, 1]} : vector<1x512xf32> to vector<1x128xf32>
    %433 = arith.negf %432 : vector<1x128xf32>
    %434 = math.exp %433 : vector<1x128xf32>
    %cst_147 = arith.constant 1.000000e+00 : f32
    %435 = vector.broadcast %cst_147 : f32 to vector<1x128xf32>
    %436 = arith.addf %435, %434 : vector<1x128xf32>
    %437 = arith.divf %435, %436 : vector<1x128xf32>
    %438 = arith.mulf %429, %410 : vector<1x128xf32>
    %439 = arith.mulf %423, %431 : vector<1x128xf32>
    %440 = arith.addf %438, %439 : vector<1x128xf32>
    %441 = math.tanh %440 : vector<1x128xf32>
    %442 = arith.mulf %437, %441 : vector<1x128xf32>
    %c13_148 = arith.constant 13 : index
    %c0_149 = arith.constant 0 : index
    %443 = vector.load %arg13[%c13_148, %c0_149] : memref<32x128xf32, #tpu.memory_space<vmem>>, vector<1x128xf32>
    tpu.vector_store %arg13[%c13_148, %c0_149], %442 {strides = array<i32>} : memref<32x128xf32, #tpu.memory_space<vmem>>, vector<1x128xf32>,
    %c14 = arith.constant 14 : index
    %c0_150 = arith.constant 0 : index
    %444 = vector.load %arg12[%c14, %c0_150] : memref<32x512xf32, #tpu.memory_space<vmem>>, vector<1x512xf32>
    %c0_151 = arith.constant 0 : index
    %c0_152 = arith.constant 0 : index
    %445 = vector.load %arg7[%c0_151, %c0_152] : memref<128x512xf32, #tpu.memory_space<vmem>>, vector<128x512xf32>
    %cst_153 = arith.constant dense<0.000000e+00> : vector<1x512xf32>
    %446 = tpu.matmul %442, %445, %cst_153 {dimension_numbers = #tpu.dot_dimension_numbers<[1], [0], [0], [1], [0, 0, 1, 1], [], []>} : vector<1x128xf32>, vector<128x512xf32>, vector<1x512xf32> -> vector<1x512xf32>
    %447 = arith.addf %444, %446 : vector<1x512xf32>
    %448 = vector.extract_strided_slice %447 {offsets = [0, 0], sizes = [1, 128], strides = [1, 1]} : vector<1x512xf32> to vector<1x128xf32>
    %449 = arith.negf %448 : vector<1x128xf32>
    %450 = math.exp %449 : vector<1x128xf32>
    %cst_154 = arith.constant 1.000000e+00 : f32
    %451 = vector.broadcast %cst_154 : f32 to vector<1x128xf32>
    %452 = arith.addf %451, %450 : vector<1x128xf32>
    %453 = arith.divf %451, %452 : vector<1x128xf32>
    %454 = vector.extract_strided_slice %447 {offsets = [0, 128], sizes = [1, 128], strides = [1, 1]} : vector<1x512xf32> to vector<1x128xf32>
    %455 = arith.negf %454 : vector<1x128xf32>
    %456 = math.exp %455 : vector<1x128xf32>
    %cst_155 = arith.constant 1.000000e+00 : f32
    %457 = vector.broadcast %cst_155 : f32 to vector<1x128xf32>
    %458 = arith.addf %457, %456 : vector<1x128xf32>
    %459 = arith.divf %457, %458 : vector<1x128xf32>
    %460 = vector.extract_strided_slice %447 {offsets = [0, 256], sizes = [1, 128], strides = [1, 1]} : vector<1x512xf32> to vector<1x128xf32>
    %461 = math.tanh %460 : vector<1x128xf32>
    %462 = vector.extract_strided_slice %447 {offsets = [0, 384], sizes = [1, 128], strides = [1, 1]} : vector<1x512xf32> to vector<1x128xf32>
    %463 = arith.negf %462 : vector<1x128xf32>
    %464 = math.exp %463 : vector<1x128xf32>
    %cst_156 = arith.constant 1.000000e+00 : f32
    %465 = vector.broadcast %cst_156 : f32 to vector<1x128xf32>
    %466 = arith.addf %465, %464 : vector<1x128xf32>
    %467 = arith.divf %465, %466 : vector<1x128xf32>
    %468 = arith.mulf %459, %440 : vector<1x128xf32>
    %469 = arith.mulf %453, %461 : vector<1x128xf32>
    %470 = arith.addf %468, %469 : vector<1x128xf32>
    %471 = math.tanh %470 : vector<1x128xf32>
    %472 = arith.mulf %467, %471 : vector<1x128xf32>
    %c14_157 = arith.constant 14 : index
    %c0_158 = arith.constant 0 : index
    %473 = vector.load %arg13[%c14_157, %c0_158] : memref<32x128xf32, #tpu.memory_space<vmem>>, vector<1x128xf32>
    tpu.vector_store %arg13[%c14_157, %c0_158], %472 {strides = array<i32>} : memref<32x128xf32, #tpu.memory_space<vmem>>, vector<1x128xf32>,
    %c15 = arith.constant 15 : index
    %c0_159 = arith.constant 0 : index
    %474 = vector.load %arg12[%c15, %c0_159] : memref<32x512xf32, #tpu.memory_space<vmem>>, vector<1x512xf32>
    %c0_160 = arith.constant 0 : index
    %c0_161 = arith.constant 0 : index
    %475 = vector.load %arg7[%c0_160, %c0_161] : memref<128x512xf32, #tpu.memory_space<vmem>>, vector<128x512xf32>
    %cst_162 = arith.constant dense<0.000000e+00> : vector<1x512xf32>
    %476 = tpu.matmul %472, %475, %cst_162 {dimension_numbers = #tpu.dot_dimension_numbers<[1], [0], [0], [1], [0, 0, 1, 1], [], []>} : vector<1x128xf32>, vector<128x512xf32>, vector<1x512xf32> -> vector<1x512xf32>
    %477 = arith.addf %474, %476 : vector<1x512xf32>
    %478 = vector.extract_strided_slice %477 {offsets = [0, 0], sizes = [1, 128], strides = [1, 1]} : vector<1x512xf32> to vector<1x128xf32>
    %479 = arith.negf %478 : vector<1x128xf32>
    %480 = math.exp %479 : vector<1x128xf32>
    %cst_163 = arith.constant 1.000000e+00 : f32
    %481 = vector.broadcast %cst_163 : f32 to vector<1x128xf32>
    %482 = arith.addf %481, %480 : vector<1x128xf32>
    %483 = arith.divf %481, %482 : vector<1x128xf32>
    %484 = vector.extract_strided_slice %477 {offsets = [0, 128], sizes = [1, 128], strides = [1, 1]} : vector<1x512xf32> to vector<1x128xf32>
    %485 = arith.negf %484 : vector<1x128xf32>
    %486 = math.exp %485 : vector<1x128xf32>
    %cst_164 = arith.constant 1.000000e+00 : f32
    %487 = vector.broadcast %cst_164 : f32 to vector<1x128xf32>
    %488 = arith.addf %487, %486 : vector<1x128xf32>
    %489 = arith.divf %487, %488 : vector<1x128xf32>
    %490 = vector.extract_strided_slice %477 {offsets = [0, 256], sizes = [1, 128], strides = [1, 1]} : vector<1x512xf32> to vector<1x128xf32>
    %491 = math.tanh %490 : vector<1x128xf32>
    %492 = vector.extract_strided_slice %477 {offsets = [0, 384], sizes = [1, 128], strides = [1, 1]} : vector<1x512xf32> to vector<1x128xf32>
    %493 = arith.negf %492 : vector<1x128xf32>
    %494 = math.exp %493 : vector<1x128xf32>
    %cst_165 = arith.constant 1.000000e+00 : f32
    %495 = vector.broadcast %cst_165 : f32 to vector<1x128xf32>
    %496 = arith.addf %495, %494 : vector<1x128xf32>
    %497 = arith.divf %495, %496 : vector<1x128xf32>
    %498 = arith.mulf %489, %470 : vector<1x128xf32>
    %499 = arith.mulf %483, %491 : vector<1x128xf32>
    %500 = arith.addf %498, %499 : vector<1x128xf32>
    %501 = math.tanh %500 : vector<1x128xf32>
    %502 = arith.mulf %497, %501 : vector<1x128xf32>
    %c15_166 = arith.constant 15 : index
    %c0_167 = arith.constant 0 : index
    %503 = vector.load %arg13[%c15_166, %c0_167] : memref<32x128xf32, #tpu.memory_space<vmem>>, vector<1x128xf32>
    tpu.vector_store %arg13[%c15_166, %c0_167], %502 {strides = array<i32>} : memref<32x128xf32, #tpu.memory_space<vmem>>, vector<1x128xf32>,
    %c16 = arith.constant 16 : index
    %c0_168 = arith.constant 0 : index
    %504 = vector.load %arg12[%c16, %c0_168] : memref<32x512xf32, #tpu.memory_space<vmem>>, vector<1x512xf32>
    %c0_169 = arith.constant 0 : index
    %c0_170 = arith.constant 0 : index
    %505 = vector.load %arg7[%c0_169, %c0_170] : memref<128x512xf32, #tpu.memory_space<vmem>>, vector<128x512xf32>
    %cst_171 = arith.constant dense<0.000000e+00> : vector<1x512xf32>
    %506 = tpu.matmul %502, %505, %cst_171 {dimension_numbers = #tpu.dot_dimension_numbers<[1], [0], [0], [1], [0, 0, 1, 1], [], []>} : vector<1x128xf32>, vector<128x512xf32>, vector<1x512xf32> -> vector<1x512xf32>
    %507 = arith.addf %504, %506 : vector<1x512xf32>
    %508 = vector.extract_strided_slice %507 {offsets = [0, 0], sizes = [1, 128], strides = [1, 1]} : vector<1x512xf32> to vector<1x128xf32>
    %509 = arith.negf %508 : vector<1x128xf32>
    %510 = math.exp %509 : vector<1x128xf32>
    %cst_172 = arith.constant 1.000000e+00 : f32
    %511 = vector.broadcast %cst_172 : f32 to vector<1x128xf32>
    %512 = arith.addf %511, %510 : vector<1x128xf32>
    %513 = arith.divf %511, %512 : vector<1x128xf32>
    %514 = vector.extract_strided_slice %507 {offsets = [0, 128], sizes = [1, 128], strides = [1, 1]} : vector<1x512xf32> to vector<1x128xf32>
    %515 = arith.negf %514 : vector<1x128xf32>
    %516 = math.exp %515 : vector<1x128xf32>
    %cst_173 = arith.constant 1.000000e+00 : f32
    %517 = vector.broadcast %cst_173 : f32 to vector<1x128xf32>
    %518 = arith.addf %517, %516 : vector<1x128xf32>
    %519 = arith.divf %517, %518 : vector<1x128xf32>
    %520 = vector.extract_strided_slice %507 {offsets = [0, 256], sizes = [1, 128], strides = [1, 1]} : vector<1x512xf32> to vector<1x128xf32>
    %521 = math.tanh %520 : vector<1x128xf32>
    %522 = vector.extract_strided_slice %507 {offsets = [0, 384], sizes = [1, 128], strides = [1, 1]} : vector<1x512xf32> to vector<1x128xf32>
    %523 = arith.negf %522 : vector<1x128xf32>
    %524 = math.exp %523 : vector<1x128xf32>
    %cst_174 = arith.constant 1.000000e+00 : f32
    %525 = vector.broadcast %cst_174 : f32 to vector<1x128xf32>
    %526 = arith.addf %525, %524 : vector<1x128xf32>
    %527 = arith.divf %525, %526 : vector<1x128xf32>
    %528 = arith.mulf %519, %500 : vector<1x128xf32>
    %529 = arith.mulf %513, %521 : vector<1x128xf32>
    %530 = arith.addf %528, %529 : vector<1x128xf32>
    %531 = math.tanh %530 : vector<1x128xf32>
    %532 = arith.mulf %527, %531 : vector<1x128xf32>
    %c16_175 = arith.constant 16 : index
    %c0_176 = arith.constant 0 : index
    %533 = vector.load %arg13[%c16_175, %c0_176] : memref<32x128xf32, #tpu.memory_space<vmem>>, vector<1x128xf32>
    tpu.vector_store %arg13[%c16_175, %c0_176], %532 {strides = array<i32>} : memref<32x128xf32, #tpu.memory_space<vmem>>, vector<1x128xf32>,
    %c17 = arith.constant 17 : index
    %c0_177 = arith.constant 0 : index
    %534 = vector.load %arg12[%c17, %c0_177] : memref<32x512xf32, #tpu.memory_space<vmem>>, vector<1x512xf32>
    %c0_178 = arith.constant 0 : index
    %c0_179 = arith.constant 0 : index
    %535 = vector.load %arg7[%c0_178, %c0_179] : memref<128x512xf32, #tpu.memory_space<vmem>>, vector<128x512xf32>
    %cst_180 = arith.constant dense<0.000000e+00> : vector<1x512xf32>
    %536 = tpu.matmul %532, %535, %cst_180 {dimension_numbers = #tpu.dot_dimension_numbers<[1], [0], [0], [1], [0, 0, 1, 1], [], []>} : vector<1x128xf32>, vector<128x512xf32>, vector<1x512xf32> -> vector<1x512xf32>
    %537 = arith.addf %534, %536 : vector<1x512xf32>
    %538 = vector.extract_strided_slice %537 {offsets = [0, 0], sizes = [1, 128], strides = [1, 1]} : vector<1x512xf32> to vector<1x128xf32>
    %539 = arith.negf %538 : vector<1x128xf32>
    %540 = math.exp %539 : vector<1x128xf32>
    %cst_181 = arith.constant 1.000000e+00 : f32
    %541 = vector.broadcast %cst_181 : f32 to vector<1x128xf32>
    %542 = arith.addf %541, %540 : vector<1x128xf32>
    %543 = arith.divf %541, %542 : vector<1x128xf32>
    %544 = vector.extract_strided_slice %537 {offsets = [0, 128], sizes = [1, 128], strides = [1, 1]} : vector<1x512xf32> to vector<1x128xf32>
    %545 = arith.negf %544 : vector<1x128xf32>
    %546 = math.exp %545 : vector<1x128xf32>
    %cst_182 = arith.constant 1.000000e+00 : f32
    %547 = vector.broadcast %cst_182 : f32 to vector<1x128xf32>
    %548 = arith.addf %547, %546 : vector<1x128xf32>
    %549 = arith.divf %547, %548 : vector<1x128xf32>
    %550 = vector.extract_strided_slice %537 {offsets = [0, 256], sizes = [1, 128], strides = [1, 1]} : vector<1x512xf32> to vector<1x128xf32>
    %551 = math.tanh %550 : vector<1x128xf32>
    %552 = vector.extract_strided_slice %537 {offsets = [0, 384], sizes = [1, 128], strides = [1, 1]} : vector<1x512xf32> to vector<1x128xf32>
    %553 = arith.negf %552 : vector<1x128xf32>
    %554 = math.exp %553 : vector<1x128xf32>
    %cst_183 = arith.constant 1.000000e+00 : f32
    %555 = vector.broadcast %cst_183 : f32 to vector<1x128xf32>
    %556 = arith.addf %555, %554 : vector<1x128xf32>
    %557 = arith.divf %555, %556 : vector<1x128xf32>
    %558 = arith.mulf %549, %530 : vector<1x128xf32>
    %559 = arith.mulf %543, %551 : vector<1x128xf32>
    %560 = arith.addf %558, %559 : vector<1x128xf32>
    %561 = math.tanh %560 : vector<1x128xf32>
    %562 = arith.mulf %557, %561 : vector<1x128xf32>
    %c17_184 = arith.constant 17 : index
    %c0_185 = arith.constant 0 : index
    %563 = vector.load %arg13[%c17_184, %c0_185] : memref<32x128xf32, #tpu.memory_space<vmem>>, vector<1x128xf32>
    tpu.vector_store %arg13[%c17_184, %c0_185], %562 {strides = array<i32>} : memref<32x128xf32, #tpu.memory_space<vmem>>, vector<1x128xf32>,
    %c18 = arith.constant 18 : index
    %c0_186 = arith.constant 0 : index
    %564 = vector.load %arg12[%c18, %c0_186] : memref<32x512xf32, #tpu.memory_space<vmem>>, vector<1x512xf32>
    %c0_187 = arith.constant 0 : index
    %c0_188 = arith.constant 0 : index
    %565 = vector.load %arg7[%c0_187, %c0_188] : memref<128x512xf32, #tpu.memory_space<vmem>>, vector<128x512xf32>
    %cst_189 = arith.constant dense<0.000000e+00> : vector<1x512xf32>
    %566 = tpu.matmul %562, %565, %cst_189 {dimension_numbers = #tpu.dot_dimension_numbers<[1], [0], [0], [1], [0, 0, 1, 1], [], []>} : vector<1x128xf32>, vector<128x512xf32>, vector<1x512xf32> -> vector<1x512xf32>
    %567 = arith.addf %564, %566 : vector<1x512xf32>
    %568 = vector.extract_strided_slice %567 {offsets = [0, 0], sizes = [1, 128], strides = [1, 1]} : vector<1x512xf32> to vector<1x128xf32>
    %569 = arith.negf %568 : vector<1x128xf32>
    %570 = math.exp %569 : vector<1x128xf32>
    %cst_190 = arith.constant 1.000000e+00 : f32
    %571 = vector.broadcast %cst_190 : f32 to vector<1x128xf32>
    %572 = arith.addf %571, %570 : vector<1x128xf32>
    %573 = arith.divf %571, %572 : vector<1x128xf32>
    %574 = vector.extract_strided_slice %567 {offsets = [0, 128], sizes = [1, 128], strides = [1, 1]} : vector<1x512xf32> to vector<1x128xf32>
    %575 = arith.negf %574 : vector<1x128xf32>
    %576 = math.exp %575 : vector<1x128xf32>
    %cst_191 = arith.constant 1.000000e+00 : f32
    %577 = vector.broadcast %cst_191 : f32 to vector<1x128xf32>
    %578 = arith.addf %577, %576 : vector<1x128xf32>
    %579 = arith.divf %577, %578 : vector<1x128xf32>
    %580 = vector.extract_strided_slice %567 {offsets = [0, 256], sizes = [1, 128], strides = [1, 1]} : vector<1x512xf32> to vector<1x128xf32>
    %581 = math.tanh %580 : vector<1x128xf32>
    %582 = vector.extract_strided_slice %567 {offsets = [0, 384], sizes = [1, 128], strides = [1, 1]} : vector<1x512xf32> to vector<1x128xf32>
    %583 = arith.negf %582 : vector<1x128xf32>
    %584 = math.exp %583 : vector<1x128xf32>
    %cst_192 = arith.constant 1.000000e+00 : f32
    %585 = vector.broadcast %cst_192 : f32 to vector<1x128xf32>
    %586 = arith.addf %585, %584 : vector<1x128xf32>
    %587 = arith.divf %585, %586 : vector<1x128xf32>
    %588 = arith.mulf %579, %560 : vector<1x128xf32>
    %589 = arith.mulf %573, %581 : vector<1x128xf32>
    %590 = arith.addf %588, %589 : vector<1x128xf32>
    %591 = math.tanh %590 : vector<1x128xf32>
    %592 = arith.mulf %587, %591 : vector<1x128xf32>
    %c18_193 = arith.constant 18 : index
    %c0_194 = arith.constant 0 : index
    %593 = vector.load %arg13[%c18_193, %c0_194] : memref<32x128xf32, #tpu.memory_space<vmem>>, vector<1x128xf32>
    tpu.vector_store %arg13[%c18_193, %c0_194], %592 {strides = array<i32>} : memref<32x128xf32, #tpu.memory_space<vmem>>, vector<1x128xf32>,
    %c19 = arith.constant 19 : index
    %c0_195 = arith.constant 0 : index
    %594 = vector.load %arg12[%c19, %c0_195] : memref<32x512xf32, #tpu.memory_space<vmem>>, vector<1x512xf32>
    %c0_196 = arith.constant 0 : index
    %c0_197 = arith.constant 0 : index
    %595 = vector.load %arg7[%c0_196, %c0_197] : memref<128x512xf32, #tpu.memory_space<vmem>>, vector<128x512xf32>
    %cst_198 = arith.constant dense<0.000000e+00> : vector<1x512xf32>
    %596 = tpu.matmul %592, %595, %cst_198 {dimension_numbers = #tpu.dot_dimension_numbers<[1], [0], [0], [1], [0, 0, 1, 1], [], []>} : vector<1x128xf32>, vector<128x512xf32>, vector<1x512xf32> -> vector<1x512xf32>
    %597 = arith.addf %594, %596 : vector<1x512xf32>
    %598 = vector.extract_strided_slice %597 {offsets = [0, 0], sizes = [1, 128], strides = [1, 1]} : vector<1x512xf32> to vector<1x128xf32>
    %599 = arith.negf %598 : vector<1x128xf32>
    %600 = math.exp %599 : vector<1x128xf32>
    %cst_199 = arith.constant 1.000000e+00 : f32
    %601 = vector.broadcast %cst_199 : f32 to vector<1x128xf32>
    %602 = arith.addf %601, %600 : vector<1x128xf32>
    %603 = arith.divf %601, %602 : vector<1x128xf32>
    %604 = vector.extract_strided_slice %597 {offsets = [0, 128], sizes = [1, 128], strides = [1, 1]} : vector<1x512xf32> to vector<1x128xf32>
    %605 = arith.negf %604 : vector<1x128xf32>
    %606 = math.exp %605 : vector<1x128xf32>
    %cst_200 = arith.constant 1.000000e+00 : f32
    %607 = vector.broadcast %cst_200 : f32 to vector<1x128xf32>
    %608 = arith.addf %607, %606 : vector<1x128xf32>
    %609 = arith.divf %607, %608 : vector<1x128xf32>
    %610 = vector.extract_strided_slice %597 {offsets = [0, 256], sizes = [1, 128], strides = [1, 1]} : vector<1x512xf32> to vector<1x128xf32>
    %611 = math.tanh %610 : vector<1x128xf32>
    %612 = vector.extract_strided_slice %597 {offsets = [0, 384], sizes = [1, 128], strides = [1, 1]} : vector<1x512xf32> to vector<1x128xf32>
    %613 = arith.negf %612 : vector<1x128xf32>
    %614 = math.exp %613 : vector<1x128xf32>
    %cst_201 = arith.constant 1.000000e+00 : f32
    %615 = vector.broadcast %cst_201 : f32 to vector<1x128xf32>
    %616 = arith.addf %615, %614 : vector<1x128xf32>
    %617 = arith.divf %615, %616 : vector<1x128xf32>
    %618 = arith.mulf %609, %590 : vector<1x128xf32>
    %619 = arith.mulf %603, %611 : vector<1x128xf32>
    %620 = arith.addf %618, %619 : vector<1x128xf32>
    %621 = math.tanh %620 : vector<1x128xf32>
    %622 = arith.mulf %617, %621 : vector<1x128xf32>
    %c19_202 = arith.constant 19 : index
    %c0_203 = arith.constant 0 : index
    %623 = vector.load %arg13[%c19_202, %c0_203] : memref<32x128xf32, #tpu.memory_space<vmem>>, vector<1x128xf32>
    tpu.vector_store %arg13[%c19_202, %c0_203], %622 {strides = array<i32>} : memref<32x128xf32, #tpu.memory_space<vmem>>, vector<1x128xf32>,
    %c20 = arith.constant 20 : index
    %c0_204 = arith.constant 0 : index
    %624 = vector.load %arg12[%c20, %c0_204] : memref<32x512xf32, #tpu.memory_space<vmem>>, vector<1x512xf32>
    %c0_205 = arith.constant 0 : index
    %c0_206 = arith.constant 0 : index
    %625 = vector.load %arg7[%c0_205, %c0_206] : memref<128x512xf32, #tpu.memory_space<vmem>>, vector<128x512xf32>
    %cst_207 = arith.constant dense<0.000000e+00> : vector<1x512xf32>
    %626 = tpu.matmul %622, %625, %cst_207 {dimension_numbers = #tpu.dot_dimension_numbers<[1], [0], [0], [1], [0, 0, 1, 1], [], []>} : vector<1x128xf32>, vector<128x512xf32>, vector<1x512xf32> -> vector<1x512xf32>
    %627 = arith.addf %624, %626 : vector<1x512xf32>
    %628 = vector.extract_strided_slice %627 {offsets = [0, 0], sizes = [1, 128], strides = [1, 1]} : vector<1x512xf32> to vector<1x128xf32>
    %629 = arith.negf %628 : vector<1x128xf32>
    %630 = math.exp %629 : vector<1x128xf32>
    %cst_208 = arith.constant 1.000000e+00 : f32
    %631 = vector.broadcast %cst_208 : f32 to vector<1x128xf32>
    %632 = arith.addf %631, %630 : vector<1x128xf32>
    %633 = arith.divf %631, %632 : vector<1x128xf32>
    %634 = vector.extract_strided_slice %627 {offsets = [0, 128], sizes = [1, 128], strides = [1, 1]} : vector<1x512xf32> to vector<1x128xf32>
    %635 = arith.negf %634 : vector<1x128xf32>
    %636 = math.exp %635 : vector<1x128xf32>
    %cst_209 = arith.constant 1.000000e+00 : f32
    %637 = vector.broadcast %cst_209 : f32 to vector<1x128xf32>
    %638 = arith.addf %637, %636 : vector<1x128xf32>
    %639 = arith.divf %637, %638 : vector<1x128xf32>
    %640 = vector.extract_strided_slice %627 {offsets = [0, 256], sizes = [1, 128], strides = [1, 1]} : vector<1x512xf32> to vector<1x128xf32>
    %641 = math.tanh %640 : vector<1x128xf32>
    %642 = vector.extract_strided_slice %627 {offsets = [0, 384], sizes = [1, 128], strides = [1, 1]} : vector<1x512xf32> to vector<1x128xf32>
    %643 = arith.negf %642 : vector<1x128xf32>
    %644 = math.exp %643 : vector<1x128xf32>
    %cst_210 = arith.constant 1.000000e+00 : f32
    %645 = vector.broadcast %cst_210 : f32 to vector<1x128xf32>
    %646 = arith.addf %645, %644 : vector<1x128xf32>
    %647 = arith.divf %645, %646 : vector<1x128xf32>
    %648 = arith.mulf %639, %620 : vector<1x128xf32>
    %649 = arith.mulf %633, %641 : vector<1x128xf32>
    %650 = arith.addf %648, %649 : vector<1x128xf32>
    %651 = math.tanh %650 : vector<1x128xf32>
    %652 = arith.mulf %647, %651 : vector<1x128xf32>
    %c20_211 = arith.constant 20 : index
    %c0_212 = arith.constant 0 : index
    %653 = vector.load %arg13[%c20_211, %c0_212] : memref<32x128xf32, #tpu.memory_space<vmem>>, vector<1x128xf32>
    tpu.vector_store %arg13[%c20_211, %c0_212], %652 {strides = array<i32>} : memref<32x128xf32, #tpu.memory_space<vmem>>, vector<1x128xf32>,
    %c21 = arith.constant 21 : index
    %c0_213 = arith.constant 0 : index
    %654 = vector.load %arg12[%c21, %c0_213] : memref<32x512xf32, #tpu.memory_space<vmem>>, vector<1x512xf32>
    %c0_214 = arith.constant 0 : index
    %c0_215 = arith.constant 0 : index
    %655 = vector.load %arg7[%c0_214, %c0_215] : memref<128x512xf32, #tpu.memory_space<vmem>>, vector<128x512xf32>
    %cst_216 = arith.constant dense<0.000000e+00> : vector<1x512xf32>
    %656 = tpu.matmul %652, %655, %cst_216 {dimension_numbers = #tpu.dot_dimension_numbers<[1], [0], [0], [1], [0, 0, 1, 1], [], []>} : vector<1x128xf32>, vector<128x512xf32>, vector<1x512xf32> -> vector<1x512xf32>
    %657 = arith.addf %654, %656 : vector<1x512xf32>
    %658 = vector.extract_strided_slice %657 {offsets = [0, 0], sizes = [1, 128], strides = [1, 1]} : vector<1x512xf32> to vector<1x128xf32>
    %659 = arith.negf %658 : vector<1x128xf32>
    %660 = math.exp %659 : vector<1x128xf32>
    %cst_217 = arith.constant 1.000000e+00 : f32
    %661 = vector.broadcast %cst_217 : f32 to vector<1x128xf32>
    %662 = arith.addf %661, %660 : vector<1x128xf32>
    %663 = arith.divf %661, %662 : vector<1x128xf32>
    %664 = vector.extract_strided_slice %657 {offsets = [0, 128], sizes = [1, 128], strides = [1, 1]} : vector<1x512xf32> to vector<1x128xf32>
    %665 = arith.negf %664 : vector<1x128xf32>
    %666 = math.exp %665 : vector<1x128xf32>
    %cst_218 = arith.constant 1.000000e+00 : f32
    %667 = vector.broadcast %cst_218 : f32 to vector<1x128xf32>
    %668 = arith.addf %667, %666 : vector<1x128xf32>
    %669 = arith.divf %667, %668 : vector<1x128xf32>
    %670 = vector.extract_strided_slice %657 {offsets = [0, 256], sizes = [1, 128], strides = [1, 1]} : vector<1x512xf32> to vector<1x128xf32>
    %671 = math.tanh %670 : vector<1x128xf32>
    %672 = vector.extract_strided_slice %657 {offsets = [0, 384], sizes = [1, 128], strides = [1, 1]} : vector<1x512xf32> to vector<1x128xf32>
    %673 = arith.negf %672 : vector<1x128xf32>
    %674 = math.exp %673 : vector<1x128xf32>
    %cst_219 = arith.constant 1.000000e+00 : f32
    %675 = vector.broadcast %cst_219 : f32 to vector<1x128xf32>
    %676 = arith.addf %675, %674 : vector<1x128xf32>
    %677 = arith.divf %675, %676 : vector<1x128xf32>
    %678 = arith.mulf %669, %650 : vector<1x128xf32>
    %679 = arith.mulf %663, %671 : vector<1x128xf32>
    %680 = arith.addf %678, %679 : vector<1x128xf32>
    %681 = math.tanh %680 : vector<1x128xf32>
    %682 = arith.mulf %677, %681 : vector<1x128xf32>
    %c21_220 = arith.constant 21 : index
    %c0_221 = arith.constant 0 : index
    %683 = vector.load %arg13[%c21_220, %c0_221] : memref<32x128xf32, #tpu.memory_space<vmem>>, vector<1x128xf32>
    tpu.vector_store %arg13[%c21_220, %c0_221], %682 {strides = array<i32>} : memref<32x128xf32, #tpu.memory_space<vmem>>, vector<1x128xf32>,
    %c22 = arith.constant 22 : index
    %c0_222 = arith.constant 0 : index
    %684 = vector.load %arg12[%c22, %c0_222] : memref<32x512xf32, #tpu.memory_space<vmem>>, vector<1x512xf32>
    %c0_223 = arith.constant 0 : index
    %c0_224 = arith.constant 0 : index
    %685 = vector.load %arg7[%c0_223, %c0_224] : memref<128x512xf32, #tpu.memory_space<vmem>>, vector<128x512xf32>
    %cst_225 = arith.constant dense<0.000000e+00> : vector<1x512xf32>
    %686 = tpu.matmul %682, %685, %cst_225 {dimension_numbers = #tpu.dot_dimension_numbers<[1], [0], [0], [1], [0, 0, 1, 1], [], []>} : vector<1x128xf32>, vector<128x512xf32>, vector<1x512xf32> -> vector<1x512xf32>
    %687 = arith.addf %684, %686 : vector<1x512xf32>
    %688 = vector.extract_strided_slice %687 {offsets = [0, 0], sizes = [1, 128], strides = [1, 1]} : vector<1x512xf32> to vector<1x128xf32>
    %689 = arith.negf %688 : vector<1x128xf32>
    %690 = math.exp %689 : vector<1x128xf32>
    %cst_226 = arith.constant 1.000000e+00 : f32
    %691 = vector.broadcast %cst_226 : f32 to vector<1x128xf32>
    %692 = arith.addf %691, %690 : vector<1x128xf32>
    %693 = arith.divf %691, %692 : vector<1x128xf32>
    %694 = vector.extract_strided_slice %687 {offsets = [0, 128], sizes = [1, 128], strides = [1, 1]} : vector<1x512xf32> to vector<1x128xf32>
    %695 = arith.negf %694 : vector<1x128xf32>
    %696 = math.exp %695 : vector<1x128xf32>
    %cst_227 = arith.constant 1.000000e+00 : f32
    %697 = vector.broadcast %cst_227 : f32 to vector<1x128xf32>
    %698 = arith.addf %697, %696 : vector<1x128xf32>
    %699 = arith.divf %697, %698 : vector<1x128xf32>
    %700 = vector.extract_strided_slice %687 {offsets = [0, 256], sizes = [1, 128], strides = [1, 1]} : vector<1x512xf32> to vector<1x128xf32>
    %701 = math.tanh %700 : vector<1x128xf32>
    %702 = vector.extract_strided_slice %687 {offsets = [0, 384], sizes = [1, 128], strides = [1, 1]} : vector<1x512xf32> to vector<1x128xf32>
    %703 = arith.negf %702 : vector<1x128xf32>
    %704 = math.exp %703 : vector<1x128xf32>
    %cst_228 = arith.constant 1.000000e+00 : f32
    %705 = vector.broadcast %cst_228 : f32 to vector<1x128xf32>
    %706 = arith.addf %705, %704 : vector<1x128xf32>
    %707 = arith.divf %705, %706 : vector<1x128xf32>
    %708 = arith.mulf %699, %680 : vector<1x128xf32>
    %709 = arith.mulf %693, %701 : vector<1x128xf32>
    %710 = arith.addf %708, %709 : vector<1x128xf32>
    %711 = math.tanh %710 : vector<1x128xf32>
    %712 = arith.mulf %707, %711 : vector<1x128xf32>
    %c22_229 = arith.constant 22 : index
    %c0_230 = arith.constant 0 : index
    %713 = vector.load %arg13[%c22_229, %c0_230] : memref<32x128xf32, #tpu.memory_space<vmem>>, vector<1x128xf32>
    tpu.vector_store %arg13[%c22_229, %c0_230], %712 {strides = array<i32>} : memref<32x128xf32, #tpu.memory_space<vmem>>, vector<1x128xf32>,
    %c23 = arith.constant 23 : index
    %c0_231 = arith.constant 0 : index
    %714 = vector.load %arg12[%c23, %c0_231] : memref<32x512xf32, #tpu.memory_space<vmem>>, vector<1x512xf32>
    %c0_232 = arith.constant 0 : index
    %c0_233 = arith.constant 0 : index
    %715 = vector.load %arg7[%c0_232, %c0_233] : memref<128x512xf32, #tpu.memory_space<vmem>>, vector<128x512xf32>
    %cst_234 = arith.constant dense<0.000000e+00> : vector<1x512xf32>
    %716 = tpu.matmul %712, %715, %cst_234 {dimension_numbers = #tpu.dot_dimension_numbers<[1], [0], [0], [1], [0, 0, 1, 1], [], []>} : vector<1x128xf32>, vector<128x512xf32>, vector<1x512xf32> -> vector<1x512xf32>
    %717 = arith.addf %714, %716 : vector<1x512xf32>
    %718 = vector.extract_strided_slice %717 {offsets = [0, 0], sizes = [1, 128], strides = [1, 1]} : vector<1x512xf32> to vector<1x128xf32>
    %719 = arith.negf %718 : vector<1x128xf32>
    %720 = math.exp %719 : vector<1x128xf32>
    %cst_235 = arith.constant 1.000000e+00 : f32
    %721 = vector.broadcast %cst_235 : f32 to vector<1x128xf32>
    %722 = arith.addf %721, %720 : vector<1x128xf32>
    %723 = arith.divf %721, %722 : vector<1x128xf32>
    %724 = vector.extract_strided_slice %717 {offsets = [0, 128], sizes = [1, 128], strides = [1, 1]} : vector<1x512xf32> to vector<1x128xf32>
    %725 = arith.negf %724 : vector<1x128xf32>
    %726 = math.exp %725 : vector<1x128xf32>
    %cst_236 = arith.constant 1.000000e+00 : f32
    %727 = vector.broadcast %cst_236 : f32 to vector<1x128xf32>
    %728 = arith.addf %727, %726 : vector<1x128xf32>
    %729 = arith.divf %727, %728 : vector<1x128xf32>
    %730 = vector.extract_strided_slice %717 {offsets = [0, 256], sizes = [1, 128], strides = [1, 1]} : vector<1x512xf32> to vector<1x128xf32>
    %731 = math.tanh %730 : vector<1x128xf32>
    %732 = vector.extract_strided_slice %717 {offsets = [0, 384], sizes = [1, 128], strides = [1, 1]} : vector<1x512xf32> to vector<1x128xf32>
    %733 = arith.negf %732 : vector<1x128xf32>
    %734 = math.exp %733 : vector<1x128xf32>
    %cst_237 = arith.constant 1.000000e+00 : f32
    %735 = vector.broadcast %cst_237 : f32 to vector<1x128xf32>
    %736 = arith.addf %735, %734 : vector<1x128xf32>
    %737 = arith.divf %735, %736 : vector<1x128xf32>
    %738 = arith.mulf %729, %710 : vector<1x128xf32>
    %739 = arith.mulf %723, %731 : vector<1x128xf32>
    %740 = arith.addf %738, %739 : vector<1x128xf32>
    %741 = math.tanh %740 : vector<1x128xf32>
    %742 = arith.mulf %737, %741 : vector<1x128xf32>
    %c23_238 = arith.constant 23 : index
    %c0_239 = arith.constant 0 : index
    %743 = vector.load %arg13[%c23_238, %c0_239] : memref<32x128xf32, #tpu.memory_space<vmem>>, vector<1x128xf32>
    tpu.vector_store %arg13[%c23_238, %c0_239], %742 {strides = array<i32>} : memref<32x128xf32, #tpu.memory_space<vmem>>, vector<1x128xf32>,
    %c24 = arith.constant 24 : index
    %c0_240 = arith.constant 0 : index
    %744 = vector.load %arg12[%c24, %c0_240] : memref<32x512xf32, #tpu.memory_space<vmem>>, vector<1x512xf32>
    %c0_241 = arith.constant 0 : index
    %c0_242 = arith.constant 0 : index
    %745 = vector.load %arg7[%c0_241, %c0_242] : memref<128x512xf32, #tpu.memory_space<vmem>>, vector<128x512xf32>
    %cst_243 = arith.constant dense<0.000000e+00> : vector<1x512xf32>
    %746 = tpu.matmul %742, %745, %cst_243 {dimension_numbers = #tpu.dot_dimension_numbers<[1], [0], [0], [1], [0, 0, 1, 1], [], []>} : vector<1x128xf32>, vector<128x512xf32>, vector<1x512xf32> -> vector<1x512xf32>
    %747 = arith.addf %744, %746 : vector<1x512xf32>
    %748 = vector.extract_strided_slice %747 {offsets = [0, 0], sizes = [1, 128], strides = [1, 1]} : vector<1x512xf32> to vector<1x128xf32>
    %749 = arith.negf %748 : vector<1x128xf32>
    %750 = math.exp %749 : vector<1x128xf32>
    %cst_244 = arith.constant 1.000000e+00 : f32
    %751 = vector.broadcast %cst_244 : f32 to vector<1x128xf32>
    %752 = arith.addf %751, %750 : vector<1x128xf32>
    %753 = arith.divf %751, %752 : vector<1x128xf32>
    %754 = vector.extract_strided_slice %747 {offsets = [0, 128], sizes = [1, 128], strides = [1, 1]} : vector<1x512xf32> to vector<1x128xf32>
    %755 = arith.negf %754 : vector<1x128xf32>
    %756 = math.exp %755 : vector<1x128xf32>
    %cst_245 = arith.constant 1.000000e+00 : f32
    %757 = vector.broadcast %cst_245 : f32 to vector<1x128xf32>
    %758 = arith.addf %757, %756 : vector<1x128xf32>
    %759 = arith.divf %757, %758 : vector<1x128xf32>
    %760 = vector.extract_strided_slice %747 {offsets = [0, 256], sizes = [1, 128], strides = [1, 1]} : vector<1x512xf32> to vector<1x128xf32>
    %761 = math.tanh %760 : vector<1x128xf32>
    %762 = vector.extract_strided_slice %747 {offsets = [0, 384], sizes = [1, 128], strides = [1, 1]} : vector<1x512xf32> to vector<1x128xf32>
    %763 = arith.negf %762 : vector<1x128xf32>
    %764 = math.exp %763 : vector<1x128xf32>
    %cst_246 = arith.constant 1.000000e+00 : f32
    %765 = vector.broadcast %cst_246 : f32 to vector<1x128xf32>
    %766 = arith.addf %765, %764 : vector<1x128xf32>
    %767 = arith.divf %765, %766 : vector<1x128xf32>
    %768 = arith.mulf %759, %740 : vector<1x128xf32>
    %769 = arith.mulf %753, %761 : vector<1x128xf32>
    %770 = arith.addf %768, %769 : vector<1x128xf32>
    %771 = math.tanh %770 : vector<1x128xf32>
    %772 = arith.mulf %767, %771 : vector<1x128xf32>
    %c24_247 = arith.constant 24 : index
    %c0_248 = arith.constant 0 : index
    %773 = vector.load %arg13[%c24_247, %c0_248] : memref<32x128xf32, #tpu.memory_space<vmem>>, vector<1x128xf32>
    tpu.vector_store %arg13[%c24_247, %c0_248], %772 {strides = array<i32>} : memref<32x128xf32, #tpu.memory_space<vmem>>, vector<1x128xf32>,
    %c25 = arith.constant 25 : index
    %c0_249 = arith.constant 0 : index
    %774 = vector.load %arg12[%c25, %c0_249] : memref<32x512xf32, #tpu.memory_space<vmem>>, vector<1x512xf32>
    %c0_250 = arith.constant 0 : index
    %c0_251 = arith.constant 0 : index
    %775 = vector.load %arg7[%c0_250, %c0_251] : memref<128x512xf32, #tpu.memory_space<vmem>>, vector<128x512xf32>
    %cst_252 = arith.constant dense<0.000000e+00> : vector<1x512xf32>
    %776 = tpu.matmul %772, %775, %cst_252 {dimension_numbers = #tpu.dot_dimension_numbers<[1], [0], [0], [1], [0, 0, 1, 1], [], []>} : vector<1x128xf32>, vector<128x512xf32>, vector<1x512xf32> -> vector<1x512xf32>
    %777 = arith.addf %774, %776 : vector<1x512xf32>
    %778 = vector.extract_strided_slice %777 {offsets = [0, 0], sizes = [1, 128], strides = [1, 1]} : vector<1x512xf32> to vector<1x128xf32>
    %779 = arith.negf %778 : vector<1x128xf32>
    %780 = math.exp %779 : vector<1x128xf32>
    %cst_253 = arith.constant 1.000000e+00 : f32
    %781 = vector.broadcast %cst_253 : f32 to vector<1x128xf32>
    %782 = arith.addf %781, %780 : vector<1x128xf32>
    %783 = arith.divf %781, %782 : vector<1x128xf32>
    %784 = vector.extract_strided_slice %777 {offsets = [0, 128], sizes = [1, 128], strides = [1, 1]} : vector<1x512xf32> to vector<1x128xf32>
    %785 = arith.negf %784 : vector<1x128xf32>
    %786 = math.exp %785 : vector<1x128xf32>
    %cst_254 = arith.constant 1.000000e+00 : f32
    %787 = vector.broadcast %cst_254 : f32 to vector<1x128xf32>
    %788 = arith.addf %787, %786 : vector<1x128xf32>
    %789 = arith.divf %787, %788 : vector<1x128xf32>
    %790 = vector.extract_strided_slice %777 {offsets = [0, 256], sizes = [1, 128], strides = [1, 1]} : vector<1x512xf32> to vector<1x128xf32>
    %791 = math.tanh %790 : vector<1x128xf32>
    %792 = vector.extract_strided_slice %777 {offsets = [0, 384], sizes = [1, 128], strides = [1, 1]} : vector<1x512xf32> to vector<1x128xf32>
    %793 = arith.negf %792 : vector<1x128xf32>
    %794 = math.exp %793 : vector<1x128xf32>
    %cst_255 = arith.constant 1.000000e+00 : f32
    %795 = vector.broadcast %cst_255 : f32 to vector<1x128xf32>
    %796 = arith.addf %795, %794 : vector<1x128xf32>
    %797 = arith.divf %795, %796 : vector<1x128xf32>
    %798 = arith.mulf %789, %770 : vector<1x128xf32>
    %799 = arith.mulf %783, %791 : vector<1x128xf32>
    %800 = arith.addf %798, %799 : vector<1x128xf32>
    %801 = math.tanh %800 : vector<1x128xf32>
    %802 = arith.mulf %797, %801 : vector<1x128xf32>
    %c25_256 = arith.constant 25 : index
    %c0_257 = arith.constant 0 : index
    %803 = vector.load %arg13[%c25_256, %c0_257] : memref<32x128xf32, #tpu.memory_space<vmem>>, vector<1x128xf32>
    tpu.vector_store %arg13[%c25_256, %c0_257], %802 {strides = array<i32>} : memref<32x128xf32, #tpu.memory_space<vmem>>, vector<1x128xf32>,
    %c26 = arith.constant 26 : index
    %c0_258 = arith.constant 0 : index
    %804 = vector.load %arg12[%c26, %c0_258] : memref<32x512xf32, #tpu.memory_space<vmem>>, vector<1x512xf32>
    %c0_259 = arith.constant 0 : index
    %c0_260 = arith.constant 0 : index
    %805 = vector.load %arg7[%c0_259, %c0_260] : memref<128x512xf32, #tpu.memory_space<vmem>>, vector<128x512xf32>
    %cst_261 = arith.constant dense<0.000000e+00> : vector<1x512xf32>
    %806 = tpu.matmul %802, %805, %cst_261 {dimension_numbers = #tpu.dot_dimension_numbers<[1], [0], [0], [1], [0, 0, 1, 1], [], []>} : vector<1x128xf32>, vector<128x512xf32>, vector<1x512xf32> -> vector<1x512xf32>
    %807 = arith.addf %804, %806 : vector<1x512xf32>
    %808 = vector.extract_strided_slice %807 {offsets = [0, 0], sizes = [1, 128], strides = [1, 1]} : vector<1x512xf32> to vector<1x128xf32>
    %809 = arith.negf %808 : vector<1x128xf32>
    %810 = math.exp %809 : vector<1x128xf32>
    %cst_262 = arith.constant 1.000000e+00 : f32
    %811 = vector.broadcast %cst_262 : f32 to vector<1x128xf32>
    %812 = arith.addf %811, %810 : vector<1x128xf32>
    %813 = arith.divf %811, %812 : vector<1x128xf32>
    %814 = vector.extract_strided_slice %807 {offsets = [0, 128], sizes = [1, 128], strides = [1, 1]} : vector<1x512xf32> to vector<1x128xf32>
    %815 = arith.negf %814 : vector<1x128xf32>
    %816 = math.exp %815 : vector<1x128xf32>
    %cst_263 = arith.constant 1.000000e+00 : f32
    %817 = vector.broadcast %cst_263 : f32 to vector<1x128xf32>
    %818 = arith.addf %817, %816 : vector<1x128xf32>
    %819 = arith.divf %817, %818 : vector<1x128xf32>
    %820 = vector.extract_strided_slice %807 {offsets = [0, 256], sizes = [1, 128], strides = [1, 1]} : vector<1x512xf32> to vector<1x128xf32>
    %821 = math.tanh %820 : vector<1x128xf32>
    %822 = vector.extract_strided_slice %807 {offsets = [0, 384], sizes = [1, 128], strides = [1, 1]} : vector<1x512xf32> to vector<1x128xf32>
    %823 = arith.negf %822 : vector<1x128xf32>
    %824 = math.exp %823 : vector<1x128xf32>
    %cst_264 = arith.constant 1.000000e+00 : f32
    %825 = vector.broadcast %cst_264 : f32 to vector<1x128xf32>
    %826 = arith.addf %825, %824 : vector<1x128xf32>
    %827 = arith.divf %825, %826 : vector<1x128xf32>
    %828 = arith.mulf %819, %800 : vector<1x128xf32>
    %829 = arith.mulf %813, %821 : vector<1x128xf32>
    %830 = arith.addf %828, %829 : vector<1x128xf32>
    %831 = math.tanh %830 : vector<1x128xf32>
    %832 = arith.mulf %827, %831 : vector<1x128xf32>
    %c26_265 = arith.constant 26 : index
    %c0_266 = arith.constant 0 : index
    %833 = vector.load %arg13[%c26_265, %c0_266] : memref<32x128xf32, #tpu.memory_space<vmem>>, vector<1x128xf32>
    tpu.vector_store %arg13[%c26_265, %c0_266], %832 {strides = array<i32>} : memref<32x128xf32, #tpu.memory_space<vmem>>, vector<1x128xf32>,
    %c27 = arith.constant 27 : index
    %c0_267 = arith.constant 0 : index
    %834 = vector.load %arg12[%c27, %c0_267] : memref<32x512xf32, #tpu.memory_space<vmem>>, vector<1x512xf32>
    %c0_268 = arith.constant 0 : index
    %c0_269 = arith.constant 0 : index
    %835 = vector.load %arg7[%c0_268, %c0_269] : memref<128x512xf32, #tpu.memory_space<vmem>>, vector<128x512xf32>
    %cst_270 = arith.constant dense<0.000000e+00> : vector<1x512xf32>
    %836 = tpu.matmul %832, %835, %cst_270 {dimension_numbers = #tpu.dot_dimension_numbers<[1], [0], [0], [1], [0, 0, 1, 1], [], []>} : vector<1x128xf32>, vector<128x512xf32>, vector<1x512xf32> -> vector<1x512xf32>
    %837 = arith.addf %834, %836 : vector<1x512xf32>
    %838 = vector.extract_strided_slice %837 {offsets = [0, 0], sizes = [1, 128], strides = [1, 1]} : vector<1x512xf32> to vector<1x128xf32>
    %839 = arith.negf %838 : vector<1x128xf32>
    %840 = math.exp %839 : vector<1x128xf32>
    %cst_271 = arith.constant 1.000000e+00 : f32
    %841 = vector.broadcast %cst_271 : f32 to vector<1x128xf32>
    %842 = arith.addf %841, %840 : vector<1x128xf32>
    %843 = arith.divf %841, %842 : vector<1x128xf32>
    %844 = vector.extract_strided_slice %837 {offsets = [0, 128], sizes = [1, 128], strides = [1, 1]} : vector<1x512xf32> to vector<1x128xf32>
    %845 = arith.negf %844 : vector<1x128xf32>
    %846 = math.exp %845 : vector<1x128xf32>
    %cst_272 = arith.constant 1.000000e+00 : f32
    %847 = vector.broadcast %cst_272 : f32 to vector<1x128xf32>
    %848 = arith.addf %847, %846 : vector<1x128xf32>
    %849 = arith.divf %847, %848 : vector<1x128xf32>
    %850 = vector.extract_strided_slice %837 {offsets = [0, 256], sizes = [1, 128], strides = [1, 1]} : vector<1x512xf32> to vector<1x128xf32>
    %851 = math.tanh %850 : vector<1x128xf32>
    %852 = vector.extract_strided_slice %837 {offsets = [0, 384], sizes = [1, 128], strides = [1, 1]} : vector<1x512xf32> to vector<1x128xf32>
    %853 = arith.negf %852 : vector<1x128xf32>
    %854 = math.exp %853 : vector<1x128xf32>
    %cst_273 = arith.constant 1.000000e+00 : f32
    %855 = vector.broadcast %cst_273 : f32 to vector<1x128xf32>
    %856 = arith.addf %855, %854 : vector<1x128xf32>
    %857 = arith.divf %855, %856 : vector<1x128xf32>
    %858 = arith.mulf %849, %830 : vector<1x128xf32>
    %859 = arith.mulf %843, %851 : vector<1x128xf32>
    %860 = arith.addf %858, %859 : vector<1x128xf32>
    %861 = math.tanh %860 : vector<1x128xf32>
    %862 = arith.mulf %857, %861 : vector<1x128xf32>
    %c27_274 = arith.constant 27 : index
    %c0_275 = arith.constant 0 : index
    %863 = vector.load %arg13[%c27_274, %c0_275] : memref<32x128xf32, #tpu.memory_space<vmem>>, vector<1x128xf32>
    tpu.vector_store %arg13[%c27_274, %c0_275], %862 {strides = array<i32>} : memref<32x128xf32, #tpu.memory_space<vmem>>, vector<1x128xf32>,
    %c28 = arith.constant 28 : index
    %c0_276 = arith.constant 0 : index
    %864 = vector.load %arg12[%c28, %c0_276] : memref<32x512xf32, #tpu.memory_space<vmem>>, vector<1x512xf32>
    %c0_277 = arith.constant 0 : index
    %c0_278 = arith.constant 0 : index
    %865 = vector.load %arg7[%c0_277, %c0_278] : memref<128x512xf32, #tpu.memory_space<vmem>>, vector<128x512xf32>
    %cst_279 = arith.constant dense<0.000000e+00> : vector<1x512xf32>
    %866 = tpu.matmul %862, %865, %cst_279 {dimension_numbers = #tpu.dot_dimension_numbers<[1], [0], [0], [1], [0, 0, 1, 1], [], []>} : vector<1x128xf32>, vector<128x512xf32>, vector<1x512xf32> -> vector<1x512xf32>
    %867 = arith.addf %864, %866 : vector<1x512xf32>
    %868 = vector.extract_strided_slice %867 {offsets = [0, 0], sizes = [1, 128], strides = [1, 1]} : vector<1x512xf32> to vector<1x128xf32>
    %869 = arith.negf %868 : vector<1x128xf32>
    %870 = math.exp %869 : vector<1x128xf32>
    %cst_280 = arith.constant 1.000000e+00 : f32
    %871 = vector.broadcast %cst_280 : f32 to vector<1x128xf32>
    %872 = arith.addf %871, %870 : vector<1x128xf32>
    %873 = arith.divf %871, %872 : vector<1x128xf32>
    %874 = vector.extract_strided_slice %867 {offsets = [0, 128], sizes = [1, 128], strides = [1, 1]} : vector<1x512xf32> to vector<1x128xf32>
    %875 = arith.negf %874 : vector<1x128xf32>
    %876 = math.exp %875 : vector<1x128xf32>
    %cst_281 = arith.constant 1.000000e+00 : f32
    %877 = vector.broadcast %cst_281 : f32 to vector<1x128xf32>
    %878 = arith.addf %877, %876 : vector<1x128xf32>
    %879 = arith.divf %877, %878 : vector<1x128xf32>
    %880 = vector.extract_strided_slice %867 {offsets = [0, 256], sizes = [1, 128], strides = [1, 1]} : vector<1x512xf32> to vector<1x128xf32>
    %881 = math.tanh %880 : vector<1x128xf32>
    %882 = vector.extract_strided_slice %867 {offsets = [0, 384], sizes = [1, 128], strides = [1, 1]} : vector<1x512xf32> to vector<1x128xf32>
    %883 = arith.negf %882 : vector<1x128xf32>
    %884 = math.exp %883 : vector<1x128xf32>
    %cst_282 = arith.constant 1.000000e+00 : f32
    %885 = vector.broadcast %cst_282 : f32 to vector<1x128xf32>
    %886 = arith.addf %885, %884 : vector<1x128xf32>
    %887 = arith.divf %885, %886 : vector<1x128xf32>
    %888 = arith.mulf %879, %860 : vector<1x128xf32>
    %889 = arith.mulf %873, %881 : vector<1x128xf32>
    %890 = arith.addf %888, %889 : vector<1x128xf32>
    %891 = math.tanh %890 : vector<1x128xf32>
    %892 = arith.mulf %887, %891 : vector<1x128xf32>
    %c28_283 = arith.constant 28 : index
    %c0_284 = arith.constant 0 : index
    %893 = vector.load %arg13[%c28_283, %c0_284] : memref<32x128xf32, #tpu.memory_space<vmem>>, vector<1x128xf32>
    tpu.vector_store %arg13[%c28_283, %c0_284], %892 {strides = array<i32>} : memref<32x128xf32, #tpu.memory_space<vmem>>, vector<1x128xf32>,
    %c29 = arith.constant 29 : index
    %c0_285 = arith.constant 0 : index
    %894 = vector.load %arg12[%c29, %c0_285] : memref<32x512xf32, #tpu.memory_space<vmem>>, vector<1x512xf32>
    %c0_286 = arith.constant 0 : index
    %c0_287 = arith.constant 0 : index
    %895 = vector.load %arg7[%c0_286, %c0_287] : memref<128x512xf32, #tpu.memory_space<vmem>>, vector<128x512xf32>
    %cst_288 = arith.constant dense<0.000000e+00> : vector<1x512xf32>
    %896 = tpu.matmul %892, %895, %cst_288 {dimension_numbers = #tpu.dot_dimension_numbers<[1], [0], [0], [1], [0, 0, 1, 1], [], []>} : vector<1x128xf32>, vector<128x512xf32>, vector<1x512xf32> -> vector<1x512xf32>
    %897 = arith.addf %894, %896 : vector<1x512xf32>
    %898 = vector.extract_strided_slice %897 {offsets = [0, 0], sizes = [1, 128], strides = [1, 1]} : vector<1x512xf32> to vector<1x128xf32>
    %899 = arith.negf %898 : vector<1x128xf32>
    %900 = math.exp %899 : vector<1x128xf32>
    %cst_289 = arith.constant 1.000000e+00 : f32
    %901 = vector.broadcast %cst_289 : f32 to vector<1x128xf32>
    %902 = arith.addf %901, %900 : vector<1x128xf32>
    %903 = arith.divf %901, %902 : vector<1x128xf32>
    %904 = vector.extract_strided_slice %897 {offsets = [0, 128], sizes = [1, 128], strides = [1, 1]} : vector<1x512xf32> to vector<1x128xf32>
    %905 = arith.negf %904 : vector<1x128xf32>
    %906 = math.exp %905 : vector<1x128xf32>
    %cst_290 = arith.constant 1.000000e+00 : f32
    %907 = vector.broadcast %cst_290 : f32 to vector<1x128xf32>
    %908 = arith.addf %907, %906 : vector<1x128xf32>
    %909 = arith.divf %907, %908 : vector<1x128xf32>
    %910 = vector.extract_strided_slice %897 {offsets = [0, 256], sizes = [1, 128], strides = [1, 1]} : vector<1x512xf32> to vector<1x128xf32>
    %911 = math.tanh %910 : vector<1x128xf32>
    %912 = vector.extract_strided_slice %897 {offsets = [0, 384], sizes = [1, 128], strides = [1, 1]} : vector<1x512xf32> to vector<1x128xf32>
    %913 = arith.negf %912 : vector<1x128xf32>
    %914 = math.exp %913 : vector<1x128xf32>
    %cst_291 = arith.constant 1.000000e+00 : f32
    %915 = vector.broadcast %cst_291 : f32 to vector<1x128xf32>
    %916 = arith.addf %915, %914 : vector<1x128xf32>
    %917 = arith.divf %915, %916 : vector<1x128xf32>
    %918 = arith.mulf %909, %890 : vector<1x128xf32>
    %919 = arith.mulf %903, %911 : vector<1x128xf32>
    %920 = arith.addf %918, %919 : vector<1x128xf32>
    %921 = math.tanh %920 : vector<1x128xf32>
    %922 = arith.mulf %917, %921 : vector<1x128xf32>
    %c29_292 = arith.constant 29 : index
    %c0_293 = arith.constant 0 : index
    %923 = vector.load %arg13[%c29_292, %c0_293] : memref<32x128xf32, #tpu.memory_space<vmem>>, vector<1x128xf32>
    tpu.vector_store %arg13[%c29_292, %c0_293], %922 {strides = array<i32>} : memref<32x128xf32, #tpu.memory_space<vmem>>, vector<1x128xf32>,
    %c30 = arith.constant 30 : index
    %c0_294 = arith.constant 0 : index
    %924 = vector.load %arg12[%c30, %c0_294] : memref<32x512xf32, #tpu.memory_space<vmem>>, vector<1x512xf32>
    %c0_295 = arith.constant 0 : index
    %c0_296 = arith.constant 0 : index
    %925 = vector.load %arg7[%c0_295, %c0_296] : memref<128x512xf32, #tpu.memory_space<vmem>>, vector<128x512xf32>
    %cst_297 = arith.constant dense<0.000000e+00> : vector<1x512xf32>
    %926 = tpu.matmul %922, %925, %cst_297 {dimension_numbers = #tpu.dot_dimension_numbers<[1], [0], [0], [1], [0, 0, 1, 1], [], []>} : vector<1x128xf32>, vector<128x512xf32>, vector<1x512xf32> -> vector<1x512xf32>
    %927 = arith.addf %924, %926 : vector<1x512xf32>
    %928 = vector.extract_strided_slice %927 {offsets = [0, 0], sizes = [1, 128], strides = [1, 1]} : vector<1x512xf32> to vector<1x128xf32>
    %929 = arith.negf %928 : vector<1x128xf32>
    %930 = math.exp %929 : vector<1x128xf32>
    %cst_298 = arith.constant 1.000000e+00 : f32
    %931 = vector.broadcast %cst_298 : f32 to vector<1x128xf32>
    %932 = arith.addf %931, %930 : vector<1x128xf32>
    %933 = arith.divf %931, %932 : vector<1x128xf32>
    %934 = vector.extract_strided_slice %927 {offsets = [0, 128], sizes = [1, 128], strides = [1, 1]} : vector<1x512xf32> to vector<1x128xf32>
    %935 = arith.negf %934 : vector<1x128xf32>
    %936 = math.exp %935 : vector<1x128xf32>
    %cst_299 = arith.constant 1.000000e+00 : f32
    %937 = vector.broadcast %cst_299 : f32 to vector<1x128xf32>
    %938 = arith.addf %937, %936 : vector<1x128xf32>
    %939 = arith.divf %937, %938 : vector<1x128xf32>
    %940 = vector.extract_strided_slice %927 {offsets = [0, 256], sizes = [1, 128], strides = [1, 1]} : vector<1x512xf32> to vector<1x128xf32>
    %941 = math.tanh %940 : vector<1x128xf32>
    %942 = vector.extract_strided_slice %927 {offsets = [0, 384], sizes = [1, 128], strides = [1, 1]} : vector<1x512xf32> to vector<1x128xf32>
    %943 = arith.negf %942 : vector<1x128xf32>
    %944 = math.exp %943 : vector<1x128xf32>
    %cst_300 = arith.constant 1.000000e+00 : f32
    %945 = vector.broadcast %cst_300 : f32 to vector<1x128xf32>
    %946 = arith.addf %945, %944 : vector<1x128xf32>
    %947 = arith.divf %945, %946 : vector<1x128xf32>
    %948 = arith.mulf %939, %920 : vector<1x128xf32>
    %949 = arith.mulf %933, %941 : vector<1x128xf32>
    %950 = arith.addf %948, %949 : vector<1x128xf32>
    %951 = math.tanh %950 : vector<1x128xf32>
    %952 = arith.mulf %947, %951 : vector<1x128xf32>
    %c30_301 = arith.constant 30 : index
    %c0_302 = arith.constant 0 : index
    %953 = vector.load %arg13[%c30_301, %c0_302] : memref<32x128xf32, #tpu.memory_space<vmem>>, vector<1x128xf32>
    tpu.vector_store %arg13[%c30_301, %c0_302], %952 {strides = array<i32>} : memref<32x128xf32, #tpu.memory_space<vmem>>, vector<1x128xf32>,
    %c31 = arith.constant 31 : index
    %c0_303 = arith.constant 0 : index
    %954 = vector.load %arg12[%c31, %c0_303] : memref<32x512xf32, #tpu.memory_space<vmem>>, vector<1x512xf32>
    %c0_304 = arith.constant 0 : index
    %c0_305 = arith.constant 0 : index
    %955 = vector.load %arg7[%c0_304, %c0_305] : memref<128x512xf32, #tpu.memory_space<vmem>>, vector<128x512xf32>
    %cst_306 = arith.constant dense<0.000000e+00> : vector<1x512xf32>
    %956 = tpu.matmul %952, %955, %cst_306 {dimension_numbers = #tpu.dot_dimension_numbers<[1], [0], [0], [1], [0, 0, 1, 1], [], []>} : vector<1x128xf32>, vector<128x512xf32>, vector<1x512xf32> -> vector<1x512xf32>
    %957 = arith.addf %954, %956 : vector<1x512xf32>
    %958 = vector.extract_strided_slice %957 {offsets = [0, 0], sizes = [1, 128], strides = [1, 1]} : vector<1x512xf32> to vector<1x128xf32>
    %959 = arith.negf %958 : vector<1x128xf32>
    %960 = math.exp %959 : vector<1x128xf32>
    %cst_307 = arith.constant 1.000000e+00 : f32
    %961 = vector.broadcast %cst_307 : f32 to vector<1x128xf32>
    %962 = arith.addf %961, %960 : vector<1x128xf32>
    %963 = arith.divf %961, %962 : vector<1x128xf32>
    %964 = vector.extract_strided_slice %957 {offsets = [0, 128], sizes = [1, 128], strides = [1, 1]} : vector<1x512xf32> to vector<1x128xf32>
    %965 = arith.negf %964 : vector<1x128xf32>
    %966 = math.exp %965 : vector<1x128xf32>
    %cst_308 = arith.constant 1.000000e+00 : f32
    %967 = vector.broadcast %cst_308 : f32 to vector<1x128xf32>
    %968 = arith.addf %967, %966 : vector<1x128xf32>
    %969 = arith.divf %967, %968 : vector<1x128xf32>
    %970 = vector.extract_strided_slice %957 {offsets = [0, 256], sizes = [1, 128], strides = [1, 1]} : vector<1x512xf32> to vector<1x128xf32>
    %971 = math.tanh %970 : vector<1x128xf32>
    %972 = vector.extract_strided_slice %957 {offsets = [0, 384], sizes = [1, 128], strides = [1, 1]} : vector<1x512xf32> to vector<1x128xf32>
    %973 = arith.negf %972 : vector<1x128xf32>
    %974 = math.exp %973 : vector<1x128xf32>
    %cst_309 = arith.constant 1.000000e+00 : f32
    %975 = vector.broadcast %cst_309 : f32 to vector<1x128xf32>
    %976 = arith.addf %975, %974 : vector<1x128xf32>
    %977 = arith.divf %975, %976 : vector<1x128xf32>
    %978 = arith.mulf %969, %950 : vector<1x128xf32>
    %979 = arith.mulf %963, %971 : vector<1x128xf32>
    %980 = arith.addf %978, %979 : vector<1x128xf32>
    %981 = math.tanh %980 : vector<1x128xf32>
    %982 = arith.mulf %977, %981 : vector<1x128xf32>
    %c31_310 = arith.constant 31 : index
    %c0_311 = arith.constant 0 : index
    %983 = vector.load %arg13[%c31_310, %c0_311] : memref<32x128xf32, #tpu.memory_space<vmem>>, vector<1x128xf32>
    tpu.vector_store %arg13[%c31_310, %c0_311], %982 {strides = array<i32>} : memref<32x128xf32, #tpu.memory_space<vmem>>, vector<1x128xf32>,
    %c0_312 = arith.constant 0 : index
    %c0_313 = arith.constant 0 : index
    %984 = vector.load %arg13[%c0_312, %c0_313] : memref<32x128xf32, #tpu.memory_space<vmem>>, vector<32x128xf32>
    %c0_314 = arith.constant 0 : index
    %c0_315 = arith.constant 0 : index
    %985 = vector.load %arg8[%c0_314, %c0_315] : memref<128x128xf32, #tpu.memory_space<vmem>>, vector<128x128xf32>
    %cst_316 = arith.constant dense<0.000000e+00> : vector<32x128xf32>
    %986 = tpu.matmul %984, %985, %cst_316 {dimension_numbers = #tpu.dot_dimension_numbers<[1], [0], [0], [1], [0, 0, 1, 1], [], []>} : vector<32x128xf32>, vector<128x128xf32>, vector<32x128xf32> -> vector<32x128xf32>
    %c0_317 = arith.constant 0 : index
    %c0_318 = arith.constant 0 : index
    %987 = vector.load %arg9[%c0_317, %c0_318] : memref<1x128xf32, #tpu.memory_space<vmem>>, vector<1x128xf32>
    %988 = vector.broadcast %987 : vector<1x128xf32> to vector<32x128xf32>
    %989 = arith.addf %986, %988 : vector<32x128xf32>
    %c0_319 = arith.constant 0 : index
    %c0_320 = arith.constant 0 : index
    %990 = vector.load %arg11[%c0_319, %c0_320] : memref<32x128xf32, #tpu.memory_space<vmem>>, vector<32x128xf32>
    tpu.vector_store %arg11[%c0_319, %c0_320], %989 {strides = array<i32>} : memref<32x128xf32, #tpu.memory_space<vmem>>, vector<32x128xf32>,
    return
  }
}

</mosaic_0001>

<bundles_post_ra>
// kernel: tpu_custom_call.1
= control target key start
LH: loop header
LB: loop body
LE: loop exit
PB: predicated region body
PF: predicated region fallthrough
CT: control target
= control target key end

     0   :  { %18 = vsyncpa [#allocation6], 0  ;;  %s15628_s0 = inlined_call_operand.<no memory space> [shape: s32[1], index: 0, kind: input, shape index: {}]   ;;  %s15629_s1 = inlined_call_operand.hbm [shape: bf16[8,768], index: 1, kind: input, shape index: {}]   ;;  %s15630_s2 = inlined_call_operand.hbm [shape: f32[32,256], index: 2, kind: input, shape index: {}]   ;;  %s15631_s3 = inlined_call_operand.hbm [shape: bf16[768,256], index: 3, kind: input, shape index: {}]   ;;  %s15632_s4 = inlined_call_operand.vmem [shape: f32[1,256], index: 4, kind: input, shape index: {}]   ;;  %s15633_s5 = inlined_call_operand.hbm [shape: bf16[256,512], index: 5, kind: input, shape index: {}]   ;;  %s15634_s6 = inlined_call_operand.vmem [shape: f32[1,512], index: 6, kind: input, shape index: {}]   ;;  %s15635_s7 = inlined_call_operand.hbm [shape: f32[128,512], index: 7, kind: input, shape index: {}]   ;;  %s15636_s8 = inlined_call_operand.hbm [shape: f32[128,128], index: 8, kind: input, shape index: {}]   ;;  %s15637_s9 = inlined_call_operand.vmem [shape: f32[1,128], index: 9, kind: input, shape index: {}]   ;;  %s15638_s10 = inlined_call_operand.hbm [shape: f32[32,256], index: 10, kind: output, shape index: {0}]   ;;  %s15639_s11 = inlined_call_operand.hbm [shape: f32[32,128], index: 11, kind: output, shape index: {1}]  }
   0x1   :  { %19 = vsyncpa [#allocation9], 0 }
   0x2   :  { %20 = vsyncpa [#allocation12], 0 }
   0x3   :  { %21 = vsyncpa [#allocation15], 0 }
   0x4   :  { %22 = vsyncpa [#allocation7], 0 }
   0x5   :  { %23 = vsyncpa [#allocation18], 0  ;;  %s13590_s17 = smov [#allocation8]   ;;  %s13402_s21 = scalar_lea.hbm %s15630_s2, 1024 }
   0x6   :  { %s41_s18 = sshll.u32 %s13590_s17, 4  ;;  %p13403_p0 = scmp.ne.s32.totalorder %s15630_s2, %s13402_s21  ;;  %s42_s18 = int_to_ptr.vmem [resolvable:$true] %s41_s18 }
   0x7   :  { %p13406_p1 = scmp.lt.u32.totalorder %s13402_s21, %s15630_s2 }
   0x9   :  { %p13408_p2 = pnand %p13406_p1, %p13403_p0 }
   0xb   :  { %13411 = shalt.err (!%p13408_p2)
}
   0xc   :  { %s13412_s26 = scalar_lea.vmem %s42_s18, 1024  ;;  %p13417_p4 = scmp.lt.s32.totalorder %s42_s18, %s42_s18 }
   0xd   :  { %p13413_p3 = scmp.ne.s32.totalorder %s42_s18, %s13412_s26  ;;  %p13418_p5 = scmp.lt.s32.totalorder %s13412_s26, %s13412_s26 }
   0xf   :  { %p13419_p6 = por %p13418_p5, %p13417_p4 }
  0x11   :  { %p13420_p7 = pnand %p13419_p6, %p13413_p3 }
  0x13   :  { %13423 = shalt.err (!%p13420_p7)
}
  0x14   :  { %s13591_s27 = smov 256   ;;  %s13592_s28 = smov 16  }
  0x15   :  { %47 = dma.hbm_to_vmem [thread:$0]  %s15630_s2, 1024, %s42_s18, [#allocation9], %s13591_s27, %s13591_s27, %s13592_s28  }
  0x16   :  { %s13593_s12 = smov [#allocation11]   ;;  %s13594_s14 = smov [#allocation5]  }
  0x17   :  { %s67_s13 = sshll.u32 %s13593_s12, 4  ;;  %s32_s15 = sshll.u32 %s13594_s14, 4  ;;  %s68_s13 = int_to_ptr.vmem [resolvable:$true] %s67_s13  ;;  %s33_s15 = int_to_ptr.vmem [resolvable:$true] %s32_s15 }
  0x18   :  { %s13424_s19 = scalar_lea.hbm %s15633_s5, 8192 }
  0x19   :  { %p13425_p8 = scmp.ne.s32.totalorder %s15633_s5, %s13424_s19  ;;  %p13428_p9 = scmp.lt.u32.totalorder %s13424_s19, %s15633_s5 }
  0x1b   :  { %p13430_p10 = pnand %p13428_p9, %p13425_p8 }
  0x1d   :  { %13433 = shalt.err (!%p13430_p10)
}
  0x1e   :  { %s13434_s2 = scalar_lea.vmem %s68_s13, 8192  ;;  %p13439_p12 = scmp.lt.s32.totalorder %s68_s13, %s68_s13 }
  0x1f   :  { %p13435_p11 = scmp.ne.s32.totalorder %s68_s13, %s13434_s2  ;;  %p13440_p13 = scmp.lt.s32.totalorder %s13434_s2, %s13434_s2 }
  0x21   :  { %p13441_p0 = por %p13440_p13, %p13439_p12 }
  0x23   :  { %p13442_p1 = pnand %p13441_p0, %p13435_p11 }
  0x25   :  { %13445 = shalt.err (!%p13442_p1)
}
  0x26   :  { %73 = dma.hbm_to_vmem [thread:$0]  %s15633_s5, 8192, %s68_s13, [#allocation12], %s13591_s27, %s13591_s27, %s13592_s28  }
  0x27   :  { %s13446_s29 = scalar_lea.hbm %s15629_s1, 384 }
  0x28   :  { %p13447_p2 = scmp.ne.s32.totalorder %s15629_s1, %s13446_s29  ;;  %p13450_p3 = scmp.lt.u32.totalorder %s13446_s29, %s15629_s1 }
  0x2a   :  { %p13452_p4 = pnand %p13450_p3, %p13447_p2 }
  0x2c   :  { %13455 = shalt.err (!%p13452_p4)
}
  0x2d   :  { %s13456_s17 = scalar_lea.vmem %s33_s15, 384  ;;  %p13461_p6 = scmp.lt.s32.totalorder %s33_s15, %s33_s15 }
  0x2e   :  { %p13457_p5 = scmp.ne.s32.totalorder %s33_s15, %s13456_s17  ;;  %p13462_p7 = scmp.lt.s32.totalorder %s13456_s17, %s13456_s17 }
  0x30   :  { %p13463_p8 = por %p13462_p7, %p13461_p6 }
  0x32   :  { %p13464_p9 = pnand %p13463_p8, %p13457_p5 }
  0x34   :  { %13467 = shalt.err (!%p13464_p9)
}
  0x35   :  { %35 = dma.hbm_to_vmem [thread:$0]  %s15629_s1, 384, %s33_s15, [#allocation6]  }
  0x36   :  { %s13595_s19 = smov [#allocation10]   ;;  %s13468_s23 = scalar_lea.hbm %s15631_s3, 12288 }
  0x37   :  { %s53_s20 = sshll.u32 %s13595_s19, 4  ;;  %p13469_p10 = scmp.ne.s32.totalorder %s15631_s3, %s13468_s23  ;;  %s54_s20 = int_to_ptr.vmem [resolvable:$true] %s53_s20 }
  0x38   :  { %p13472_p11 = scmp.lt.u32.totalorder %s13468_s23, %s15631_s3 }
  0x3a   :  { %p13474_p12 = pnand %p13472_p11, %p13469_p10 }
  0x3c   :  { %13477 = shalt.err (!%p13474_p12)
}
  0x3d   :  { %s13478_s26 = scalar_lea.vmem %s54_s20, 12288  ;;  %p13483_p0 = scmp.lt.s32.totalorder %s54_s20, %s54_s20 }
  0x3e   :  { %p13479_p13 = scmp.ne.s32.totalorder %s54_s20, %s13478_s26  ;;  %p13484_p1 = scmp.lt.s32.totalorder %s13478_s26, %s13478_s26 }
  0x40   :  { %p13485_p2 = por %p13484_p1, %p13483_p0 }
  0x42   :  { %p13486_p3 = pnand %p13485_p2, %p13479_p13 }
  0x44   :  { %13489 = shalt.err (!%p13486_p3)
}
  0x45   :  { %s13596_s1 = smov 128   ;;  %s13597_s15 = smov 8  }
  0x46   :  { %59 = dma.hbm_to_vmem [thread:$0]  %s15631_s3, 12288, %s54_s20, [#allocation9], %s13596_s1, %s13596_s1, %s13597_s15  }
  0x47   :  { %s13598_s12 = smov [#allocation13]   ;;  %s13490_s5 = scalar_lea.hbm %s15635_s7, 8192 }
  0x48   :  { %s81_s14 = sshll.u32 %s13598_s12, 4  ;;  %p13491_p4 = scmp.ne.s32.totalorder %s15635_s7, %s13490_s5  ;;  %s82_s14 = int_to_ptr.vmem [resolvable:$true] %s81_s14 }
  0x49   :  { %p13494_p5 = scmp.lt.u32.totalorder %s13490_s5, %s15635_s7 }
  0x4b   :  { %p13496_p6 = pnand %p13494_p5, %p13491_p4 }
  0x4d   :  { %13499 = shalt.err (!%p13496_p6)
}
  0x4e   :  { %s13500_s23 = scalar_lea.vmem %s82_s14, 8192  ;;  %p13505_p8 = scmp.lt.s32.totalorder %s82_s14, %s82_s14 }
  0x4f   :  { %p13501_p7 = scmp.ne.s32.totalorder %s82_s14, %s13500_s23  ;;  %p13506_p9 = scmp.lt.s32.totalorder %s13500_s23, %s13500_s23 }
  0x51   :  { %p13507_p10 = por %p13506_p9, %p13505_p8 }
  0x53   :  { %p13508_p11 = pnand %p13507_p10, %p13501_p7 }
  0x55   :  { %13511 = shalt.err (!%p13508_p11)
}
  0x56   :  { %s13599_s3 = smov 512   ;;  %s13600_s20 = smov 32  }
  0x57   :  { %87 = dma.hbm_to_vmem [thread:$0]  %s15635_s7, 8192, %s82_s14, [#allocation12], %s13599_s3, %s13599_s3, %s13600_s20  }
  0x58   :  { %s13601_s24 = smov [#allocation14]   ;;  %s13512_s30 = scalar_lea.hbm %s15636_s8, 2048 }
  0x59   :  { %s93_s25 = sshll.u32 %s13601_s24, 4  ;;  %p13513_p12 = scmp.ne.s32.totalorder %s15636_s8, %s13512_s30  ;;  %s94_s25 = int_to_ptr.vmem [resolvable:$true] %s93_s25 }
  0x5a   :  { %p13516_p13 = scmp.lt.u32.totalorder %s13512_s30, %s15636_s8 }
  0x5c   :  { %p13518_p0 = pnand %p13516_p13, %p13513_p12 }
  0x5e   :  { %13521 = shalt.err (!%p13518_p0)
}
  0x5f   :  { %s13522_s13 = scalar_lea.vmem %s94_s25, 2048  ;;  %p13527_p2 = scmp.lt.s32.totalorder %s94_s25, %s94_s25 }
  0x60   :  { %p13523_p1 = scmp.ne.s32.totalorder %s94_s25, %s13522_s13  ;;  %p13528_p3 = scmp.lt.s32.totalorder %s13522_s13, %s13522_s13 }
  0x62   :  { %p13529_p4 = por %p13528_p3, %p13527_p2 }
  0x64   :  { %p13530_p5 = pnand %p13529_p4, %p13523_p1 }
  0x66   :  { %13533 = shalt.err (!%p13530_p5)
}
  0x67   :  { %99 = dma.hbm_to_vmem [thread:$0]  %s15636_s8, 2048, %s94_s25, [#allocation15], %s13596_s1, %s13596_s1, %s13597_s15  }
  0x68   :  { %13578 = dma.done.wait [#allocation6], 384  }
  0x69   :  { %13579 = vsyncadd [#allocation6], 4294966912 }
  0x6a   :  { %13580 = dma.done.wait [#allocation9], 13312  }
  0x6b   :  { %13581 = vsyncadd [#allocation9], 4294953984 }
  0x6c   :  { %13582 = dma.done.wait [#allocation12], 16384  }
  0x6d   :  { %13583 = vsyncadd [#allocation12], 4294950912 }
  0x6e   :  { %13584 = dma.done.wait [#allocation15], 2048  }
  0x6f   :  { %13585 = vsyncadd [#allocation15], 4294965248  ;;  %v12644_v0 = vld [vmem:[#allocation10 + $0x4] ss:$8 sps:$4 sm:$0xff]   ;;  %v12646_v1 = vld [vmem:[#allocation10] ss:$8 sps:$4 sm:$0xff]  }
  0x70   :  { %732 = vmatprep.subr.bf16.mxu0 %v12644_v0  ;;  %v12647_v2 = vld [vmem:[#allocation10 + $0x14] ss:$8 sps:$4 sm:$0xff]   ;;  %v12649_v3 = vld [vmem:[#allocation10 + $0x10] ss:$8 sps:$4 sm:$0xff]   ;;  %v12650_v4 = vld [vmem:[#allocation10 + $0x24] ss:$8 sps:$4 sm:$0xff]  }
  0x71   :  { %733 = vmatpush1.bf16.msra.mxu0 %v12646_v1  ;;  %v12652_v5 = vld [vmem:[#allocation10 + $0x20] ss:$8 sps:$4 sm:$0xff]   ;;  %v12653_v6 = vld [vmem:[#allocation10 + $0x34] ss:$8 sps:$4 sm:$0xff]   ;;  %v12655_v7 = vld [vmem:[#allocation10 + $0x30] ss:$8 sps:$4 sm:$0xff]  }
  0x72   :  { %734 = vmatprep.subr.bf16.mxu0 %v12647_v2  ;;  %v12656_v8 = vld [vmem:[#allocation10 + $0x44] ss:$8 sps:$4 sm:$0xff]   ;;  %v12658_v9 = vld [vmem:[#allocation10 + $0x40] ss:$8 sps:$4 sm:$0xff]   ;;  %v12659_v10 = vld [vmem:[#allocation10 + $0x54] ss:$8 sps:$4 sm:$0xff]  }
  0x73   :  { %v12661_v11 = vld [vmem:[#allocation10 + $0x50] ss:$8 sps:$4 sm:$0xff]   ;;  %v12662_v12 = vld [vmem:[#allocation10 + $0x64] ss:$8 sps:$4 sm:$0xff]   ;;  %v12664_v15 = vld [vmem:[#allocation10 + $0x60] ss:$8 sps:$4 sm:$0xff]  }
  0x74   :  { %v120_v13 = vld [vmem:[#allocation5] sm:$0xff]  ;;  %v12665_v16 = vld [vmem:[#allocation10 + $0x74] ss:$8 sps:$4 sm:$0xff]   ;;  %v12667_v17 = vld [vmem:[#allocation10 + $0x70] ss:$8 sps:$4 sm:$0xff]   ;;  %s874_s23 = sshra.s32 %s15628_s0, 3 }
  0x75   :  { %735 = vmatpush1.bf16.msra.mxu0 %v12649_v3  ;;  %v10215_v14 = vcombine.high %v120_v13, %v120_v13  ;;  %v12668_v18 = vld [vmem:[#allocation10 + $0x84] ss:$8 sps:$4 sm:$0xff]   ;;  %v12670_v19 = vld [vmem:[#allocation10 + $0x80] ss:$8 sps:$4 sm:$0xff]   ;;  %v12671_v20 = vld [vmem:[#allocation10 + $0x94] ss:$8 sps:$4 sm:$0xff]   ;;  %v10214_v36 = vcombine.low %v120_v13, %v120_v13 }
  0x76   :  { %736 = vmatprep.subr.bf16.mxu0 %v12650_v4  ;;  %v12673_v21 = vld [vmem:[#allocation10 + $0x90] ss:$8 sps:$4 sm:$0xff]   ;;  %v12674_v22 = vld [vmem:[#allocation10 + $0xa4] ss:$8 sps:$4 sm:$0xff]   ;;  %v12676_v23 = vld [vmem:[#allocation10 + $0xa0] ss:$8 sps:$4 sm:$0xff]  }
  0x77   :  { %764 = vmatprep.mubr.bf16.mxu0 %v10215_v14  ;;  %v12677_v24 = vld [vmem:[#allocation10 + $0xb4] ss:$8 sps:$4 sm:$0xff]   ;;  %v12679_v25 = vld [vmem:[#allocation10 + $0xb0] ss:$8 sps:$4 sm:$0xff]   ;;  %v12680_v26 = vld [vmem:[#allocation10 + $0xc4] ss:$8 sps:$4 sm:$0xff]  }
  0x78   :  { %v12682_v27 = vld [vmem:[#allocation10 + $0xc0] ss:$8 sps:$4 sm:$0xff]   ;;  %v12683_v28 = vld [vmem:[#allocation10 + $0xd4] ss:$8 sps:$4 sm:$0xff]   ;;  %v12685_v29 = vld [vmem:[#allocation10 + $0xd0] ss:$8 sps:$4 sm:$0xff]  }
  0x79   :  { %737 = vmatpush1.bf16.msra.mxu0 %v12652_v5  ;;  %v12686_v30 = vld [vmem:[#allocation10 + $0xe4] ss:$8 sps:$4 sm:$0xff]   ;;  %v12688_v31 = vld [vmem:[#allocation10 + $0xe0] ss:$8 sps:$4 sm:$0xff]   ;;  %v12689_v32 = vld [vmem:[#allocation10 + $0xf4] ss:$8 sps:$4 sm:$0xff]  }
  0x7a   :  { %738 = vmatprep.subr.bf16.mxu0 %v12653_v6  ;;  %v12691_v33 = vld [vmem:[#allocation10 + $0xf0] ss:$8 sps:$4 sm:$0xff]   ;;  %v12696_v34 = vld [vmem:[#allocation10 + $0x104] ss:$8 sps:$4 sm:$0xff]   ;;  %v12694_v37 = vld [vmem:[#allocation10 + $0x100] ss:$8 sps:$4 sm:$0xff]  }
  0x7b   :  { %v13750_v35 = vld [vmem:[#allocation5 + $0x8] sm:$0xff]  ;;  %v12702_v44 = vld [vmem:[#allocation10 + $0x124] ss:$8 sps:$4 sm:$0xff]   ;;  %v12700_v47 = vld [vmem:[#allocation10 + $0x120] ss:$8 sps:$4 sm:$0xff]   ;;  %s10479_s3 = sshll.u32 %s874_s23, 4 }
  0x7c   :  { %v10217_v38 = vcombine.high %v13750_v35, %v13750_v35  ;;  %v12699_v39 = vld [vmem:[#allocation10 + $0x114] ss:$8 sps:$4 sm:$0xff]   ;;  %v12796_v41 = vld [vmem:[#allocation11] ss:$16 sps:$4 sm:$0xff]   ;;  %v12708_v52 = vld [vmem:[#allocation10 + $0x144] ss:$8 sps:$4 sm:$0xff]  }
  0x7d   :  { %739 = vmatpush1.bf16.msra.mxu0 %v12655_v7  ;;  %v12794_v40 = vld [vmem:[#allocation11 + $0x4] ss:$16 sps:$4 sm:$0xff]   ;;  %v12697_v42 = vld [vmem:[#allocation10 + $0x110] ss:$8 sps:$4 sm:$0xff]   ;;  %v12706_v55 = vld [vmem:[#allocation10 + $0x140] ss:$8 sps:$4 sm:$0xff]  }
  0x7e   :  { %740 = vmatprep.subr.bf16.mxu0 %v12656_v8  ;;  %v12797_v43 = vld [vmem:[#allocation11 + $0x24] ss:$16 sps:$4 sm:$0xff]   ;;  %1299 = vmatprep.subr.bf16.mxu1 %v12794_v40  ;;  %v12799_v45 = vld [vmem:[#allocation11 + $0x20] ss:$16 sps:$4 sm:$0xff]  }
  0x7f   :  { %1300 = vmatpush1.bf16.msra.mxu1 %v12796_v41  ;;  %v12800_v46 = vld [vmem:[#allocation11 + $0x44] ss:$16 sps:$4 sm:$0xff]   ;;  %v12802_v49 = vld [vmem:[#allocation11 + $0x40] ss:$16 sps:$4 sm:$0xff]  }
  0x80   :  { %1301 = vmatprep.subr.bf16.mxu1 %v12797_v43  ;;  %v12705_v48 = vld [vmem:[#allocation10 + $0x134] ss:$8 sps:$4 sm:$0xff]   ;;  %v12703_v51 = vld [vmem:[#allocation10 + $0x130] ss:$8 sps:$4 sm:$0xff]   ;;  %v12714_v60 = vld [vmem:[#allocation10 + $0x164] ss:$8 sps:$4 sm:$0xff]  }
  0x81   :  { %741 = vmatpush1.bf16.msra.mxu0 %v12658_v9  ;;  %v12803_v50 = vld [vmem:[#allocation11 + $0x64] ss:$16 sps:$4 sm:$0xff]   ;;  %v12805_v53 = vld [vmem:[#allocation11 + $0x60] ss:$16 sps:$4 sm:$0xff]  }
  0x82   :  { %742 = vmatprep.subr.bf16.mxu0 %v12659_v10  ;;  %v12806_v54 = vld [vmem:[#allocation11 + $0x84] ss:$16 sps:$4 sm:$0xff]   ;;  %v12808_v57 = vld [vmem:[#allocation11 + $0x80] ss:$16 sps:$4 sm:$0xff]  }
  0x83   :  { %1302 = vmatpush1.bf16.msra.mxu1 %v12799_v45  ;;  %v12711_v56 = vld [vmem:[#allocation10 + $0x154] ss:$8 sps:$4 sm:$0xff]   ;;  %v12709_v58 = vld [vmem:[#allocation10 + $0x150] ss:$8 sps:$4 sm:$0xff]   ;;  %v12712_v63 = vld [vmem:[#allocation10 + $0x160] ss:$8 sps:$4 sm:$0xff]  }
  0x84   :  { %1303 = vmatprep.subr.bf16.mxu1 %v12800_v46  ;;  %v12809_v59 = vld [vmem:[#allocation11 + $0xa4] ss:$16 sps:$4 sm:$0xff]   ;;  %v12811_v61 = vld [vmem:[#allocation11 + $0xa0] ss:$16 sps:$4 sm:$0xff]  }
  0x85   :  { %743 = vmatpush1.bf16.msra.mxu0 %v12661_v11  ;;  %v12812_v62 = vld [vmem:[#allocation11 + $0xc4] ss:$16 sps:$4 sm:$0xff]   ;;  %v12814_v1 = vld [vmem:[#allocation11 + $0xc0] ss:$16 sps:$4 sm:$0xff]  }
  0x86   :  { %744 = vmatprep.subr.bf16.mxu0 %v12662_v12  ;;  %v12717_v0 = vld [vmem:[#allocation10 + $0x174] ss:$8 sps:$4 sm:$0xff]   ;;  %v12715_v3 = vld [vmem:[#allocation10 + $0x170] ss:$8 sps:$4 sm:$0xff]   ;;  %v12720_v4 = vld [vmem:[#allocation10 + $0x184] ss:$8 sps:$4 sm:$0xff]  }
  0x87   :  { %1304 = vmatpush1.bf16.msra.mxu1 %v12802_v49  ;;  %v12815_v2 = vld [vmem:[#allocation11 + $0xe4] ss:$16 sps:$4 sm:$0xff]   ;;  %v12817_v5 = vld [vmem:[#allocation11 + $0xe0] ss:$16 sps:$4 sm:$0xff]  }
  0x88   :  { %1305 = vmatprep.subr.bf16.mxu1 %v12803_v50  ;;  %v12818_v6 = vld [vmem:[#allocation11 + $0x104] ss:$16 sps:$4 sm:$0xff]   ;;  %v12718_v7 = vld [vmem:[#allocation10 + $0x180] ss:$8 sps:$4 sm:$0xff]   ;;  %v12721_v11 = vld [vmem:[#allocation10 + $0x190] ss:$8 sps:$4 sm:$0xff]  }
  0x89   :  { %745 = vmatpush1.bf16.msra.mxu0 %v12664_v15  ;;  %v12723_v8 = vld [vmem:[#allocation10 + $0x194] ss:$8 sps:$4 sm:$0xff]   ;;  %v12820_v9 = vld [vmem:[#allocation11 + $0x100] ss:$16 sps:$4 sm:$0xff]   ;;  %v12726_v12 = vld [vmem:[#allocation10 + $0x1a4] ss:$8 sps:$4 sm:$0xff]  }
  0x8a   :  { %746 = vmatprep.subr.bf16.mxu0 %v12665_v16  ;;  %v12821_v10 = vld [vmem:[#allocation11 + $0x124] ss:$16 sps:$4 sm:$0xff]   ;;  %v12823_v13 = vld [vmem:[#allocation11 + $0x120] ss:$16 sps:$4 sm:$0xff]  }
  0x8b   :  { %1306 = vmatpush1.bf16.msra.mxu1 %v12805_v53  ;;  %v12824_v14 = vld [vmem:[#allocation11 + $0x144] ss:$16 sps:$4 sm:$0xff]   ;;  %v12724_v15 = vld [vmem:[#allocation10 + $0x1a0] ss:$8 sps:$4 sm:$0xff]   ;;  %v12753_v40 = vld [vmem:[#allocation10 + $0x230] ss:$8 sps:$4 sm:$0xff]  }
  0x8c   :  { %1307 = vmatprep.subr.bf16.mxu1 %v12806_v54  ;;  %v12729_v16 = vld [vmem:[#allocation10 + $0x1b4] ss:$8 sps:$4 sm:$0xff]   ;;  %v12756_v41 = vld [vmem:[#allocation10 + $0x240] ss:$8 sps:$4 sm:$0xff]   ;;  %v12759_v43 = vld [vmem:[#allocation10 + $0x250] ss:$8 sps:$4 sm:$0xff]  }
  0x8d   :  { %747 = vmatpush1.bf16.msra.mxu0 %v12667_v17  ;;  %v12826_v17 = vld [vmem:[#allocation11 + $0x140] ss:$16 sps:$4 sm:$0xff]   ;;  %v12767_v46 = vld [vmem:[#allocation10 + $0x274] ss:$8 sps:$4 sm:$0xff]  }
  0x8e   :  { %748 = vmatprep.subr.bf16.mxu0 %v12668_v18  ;;  %v12827_v18 = vld [vmem:[#allocation11 + $0x164] ss:$16 sps:$4 sm:$0xff]   ;;  %v12762_v45 = vld [vmem:[#allocation10 + $0x260] ss:$8 sps:$4 sm:$0xff]  }
  0x8f   :  { %1308 = vmatpush1.bf16.msra.mxu1 %v12808_v57  ;;  %v12768_v49 = vld [vmem:[#allocation10 + $0x280] ss:$8 sps:$4 sm:$0xff]   ;;  %v12773_v50 = vld [vmem:[#allocation10 + $0x294] ss:$8 sps:$4 sm:$0xff]  }
  0x90   :  { %1309 = vmatprep.subr.bf16.mxu1 %v12809_v59  ;;  %v12774_v53 = vld [vmem:[#allocation10 + $0x2a0] ss:$8 sps:$4 sm:$0xff]   ;;  %v12779_v54 = vld [vmem:[#allocation10 + $0x2b4] ss:$8 sps:$4 sm:$0xff]   ;;  %v12783_v59 = vld [vmem:[#allocation10 + $0x2d0] ss:$8 sps:$4 sm:$0xff]  }
  0x91   :  { %749 = vmatpush1.bf16.msra.mxu0 %v12670_v19  ;;  %v12727_v19 = vld [vmem:[#allocation10 + $0x1b0] ss:$8 sps:$4 sm:$0xff]   ;;  %v12780_v57 = vld [vmem:[#allocation10 + $0x2c0] ss:$8 sps:$4 sm:$0xff]  }
  0x92   :  { %750 = vmatprep.subr.bf16.mxu0 %v12671_v20  ;;  %v12732_v20 = vld [vmem:[#allocation10 + $0x1c4] ss:$8 sps:$4 sm:$0xff]  }
  0x93   :  { %1310 = vmatpush1.bf16.msra.mxu1 %v12811_v61  ;;  %v12786_v61 = vld [vmem:[#allocation10 + $0x2e0] ss:$8 sps:$4 sm:$0xff]  }
  0x94   :  { %1311 = vmatprep.subr.bf16.mxu1 %v12812_v62  ;;  %v12791_v62 = vld [vmem:[#allocation10 + $0x2f4] ss:$8 sps:$4 sm:$0xff]  }
  0x95   :  { %751 = vmatpush1.bf16.msra.mxu0 %v12673_v21  ;;  %v12829_v21 = vld [vmem:[#allocation11 + $0x160] ss:$16 sps:$4 sm:$0xff]  }
  0x96   :  { %752 = vmatprep.subr.bf16.mxu0 %v12674_v22  ;;  %v12730_v22 = vld [vmem:[#allocation10 + $0x1c0] ss:$8 sps:$4 sm:$0xff]  }
  0x97   :  { %1312 = vmatpush1.bf16.msra.mxu1 %v12814_v1  ;;  %v12830_v1 = vld [vmem:[#allocation11 + $0x184] ss:$16 sps:$4 sm:$0xff]  }
  0x98   :  { %1313 = vmatprep.subr.bf16.mxu1 %v12815_v2  ;;  %v12832_v2 = vld [vmem:[#allocation11 + $0x180] ss:$16 sps:$4 sm:$0xff]  }
  0x99   :  { %753 = vmatpush1.bf16.msra.mxu0 %v12676_v23  ;;  %v12735_v23 = vld [vmem:[#allocation10 + $0x1d4] ss:$8 sps:$4 sm:$0xff]  }
  0x9a   :  { %754 = vmatprep.subr.bf16.mxu0 %v12677_v24  ;;  %v12733_v24 = vld [vmem:[#allocation10 + $0x1d0] ss:$8 sps:$4 sm:$0xff]  }
  0x9b   :  { %1314 = vmatpush1.bf16.msra.mxu1 %v12817_v5  ;;  %v12836_v5 = vld [vmem:[#allocation11 + $0x1c4] ss:$16 sps:$4 sm:$0xff]  }
  0x9c   :  { %1315 = vmatprep.subr.bf16.mxu1 %v12818_v6  ;;  %v12838_v6 = vld [vmem:[#allocation11 + $0x1c0] ss:$16 sps:$4 sm:$0xff]  }
  0x9d   :  { %755 = vmatpush1.bf16.msra.mxu0 %v12679_v25  ;;  %v12738_v25 = vld [vmem:[#allocation10 + $0x1e4] ss:$8 sps:$4 sm:$0xff]  }
  0x9e   :  { %756 = vmatprep.subr.bf16.mxu0 %v12680_v26  ;;  %v12736_v26 = vld [vmem:[#allocation10 + $0x1e0] ss:$8 sps:$4 sm:$0xff]  }
  0x9f   :  { %1316 = vmatpush1.bf16.msra.mxu1 %v12820_v9  ;;  %v858_v9 = vld [vmem:[#allocation8 + $0x8] sm:$0xff] }
  0xa0   :  { %1317 = vmatprep.subr.bf16.mxu1 %v12821_v10  ;;  %v859_v10 = vld [vmem:[#allocation8 + $0x10] sm:$0xff]  ;;  %866 = vst [vmem:[#allocation16 + $0x8] sm:$0xff] %v858_v9 }
  0xa1   :  { %757 = vmatpush1.bf16.msra.mxu0 %v12682_v27  ;;  %v12741_v27 = vld [vmem:[#allocation10 + $0x1f4] ss:$8 sps:$4 sm:$0xff]   ;;  %867 = vst [vmem:[#allocation16 + $0x10] sm:$0xff] %v859_v10 }
  0xa2   :  { %758 = vmatprep.subr.bf16.mxu0 %v12683_v28  ;;  %v12739_v28 = vld [vmem:[#allocation10 + $0x1f0] ss:$8 sps:$4 sm:$0xff]  }
  0xa3   :  { %1318 = vmatpush1.bf16.msra.mxu1 %v12823_v13  ;;  %v862_v13 = vld [vmem:[#allocation8 + $0x28] sm:$0xff] }
  0xa4   :  { %1319 = vmatprep.subr.bf16.mxu1 %v12824_v14  ;;  %v863_v14 = vld [vmem:[#allocation8 + $0x30] sm:$0xff]  ;;  %870 = vst [vmem:[#allocation16 + $0x28] sm:$0xff] %v862_v13 }
  0xa5   :  { %759 = vmatpush1.bf16.msra.mxu0 %v12685_v29  ;;  %v12746_v29 = vld [vmem:[#allocation10 + $0x204] ss:$8 sps:$4 sm:$0xff]   ;;  %871 = vst [vmem:[#allocation16 + $0x30] sm:$0xff] %v863_v14 }
  0xa6   :  { %760 = vmatprep.subr.bf16.mxu0 %v12686_v30  ;;  %v13754_v30 = vld [vmem:[#allocation5 + $0x10] sm:$0xff] }
  0xa7   :  { %1320 = vmatpush1.bf16.msra.mxu1 %v12826_v17  ;;  %v12844_v17 = vld [vmem:[#allocation11 + $0xc] ss:$16 sps:$4 sm:$0xff]  }
  0xa8   :  { %1321 = vmatprep.subr.bf16.mxu1 %v12827_v18  ;;  %v1423_v18 = vld [vmem:[#allocation13 + $0x8] sm:$0xff] }
  0xa9   :  { %761 = vmatpush1.bf16.msra.mxu0 %v12688_v31  ;;  %v10216_v31 = vcombine.low %v13750_v35, %v13750_v35  ;;  %v12758_v35 = vld [vmem:[#allocation10 + $0x244] ss:$8 sps:$4 sm:$0xff]  }
  0xaa   :  { %762 = vmatprep.subr.bf16.mxu0 %v12689_v32  ;;  %v12744_v32 = vld [vmem:[#allocation10 + $0x200] ss:$8 sps:$4 sm:$0xff]  }
  0xab   :  { %1322 = vmatpush1.bf16.msra.mxu1 %v12829_v21  ;;  %v1422_v21 = vld [vmem:[#allocation13] sm:$0xff] }
  0xac   :  { %1323 = vmatprep.subr.bf16.mxu1 %v12830_v1 }
  0xad   :  { %763 = vmatpush1.bf16.msra.mxu0 %v12691_v33  ;;  %v10219_v33 = vcombine.high %v13754_v30, %v13754_v30 }
  0xae   :  { %773 = vmatprep.subr.bf16.mxu0 %v12696_v34  ;;  %v12749_v34 = vld [vmem:[#allocation10 + $0x214] ss:$8 sps:$4 sm:$0xff]  }
  0xaf   :  { %1324 = vmatpush1.bf16.msra.mxu1 %v12832_v2  ;;  %v13602_v2 = vmov 0.0  }
  0xb0   :  { %765 = vmatmul.mubr.bf16.vlgmr.msra.gmra.mrb[0].mxu0 %v10214_v36  ;;  %v12747_v36 = vld [vmem:[#allocation10 + $0x210] ss:$8 sps:$4 sm:$0xff]  }
  0xb1   :  { %774 = vmatpush1.bf16.msra.mxu0 %v12694_v37  ;;  %805 = vmatprep.mubr.bf16.mxu0 %v10217_v38  ;;  %v12752_v37 = vld [vmem:[#allocation10 + $0x224] ss:$8 sps:$4 sm:$0xff]   ;;  %v12750_v38 = vld [vmem:[#allocation10 + $0x220] ss:$8 sps:$4 sm:$0xff]  }
  0xb2   :  { %775 = vmatprep.subr.bf16.mxu0 %v12699_v39  ;;  %v12755_v39 = vld [vmem:[#allocation10 + $0x234] ss:$8 sps:$4 sm:$0xff]  }
  0xb5   :  { %776 = vmatpush1.bf16.msra.mxu0 %v12697_v42  ;;  %v12761_v42 = vld [vmem:[#allocation10 + $0x254] ss:$8 sps:$4 sm:$0xff]  }
  0xb6   :  { %777 = vmatprep.subr.bf16.mxu0 %v12702_v44  ;;  %v12764_v44 = vld [vmem:[#allocation10 + $0x264] ss:$8 sps:$4 sm:$0xff]  }
  0xb9   :  { %778 = vmatpush1.bf16.msra.mxu0 %v12700_v47  ;;  %v12765_v47 = vld [vmem:[#allocation10 + $0x270] ss:$8 sps:$4 sm:$0xff]  }
  0xba   :  { %779 = vmatprep.subr.bf16.mxu0 %v12705_v48  ;;  %v12770_v48 = vld [vmem:[#allocation10 + $0x284] ss:$8 sps:$4 sm:$0xff]  }
  0xbd   :  { %780 = vmatpush1.bf16.msra.mxu0 %v12703_v51  ;;  %v12771_v51 = vld [vmem:[#allocation10 + $0x290] ss:$8 sps:$4 sm:$0xff]  }
  0xbe   :  { %781 = vmatprep.subr.bf16.mxu0 %v12708_v52  ;;  %v12776_v52 = vld [vmem:[#allocation10 + $0x2a4] ss:$8 sps:$4 sm:$0xff]  }
  0xc1   :  { %782 = vmatpush1.bf16.msra.mxu0 %v12706_v55  ;;  %v12777_v55 = vld [vmem:[#allocation10 + $0x2b0] ss:$8 sps:$4 sm:$0xff]  }
  0xc2   :  { %783 = vmatprep.subr.bf16.mxu0 %v12711_v56  ;;  %v12782_v56 = vld [vmem:[#allocation10 + $0x2c4] ss:$8 sps:$4 sm:$0xff]  }
  0xc5   :  { %784 = vmatpush1.bf16.msra.mxu0 %v12709_v58  ;;  %v12785_v58 = vld [vmem:[#allocation10 + $0x2d4] ss:$8 sps:$4 sm:$0xff]  }
  0xc6   :  { %785 = vmatprep.subr.bf16.mxu0 %v12714_v60  ;;  %v12788_v60 = vld [vmem:[#allocation10 + $0x2e4] ss:$8 sps:$4 sm:$0xff]  }
  0xc9   :  { %786 = vmatpush1.bf16.msra.mxu0 %v12712_v63  ;;  %v12789_v63 = vld [vmem:[#allocation10 + $0x2f0] ss:$8 sps:$4 sm:$0xff]  }
  0xca   :  { %787 = vmatprep.subr.bf16.mxu0 %v12717_v0  ;;  %v10218_v0 = vcombine.low %v13754_v30, %v13754_v30  ;;  %v1439_v30 = vld [vmem:[#allocation13 + $0x88] sm:$0xff] }
  0xcd   :  { %788 = vmatpush1.bf16.msra.mxu0 %v12715_v3  ;;  %v12833_v3 = vld [vmem:[#allocation11 + $0x1a4] ss:$16 sps:$4 sm:$0xff]  }
  0xce   :  { %789 = vmatprep.subr.bf16.mxu0 %v12720_v4  ;;  %v12835_v4 = vld [vmem:[#allocation11 + $0x1a0] ss:$16 sps:$4 sm:$0xff]   ;;  %1325 = vmatprep.subr.bf16.mxu1 %v12833_v3  ;;  %v221_v3 = vlaneseq }
  0xcf   :  { %1326 = vmatpush1.bf16.msra.mxu1 %v12835_v4 }
  0xd0   :  { %1327 = vmatprep.subr.bf16.mxu1 %v12836_v5  ;;  %v13811_v4 = vshrl.u32 %v221_v3, 7  ;;  %v12872_v3 = vld [vmem:[#allocation11 + $0x148] ss:$16 sps:$4 sm:$0xff]  }
  0xd1   :  { %790 = vmatpush1.bf16.msra.mxu0 %v12718_v7  ;;  %v12839_v7 = vld [vmem:[#allocation11 + $0x1e4] ss:$16 sps:$4 sm:$0xff]  }
  0xd2   :  { %791 = vmatprep.subr.bf16.mxu0 %v12723_v8  ;;  %v857_v8 = vld [vmem:[#allocation8] sm:$0xff]  ;;  %v223_v5 = vsub.s32 0, %v13811_v4 }
  0xd3   :  { %865 = vst [vmem:[#allocation16] sm:$0xff] %v857_v8  ;;  %1328 = vmatpush1.bf16.msra.mxu1 %v12838_v6  ;;  %v219_v6 = vld [vmem:[%s15632_s4] sm:$0x3]  ;;  %s878_s4 = scalar_lea.vmem [#allocation16], %s10479_s3 }
  0xd4   :  { %1329 = vmatprep.subr.bf16.mxu1 %v12839_v7  ;;  %v227_v7 = vsub.s32 1, %v13811_v4  ;;  %v224_v8 = vrot.slane %v219_v6, %v223_v5 }
  0xd5   :  { %792 = vmatpush1.bf16.msra.mxu0 %v12721_v11  ;;  %v860_v11 = vld [vmem:[#allocation8 + $0x18] sm:$0xff] }
  0xd6   :  { %793 = vmatprep.subr.bf16.mxu0 %v12726_v12  ;;  %v861_v12 = vld [vmem:[#allocation8 + $0x20] sm:$0xff]  ;;  %868 = vst [vmem:[#allocation16 + $0x18] sm:$0xff] %v860_v11  ;;  %v228_v9 = vrot.slane %v219_v6, %v227_v7  ;;  %v12877_v6 = vld [vmem:[#allocation11 + $0x16c] ss:$16 sps:$4 sm:$0xff]  }
  0xd7   :  { %869 = vst [vmem:[#allocation16 + $0x20] sm:$0xff] %v861_v12 }
  0xd9   :  { %794 = vmatpush1.bf16.msra.mxu0 %v12724_v15  ;;  %v864_v15 = vld [vmem:[#allocation8 + $0x38] sm:$0xff] }
  0xda   :  { %795 = vmatprep.subr.bf16.mxu0 %v12729_v16  ;;  %872 = vst [vmem:[#allocation16 + $0x38] sm:$0xff] %v864_v15  ;;  %v12841_v16 = vld [vmem:[#allocation11 + $0x1e0] ss:$16 sps:$4 sm:$0xff]  }
  0xdb   :  { %1330 = vmatpush1.bf16.msra.mxu1 %v12841_v16 }
  0xdc   :  { %1352 = vmatprep.subr.bf16.mxu1 %v12844_v17 }
  0xdd   :  { %796 = vmatpush1.bf16.msra.mxu0 %v12727_v19  ;;  %v1427_v19 = vld [vmem:[#allocation13 + $0x28] sm:$0xff] }
  0xde   :  { %797 = vmatprep.subr.bf16.mxu0 %v12732_v20  ;;  %v13762_v20 = vpack.c.bf16 %v1427_v19, %v1423_v18  ;;  %v12842_v18 = vld [vmem:[#allocation11 + $0x8] ss:$16 sps:$4 sm:$0xff]  }
  0xe1   :  { %798 = vmatpush1.bf16.msra.mxu0 %v12730_v22  ;;  %v1426_v22 = vld [vmem:[#allocation13 + $0x20] sm:$0xff] }
  0xe2   :  { %799 = vmatprep.subr.bf16.mxu0 %v12735_v23  ;;  %v13764_v23 = vpack.c.bf16 %v1426_v22, %v1422_v21 }
  0xe5   :  { %800 = vmatpush1.bf16.msra.mxu0 %v12733_v24  ;;  %v1431_v24 = vld [vmem:[#allocation13 + $0x48] sm:$0xff] }
  0xe6   :  { %801 = vmatprep.subr.bf16.mxu0 %v12738_v25  ;;  %v1435_v25 = vld [vmem:[#allocation13 + $0x68] sm:$0xff] }
  0xe9   :  { %802 = vmatpush1.bf16.msra.mxu0 %v12736_v26  ;;  %v13767_v26 = vpack.c.bf16 %v1435_v25, %v1431_v24 }
  0xea   :  { %803 = vmatprep.subr.bf16.mxu0 %v12741_v27  ;;  %v1430_v27 = vld [vmem:[#allocation13 + $0x40] sm:$0xff] }
  0xed   :  { %804 = vmatpush1.bf16.msra.mxu0 %v12739_v28  ;;  %v1434_v28 = vld [vmem:[#allocation13 + $0x60] sm:$0xff] }
  0xee   :  { %814 = vmatprep.subr.bf16.mxu0 %v12746_v29  ;;  %v13770_v29 = vpack.c.bf16 %v1434_v28, %v1430_v27 }
  0xf0   :  { %806 = vmatmul.mubr.bf16.vlgmr.msra.gmra.mrb[0].mxu0 %v10216_v31  ;;  %v1443_v31 = vld [vmem:[#allocation13 + $0xa8] sm:$0xff] }
  0xf1   :  { %815 = vmatpush1.bf16.msra.mxu0 %v12744_v32  ;;  %846 = vmatprep.mubr.bf16.mxu0 %v10219_v33  ;;  %v13774_v32 = vpack.c.bf16 %v1443_v31, %v1439_v30  ;;  %v1438_v33 = vld [vmem:[#allocation13 + $0x80] sm:$0xff]  ;;  %v12847_v31 = vld [vmem:[#allocation11 + $0x2c] ss:$16 sps:$4 sm:$0xff]  }
  0xf2   :  { %816 = vmatprep.subr.bf16.mxu0 %v12749_v34  ;;  %v1442_v34 = vld [vmem:[#allocation13 + $0xa0] sm:$0xff] }
  0xf5   :  { %817 = vmatpush1.bf16.msra.mxu0 %v12747_v36  ;;  %v13776_v36 = vpack.c.bf16 %v1442_v34, %v1438_v33  ;;  %v12845_v34 = vld [vmem:[#allocation11 + $0x28] ss:$16 sps:$4 sm:$0xff]  }
  0xf6   :  { %818 = vmatprep.subr.bf16.mxu0 %v12752_v37  ;;  %v1447_v37 = vld [vmem:[#allocation13 + $0xc8] sm:$0xff] }
  0xf9   :  { %819 = vmatpush1.bf16.msra.mxu0 %v12750_v38  ;;  %v1451_v38 = vld [vmem:[#allocation13 + $0xe8] sm:$0xff] }
  0xfa   :  { %820 = vmatprep.subr.bf16.mxu0 %v12755_v39  ;;  %v13779_v39 = vpack.c.bf16 %v1451_v38, %v1447_v37  ;;  %v12850_v37 = vld [vmem:[#allocation11 + $0x4c] ss:$16 sps:$4 sm:$0xff]  }
  0xfd   :  { %821 = vmatpush1.bf16.msra.mxu0 %v12753_v40  ;;  %v1446_v40 = vld [vmem:[#allocation13 + $0xc0] sm:$0xff] }
  0xfe   :  { %822 = vmatprep.subr.bf16.mxu0 %v12758_v35  ;;  %v1450_v35 = vld [vmem:[#allocation13 + $0xe0] sm:$0xff] }
 0x101   :  { %823 = vmatpush1.bf16.msra.mxu0 %v12756_v41  ;;  %v13782_v41 = vpack.c.bf16 %v1450_v35, %v1446_v40  ;;  %v12848_v35 = vld [vmem:[#allocation11 + $0x48] ss:$16 sps:$4 sm:$0xff]  }
 0x102   :  { %824 = vmatprep.subr.bf16.mxu0 %v12761_v42  ;;  %v1455_v42 = vld [vmem:[#allocation13 + $0x108] sm:$0xff] }
 0x105   :  { %825 = vmatpush1.bf16.msra.mxu0 %v12759_v43  ;;  %v1459_v43 = vld [vmem:[#allocation13 + $0x128] sm:$0xff] }
 0x106   :  { %826 = vmatprep.subr.bf16.mxu0 %v12764_v44  ;;  %v13785_v44 = vpack.c.bf16 %v1459_v43, %v1455_v42  ;;  %v12853_v43 = vld [vmem:[#allocation11 + $0x6c] ss:$16 sps:$4 sm:$0xff]  }
 0x109   :  { %827 = vmatpush1.bf16.msra.mxu0 %v12762_v45  ;;  %v1454_v45 = vld [vmem:[#allocation13 + $0x100] sm:$0xff] }
 0x10a   :  { %828 = vmatprep.subr.bf16.mxu0 %v12767_v46  ;;  %v1458_v46 = vld [vmem:[#allocation13 + $0x120] sm:$0xff] }
 0x10d   :  { %829 = vmatpush1.bf16.msra.mxu0 %v12765_v47  ;;  %v13788_v47 = vpack.c.bf16 %v1458_v46, %v1454_v45  ;;  %v12851_v45 = vld [vmem:[#allocation11 + $0x68] ss:$16 sps:$4 sm:$0xff]   ;;  %v12856_v46 = vld [vmem:[#allocation11 + $0x8c] ss:$16 sps:$4 sm:$0xff]  }
 0x10e   :  { %830 = vmatprep.subr.bf16.mxu0 %v12770_v48  ;;  %v1463_v48 = vld [vmem:[#allocation13 + $0x148] sm:$0xff] }
 0x111   :  { %831 = vmatpush1.bf16.msra.mxu0 %v12768_v49  ;;  %v1467_v49 = vld [vmem:[#allocation13 + $0x168] sm:$0xff] }
 0x112   :  { %832 = vmatprep.subr.bf16.mxu0 %v12773_v50  ;;  %v13791_v50 = vpack.c.bf16 %v1467_v49, %v1463_v48  ;;  %v12854_v48 = vld [vmem:[#allocation11 + $0x88] ss:$16 sps:$4 sm:$0xff]   ;;  %v12859_v49 = vld [vmem:[#allocation11 + $0xac] ss:$16 sps:$4 sm:$0xff]  }
 0x115   :  { %833 = vmatpush1.bf16.msra.mxu0 %v12771_v51  ;;  %v1462_v51 = vld [vmem:[#allocation13 + $0x140] sm:$0xff] }
 0x116   :  { %834 = vmatprep.subr.bf16.mxu0 %v12776_v52  ;;  %v1466_v52 = vld [vmem:[#allocation13 + $0x160] sm:$0xff] }
 0x119   :  { %835 = vmatpush1.bf16.msra.mxu0 %v12774_v53  ;;  %v13794_v53 = vpack.c.bf16 %v1466_v52, %v1462_v51  ;;  %v12857_v51 = vld [vmem:[#allocation11 + $0xa8] ss:$16 sps:$4 sm:$0xff]   ;;  %v12862_v52 = vld [vmem:[#allocation11 + $0xcc] ss:$16 sps:$4 sm:$0xff]  }
 0x11a   :  { %836 = vmatprep.subr.bf16.mxu0 %v12779_v54  ;;  %v1471_v54 = vld [vmem:[#allocation13 + $0x188] sm:$0xff] }
 0x11d   :  { %837 = vmatpush1.bf16.msra.mxu0 %v12777_v55  ;;  %v1475_v55 = vld [vmem:[#allocation13 + $0x1a8] sm:$0xff] }
 0x11e   :  { %838 = vmatprep.subr.bf16.mxu0 %v12782_v56  ;;  %v13797_v56 = vpack.c.bf16 %v1475_v55, %v1471_v54  ;;  %v12860_v54 = vld [vmem:[#allocation11 + $0xc8] ss:$16 sps:$4 sm:$0xff]   ;;  %v12865_v55 = vld [vmem:[#allocation11 + $0xec] ss:$16 sps:$4 sm:$0xff]  }
 0x121   :  { %839 = vmatpush1.bf16.msra.mxu0 %v12780_v57  ;;  %v1470_v57 = vld [vmem:[#allocation13 + $0x180] sm:$0xff] }
 0x122   :  { %840 = vmatprep.subr.bf16.mxu0 %v12785_v58  ;;  %v1474_v58 = vld [vmem:[#allocation13 + $0x1a0] sm:$0xff] }
 0x125   :  { %841 = vmatpush1.bf16.msra.mxu0 %v12783_v59  ;;  %v13800_v59 = vpack.c.bf16 %v1474_v58, %v1470_v57  ;;  %v12863_v57 = vld [vmem:[#allocation11 + $0xe8] ss:$16 sps:$4 sm:$0xff]   ;;  %v12868_v58 = vld [vmem:[#allocation11 + $0x10c] ss:$16 sps:$4 sm:$0xff]  }
 0x126   :  { %842 = vmatprep.subr.bf16.mxu0 %v12788_v60  ;;  %v1479_v60 = vld [vmem:[#allocation13 + $0x1c8] sm:$0xff] }
 0x129   :  { %843 = vmatpush1.bf16.msra.mxu0 %v12786_v61  ;;  %v1483_v61 = vld [vmem:[#allocation13 + $0x1e8] sm:$0xff] }
 0x12a   :  { %844 = vmatprep.subr.bf16.mxu0 %v12791_v62  ;;  %v13803_v62 = vpack.c.bf16 %v1483_v61, %v1479_v60  ;;  %v12866_v60 = vld [vmem:[#allocation11 + $0x108] ss:$16 sps:$4 sm:$0xff]   ;;  %v12871_v61 = vld [vmem:[#allocation11 + $0x12c] ss:$16 sps:$4 sm:$0xff]  }
 0x12d   :  { %845 = vmatpush1.bf16.msra.mxu0 %v12789_v63  ;;  %v1478_v63 = vld [vmem:[#allocation13 + $0x1c0] sm:$0xff] }
 0x12e   :  { %10667 = vmatprep.subr.bf16.mxu0 %v13762_v20 }
 0x130   :  { %847 = vmatmul.mubr.bf16.vlgmr.msra.gmra.mrb[0].mxu0 %v10218_v0  ;;  %v1482_v0 = vld [vmem:[#allocation13 + $0x1e0] sm:$0xff] }
 0x131   :  { %10669 = vmatpush1.bf16.msra.mxu0 %v13764_v23  ;;  %v13806_v1 = vpack.c.bf16 %v1482_v0, %v1478_v63  ;;  %2090 = vmatprep.mubr.f32.mxu0 %v13602_v2  ;;  %v12869_v63 = vld [vmem:[#allocation11 + $0x128] ss:$16 sps:$4 sm:$0xff]   ;;  %v12874_v0 = vld [vmem:[#allocation11 + $0x14c] ss:$16 sps:$4 sm:$0xff]  }
 0x132   :  { %10671 = vmatprep.subr.bf16.mxu0 %v13767_v26 }
 0x135   :  { %10673 = vmatpush1.bf16.msra.mxu0 %v13770_v29 }
 0x136   :  { %10675 = vmatprep.subr.bf16.mxu0 %v13774_v32 }
 0x139   :  { %10677 = vmatpush1.bf16.msra.mxu0 %v13776_v36 }
 0x13a   :  { %10679 = vmatprep.subr.bf16.mxu0 %v13779_v39 }
 0x13d   :  { %10681 = vmatpush1.bf16.msra.mxu0 %v13782_v41 }
 0x13e   :  { %10683 = vmatprep.subr.bf16.mxu0 %v13785_v44 }
 0x141   :  { %10685 = vmatpush1.bf16.msra.mxu0 %v13788_v47 }
 0x142   :  { %10687 = vmatprep.subr.bf16.mxu0 %v13791_v50 }
 0x145   :  { %10689 = vmatpush1.bf16.msra.mxu0 %v13794_v53 }
 0x146   :  { %10691 = vmatprep.subr.bf16.mxu0 %v13797_v56 }
 0x149   :  { %10693 = vmatpush1.bf16.msra.mxu0 %v13800_v59 }
 0x14a   :  { %10695 = vmatprep.subr.bf16.mxu0 %v13803_v62 }
 0x14d   :  { %10697 = vmatpush1.bf16.msra.mxu0 %v13806_v1 }
 0x203   :  { %v848_v10 = vpop.f32.mrb[0].mxu0 }
 0x204   :  { %v12618_v11 = vadd.f32 %v848_v10, %v224_v8  ;;  %v850_v12 = vpop.f32.mrb[1].mxu0  ;;  %v12875_v8 = vld [vmem:[#allocation11 + $0x168] ss:$16 sps:$4 sm:$0xff]  }
 0x205   :  { %v12619_v13 = vadd.f32 %v850_v12, %v228_v9  ;;  %v852_v14 = vpop.f32.mrb[2].mxu0  ;;  %v12880_v9 = vld [vmem:[#allocation11 + $0x18c] ss:$16 sps:$4 sm:$0xff]   ;;  %v12878_v10 = vld [vmem:[#allocation11 + $0x188] ss:$16 sps:$4 sm:$0xff]  }
 0x206   :  { %v855_v15 = vmax.f32 %v12618_v11, 0.0  ;;  %v853_v16 = vpop.f32.mrb[3].mxu0  ;;  %v12883_v11 = vld [vmem:[#allocation11 + $0x1ac] ss:$16 sps:$4 sm:$0xff]   ;;  %v12881_v12 = vld [vmem:[#allocation11 + $0x1a8] ss:$16 sps:$4 sm:$0xff]  }
 0x207   :  { %v856_v17 = vmax.f32 %v12619_v13, 0.0  ;;  %v12886_v13 = vld [vmem:[#allocation11 + $0x1cc] ss:$16 sps:$4 sm:$0xff]   ;;  %v12884_v14 = vld [vmem:[#allocation11 + $0x1c8] ss:$16 sps:$4 sm:$0xff]  }
 0x208   :  { %879 = vst [vmem:[%s878_s4] sm:$0xff] %v855_v15  ;;  %v12889_v15 = vld [vmem:[#allocation11 + $0x1ec] ss:$16 sps:$4 sm:$0xff]   ;;  %v12887_v16 = vld [vmem:[#allocation11 + $0x1e8] ss:$16 sps:$4 sm:$0xff]  }
 0x209   :  { %880 = vst [vmem:[%s878_s4 + $0x8] sm:$0xff] %v856_v17  ;;  %v1425_v17 = vld [vmem:[#allocation13 + $0x18] sm:$0xff] }
 0x210   :  { %v882_v19 = vld [vmem:[#allocation16 + $0x8] sm:$0xff]  ;;  %v884_v21 = vld [vmem:[#allocation16 + $0x18] sm:$0xff]  ;;  %v881_v22 = vld [vmem:[#allocation16] sm:$0xff] }
 0x211   :  { %v890_v24 = vpack.c.bf16 %v884_v21, %v882_v19  ;;  %v883_v25 = vld [vmem:[#allocation16 + $0x10] sm:$0xff]  ;;  %v886_v27 = vld [vmem:[#allocation16 + $0x28] sm:$0xff]  ;;  %v888_v28 = vld [vmem:[#allocation16 + $0x38] sm:$0xff] }
 0x212   :  { %v13825_v30 = vpack.c.bf16 %v883_v25, %v881_v22  ;;  %v13827_v33 = vpack.c.bf16 %v888_v28, %v886_v27  ;;  %v885_v38 = vld [vmem:[#allocation16 + $0x20] sm:$0xff]  ;;  %v887_v40 = vld [vmem:[#allocation16 + $0x30] sm:$0xff]  ;;  %v1437_v25 = vld [vmem:[#allocation13 + $0x78] sm:$0xff] }
 0x213   :  { %1331 = vmatprep.mubr.bf16.mxu1 %v890_v24  ;;  %v891_v42 = vpack.c.bf16 %v887_v40, %v885_v38  ;;  %v1424_v21 = vld [vmem:[#allocation13 + $0x10] sm:$0xff] }
 0x214   :  { %1332 = vmatmul.mubr.bf16.vlgmr.msra.gmra.mrb[0].mxu1 %v13825_v30  ;;  %v1428_v22 = vld [vmem:[#allocation13 + $0x30] sm:$0xff] }
 0x215   :  { %1353 = vmatpush1.bf16.msra.mxu1 %v12842_v18  ;;  %1341 = vmatprep.mubr.bf16.mxu1 %v13827_v33  ;;  %v1429_v18 = vld [vmem:[#allocation13 + $0x38] sm:$0xff]  ;;  %v13852_v27 = vpack.c.bf16 %v1428_v22, %v1424_v21  ;;  %v1440_v40 = vld [vmem:[#allocation13 + $0x90] sm:$0xff] }
 0x216   :  { %1354 = vmatprep.subr.bf16.mxu1 %v12847_v31  ;;  %v13849_v19 = vpack.c.bf16 %v1429_v18, %v1425_v17  ;;  %v1436_v31 = vld [vmem:[#allocation13 + $0x70] sm:$0xff] }
 0x217   :  { %v1480_v18 = vld [vmem:[#allocation13 + $0x1d0] sm:$0xff] }
 0x218   :  { %v1484_v21 = vld [vmem:[#allocation13 + $0x1f0] sm:$0xff] }
 0x219   :  { %1355 = vmatpush1.bf16.msra.mxu1 %v12845_v34  ;;  %v1445_v34 = vld [vmem:[#allocation13 + $0xb8] sm:$0xff]  ;;  %v13896_v22 = vpack.c.bf16 %v1484_v21, %v1480_v18 }
 0x21a   :  { %1356 = vmatprep.subr.bf16.mxu1 %v12850_v37 }
 0x21c   :  { %1342 = vmatmul.mubr.bf16.gmra.mrb[4].mxu1 %v891_v42 }
 0x21d   :  { %1357 = vmatpush1.bf16.msra.mxu1 %v12848_v35  ;;  %1384 = vmatprep.mubr.bf16.mxu1 %v890_v24  ;;  %v1433_v24 = vld [vmem:[#allocation13 + $0x58] sm:$0xff]  ;;  %v1444_v35 = vld [vmem:[#allocation13 + $0xb0] sm:$0xff] }
 0x21e   :  { %1358 = vmatprep.subr.bf16.mxu1 %v12853_v43  ;;  %v13855_v28 = vpack.c.bf16 %v1437_v25, %v1433_v24  ;;  %v1453_v43 = vld [vmem:[#allocation13 + $0xf8] sm:$0xff]  ;;  %v969_v25 = vsub.s32 2, %v13811_v4 }
 0x221   :  { %1359 = vmatpush1.bf16.msra.mxu1 %v12851_v45  ;;  %v13866_v45 = vpack.c.bf16 %v1444_v35, %v1440_v40 }
 0x222   :  { %1360 = vmatprep.subr.bf16.mxu1 %v12856_v46 }
 0x225   :  { %1361 = vmatpush1.bf16.msra.mxu1 %v12854_v48  ;;  %v1448_v48 = vld [vmem:[#allocation13 + $0xd0] sm:$0xff] }
 0x226   :  { %1362 = vmatprep.subr.bf16.mxu1 %v12859_v49  ;;  %v1452_v49 = vld [vmem:[#allocation13 + $0xf0] sm:$0xff] }
 0x229   :  { %1363 = vmatpush1.bf16.msra.mxu1 %v12857_v51  ;;  %v1457_v51 = vld [vmem:[#allocation13 + $0x118] sm:$0xff] }
 0x22a   :  { %1364 = vmatprep.subr.bf16.mxu1 %v12862_v52  ;;  %v1461_v52 = vld [vmem:[#allocation13 + $0x138] sm:$0xff] }
 0x22d   :  { %1365 = vmatpush1.bf16.msra.mxu1 %v12860_v54  ;;  %v13872_v54 = vpack.c.bf16 %v1452_v49, %v1448_v48 }
 0x22e   :  { %1366 = vmatprep.subr.bf16.mxu1 %v12865_v55  ;;  %v13875_v55 = vpack.c.bf16 %v1461_v52, %v1457_v51 }
 0x231   :  { %1367 = vmatpush1.bf16.msra.mxu1 %v12863_v57  ;;  %v1456_v57 = vld [vmem:[#allocation13 + $0x110] sm:$0xff] }
 0x232   :  { %1368 = vmatprep.subr.bf16.mxu1 %v12868_v58  ;;  %v1460_v58 = vld [vmem:[#allocation13 + $0x130] sm:$0xff] }
 0x235   :  { %1369 = vmatpush1.bf16.msra.mxu1 %v12866_v60  ;;  %v1465_v60 = vld [vmem:[#allocation13 + $0x158] sm:$0xff] }
 0x236   :  { %1370 = vmatprep.subr.bf16.mxu1 %v12871_v61  ;;  %v1469_v61 = vld [vmem:[#allocation13 + $0x178] sm:$0xff] }
 0x239   :  { %1371 = vmatpush1.bf16.msra.mxu1 %v12869_v63  ;;  %v13878_v63 = vpack.c.bf16 %v1460_v58, %v1456_v57 }
 0x23a   :  { %1372 = vmatprep.subr.bf16.mxu1 %v12874_v0  ;;  %v13881_v0 = vpack.c.bf16 %v1469_v61, %v1465_v60 }
 0x23d   :  { %1373 = vmatpush1.bf16.msra.mxu1 %v12872_v3  ;;  %v1464_v3 = vld [vmem:[#allocation13 + $0x150] sm:$0xff] }
 0x23e   :  { %1374 = vmatprep.subr.bf16.mxu1 %v12877_v6  ;;  %v1468_v6 = vld [vmem:[#allocation13 + $0x170] sm:$0xff] }
 0x241   :  { %1375 = vmatpush1.bf16.msra.mxu1 %v12875_v8  ;;  %v1473_v8 = vld [vmem:[#allocation13 + $0x198] sm:$0xff] }
 0x242   :  { %1376 = vmatprep.subr.bf16.mxu1 %v12880_v9  ;;  %v1477_v9 = vld [vmem:[#allocation13 + $0x1b8] sm:$0xff] }
 0x245   :  { %1377 = vmatpush1.bf16.msra.mxu1 %v12878_v10  ;;  %v13884_v10 = vpack.c.bf16 %v1468_v6, %v1464_v3 }
 0x246   :  { %1378 = vmatprep.subr.bf16.mxu1 %v12883_v11  ;;  %v13887_v11 = vpack.c.bf16 %v1477_v9, %v1473_v8 }
 0x249   :  { %1379 = vmatpush1.bf16.msra.mxu1 %v12881_v12  ;;  %v1472_v12 = vld [vmem:[#allocation13 + $0x190] sm:$0xff] }
 0x24a   :  { %1380 = vmatprep.subr.bf16.mxu1 %v12886_v13  ;;  %v1476_v13 = vld [vmem:[#allocation13 + $0x1b0] sm:$0xff] }
 0x24d   :  { %1381 = vmatpush1.bf16.msra.mxu1 %v12884_v14  ;;  %v1481_v14 = vld [vmem:[#allocation13 + $0x1d8] sm:$0xff] }
 0x24e   :  { %1382 = vmatprep.subr.bf16.mxu1 %v12889_v15  ;;  %v1485_v15 = vld [vmem:[#allocation13 + $0x1f8] sm:$0xff] }
 0x24f   :  { %v13893_v17 = vpack.c.bf16 %v1485_v15, %v1481_v14  ;;  %v13603_v14 = vmov 1966171168  }
 0x250   :  { %v1635_v15 = vunpack.c.l.s4 %v13603_v14 }
 0x251   :  { %1383 = vmatpush1.bf16.msra.mxu1 %v12887_v16  ;;  %v13890_v16 = vpack.c.bf16 %v1476_v13, %v1472_v12 }
 0x252   :  { %10539 = vmatprep.subr.bf16.mxu1 %v13762_v20  ;;  %v1636_v18 = vunpack.c.0.s8 %v1635_v15 }
 0x254   :  { %1385 = vmatmul.mubr.bf16.vlgmr.msra.gmra.mrb[8].mxu1 %v13825_v30  ;;  %v1432_v30 = vld [vmem:[#allocation13 + $0x50] sm:$0xff]  ;;  %v13929_v21 = vsub.s32 %v1636_v18, %v13811_v4 }
 0x255   :  { %1394 = vmatprep.mubr.bf16.mxu1 %v13827_v33  ;;  %10541 = vmatpush1.bf16.msra.mxu1 %v13764_v23  ;;  %v1441_v33 = vld [vmem:[#allocation13 + $0x98] sm:$0xff]  ;;  %v13859_v37 = vpack.c.bf16 %v1436_v31, %v1432_v30  ;;  %v973_v30 = vsub.s32 3, %v13811_v4 }
 0x256   :  { %10543 = vmatprep.subr.bf16.mxu1 %v13767_v26  ;;  %v13863_v38 = vpack.c.bf16 %v1445_v34, %v1441_v33 }
 0x259   :  { %10545 = vmatpush1.bf16.msra.mxu1 %v13770_v29 }
 0x25a   :  { %10547 = vmatprep.subr.bf16.mxu1 %v13774_v32 }
 0x25c   :  { %1395 = vmatmul.mubr.bf16.gmra.mrb[12].mxu1 %v891_v42  ;;  %v1449_v42 = vld [vmem:[#allocation13 + $0xd8] sm:$0xff] }
 0x25d   :  { %10549 = vmatpush1.bf16.msra.mxu1 %v13776_v36  ;;  %1550 = vmatprep.mubr.f32.mxu1 %v13602_v2  ;;  %v13869_v46 = vpack.c.bf16 %v1453_v43, %v1449_v42 }
 0x25e   :  { %10551 = vmatprep.subr.bf16.mxu1 %v13779_v39 }
 0x261   :  { %10553 = vmatpush1.bf16.msra.mxu1 %v13782_v41 }
 0x262   :  { %10555 = vmatprep.subr.bf16.mxu1 %v13785_v44 }
 0x265   :  { %10557 = vmatpush1.bf16.msra.mxu1 %v13788_v47 }
 0x266   :  { %10559 = vmatprep.subr.bf16.mxu1 %v13791_v50 }
 0x269   :  { %10561 = vmatpush1.bf16.msra.mxu1 %v13794_v53 }
 0x26a   :  { %10563 = vmatprep.subr.bf16.mxu1 %v13797_v56 }
 0x26d   :  { %10565 = vmatpush1.bf16.msra.mxu1 %v13800_v59 }
 0x26e   :  { %10567 = vmatprep.subr.bf16.mxu1 %v13803_v62 }
 0x271   :  { %10569 = vmatpush1.bf16.msra.mxu1 %v13806_v1 }
 0x272   :  { %10571 = vmatprep.subr.bf16.mxu1 %v13849_v19 }
 0x274   :  { %1551 = vmatmul.mubr.f32.vlgmr.msra.gmra.mrb[16].mxu1 %v13602_v2 }
 0x275   :  { %10573 = vmatpush1.bf16.msra.mxu1 %v13852_v27  ;;  %1621 = vmatprep.mubr.f32.mxu1 %v13602_v2 }
 0x276   :  { %10575 = vmatprep.subr.bf16.mxu1 %v13855_v28 }
 0x279   :  { %10577 = vmatpush1.bf16.msra.mxu1 %v13859_v37 }
 0x27a   :  { %10579 = vmatprep.subr.bf16.mxu1 %v13863_v38 }
 0x27d   :  { %10581 = vmatpush1.bf16.msra.mxu1 %v13866_v45 }
 0x27e   :  { %10583 = vmatprep.subr.bf16.mxu1 %v13869_v46 }
 0x281   :  { %10585 = vmatpush1.bf16.msra.mxu1 %v13872_v54 }
 0x282   :  { %10587 = vmatprep.subr.bf16.mxu1 %v13875_v55 }
 0x285   :  { %10589 = vmatpush1.bf16.msra.mxu1 %v13878_v63 }
 0x286   :  { %10591 = vmatprep.subr.bf16.mxu1 %v13881_v0 }
 0x289   :  { %10593 = vmatpush1.bf16.msra.mxu1 %v13884_v10 }
 0x28a   :  { %10595 = vmatprep.subr.bf16.mxu1 %v13887_v11 }
 0x28d   :  { %10597 = vmatpush1.bf16.msra.mxu1 %v13890_v16 }
 0x28e   :  { %10599 = vmatprep.subr.bf16.mxu1 %v13893_v17 }
 0x291   :  { %10601 = vmatpush1.bf16.msra.mxu1 %v13896_v22 }
 0x292   :  { %10603 = vmatprep.subr.bf16.mxu1 %v13762_v20  ;;  %v957_v20 = vld [vmem:[%s15634_s6] sm:$0xf] }
 0x293   :  { %v970_v31 = vrot.slane %v957_v20, %v969_v25  ;;  %v974_v33 = vrot.slane %v957_v20, %v973_v30 }
 0x294   :  { %1622 = vmatmul.mubr.f32.vlgmr.msra.gmra.mrb[18].mxu1 %v13602_v2 }
 0x295   :  { %10605 = vmatpush1.bf16.msra.mxu1 %v13764_v23  ;;  %1820 = vmatprep.mubr.f32.mxu1 %v13602_v2  ;;  %v962_v23 = vrot.slane %v957_v20, %v223_v5 }
 0x296   :  { %10607 = vmatprep.subr.bf16.mxu1 %v13767_v26  ;;  %v966_v26 = vrot.slane %v957_v20, %v227_v7 }
 0x299   :  { %10609 = vmatpush1.bf16.msra.mxu1 %v13770_v29 }
 0x29a   :  { %10611 = vmatprep.subr.bf16.mxu1 %v13774_v32 }
 0x29d   :  { %10613 = vmatpush1.bf16.msra.mxu1 %v13776_v36 }
 0x29e   :  { %10615 = vmatprep.subr.bf16.mxu1 %v13779_v39 }
 0x2a1   :  { %10617 = vmatpush1.bf16.msra.mxu1 %v13782_v41 }
 0x2a2   :  { %10619 = vmatprep.subr.bf16.mxu1 %v13785_v44 }
 0x2a5   :  { %10621 = vmatpush1.bf16.msra.mxu1 %v13788_v47 }
 0x2a6   :  { %10623 = vmatprep.subr.bf16.mxu1 %v13791_v50 }
 0x2a9   :  { %10625 = vmatpush1.bf16.msra.mxu1 %v13794_v53 }
 0x2aa   :  { %10627 = vmatprep.subr.bf16.mxu1 %v13797_v56 }
 0x2ad   :  { %10629 = vmatpush1.bf16.msra.mxu1 %v13800_v59 }
 0x2ae   :  { %10631 = vmatprep.subr.bf16.mxu1 %v13803_v62 }
 0x2b1   :  { %10633 = vmatpush1.bf16.msra.mxu1 %v13806_v1 }
 0x2b2   :  { %10635 = vmatprep.subr.bf16.mxu1 %v13849_v19 }
 0x2e7   :  { %v1333_v29 = vpop.f32.mrb[0].mxu1 }
 0x2e8   :  { %v1334_v32 = vadd.f32 %v1333_v29, %v962_v23  ;;  %v1335_v36 = vpop.f32.mrb[1].mxu1 }
 0x2e9   :  { %v1336_v39 = vadd.f32 %v1335_v36, %v966_v26  ;;  %v1337_v41 = vpop.f32.mrb[2].mxu1 }
 0x2ea   :  { %1405 = vst [vmem:[#allocation2] sm:$0xff] %v1334_v32  ;;  %v1338_v44 = vadd.f32 %v1337_v41, %v962_v23  ;;  %v1339_v47 = vpop.f32.mrb[3].mxu1 }
 0x2eb   :  { %1406 = vst [vmem:[#allocation2 + $0x8] sm:$0xff] %v1336_v39  ;;  %v1340_v50 = vadd.f32 %v1339_v47, %v966_v26 }
 0x2ec   :  { %1409 = vst [vmem:[#allocation2 + $0x20] sm:$0xff] %v1338_v44 }
 0x2ed   :  { %1410 = vst [vmem:[#allocation2 + $0x28] sm:$0xff] %v1340_v50 }
 0x2ef   :  { %v1343_v53 = vpop.f32.mrb[4].mxu1 }
 0x2f0   :  { %v1344_v56 = vadd.f32 %v1343_v53, %v962_v23  ;;  %v1345_v59 = vpop.f32.mrb[5].mxu1 }
 0x2f1   :  { %v1346_v62 = vadd.f32 %v1345_v59, %v966_v26  ;;  %v1347_v1 = vpop.f32.mrb[6].mxu1 }
 0x2f2   :  { %1413 = vst [vmem:[#allocation2 + $0x40] sm:$0xff] %v1344_v56  ;;  %v1348_v5 = vadd.f32 %v1347_v1, %v962_v23  ;;  %v1349_v7 = vpop.f32.mrb[7].mxu1 }
 0x2f3   :  { %1414 = vst [vmem:[#allocation2 + $0x48] sm:$0xff] %v1346_v62  ;;  %v1350_v24 = vadd.f32 %v1349_v7, %v966_v26 }
 0x2f4   :  { %1417 = vst [vmem:[#allocation2 + $0x60] sm:$0xff] %v1348_v5 }
 0x2f5   :  { %1418 = vst [vmem:[#allocation2 + $0x68] sm:$0xff] %v1350_v24 }
 0x327   :  { %v1386_v34 = vpop.f32.mrb[8].mxu1 }
 0x328   :  { %v1387_v40 = vadd.f32 %v1386_v34, %v970_v31  ;;  %v1388_v35 = vpop.f32.mrb[9].mxu1 }
 0x329   :  { %v1389_v42 = vadd.f32 %v1388_v35, %v974_v33  ;;  %v1390_v43 = vpop.f32.mrb[10].mxu1 }
 0x32a   :  { %1407 = vst [vmem:[#allocation2 + $0x10] sm:$0xff] %v1387_v40  ;;  %v1391_v48 = vadd.f32 %v1390_v43, %v970_v31  ;;  %v1392_v49 = vpop.f32.mrb[11].mxu1 }
 0x32b   :  { %1408 = vst [vmem:[#allocation2 + $0x18] sm:$0xff] %v1389_v42  ;;  %v1393_v51 = vadd.f32 %v1392_v49, %v974_v33 }
 0x32c   :  { %1411 = vst [vmem:[#allocation2 + $0x30] sm:$0xff] %v1391_v48 }
 0x32d   :  { %1412 = vst [vmem:[#allocation2 + $0x38] sm:$0xff] %v1393_v51 }
 0x32f   :  { %v1396_v52 = vpop.f32.mrb[12].mxu1 }
 0x330   :  { %v1397_v57 = vadd.f32 %v1396_v52, %v970_v31  ;;  %v1398_v58 = vpop.f32.mrb[13].mxu1 }
 0x331   :  { %v1399_v60 = vadd.f32 %v1398_v58, %v974_v33  ;;  %v1400_v61 = vpop.f32.mrb[14].mxu1 }
 0x332   :  { %1415 = vst [vmem:[#allocation2 + $0x50] sm:$0xff] %v1397_v57  ;;  %v1401_v3 = vadd.f32 %v1400_v61, %v970_v31  ;;  %v1402_v6 = vpop.f32.mrb[15].mxu1  ;;  %v1421_v41 = vld [vmem:[#allocation2] ss:$8 sm:$0xf] }
 0x333   :  { %1416 = vst [vmem:[#allocation2 + $0x58] sm:$0xff] %v1399_v60  ;;  %v1403_v8 = vadd.f32 %v1402_v6, %v974_v33 }
 0x334   :  { %1419 = vst [vmem:[#allocation2 + $0x70] sm:$0xff] %v1401_v3 }
 0x335   :  { %1420 = vst [vmem:[#allocation2 + $0x78] sm:$0xff] %v1403_v8 }
 0x347   :  { %v1552_v9 = vpop.f32.mrb[16].mxu1 }
 0x348   :  { %v1554_v12 = vpop.f32.mrb[17].mxu1 }
 0x349   :  { %v1632_v13 = vcombine.low %v1552_v9, %v1554_v12 }
 0x34b   :  { %v1640_v29 = vrot.slane %v1632_v13, %v13929_v21 }
 0x367   :  { %v1623_v20 = vpop.f32.mrb[18].mxu1 }
 0x368   :  { %v1625_v23 = vpop.f32.mrb[19].mxu1 }
 0x369   :  { %v1633_v26 = vcombine.low %v1623_v20, %v1625_v23 }
 0x36b   :  { %v1647_v32 = vrot.slane %v1633_v26, %v13929_v21 }
 0x36d   :  { %v1648_v36 = vcombine.low %v1640_v29, %v1647_v32 }
 0x36f   :  { %v1655_v39 = vrot.slane %v1648_v36, %v13929_v21 }
 0x371   :  { %v1657_v44 = vadd.f32 %v1655_v39, %v1421_v41 }
 0x373   :  { %v10382_v47 = vmul.f32 -1.442695, %v1657_v44  ;;  %v1665_v50 = vrot.slane %v1657_v44, 1  ;;  %v1676_v56 = vrot.slane %v1657_v44, 3  ;;  %v1673_v62 = vrot.slane %v1657_v44, 2 }
 0x375   :  { %12890 = vpow2.f32 %v10382_v47  ;;  %v10383_v53 = vmul.f32 -1.442695, %v1665_v50  ;;  %v10384_v4 = vmul.f32 -1.442695, %v1676_v56  ;;  %v2233_v47 = vld [vmem:[#allocation13 + $0x8] sm:$0xff] }
 0x377   :  { %12892 = vpow2.f32 %v10383_v53  ;;  %v2232_v53 = vld [vmem:[#allocation13] sm:$0xff] }
 0x378   :  { %12894 = vpow2.f32 %v10384_v4 }
 0x37f   :  { %v12891_v59 = vpop.eup %12890 }
 0x380   :  { %v1661_v1 = vadd.f32 1.0, %v12891_v59  ;;  %v2253_v59 = vld [vmem:[#allocation13 + $0xa8] sm:$0xff] }
 0x381   :  { %v12893_v5 = vpop.eup %12892 }
 0x382   :  { %12896 = vrcp.f32 %v1661_v1  ;;  %v1670_v7 = vadd.f32 1.0, %v12893_v5  ;;  %v12895_v24 = vpop.eup %12894  ;;  %v2252_v5 = vld [vmem:[#allocation13 + $0xa0] sm:$0xff] }
 0x383   :  { %12898 = vtanh.f32 %v1673_v62  ;;  %v1681_v33 = vadd.f32 1.0, %v12895_v24  ;;  %v2248_v62 = vld [vmem:[#allocation13 + $0x80] sm:$0xff]  ;;  %v2261_v24 = vld [vmem:[#allocation13 + $0xe8] sm:$0xff] }
 0x384   :  { %12900 = vrcp.f32 %v1670_v7  ;;  %v2257_v7 = vld [vmem:[#allocation13 + $0xc8] sm:$0xff] }
 0x385   :  { %12902 = vrcp.f32 %v1681_v33  ;;  %v2260_v33 = vld [vmem:[#allocation13 + $0xe0] sm:$0xff] }
 0x38c   :  { %v12897_v25 = vpop.eup %12896 }
 0x38d   :  { %v12899_v30 = vpop.eup %12898 }
 0x38e   :  { %v12901_v31 = vpop.eup %12900  ;;  %v1685_v40 = vmul.f32 %v12899_v30, %v12897_v25  ;;  %v14002_v25 = vpack.c.bf16 %v2252_v5, %v2248_v62  ;;  %v14005_v30 = vpack.c.bf16 %v2261_v24, %v2257_v7 }
 0x38f   :  { %v1684_v34 = vmul.f32 0.0, %v12901_v31  ;;  %v12903_v42 = vpop.eup %12902  ;;  %v2256_v31 = vld [vmem:[#allocation13 + $0xc0] sm:$0xff] }
 0x391   :  { %v13934_v35 = vadd.f32 %v1685_v40, %v1684_v34  ;;  %v2265_v34 = vld [vmem:[#allocation13 + $0x108] sm:$0xff] }
 0x392   :  { %v2269_v40 = vld [vmem:[#allocation13 + $0x128] sm:$0xff] }
 0x393   :  { %12904 = vtanh.f32 %v13934_v35 }
 0x39d   :  { %v12905_v43 = vpop.eup %12904 }
 0x39e   :  { %v1688_v48 = vmul.f32 %v12905_v43, %v12903_v42  ;;  %v2270_v42 = vld [vmem:[#allocation13 + $0x130] sm:$0xff] }
 0x3a0   :  { %1689 = vst [vmem:[#allocation3] sm:$0x1] %v1688_v48  ;;  %1821 = vmatmul.mubr.f32.vlgmr.msra.gmra.mrb[20].mxu1 %v1688_v48 }
 0x3a1   :  { %10637 = vmatpush1.bf16.msra.mxu1 %v13852_v27  ;;  %1891 = vmatprep.mubr.f32.mxu1 %v13602_v2 }
 0x3a2   :  { %10639 = vmatprep.subr.bf16.mxu1 %v13855_v28 }
 0x3a5   :  { %10641 = vmatpush1.bf16.msra.mxu1 %v13859_v37 }
 0x3a6   :  { %10643 = vmatprep.subr.bf16.mxu1 %v13863_v38 }
 0x3a9   :  { %10645 = vmatpush1.bf16.msra.mxu1 %v13866_v45 }
 0x3aa   :  { %10647 = vmatprep.subr.bf16.mxu1 %v13869_v46 }
 0x3ad   :  { %10649 = vmatpush1.bf16.msra.mxu1 %v13872_v54 }
 0x3ae   :  { %10651 = vmatprep.subr.bf16.mxu1 %v13875_v55 }
 0x3b1   :  { %10653 = vmatpush1.bf16.msra.mxu1 %v13878_v63 }
 0x3b2   :  { %10655 = vmatprep.subr.bf16.mxu1 %v13881_v0 }
 0x3b5   :  { %10657 = vmatpush1.bf16.msra.mxu1 %v13884_v10 }
 0x3b6   :  { %10659 = vmatprep.subr.bf16.mxu1 %v13887_v11 }
 0x3b9   :  { %10661 = vmatpush1.bf16.msra.mxu1 %v13890_v16 }
 0x3ba   :  { %10663 = vmatprep.subr.bf16.mxu1 %v13893_v17 }
 0x3bd   :  { %10665 = vmatpush1.bf16.msra.mxu1 %v13896_v22 }
 0x3be   :  { %10699 = vmatprep.subr.bf16.mxu1 %v13849_v19 }
 0x3c0   :  { %1892 = vmatmul.mubr.f32.vlgmr.msra.gmra.mrb[22].mxu1 %v1688_v48  ;;  %v2275_v48 = vld [vmem:[#allocation13 + $0x158] sm:$0xff] }
 0x3c1   :  { %10701 = vmatpush1.bf16.msra.mxu1 %v13852_v27  ;;  %2161 = vmatprep.mubr.f32.mxu1 %v13602_v2 }
 0x3c2   :  { %10703 = vmatprep.subr.bf16.mxu1 %v13855_v28 }
 0x3c5   :  { %10705 = vmatpush1.bf16.msra.mxu1 %v13859_v37 }
 0x3c6   :  { %10707 = vmatprep.subr.bf16.mxu1 %v13863_v38 }
 0x3c9   :  { %10709 = vmatpush1.bf16.msra.mxu1 %v13866_v45 }
 0x3ca   :  { %10711 = vmatprep.subr.bf16.mxu1 %v13869_v46 }
 0x3cd   :  { %10713 = vmatpush1.bf16.msra.mxu1 %v13872_v54 }
 0x3ce   :  { %10715 = vmatprep.subr.bf16.mxu1 %v13875_v55 }
 0x3d1   :  { %10717 = vmatpush1.bf16.msra.mxu1 %v13878_v63 }
 0x3d2   :  { %10719 = vmatprep.subr.bf16.mxu1 %v13881_v0 }
 0x3d5   :  { %10721 = vmatpush1.bf16.msra.mxu1 %v13884_v10 }
 0x3d6   :  { %10723 = vmatprep.subr.bf16.mxu1 %v13887_v11 }
 0x3d9   :  { %10725 = vmatpush1.bf16.msra.mxu1 %v13890_v16  ;;  %v1691_v16 = vld [vmem:[#allocation2 + $0x1] ss:$8 sm:$0xf] }
 0x3da   :  { %10727 = vmatprep.subr.bf16.mxu1 %v13893_v17 }
 0x3dd   :  { %10729 = vmatpush1.bf16.msra.mxu1 %v13896_v22 }
 0x3de   :  { %10763 = vmatprep.subr.bf16.mxu1 %v13849_v19 }
 0x473   :  { %v1822_v49 = vpop.f32.mrb[20].mxu1 }
 0x474   :  { %v1824_v51 = vpop.f32.mrb[21].mxu1 }
 0x475   :  { %v1902_v52 = vcombine.low %v1822_v49, %v1824_v51  ;;  %v2279_v49 = vld [vmem:[#allocation13 + $0x178] sm:$0xff]  ;;  %v14010_v51 = vpack.c.bf16 %v2260_v33, %v2256_v31 }
 0x477   :  { %v1910_v0 = vrot.slane %v1902_v52, %v13929_v21  ;;  %v2264_v52 = vld [vmem:[#allocation13 + $0x100] sm:$0xff] }
 0x493   :  { %v1893_v57 = vpop.f32.mrb[22].mxu1 }
 0x494   :  { %v1895_v58 = vpop.f32.mrb[23].mxu1 }
 0x495   :  { %v1903_v63 = vcombine.low %v1893_v57, %v1895_v58  ;;  %v14012_v57 = vpack.c.bf16 %v2279_v49, %v2275_v48  ;;  %v2274_v58 = vld [vmem:[#allocation13 + $0x150] sm:$0xff] }
 0x497   :  { %v1917_v10 = vrot.slane %v1903_v63, %v13929_v21  ;;  %v14015_v63 = vpack.c.bf16 %v2269_v40, %v2265_v34 }
 0x499   :  { %v1918_v60 = vcombine.low %v1910_v0, %v1917_v10  ;;  %v2268_v0 = vld [vmem:[#allocation13 + $0x120] sm:$0xff]  ;;  %v2273_v10 = vld [vmem:[#allocation13 + $0x148] sm:$0xff] }
 0x49b   :  { %v1925_v11 = vrot.slane %v1918_v60, %v13929_v21  ;;  %v2278_v60 = vld [vmem:[#allocation13 + $0x170] sm:$0xff] }
 0x49d   :  { %v1927_v61 = vadd.f32 %v1925_v11, %v1691_v16  ;;  %v2277_v11 = vld [vmem:[#allocation13 + $0x168] sm:$0xff]  ;;  %v14019_v16 = vpack.c.bf16 %v2278_v60, %v2274_v58 }
 0x49f   :  { %v10385_v17 = vmul.f32 -1.442695, %v1927_v61  ;;  %v1935_v3 = vrot.slane %v1927_v61, 1  ;;  %v1946_v19 = vrot.slane %v1927_v61, 3  ;;  %v1943_v9 = vrot.slane %v1927_v61, 2  ;;  %v2283_v61 = vld [vmem:[#allocation13 + $0x198] sm:$0xff] }
 0x4a1   :  { %12906 = vpow2.f32 %v10385_v17  ;;  %v10386_v22 = vmul.f32 -1.442695, %v1935_v3  ;;  %v10387_v6 = vmul.f32 -1.442695, %v1946_v19  ;;  %v2287_v17 = vld [vmem:[#allocation13 + $0x1b8] sm:$0xff]  ;;  %v2286_v19 = vld [vmem:[#allocation13 + $0x1b0] sm:$0xff] }
 0x4a2   :  { %v14021_v3 = vpack.c.bf16 %v2287_v17, %v2283_v61 }
 0x4a3   :  { %12908 = vpow2.f32 %v10386_v22  ;;  %v2282_v22 = vld [vmem:[#allocation13 + $0x190] sm:$0xff] }
 0x4a4   :  { %12910 = vpow2.f32 %v10387_v6  ;;  %v14024_v6 = vpack.c.bf16 %v2268_v0, %v2264_v52 }
 0x4ab   :  { %v12907_v8 = vpop.eup %12906 }
 0x4ac   :  { %v1931_v12 = vadd.f32 1.0, %v12907_v8  ;;  %v2272_v8 = vld [vmem:[#allocation13 + $0x140] sm:$0xff] }
 0x4ad   :  { %v12909_v13 = vpop.eup %12908 }
 0x4ae   :  { %12912 = vrcp.f32 %v1931_v12  ;;  %v1940_v14 = vadd.f32 1.0, %v12909_v13  ;;  %v12911_v15 = vpop.eup %12910  ;;  %v14027_v12 = vpack.c.bf16 %v2277_v11, %v2273_v10  ;;  %v2276_v13 = vld [vmem:[#allocation13 + $0x160] sm:$0xff] }
 0x4af   :  { %12914 = vtanh.f32 %v1943_v9  ;;  %v1951_v26 = vadd.f32 1.0, %v12911_v15  ;;  %v2291_v9 = vld [vmem:[#allocation13 + $0x1d8] sm:$0xff]  ;;  %v14030_v15 = vpack.c.bf16 %v2286_v19, %v2282_v22 }
 0x4b0   :  { %12916 = vrcp.f32 %v1940_v14  ;;  %v2281_v14 = vld [vmem:[#allocation13 + $0x188] sm:$0xff] }
 0x4b1   :  { %12918 = vrcp.f32 %v1951_v26  ;;  %v2290_v26 = vld [vmem:[#allocation13 + $0x1d0] sm:$0xff] }
 0x4b8   :  { %v12913_v18 = vpop.eup %12912 }
 0x4b9   :  { %v12915_v20 = vpop.eup %12914 }
 0x4ba   :  { %v12917_v23 = vpop.eup %12916  ;;  %v1955_v32 = vmul.f32 %v12915_v20, %v12913_v18  ;;  %v2295_v18 = vld [vmem:[#allocation13 + $0x1f8] sm:$0xff]  ;;  %v2285_v20 = vld [vmem:[#allocation13 + $0x1a8] sm:$0xff] }
 0x4bb   :  { %v1954_v29 = vmul.f32 %v12917_v23, %v13934_v35  ;;  %v12919_v39 = vpop.eup %12918  ;;  %v2266_v35 = vld [vmem:[#allocation13 + $0x110] sm:$0xff]  ;;  %v14033_v23 = vpack.c.bf16 %v2295_v18, %v2291_v9 }
 0x4bc   :  { %v14007_v43 = vpack.c.bf16 %v2270_v42, %v2266_v35  ;;  %v1961_v35 = vld [vmem:[#allocation2 + $0x2] ss:$8 sm:$0xf] }
 0x4bd   :  { %v13975_v36 = vadd.f32 %v1955_v32, %v1954_v29  ;;  %v2294_v29 = vld [vmem:[#allocation13 + $0x1f0] sm:$0xff]  ;;  %v14036_v32 = vpack.c.bf16 %v2276_v13, %v2272_v8 }
 0x4bf   :  { %12920 = vtanh.f32 %v13975_v36 }
 0x4c9   :  { %v12921_v41 = vpop.eup %12920 }
 0x4ca   :  { %v1958_v44 = vmul.f32 %v12921_v41, %v12919_v39  ;;  %v14039_v39 = vpack.c.bf16 %v2285_v20, %v2281_v14  ;;  %v2280_v41 = vld [vmem:[#allocation13 + $0x180] sm:$0xff] }
 0x4cc   :  { %1959 = vst [vmem:[#allocation3 + $0x1] sm:$0x1] %v1958_v44  ;;  %2091 = vmatmul.mubr.f32.vlgmr.msra.gmra.mrb[4].mxu0 %v1958_v44  ;;  %2162 = vmatmul.mubr.f32.vlgmr.msra.gmra.mrb[24].mxu1 %v1958_v44  ;;  %v2284_v44 = vld [vmem:[#allocation13 + $0x1a0] sm:$0xff] }
 0x4cd   :  { %10765 = vmatpush1.bf16.msra.mxu1 %v13852_v27  ;;  %2360 = vmatprep.mubr.f32.mxu0 %v13602_v2  ;;  %v2237_v27 = vld [vmem:[#allocation13 + $0x28] sm:$0xff] }
 0x4ce   :  { %10767 = vmatprep.subr.bf16.mxu1 %v13855_v28  ;;  %2431 = vmatprep.mubr.f32.mxu1 %v13602_v2  ;;  %v13988_v50 = vpack.c.bf16 %v2237_v27, %v2233_v47  ;;  %v2236_v28 = vld [vmem:[#allocation13 + $0x20] sm:$0xff]  ;;  %v14042_v47 = vpack.c.bf16 %v2294_v29, %v2290_v26  ;;  %v2289_v27 = vld [vmem:[#allocation13 + $0x1c8] sm:$0xff] }
 0x4cf   :  { %v13990_v56 = vpack.c.bf16 %v2236_v28, %v2232_v53  ;;  %v2293_v53 = vld [vmem:[#allocation13 + $0x1e8] sm:$0xff]  ;;  %v14046_v28 = vpack.c.bf16 %v2284_v44, %v2280_v41  ;;  %v2509_v44 = vld [vmem:[#allocation13 + $0x38] sm:$0xff] }
 0x4d0   :  { %10731 = vmatprep.subr.bf16.mxu0 %v13988_v50 }
 0x4d1   :  { %10769 = vmatpush1.bf16.msra.mxu1 %v13859_v37  ;;  %10733 = vmatpush1.bf16.msra.mxu0 %v13990_v56  ;;  %v2241_v37 = vld [vmem:[#allocation13 + $0x48] sm:$0xff] }
 0x4d2   :  { %10771 = vmatprep.subr.bf16.mxu1 %v13863_v38  ;;  %v2245_v38 = vld [vmem:[#allocation13 + $0x68] sm:$0xff] }
 0x4d5   :  { %10773 = vmatpush1.bf16.msra.mxu1 %v13866_v45  ;;  %v13994_v45 = vpack.c.bf16 %v2245_v38, %v2241_v37  ;;  %v14049_v37 = vpack.c.bf16 %v2293_v53, %v2289_v27  ;;  %v2288_v38 = vld [vmem:[#allocation13 + $0x1c0] sm:$0xff]  ;;  %v2504_v53 = vld [vmem:[#allocation13 + $0x10] sm:$0xff] }
 0x4d6   :  { %10775 = vmatprep.subr.bf16.mxu1 %v13869_v46  ;;  %v2240_v46 = vld [vmem:[#allocation13 + $0x40] sm:$0xff] }
 0x4d7   :  { %10735 = vmatprep.subr.bf16.mxu0 %v13994_v45 }
 0x4d9   :  { %10777 = vmatpush1.bf16.msra.mxu1 %v13872_v54  ;;  %v2244_v54 = vld [vmem:[#allocation13 + $0x60] sm:$0xff] }
 0x4da   :  { %10779 = vmatprep.subr.bf16.mxu1 %v13875_v55  ;;  %v13996_v4 = vpack.c.bf16 %v2244_v54, %v2240_v46  ;;  %v2249_v55 = vld [vmem:[#allocation13 + $0x88] sm:$0xff]  ;;  %v2292_v46 = vld [vmem:[#allocation13 + $0x1e0] sm:$0xff] }
 0x4db   :  { %v13999_v1 = vpack.c.bf16 %v2253_v59, %v2249_v55  ;;  %v14053_v54 = vpack.c.bf16 %v2292_v46, %v2288_v38  ;;  %v2508_v38 = vld [vmem:[#allocation13 + $0x30] sm:$0xff] }
 0x4dc   :  { %10737 = vmatpush1.bf16.msra.mxu0 %v13996_v4  ;;  %v14085_v46 = vpack.c.bf16 %v2508_v38, %v2504_v53 }
 0x4dd   :  { %10739 = vmatprep.subr.bf16.mxu0 %v13999_v1  ;;  %10781 = vmatpush1.bf16.msra.mxu1 %v14007_v43 }
 0x4de   :  { %10783 = vmatprep.subr.bf16.mxu1 %v14012_v57 }
 0x4e0   :  { %10741 = vmatpush1.bf16.msra.mxu0 %v14002_v25 }
 0x4e1   :  { %10743 = vmatprep.subr.bf16.mxu0 %v14005_v30  ;;  %10785 = vmatpush1.bf16.msra.mxu1 %v14019_v16 }
 0x4e2   :  { %10787 = vmatprep.subr.bf16.mxu1 %v14021_v3 }
 0x4e4   :  { %10745 = vmatpush1.bf16.msra.mxu0 %v14010_v51 }
 0x4e5   :  { %10747 = vmatprep.subr.bf16.mxu0 %v14015_v63  ;;  %10789 = vmatpush1.bf16.msra.mxu1 %v14030_v15 }
 0x4e6   :  { %10791 = vmatprep.subr.bf16.mxu1 %v14033_v23 }
 0x4e8   :  { %10749 = vmatpush1.bf16.msra.mxu0 %v14024_v6 }
 0x4e9   :  { %10751 = vmatprep.subr.bf16.mxu0 %v14027_v12  ;;  %10793 = vmatpush1.bf16.msra.mxu1 %v14042_v47 }
 0x4ec   :  { %10753 = vmatpush1.bf16.msra.mxu0 %v14036_v32 }
 0x4ed   :  { %10755 = vmatprep.subr.bf16.mxu0 %v14039_v39 }
 0x4f0   :  { %10757 = vmatpush1.bf16.msra.mxu0 %v14046_v28 }
 0x4f1   :  { %10759 = vmatprep.subr.bf16.mxu0 %v14049_v37 }
 0x4f4   :  { %10761 = vmatpush1.bf16.msra.mxu0 %v14053_v54 }
 0x4f5   :  { %10795 = vmatprep.subr.bf16.mxu0 %v13988_v50 }
 0x59f   :  { %v2092_v55 = vpop.f32.mrb[4].mxu0  ;;  %v2163_v59 = vpop.f32.mrb[24].mxu1 }
 0x5a0   :  { %v2094_v62 = vpop.f32.mrb[5].mxu0  ;;  %v2165_v5 = vpop.f32.mrb[25].mxu1 }
 0x5a1   :  { %v2172_v7 = vcombine.low %v2092_v55, %v2094_v62  ;;  %v2173_v24 = vcombine.low %v2163_v59, %v2165_v5  ;;  %v2513_v55 = vld [vmem:[#allocation13 + $0x58] sm:$0xff]  ;;  %v2512_v5 = vld [vmem:[#allocation13 + $0x50] sm:$0xff] }
 0x5a2   :  { %v2517_v59 = vld [vmem:[#allocation13 + $0x78] sm:$0xff] }
 0x5a3   :  { %v2180_v31 = vrot.slane %v2172_v7, %v13929_v21  ;;  %v2187_v33 = vrot.slane %v2173_v24, %v13929_v21  ;;  %v14089_v62 = vpack.c.bf16 %v2517_v59, %v2513_v55  ;;  %v2516_v7 = vld [vmem:[#allocation13 + $0x70] sm:$0xff] }
 0x5a4   :  { %v14091_v24 = vpack.c.bf16 %v2516_v7, %v2512_v5 }
 0x5a5   :  { %v2188_v34 = vcombine.low %v2180_v31, %v2187_v33  ;;  %v2521_v31 = vld [vmem:[#allocation13 + $0x98] sm:$0xff] }
 0x5a6   :  { %v2525_v33 = vld [vmem:[#allocation13 + $0xb8] sm:$0xff] }
 0x5a7   :  { %v2195_v40 = vrot.slane %v2188_v34, %v13929_v21  ;;  %v2520_v34 = vld [vmem:[#allocation13 + $0x90] sm:$0xff] }
 0x5a9   :  { %v2197_v42 = vadd.f32 %v2195_v40, %v1961_v35  ;;  %v14094_v40 = vpack.c.bf16 %v2525_v33, %v2521_v31  ;;  %v2524_v35 = vld [vmem:[#allocation13 + $0xb0] sm:$0xff] }
 0x5ab   :  { %v10388_v48 = vmul.f32 -1.442695, %v2197_v42  ;;  %v2205_v49 = vrot.slane %v2197_v42, 1  ;;  %v2216_v58 = vrot.slane %v2197_v42, 3  ;;  %v2213_v60 = vrot.slane %v2197_v42, 2  ;;  %v2529_v42 = vld [vmem:[#allocation13 + $0xd8] sm:$0xff] }
 0x5ad   :  { %12922 = vpow2.f32 %v10388_v48  ;;  %v10389_v52 = vmul.f32 -1.442695, %v2205_v49  ;;  %v10390_v0 = vmul.f32 -1.442695, %v2216_v58  ;;  %v2533_v48 = vld [vmem:[#allocation13 + $0xf8] sm:$0xff]  ;;  %v14097_v49 = vpack.c.bf16 %v2524_v35, %v2520_v34  ;;  %v2528_v58 = vld [vmem:[#allocation13 + $0xd0] sm:$0xff] }
 0x5af   :  { %12924 = vpow2.f32 %v10389_v52  ;;  %v14100_v52 = vpack.c.bf16 %v2533_v48, %v2529_v42 }
 0x5b0   :  { %12926 = vpow2.f32 %v10390_v0  ;;  %v2532_v0 = vld [vmem:[#allocation13 + $0xf0] sm:$0xff] }
 0x5b7   :  { %v12923_v10 = vpop.eup %12922 }
 0x5b8   :  { %v2201_v11 = vadd.f32 1.0, %v12923_v10  ;;  %v2537_v10 = vld [vmem:[#allocation13 + $0x118] sm:$0xff] }
 0x5b9   :  { %v12925_v61 = vpop.eup %12924 }
 0x5ba   :  { %12928 = vrcp.f32 %v2201_v11  ;;  %v2210_v17 = vadd.f32 1.0, %v12925_v61  ;;  %v12927_v22 = vpop.eup %12926  ;;  %v14103_v11 = vpack.c.bf16 %v2532_v0, %v2528_v58 }
 0x5bb   :  { %12930 = vtanh.f32 %v2213_v60  ;;  %v2221_v13 = vadd.f32 1.0, %v12927_v22  ;;  %v2541_v60 = vld [vmem:[#allocation13 + $0x138] sm:$0xff] }
 0x5bc   :  { %12932 = vrcp.f32 %v2210_v17  ;;  %v14106_v61 = vpack.c.bf16 %v2541_v60, %v2537_v10 }
 0x5bd   :  { %12934 = vrcp.f32 %v2221_v13 }
 0x5c4   :  { %v12929_v19 = vpop.eup %12928 }
 0x5c5   :  { %v12931_v8 = vpop.eup %12930 }
 0x5c6   :  { %v12933_v9 = vpop.eup %12932  ;;  %v2225_v18 = vmul.f32 %v12931_v8, %v12929_v19 }
 0x5c7   :  { %v2224_v14 = vmul.f32 %v12933_v9, %v13975_v36  ;;  %v12935_v26 = vpop.eup %12934  ;;  %v2505_v36 = vld [vmem:[#allocation13 + $0x18] sm:$0xff] }
 0x5c8   :  { %v14083_v27 = vpack.c.bf16 %v2509_v44, %v2505_v36 }
 0x5c9   :  { %v14062_v20 = vadd.f32 %v2225_v18, %v2224_v14 }
 0x5ca   :  { %10827 = vmatprep.subr.bf16.mxu1 %v14083_v27 }
 0x5cb   :  { %12936 = vtanh.f32 %v14062_v20 }
 0x5d5   :  { %v12937_v29 = vpop.eup %12936 }
 0x5d6   :  { %v2228_v41 = vmul.f32 %v12937_v29, %v12935_v26 }
 0x5d8   :  { %2229 = vst [vmem:[#allocation3 + $0x2] sm:$0x1] %v2228_v41  ;;  %2361 = vmatmul.mubr.f32.vlgmr.msra.gmra.mrb[6].mxu0 %v2228_v41  ;;  %2432 = vmatmul.mubr.f32.vlgmr.msra.gmra.mrb[26].mxu1 %v2228_v41  ;;  %v2231_v41 = vld [vmem:[#allocation2 + $0x3] ss:$8 sm:$0xf] }
 0x5d9   :  { %10797 = vmatpush1.bf16.msra.mxu0 %v13990_v56  ;;  %2630 = vmatprep.mubr.f32.mxu0 %v13602_v2 }
 0x5da   :  { %10799 = vmatprep.subr.bf16.mxu0 %v13994_v45  ;;  %2701 = vmatprep.mubr.f32.mxu1 %v13602_v2 }
 0x5db   :  { %10829 = vmatpush1.bf16.msra.mxu1 %v14085_v46 }
 0x5dc   :  { %10831 = vmatprep.subr.bf16.mxu1 %v14089_v62 }
 0x5dd   :  { %10801 = vmatpush1.bf16.msra.mxu0 %v13996_v4 }
 0x5de   :  { %10803 = vmatprep.subr.bf16.mxu0 %v13999_v1 }
 0x5df   :  { %10833 = vmatpush1.bf16.msra.mxu1 %v14091_v24 }
 0x5e0   :  { %10835 = vmatprep.subr.bf16.mxu1 %v14094_v40 }
 0x5e1   :  { %10805 = vmatpush1.bf16.msra.mxu0 %v14002_v25 }
 0x5e2   :  { %10807 = vmatprep.subr.bf16.mxu0 %v14005_v30 }
 0x5e3   :  { %10837 = vmatpush1.bf16.msra.mxu1 %v14097_v49 }
 0x5e4   :  { %10839 = vmatprep.subr.bf16.mxu1 %v14100_v52 }
 0x5e5   :  { %10809 = vmatpush1.bf16.msra.mxu0 %v14010_v51 }
 0x5e6   :  { %10811 = vmatprep.subr.bf16.mxu0 %v14015_v63 }
 0x5e7   :  { %10841 = vmatpush1.bf16.msra.mxu1 %v14103_v11 }
 0x5e8   :  { %10843 = vmatprep.subr.bf16.mxu1 %v14106_v61 }
 0x5e9   :  { %10813 = vmatpush1.bf16.msra.mxu0 %v14024_v6 }
 0x5ea   :  { %10815 = vmatprep.subr.bf16.mxu0 %v14027_v12 }
 0x5eb   :  { %10845 = vmatpush1.bf16.msra.mxu1 %v14007_v43 }
 0x5ec   :  { %10847 = vmatprep.subr.bf16.mxu1 %v14012_v57 }
 0x5ed   :  { %10817 = vmatpush1.bf16.msra.mxu0 %v14036_v32 }
 0x5ee   :  { %10819 = vmatprep.subr.bf16.mxu0 %v14039_v39 }
 0x5ef   :  { %10849 = vmatpush1.bf16.msra.mxu1 %v14019_v16 }
 0x5f0   :  { %10851 = vmatprep.subr.bf16.mxu1 %v14021_v3 }
 0x5f1   :  { %10821 = vmatpush1.bf16.msra.mxu0 %v14046_v28 }
 0x5f2   :  { %10823 = vmatprep.subr.bf16.mxu0 %v14049_v37 }
 0x5f3   :  { %10853 = vmatpush1.bf16.msra.mxu1 %v14030_v15 }
 0x5f4   :  { %10855 = vmatprep.subr.bf16.mxu1 %v14033_v23 }
 0x5f5   :  { %10825 = vmatpush1.bf16.msra.mxu0 %v14053_v54 }
 0x5f6   :  { %10859 = vmatprep.subr.bf16.mxu0 %v13988_v50 }
 0x5f7   :  { %10857 = vmatpush1.bf16.msra.mxu1 %v14042_v47 }
 0x5f8   :  { %10891 = vmatprep.subr.bf16.mxu1 %v14083_v27 }
 0x6ab   :  { %v2362_v17 = vpop.f32.mrb[6].mxu0  ;;  %v2433_v22 = vpop.f32.mrb[26].mxu1 }
 0x6ac   :  { %v2364_v19 = vpop.f32.mrb[7].mxu0  ;;  %v2435_v8 = vpop.f32.mrb[27].mxu1 }
 0x6ad   :  { %v2442_v9 = vcombine.low %v2362_v17, %v2364_v19  ;;  %v2443_v13 = vcombine.low %v2433_v22, %v2435_v8 }
 0x6af   :  { %v2450_v14 = vrot.slane %v2442_v9, %v13929_v21  ;;  %v2457_v18 = vrot.slane %v2443_v13, %v13929_v21 }
 0x6b1   :  { %v2458_v26 = vcombine.low %v2450_v14, %v2457_v18 }
 0x6b3   :  { %v2465_v29 = vrot.slane %v2458_v26, %v13929_v21 }
 0x6b5   :  { %v2467_v36 = vadd.f32 %v2465_v29, %v2231_v41 }
 0x6b7   :  { %v10391_v44 = vmul.f32 -1.442695, %v2467_v36  ;;  %v2475_v53 = vrot.slane %v2467_v36, 1  ;;  %v2486_v55 = vrot.slane %v2467_v36, 3  ;;  %v2483_v7 = vrot.slane %v2467_v36, 2 }
 0x6b9   :  { %12938 = vpow2.f32 %v10391_v44  ;;  %v10392_v38 = vmul.f32 -1.442695, %v2475_v53  ;;  %v10393_v59 = vmul.f32 -1.442695, %v2486_v55 }
 0x6ba   :  { %v2501_v53 = vld [vmem:[#allocation2 + $0x4] ss:$8 sm:$0xf] }
 0x6bb   :  { %12940 = vpow2.f32 %v10392_v38 }
 0x6bc   :  { %12942 = vpow2.f32 %v10393_v59 }
 0x6c3   :  { %v12939_v5 = vpop.eup %12938 }
 0x6c4   :  { %v2471_v31 = vadd.f32 1.0, %v12939_v5 }
 0x6c5   :  { %v12941_v33 = vpop.eup %12940 }
 0x6c6   :  { %12944 = vrcp.f32 %v2471_v31  ;;  %v2480_v34 = vadd.f32 1.0, %v12941_v33  ;;  %v12943_v35 = vpop.eup %12942 }
 0x6c7   :  { %12946 = vtanh.f32 %v2483_v7  ;;  %v2491_v0 = vadd.f32 1.0, %v12943_v35 }
 0x6c8   :  { %12948 = vrcp.f32 %v2480_v34 }
 0x6c9   :  { %12950 = vrcp.f32 %v2491_v0 }
 0x6d0   :  { %v12945_v42 = vpop.eup %12944 }
 0x6d1   :  { %v12947_v48 = vpop.eup %12946 }
 0x6d2   :  { %v12949_v58 = vpop.eup %12948  ;;  %v2495_v60 = vmul.f32 %v12947_v48, %v12945_v42 }
 0x6d3   :  { %v2494_v10 = vmul.f32 %v12949_v58, %v14062_v20  ;;  %v12951_v22 = vpop.eup %12950 }
 0x6d5   :  { %v14122_v17 = vadd.f32 %v2495_v60, %v2494_v10 }
 0x6d7   :  { %12952 = vtanh.f32 %v14122_v17 }
 0x6e1   :  { %v12953_v19 = vpop.eup %12952 }
 0x6e2   :  { %v2498_v8 = vmul.f32 %v12953_v19, %v12951_v22 }
 0x6e4   :  { %2499 = vst [vmem:[#allocation3 + $0x3] sm:$0x1] %v2498_v8  ;;  %2631 = vmatmul.mubr.f32.vlgmr.msra.gmra.mrb[8].mxu0 %v2498_v8  ;;  %2702 = vmatmul.mubr.f32.vlgmr.msra.gmra.mrb[28].mxu1 %v2498_v8 }
 0x6e5   :  { %10861 = vmatpush1.bf16.msra.mxu0 %v13990_v56  ;;  %10893 = vmatpush1.bf16.msra.mxu1 %v14085_v46 }
 0x6e6   :  { %10863 = vmatprep.subr.bf16.mxu0 %v13994_v45  ;;  %10895 = vmatprep.subr.bf16.mxu1 %v14089_v62 }
 0x6e7   :  { %2900 = vmatprep.mubr.f32.mxu0 %v13602_v2  ;;  %2971 = vmatprep.mubr.f32.mxu1 %v13602_v2 }
 0x6e9   :  { %10865 = vmatpush1.bf16.msra.mxu0 %v13996_v4  ;;  %10897 = vmatpush1.bf16.msra.mxu1 %v14091_v24 }
 0x6ea   :  { %10867 = vmatprep.subr.bf16.mxu0 %v13999_v1  ;;  %10899 = vmatprep.subr.bf16.mxu1 %v14094_v40 }
 0x6ed   :  { %10869 = vmatpush1.bf16.msra.mxu0 %v14002_v25  ;;  %10901 = vmatpush1.bf16.msra.mxu1 %v14097_v49 }
 0x6ee   :  { %10871 = vmatprep.subr.bf16.mxu0 %v14005_v30  ;;  %10903 = vmatprep.subr.bf16.mxu1 %v14100_v52 }
 0x6f1   :  { %10873 = vmatpush1.bf16.msra.mxu0 %v14010_v51  ;;  %10905 = vmatpush1.bf16.msra.mxu1 %v14103_v11 }
 0x6f2   :  { %10875 = vmatprep.subr.bf16.mxu0 %v14015_v63  ;;  %10907 = vmatprep.subr.bf16.mxu1 %v14106_v61 }
 0x6f5   :  { %10877 = vmatpush1.bf16.msra.mxu0 %v14024_v6  ;;  %10909 = vmatpush1.bf16.msra.mxu1 %v14007_v43 }
 0x6f6   :  { %10879 = vmatprep.subr.bf16.mxu0 %v14027_v12  ;;  %10911 = vmatprep.subr.bf16.mxu1 %v14012_v57 }
 0x6f9   :  { %10881 = vmatpush1.bf16.msra.mxu0 %v14036_v32  ;;  %10913 = vmatpush1.bf16.msra.mxu1 %v14019_v16 }
 0x6fa   :  { %10883 = vmatprep.subr.bf16.mxu0 %v14039_v39  ;;  %10915 = vmatprep.subr.bf16.mxu1 %v14021_v3 }
 0x6fd   :  { %10885 = vmatpush1.bf16.msra.mxu0 %v14046_v28  ;;  %10917 = vmatpush1.bf16.msra.mxu1 %v14030_v15 }
 0x6fe   :  { %10887 = vmatprep.subr.bf16.mxu0 %v14049_v37  ;;  %10919 = vmatprep.subr.bf16.mxu1 %v14033_v23 }
 0x701   :  { %10889 = vmatpush1.bf16.msra.mxu0 %v14053_v54  ;;  %10921 = vmatpush1.bf16.msra.mxu1 %v14042_v47 }
 0x702   :  { %10923 = vmatprep.subr.bf16.mxu0 %v13988_v50  ;;  %10955 = vmatprep.subr.bf16.mxu1 %v14083_v27 }
 0x7b7   :  { %v2632_v20 = vpop.f32.mrb[8].mxu0  ;;  %v2703_v9 = vpop.f32.mrb[28].mxu1 }
 0x7b8   :  { %v2634_v13 = vpop.f32.mrb[9].mxu0  ;;  %v2705_v14 = vpop.f32.mrb[29].mxu1 }
 0x7b9   :  { %v2712_v18 = vcombine.low %v2632_v20, %v2634_v13  ;;  %v2713_v26 = vcombine.low %v2703_v9, %v2705_v14 }
 0x7bb   :  { %v2720_v29 = vrot.slane %v2712_v18, %v13929_v21  ;;  %v2727_v41 = vrot.slane %v2713_v26, %v13929_v21 }
 0x7bd   :  { %v2728_v36 = vcombine.low %v2720_v29, %v2727_v41 }
 0x7bf   :  { %v2735_v44 = vrot.slane %v2728_v36, %v13929_v21 }
 0x7c1   :  { %v2737_v38 = vadd.f32 %v2735_v44, %v2501_v53 }
 0x7c3   :  { %v10394_v55 = vmul.f32 -1.442695, %v2737_v38  ;;  %v2745_v59 = vrot.slane %v2737_v38, 1  ;;  %v2756_v5 = vrot.slane %v2737_v38, 3  ;;  %v2753_v33 = vrot.slane %v2737_v38, 2 }
 0x7c5   :  { %12954 = vpow2.f32 %v10394_v55  ;;  %v10395_v50 = vmul.f32 -1.442695, %v2745_v59  ;;  %v10396_v7 = vmul.f32 -1.442695, %v2756_v5  ;;  %v3313_v55 = vld [vmem:[#allocation13 + $0x8] sm:$0xff] }
 0x7c7   :  { %12956 = vpow2.f32 %v10395_v50  ;;  %v3312_v50 = vld [vmem:[#allocation13] sm:$0xff] }
 0x7c8   :  { %12958 = vpow2.f32 %v10396_v7  ;;  %v3329_v7 = vld [vmem:[#allocation13 + $0x88] sm:$0xff] }
 0x7cf   :  { %v12955_v31 = vpop.eup %12954 }
 0x7d0   :  { %v2741_v34 = vadd.f32 1.0, %v12955_v31  ;;  %v3333_v31 = vld [vmem:[#allocation13 + $0xa8] sm:$0xff] }
 0x7d1   :  { %v12957_v35 = vpop.eup %12956 }
 0x7d2   :  { %12960 = vrcp.f32 %v2741_v34  ;;  %v2750_v42 = vadd.f32 1.0, %v12957_v35  ;;  %v12959_v48 = vpop.eup %12958  ;;  %v3332_v34 = vld [vmem:[#allocation13 + $0xa0] sm:$0xff]  ;;  %v14227_v35 = vpack.c.bf16 %v3333_v31, %v3329_v7 }
 0x7d3   :  { %12962 = vtanh.f32 %v2753_v33  ;;  %v2761_v60 = vadd.f32 1.0, %v12959_v48  ;;  %v3328_v33 = vld [vmem:[#allocation13 + $0x80] sm:$0xff]  ;;  %v3341_v48 = vld [vmem:[#allocation13 + $0xe8] sm:$0xff] }
 0x7d4   :  { %12964 = vrcp.f32 %v2750_v42  ;;  %v3337_v42 = vld [vmem:[#allocation13 + $0xc8] sm:$0xff] }
 0x7d5   :  { %12966 = vrcp.f32 %v2761_v60  ;;  %v3340_v60 = vld [vmem:[#allocation13 + $0xe0] sm:$0xff] }
 0x7dc   :  { %v12961_v58 = vpop.eup %12960 }
 0x7dd   :  { %v12963_v0 = vpop.eup %12962 }
 0x7de   :  { %v12965_v10 = vpop.eup %12964  ;;  %v2765_v19 = vmul.f32 %v12963_v0, %v12961_v58  ;;  %v14230_v58 = vpack.c.bf16 %v3332_v34, %v3328_v33  ;;  %v14233_v0 = vpack.c.bf16 %v3341_v48, %v3337_v42 }
 0x7df   :  { %v2764_v22 = vmul.f32 %v12965_v10, %v14122_v17  ;;  %v12967_v20 = vpop.eup %12966  ;;  %v3336_v10 = vld [vmem:[#allocation13 + $0xc0] sm:$0xff] }
 0x7e1   :  { %v14163_v8 = vadd.f32 %v2765_v19, %v2764_v22  ;;  %v3346_v22 = vld [vmem:[#allocation13 + $0x110] sm:$0xff]  ;;  %v3345_v19 = vld [vmem:[#allocation13 + $0x108] sm:$0xff] }
 0x7e3   :  { %12968 = vtanh.f32 %v14163_v8 }
 0x7ed   :  { %v12969_v9 = vpop.eup %12968 }
 0x7ee   :  { %v2768_v13 = vmul.f32 %v12969_v9, %v12967_v20  ;;  %v3350_v20 = vld [vmem:[#allocation13 + $0x130] sm:$0xff] }
 0x7ef   :  { %v14235_v9 = vpack.c.bf16 %v3350_v20, %v3346_v22 }
 0x7f0   :  { %2769 = vst [vmem:[#allocation3 + $0x4] sm:$0x1] %v2768_v13  ;;  %2901 = vmatmul.mubr.f32.vlgmr.msra.gmra.mrb[10].mxu0 %v2768_v13  ;;  %2972 = vmatmul.mubr.f32.vlgmr.msra.gmra.mrb[30].mxu1 %v2768_v13  ;;  %v3355_v13 = vld [vmem:[#allocation13 + $0x158] sm:$0xff] }
 0x7f1   :  { %10925 = vmatpush1.bf16.msra.mxu0 %v13990_v56  ;;  %10957 = vmatpush1.bf16.msra.mxu1 %v14085_v46 }
 0x7f2   :  { %10927 = vmatprep.subr.bf16.mxu0 %v13994_v45  ;;  %10959 = vmatprep.subr.bf16.mxu1 %v14089_v62 }
 0x7f3   :  { %3170 = vmatprep.mubr.f32.mxu0 %v13602_v2  ;;  %3241 = vmatprep.mubr.f32.mxu1 %v13602_v2 }
 0x7f5   :  { %10929 = vmatpush1.bf16.msra.mxu0 %v13996_v4  ;;  %10961 = vmatpush1.bf16.msra.mxu1 %v14091_v24 }
 0x7f6   :  { %10931 = vmatprep.subr.bf16.mxu0 %v13999_v1  ;;  %10963 = vmatprep.subr.bf16.mxu1 %v14094_v40 }
 0x7f9   :  { %10933 = vmatpush1.bf16.msra.mxu0 %v14002_v25  ;;  %10965 = vmatpush1.bf16.msra.mxu1 %v14097_v49 }
 0x7fa   :  { %10935 = vmatprep.subr.bf16.mxu0 %v14005_v30  ;;  %10967 = vmatprep.subr.bf16.mxu1 %v14100_v52 }
 0x7fd   :  { %10937 = vmatpush1.bf16.msra.mxu0 %v14010_v51  ;;  %10969 = vmatpush1.bf16.msra.mxu1 %v14103_v11 }
 0x7fe   :  { %10939 = vmatprep.subr.bf16.mxu0 %v14015_v63  ;;  %10971 = vmatprep.subr.bf16.mxu1 %v14106_v61 }
 0x801   :  { %10941 = vmatpush1.bf16.msra.mxu0 %v14024_v6  ;;  %10973 = vmatpush1.bf16.msra.mxu1 %v14007_v43 }
 0x802   :  { %10943 = vmatprep.subr.bf16.mxu0 %v14027_v12  ;;  %10975 = vmatprep.subr.bf16.mxu1 %v14012_v57 }
 0x805   :  { %10945 = vmatpush1.bf16.msra.mxu0 %v14036_v32  ;;  %10977 = vmatpush1.bf16.msra.mxu1 %v14019_v16  ;;  %v2771_v16 = vld [vmem:[#allocation2 + $0x5] ss:$8 sm:$0xf] }
 0x806   :  { %10947 = vmatprep.subr.bf16.mxu0 %v14039_v39  ;;  %10979 = vmatprep.subr.bf16.mxu1 %v14021_v3 }
 0x809   :  { %10949 = vmatpush1.bf16.msra.mxu0 %v14046_v28  ;;  %10981 = vmatpush1.bf16.msra.mxu1 %v14030_v15 }
 0x80a   :  { %10951 = vmatprep.subr.bf16.mxu0 %v14049_v37  ;;  %10983 = vmatprep.subr.bf16.mxu1 %v14033_v23 }
 0x80d   :  { %10953 = vmatpush1.bf16.msra.mxu0 %v14053_v54  ;;  %10985 = vmatpush1.bf16.msra.mxu1 %v14042_v47 }
 0x80e   :  { %11019 = vmatprep.subr.bf16.mxu1 %v14083_v27 }
 0x8c3   :  { %v2902_v56 = vpop.f32.mrb[10].mxu0  ;;  %v2973_v45 = vpop.f32.mrb[30].mxu1 }
 0x8c4   :  { %v2904_v4 = vpop.f32.mrb[11].mxu0  ;;  %v2975_v1 = vpop.f32.mrb[31].mxu1 }
 0x8c5   :  { %v2982_v25 = vcombine.low %v2902_v56, %v2904_v4  ;;  %v2983_v30 = vcombine.low %v2973_v45, %v2975_v1  ;;  %v3359_v56 = vld [vmem:[#allocation13 + $0x178] sm:$0xff]  ;;  %v14238_v45 = vpack.c.bf16 %v3340_v60, %v3336_v10  ;;  %v3354_v1 = vld [vmem:[#allocation13 + $0x150] sm:$0xff] }
 0x8c6   :  { %v14240_v4 = vpack.c.bf16 %v3359_v56, %v3355_v13 }
 0x8c7   :  { %v2990_v43 = vrot.slane %v2982_v25, %v13929_v21  ;;  %v2997_v51 = vrot.slane %v2983_v30, %v13929_v21  ;;  %v3358_v25 = vld [vmem:[#allocation13 + $0x170] sm:$0xff] }
 0x8c9   :  { %v2998_v57 = vcombine.low %v2990_v43, %v2997_v51  ;;  %v3344_v43 = vld [vmem:[#allocation13 + $0x100] sm:$0xff] }
 0x8ca   :  { %v3348_v51 = vld [vmem:[#allocation13 + $0x120] sm:$0xff] }
 0x8cb   :  { %v3005_v63 = vrot.slane %v2998_v57, %v13929_v21  ;;  %v14246_v57 = vpack.c.bf16 %v3358_v25, %v3354_v1 }
 0x8cd   :  { %v3007_v3 = vadd.f32 %v3005_v63, %v2771_v16  ;;  %v3363_v63 = vld [vmem:[#allocation13 + $0x198] sm:$0xff]  ;;  %v3353_v16 = vld [vmem:[#allocation13 + $0x148] sm:$0xff] }
 0x8cf   :  { %v10397_v6 = vmul.f32 -1.442695, %v3007_v3  ;;  %v3015_v12 = vrot.slane %v3007_v3, 1  ;;  %v3026_v23 = vrot.slane %v3007_v3, 3  ;;  %v3023_v47 = vrot.slane %v3007_v3, 2  ;;  %v3357_v3 = vld [vmem:[#allocation13 + $0x168] sm:$0xff] }
 0x8d1   :  { %12970 = vpow2.f32 %v10397_v6  ;;  %v10398_v15 = vmul.f32 -1.442695, %v3015_v12  ;;  %v10399_v32 = vmul.f32 -1.442695, %v3026_v23  ;;  %v3367_v6 = vld [vmem:[#allocation13 + $0x1b8] sm:$0xff]  ;;  %v3366_v23 = vld [vmem:[#allocation13 + $0x1b0] sm:$0xff] }
 0x8d2   :  { %v14249_v12 = vpack.c.bf16 %v3367_v6, %v3363_v63 }
 0x8d3   :  { %12972 = vpow2.f32 %v10398_v15  ;;  %v3362_v15 = vld [vmem:[#allocation13 + $0x190] sm:$0xff] }
 0x8d4   :  { %12974 = vpow2.f32 %v10399_v32  ;;  %v14252_v32 = vpack.c.bf16 %v3348_v51, %v3344_v43 }
 0x8db   :  { %v12971_v39 = vpop.eup %12970 }
 0x8dc   :  { %v3011_v28 = vadd.f32 1.0, %v12971_v39  ;;  %v3371_v39 = vld [vmem:[#allocation13 + $0x1d8] sm:$0xff] }
 0x8dd   :  { %v12973_v37 = vpop.eup %12972 }
 0x8de   :  { %12976 = vrcp.f32 %v3011_v28  ;;  %v3020_v54 = vadd.f32 1.0, %v12973_v37  ;;  %v12975_v27 = vpop.eup %12974  ;;  %v14255_v28 = vpack.c.bf16 %v3357_v3, %v3353_v16  ;;  %v3352_v37 = vld [vmem:[#allocation13 + $0x140] sm:$0xff] }
 0x8df   :  { %12978 = vtanh.f32 %v3023_v47  ;;  %v3031_v26 = vadd.f32 1.0, %v12975_v27  ;;  %v3375_v47 = vld [vmem:[#allocation13 + $0x1f8] sm:$0xff]  ;;  %v3361_v27 = vld [vmem:[#allocation13 + $0x188] sm:$0xff] }
 0x8e0   :  { %12980 = vrcp.f32 %v3020_v54  ;;  %v3356_v54 = vld [vmem:[#allocation13 + $0x160] sm:$0xff] }
 0x8e1   :  { %12982 = vrcp.f32 %v3031_v26  ;;  %v3370_v26 = vld [vmem:[#allocation13 + $0x1d0] sm:$0xff] }
 0x8e8   :  { %v12977_v17 = vpop.eup %12976 }
 0x8e9   :  { %v12979_v14 = vpop.eup %12978 }
 0x8ea   :  { %v12981_v18 = vpop.eup %12980  ;;  %v3035_v41 = vmul.f32 %v12979_v14, %v12977_v17  ;;  %v14258_v17 = vpack.c.bf16 %v3366_v23, %v3362_v15  ;;  %v3365_v14 = vld [vmem:[#allocation13 + $0x1a8] sm:$0xff] }
 0x8eb   :  { %v3034_v29 = vmul.f32 %v12981_v18, %v14163_v8  ;;  %v12983_v44 = vpop.eup %12982  ;;  %v3349_v8 = vld [vmem:[#allocation13 + $0x128] sm:$0xff]  ;;  %v14261_v18 = vpack.c.bf16 %v3375_v47, %v3371_v39 }
 0x8ec   :  { %v14243_v30 = vpack.c.bf16 %v3349_v8, %v3345_v19  ;;  %v3041_v8 = vld [vmem:[#allocation2 + $0x6] ss:$8 sm:$0xf] }
 0x8ed   :  { %v14203_v36 = vadd.f32 %v3035_v41, %v3034_v29  ;;  %v3374_v29 = vld [vmem:[#allocation13 + $0x1f0] sm:$0xff]  ;;  %v14264_v41 = vpack.c.bf16 %v3356_v54, %v3352_v37 }
 0x8ef   :  { %12984 = vtanh.f32 %v14203_v36 }
 0x8f9   :  { %v12985_v53 = vpop.eup %12984 }
 0x8fa   :  { %v3038_v38 = vmul.f32 %v12985_v53, %v12983_v44  ;;  %v14267_v44 = vpack.c.bf16 %v3365_v14, %v3361_v27  ;;  %v3360_v53 = vld [vmem:[#allocation13 + $0x180] sm:$0xff] }
 0x8fc   :  { %3039 = vst [vmem:[#allocation3 + $0x5] sm:$0x1] %v3038_v38  ;;  %3171 = vmatmul.mubr.f32.vlgmr.msra.gmra.mrb[12].mxu0 %v3038_v38  ;;  %3242 = vmatmul.mubr.f32.vlgmr.msra.gmra.mrb[32].mxu1 %v3038_v38  ;;  %v3364_v38 = vld [vmem:[#allocation13 + $0x1a0] sm:$0xff] }
 0x8fd   :  { %11021 = vmatpush1.bf16.msra.mxu1 %v14085_v46  ;;  %3440 = vmatprep.mubr.f32.mxu0 %v13602_v2  ;;  %v3317_v46 = vld [vmem:[#allocation13 + $0x28] sm:$0xff] }
 0x8fe   :  { %11023 = vmatprep.subr.bf16.mxu1 %v14089_v62  ;;  %3511 = vmatprep.mubr.f32.mxu1 %v13602_v2  ;;  %v14216_v59 = vpack.c.bf16 %v3317_v46, %v3313_v55  ;;  %v3316_v62 = vld [vmem:[#allocation13 + $0x20] sm:$0xff]  ;;  %v14270_v55 = vpack.c.bf16 %v3374_v29, %v3370_v26  ;;  %v3369_v46 = vld [vmem:[#allocation13 + $0x1c8] sm:$0xff] }
 0x8ff   :  { %v14218_v5 = vpack.c.bf16 %v3316_v62, %v3312_v50  ;;  %v3373_v50 = vld [vmem:[#allocation13 + $0x1e8] sm:$0xff]  ;;  %v14274_v62 = vpack.c.bf16 %v3364_v38, %v3360_v53  ;;  %v3589_v38 = vld [vmem:[#allocation13 + $0x38] sm:$0xff] }
 0x900   :  { %10987 = vmatprep.subr.bf16.mxu0 %v14216_v59 }
 0x901   :  { %11025 = vmatpush1.bf16.msra.mxu1 %v14091_v24  ;;  %10989 = vmatpush1.bf16.msra.mxu0 %v14218_v5  ;;  %v3321_v24 = vld [vmem:[#allocation13 + $0x48] sm:$0xff] }
 0x902   :  { %11027 = vmatprep.subr.bf16.mxu1 %v14094_v40  ;;  %v3325_v40 = vld [vmem:[#allocation13 + $0x68] sm:$0xff] }
 0x905   :  { %11029 = vmatpush1.bf16.msra.mxu1 %v14097_v49  ;;  %v14222_v49 = vpack.c.bf16 %v3325_v40, %v3321_v24  ;;  %v14277_v24 = vpack.c.bf16 %v3373_v50, %v3369_v46  ;;  %v3368_v40 = vld [vmem:[#allocation13 + $0x1c0] sm:$0xff]  ;;  %v3584_v50 = vld [vmem:[#allocation13 + $0x10] sm:$0xff] }
 0x906   :  { %11031 = vmatprep.subr.bf16.mxu1 %v14100_v52  ;;  %v3320_v52 = vld [vmem:[#allocation13 + $0x40] sm:$0xff] }
 0x907   :  { %10991 = vmatprep.subr.bf16.mxu0 %v14222_v49 }
 0x909   :  { %11033 = vmatpush1.bf16.msra.mxu1 %v14103_v11  ;;  %v3324_v11 = vld [vmem:[#allocation13 + $0x60] sm:$0xff] }
 0x90a   :  { %11035 = vmatprep.subr.bf16.mxu1 %v14106_v61  ;;  %v14224_v61 = vpack.c.bf16 %v3324_v11, %v3320_v52  ;;  %v3372_v52 = vld [vmem:[#allocation13 + $0x1e0] sm:$0xff] }
 0x90b   :  { %v14281_v11 = vpack.c.bf16 %v3372_v52, %v3368_v40  ;;  %v3588_v40 = vld [vmem:[#allocation13 + $0x30] sm:$0xff] }
 0x90c   :  { %10993 = vmatpush1.bf16.msra.mxu0 %v14224_v61  ;;  %v14313_v52 = vpack.c.bf16 %v3588_v40, %v3584_v50 }
 0x90d   :  { %10995 = vmatprep.subr.bf16.mxu0 %v14227_v35  ;;  %11037 = vmatpush1.bf16.msra.mxu1 %v14235_v9 }
 0x90e   :  { %11039 = vmatprep.subr.bf16.mxu1 %v14240_v4 }
 0x910   :  { %10997 = vmatpush1.bf16.msra.mxu0 %v14230_v58 }
 0x911   :  { %10999 = vmatprep.subr.bf16.mxu0 %v14233_v0  ;;  %11041 = vmatpush1.bf16.msra.mxu1 %v14246_v57 }
 0x912   :  { %11043 = vmatprep.subr.bf16.mxu1 %v14249_v12 }
 0x914   :  { %11001 = vmatpush1.bf16.msra.mxu0 %v14238_v45 }
 0x915   :  { %11003 = vmatprep.subr.bf16.mxu0 %v14243_v30  ;;  %11045 = vmatpush1.bf16.msra.mxu1 %v14258_v17 }
 0x916   :  { %11047 = vmatprep.subr.bf16.mxu1 %v14261_v18 }
 0x918   :  { %11005 = vmatpush1.bf16.msra.mxu0 %v14252_v32 }
 0x919   :  { %11007 = vmatprep.subr.bf16.mxu0 %v14255_v28  ;;  %11049 = vmatpush1.bf16.msra.mxu1 %v14270_v55 }
 0x91c   :  { %11009 = vmatpush1.bf16.msra.mxu0 %v14264_v41 }
 0x91d   :  { %11011 = vmatprep.subr.bf16.mxu0 %v14267_v44 }
 0x920   :  { %11013 = vmatpush1.bf16.msra.mxu0 %v14274_v62 }
 0x921   :  { %11015 = vmatprep.subr.bf16.mxu0 %v14277_v24 }
 0x924   :  { %11017 = vmatpush1.bf16.msra.mxu0 %v14281_v11 }
 0x925   :  { %11051 = vmatprep.subr.bf16.mxu0 %v14216_v59 }
 0x9cf   :  { %v3172_v7 = vpop.f32.mrb[12].mxu0  ;;  %v3243_v31 = vpop.f32.mrb[32].mxu1 }
 0x9d0   :  { %v3174_v33 = vpop.f32.mrb[13].mxu0  ;;  %v3245_v34 = vpop.f32.mrb[33].mxu1 }
 0x9d1   :  { %v3252_v42 = vcombine.low %v3172_v7, %v3174_v33  ;;  %v3253_v48 = vcombine.low %v3243_v31, %v3245_v34  ;;  %v3593_v7 = vld [vmem:[#allocation13 + $0x58] sm:$0xff]  ;;  %v3592_v33 = vld [vmem:[#allocation13 + $0x50] sm:$0xff] }
 0x9d2   :  { %v3597_v31 = vld [vmem:[#allocation13 + $0x78] sm:$0xff] }
 0x9d3   :  { %v3260_v10 = vrot.slane %v3252_v42, %v13929_v21  ;;  %v3267_v60 = vrot.slane %v3253_v48, %v13929_v21  ;;  %v14317_v34 = vpack.c.bf16 %v3597_v31, %v3593_v7  ;;  %v3596_v42 = vld [vmem:[#allocation13 + $0x70] sm:$0xff]  ;;  %v3601_v48 = vld [vmem:[#allocation13 + $0x98] sm:$0xff] }
 0x9d5   :  { %v3268_v22 = vcombine.low %v3260_v10, %v3267_v60  ;;  %v3605_v10 = vld [vmem:[#allocation13 + $0xb8] sm:$0xff]  ;;  %v14319_v60 = vpack.c.bf16 %v3596_v42, %v3592_v33 }
 0x9d7   :  { %v3275_v19 = vrot.slane %v3268_v22, %v13929_v21  ;;  %v14321_v22 = vpack.c.bf16 %v3605_v10, %v3601_v48 }
 0x9d9   :  { %v3277_v20 = vadd.f32 %v3275_v19, %v3041_v8  ;;  %v3600_v19 = vld [vmem:[#allocation13 + $0x90] sm:$0xff] }
 0x9da   :  { %v3604_v8 = vld [vmem:[#allocation13 + $0xb0] sm:$0xff] }
 0x9db   :  { %v10400_v13 = vmul.f32 -1.442695, %v3277_v20  ;;  %v3285_v56 = vrot.slane %v3277_v20, 1  ;;  %v3296_v25 = vrot.slane %v3277_v20, 3  ;;  %v3293_v63 = vrot.slane %v3277_v20, 2  ;;  %v3609_v20 = vld [vmem:[#allocation13 + $0xd8] sm:$0xff] }
 0x9dd   :  { %12986 = vpow2.f32 %v10400_v13  ;;  %v10401_v1 = vmul.f32 -1.442695, %v3285_v56  ;;  %v10402_v43 = vmul.f32 -1.442695, %v3296_v25  ;;  %v3613_v13 = vld [vmem:[#allocation13 + $0xf8] sm:$0xff]  ;;  %v14325_v56 = vpack.c.bf16 %v3604_v8, %v3600_v19  ;;  %v3608_v25 = vld [vmem:[#allocation13 + $0xd0] sm:$0xff] }
 0x9df   :  { %12988 = vpow2.f32 %v10401_v1  ;;  %v14328_v1 = vpack.c.bf16 %v3613_v13, %v3609_v20 }
 0x9e0   :  { %12990 = vpow2.f32 %v10402_v43  ;;  %v3612_v43 = vld [vmem:[#allocation13 + $0xf0] sm:$0xff] }
 0x9e7   :  { %v12987_v51 = vpop.eup %12986 }
 0x9e8   :  { %v3281_v16 = vadd.f32 1.0, %v12987_v51  ;;  %v3617_v51 = vld [vmem:[#allocation13 + $0x118] sm:$0xff] }
 0x9e9   :  { %v12989_v3 = vpop.eup %12988 }
 0x9ea   :  { %12992 = vrcp.f32 %v3281_v16  ;;  %v3290_v6 = vadd.f32 1.0, %v12989_v3  ;;  %v12991_v15 = vpop.eup %12990  ;;  %v14331_v16 = vpack.c.bf16 %v3612_v43, %v3608_v25 }
 0x9eb   :  { %12994 = vtanh.f32 %v3293_v63  ;;  %v3301_v37 = vadd.f32 1.0, %v12991_v15  ;;  %v3621_v63 = vld [vmem:[#allocation13 + $0x138] sm:$0xff] }
 0x9ec   :  { %12996 = vrcp.f32 %v3290_v6  ;;  %v14334_v3 = vpack.c.bf16 %v3621_v63, %v3617_v51 }
 0x9ed   :  { %12998 = vrcp.f32 %v3301_v37 }
 0x9f4   :  { %v12993_v23 = vpop.eup %12992 }
 0x9f5   :  { %v12995_v39 = vpop.eup %12994 }
 0x9f6   :  { %v12997_v47 = vpop.eup %12996  ;;  %v3305_v27 = vmul.f32 %v12995_v39, %v12993_v23 }
 0x9f7   :  { %v3304_v54 = vmul.f32 %v12997_v47, %v14203_v36  ;;  %v12999_v26 = vpop.eup %12998  ;;  %v3585_v36 = vld [vmem:[#allocation13 + $0x18] sm:$0xff] }
 0x9f8   :  { %v14311_v46 = vpack.c.bf16 %v3589_v38, %v3585_v36 }
 0x9f9   :  { %v14290_v14 = vadd.f32 %v3305_v27, %v3304_v54 }
 0x9fa   :  { %11083 = vmatprep.subr.bf16.mxu1 %v14311_v46 }
 0x9fb   :  { %13000 = vtanh.f32 %v14290_v14 }
 0xa05   :  { %v13001_v29 = vpop.eup %13000 }
 0xa06   :  { %v3308_v53 = vmul.f32 %v13001_v29, %v12999_v26 }
 0xa08   :  { %3309 = vst [vmem:[#allocation3 + $0x6] sm:$0x1] %v3308_v53  ;;  %3441 = vmatmul.mubr.f32.vlgmr.msra.gmra.mrb[14].mxu0 %v3308_v53  ;;  %3512 = vmatmul.mubr.f32.vlgmr.msra.gmra.mrb[34].mxu1 %v3308_v53  ;;  %v3311_v53 = vld [vmem:[#allocation2 + $0x7] ss:$8 sm:$0xf] }
 0xa09   :  { %11053 = vmatpush1.bf16.msra.mxu0 %v14218_v5  ;;  %3710 = vmatprep.mubr.f32.mxu0 %v13602_v2 }
 0xa0a   :  { %11055 = vmatprep.subr.bf16.mxu0 %v14222_v49  ;;  %3781 = vmatprep.mubr.f32.mxu1 %v13602_v2 }
 0xa0b   :  { %11085 = vmatpush1.bf16.msra.mxu1 %v14313_v52 }
 0xa0c   :  { %11087 = vmatprep.subr.bf16.mxu1 %v14317_v34 }
 0xa0d   :  { %11057 = vmatpush1.bf16.msra.mxu0 %v14224_v61 }
 0xa0e   :  { %11059 = vmatprep.subr.bf16.mxu0 %v14227_v35 }
 0xa0f   :  { %11089 = vmatpush1.bf16.msra.mxu1 %v14319_v60 }
 0xa10   :  { %11091 = vmatprep.subr.bf16.mxu1 %v14321_v22 }
 0xa11   :  { %11061 = vmatpush1.bf16.msra.mxu0 %v14230_v58 }
 0xa12   :  { %11063 = vmatprep.subr.bf16.mxu0 %v14233_v0 }
 0xa13   :  { %11093 = vmatpush1.bf16.msra.mxu1 %v14325_v56 }
 0xa14   :  { %11095 = vmatprep.subr.bf16.mxu1 %v14328_v1 }
 0xa15   :  { %11065 = vmatpush1.bf16.msra.mxu0 %v14238_v45 }
 0xa16   :  { %11067 = vmatprep.subr.bf16.mxu0 %v14243_v30 }
 0xa17   :  { %11097 = vmatpush1.bf16.msra.mxu1 %v14331_v16 }
 0xa18   :  { %11099 = vmatprep.subr.bf16.mxu1 %v14334_v3 }
 0xa19   :  { %11069 = vmatpush1.bf16.msra.mxu0 %v14252_v32 }
 0xa1a   :  { %11071 = vmatprep.subr.bf16.mxu0 %v14255_v28 }
 0xa1b   :  { %11101 = vmatpush1.bf16.msra.mxu1 %v14235_v9 }
 0xa1c   :  { %11103 = vmatprep.subr.bf16.mxu1 %v14240_v4 }
 0xa1d   :  { %11073 = vmatpush1.bf16.msra.mxu0 %v14264_v41 }
 0xa1e   :  { %11075 = vmatprep.subr.bf16.mxu0 %v14267_v44 }
 0xa1f   :  { %11105 = vmatpush1.bf16.msra.mxu1 %v14246_v57 }
 0xa20   :  { %11107 = vmatprep.subr.bf16.mxu1 %v14249_v12 }
 0xa21   :  { %11077 = vmatpush1.bf16.msra.mxu0 %v14274_v62 }
 0xa22   :  { %11079 = vmatprep.subr.bf16.mxu0 %v14277_v24 }
 0xa23   :  { %11109 = vmatpush1.bf16.msra.mxu1 %v14258_v17 }
 0xa24   :  { %11111 = vmatprep.subr.bf16.mxu1 %v14261_v18 }
 0xa25   :  { %11081 = vmatpush1.bf16.msra.mxu0 %v14281_v11 }
 0xa26   :  { %11115 = vmatprep.subr.bf16.mxu0 %v14216_v59 }
 0xa27   :  { %11113 = vmatpush1.bf16.msra.mxu1 %v14270_v55 }
 0xa28   :  { %11147 = vmatprep.subr.bf16.mxu1 %v14311_v46 }
 0xadb   :  { %v3442_v6 = vpop.f32.mrb[14].mxu0  ;;  %v3513_v15 = vpop.f32.mrb[34].mxu1 }
 0xadc   :  { %v3444_v23 = vpop.f32.mrb[15].mxu0  ;;  %v3515_v39 = vpop.f32.mrb[35].mxu1 }
 0xadd   :  { %v3522_v47 = vcombine.low %v3442_v6, %v3444_v23  ;;  %v3523_v37 = vcombine.low %v3513_v15, %v3515_v39 }
 0xadf   :  { %v3530_v54 = vrot.slane %v3522_v47, %v13929_v21  ;;  %v3537_v27 = vrot.slane %v3523_v37, %v13929_v21 }
 0xae1   :  { %v3538_v26 = vcombine.low %v3530_v54, %v3537_v27 }
 0xae3   :  { %v3545_v29 = vrot.slane %v3538_v26, %v13929_v21 }
 0xae5   :  { %v3547_v36 = vadd.f32 %v3545_v29, %v3311_v53 }
 0xae7   :  { %v10403_v38 = vmul.f32 -1.442695, %v3547_v36  ;;  %v3555_v50 = vrot.slane %v3547_v36, 1  ;;  %v3566_v7 = vrot.slane %v3547_v36, 3  ;;  %v3563_v42 = vrot.slane %v3547_v36, 2 }
 0xae9   :  { %13002 = vpow2.f32 %v10403_v38  ;;  %v10404_v40 = vmul.f32 -1.442695, %v3555_v50  ;;  %v10405_v31 = vmul.f32 -1.442695, %v3566_v7 }
 0xaea   :  { %v3581_v50 = vld [vmem:[#allocation2 + $0x20] ss:$8 sm:$0xf] }
 0xaeb   :  { %13004 = vpow2.f32 %v10404_v40 }
 0xaec   :  { %13006 = vpow2.f32 %v10405_v31 }
 0xaf3   :  { %v13003_v33 = vpop.eup %13002 }
 0xaf4   :  { %v3551_v48 = vadd.f32 1.0, %v13003_v33 }
 0xaf5   :  { %v13005_v10 = vpop.eup %13004 }
 0xaf6   :  { %13008 = vrcp.f32 %v3551_v48  ;;  %v3560_v19 = vadd.f32 1.0, %v13005_v10  ;;  %v13007_v8 = vpop.eup %13006 }
 0xaf7   :  { %13010 = vtanh.f32 %v3563_v42  ;;  %v3571_v43 = vadd.f32 1.0, %v13007_v8 }
 0xaf8   :  { %13012 = vrcp.f32 %v3560_v19 }
 0xaf9   :  { %13014 = vrcp.f32 %v3571_v43 }
 0xb00   :  { %v13009_v20 = vpop.eup %13008 }
 0xb01   :  { %v13011_v13 = vpop.eup %13010 }
 0xb02   :  { %v13013_v25 = vpop.eup %13012  ;;  %v3575_v63 = vmul.f32 %v13011_v13, %v13009_v20 }
 0xb03   :  { %v3574_v51 = vmul.f32 %v13013_v25, %v14290_v14  ;;  %v13015_v15 = vpop.eup %13014 }
 0xb05   :  { %v14350_v6 = vadd.f32 %v3575_v63, %v3574_v51 }
 0xb07   :  { %13016 = vtanh.f32 %v14350_v6 }
 0xb11   :  { %v13017_v23 = vpop.eup %13016 }
 0xb12   :  { %v3578_v39 = vmul.f32 %v13017_v23, %v13015_v15 }
 0xb14   :  { %3579 = vst [vmem:[#allocation3 + $0x7] sm:$0x1] %v3578_v39  ;;  %3711 = vmatmul.mubr.f32.vlgmr.msra.gmra.mrb[16].mxu0 %v3578_v39  ;;  %3782 = vmatmul.mubr.f32.vlgmr.msra.gmra.mrb[36].mxu1 %v3578_v39 }
 0xb15   :  { %11117 = vmatpush1.bf16.msra.mxu0 %v14218_v5  ;;  %11149 = vmatpush1.bf16.msra.mxu1 %v14313_v52 }
 0xb16   :  { %11119 = vmatprep.subr.bf16.mxu0 %v14222_v49  ;;  %11151 = vmatprep.subr.bf16.mxu1 %v14317_v34 }
 0xb17   :  { %3980 = vmatprep.mubr.f32.mxu0 %v13602_v2  ;;  %4051 = vmatprep.mubr.f32.mxu1 %v13602_v2 }
 0xb19   :  { %11121 = vmatpush1.bf16.msra.mxu0 %v14224_v61  ;;  %11153 = vmatpush1.bf16.msra.mxu1 %v14319_v60 }
 0xb1a   :  { %11123 = vmatprep.subr.bf16.mxu0 %v14227_v35  ;;  %11155 = vmatprep.subr.bf16.mxu1 %v14321_v22 }
 0xb1d   :  { %11125 = vmatpush1.bf16.msra.mxu0 %v14230_v58  ;;  %11157 = vmatpush1.bf16.msra.mxu1 %v14325_v56 }
 0xb1e   :  { %11127 = vmatprep.subr.bf16.mxu0 %v14233_v0  ;;  %11159 = vmatprep.subr.bf16.mxu1 %v14328_v1 }
 0xb21   :  { %11129 = vmatpush1.bf16.msra.mxu0 %v14238_v45  ;;  %11161 = vmatpush1.bf16.msra.mxu1 %v14331_v16 }
 0xb22   :  { %11131 = vmatprep.subr.bf16.mxu0 %v14243_v30  ;;  %11163 = vmatprep.subr.bf16.mxu1 %v14334_v3 }
 0xb25   :  { %11133 = vmatpush1.bf16.msra.mxu0 %v14252_v32  ;;  %11165 = vmatpush1.bf16.msra.mxu1 %v14235_v9 }
 0xb26   :  { %11135 = vmatprep.subr.bf16.mxu0 %v14255_v28  ;;  %11167 = vmatprep.subr.bf16.mxu1 %v14240_v4 }
 0xb29   :  { %11137 = vmatpush1.bf16.msra.mxu0 %v14264_v41  ;;  %11169 = vmatpush1.bf16.msra.mxu1 %v14246_v57 }
 0xb2a   :  { %11139 = vmatprep.subr.bf16.mxu0 %v14267_v44  ;;  %11171 = vmatprep.subr.bf16.mxu1 %v14249_v12 }
 0xb2d   :  { %11141 = vmatpush1.bf16.msra.mxu0 %v14274_v62  ;;  %11173 = vmatpush1.bf16.msra.mxu1 %v14258_v17 }
 0xb2e   :  { %11143 = vmatprep.subr.bf16.mxu0 %v14277_v24  ;;  %11175 = vmatprep.subr.bf16.mxu1 %v14261_v18 }
 0xb31   :  { %11145 = vmatpush1.bf16.msra.mxu0 %v14281_v11  ;;  %11177 = vmatpush1.bf16.msra.mxu1 %v14270_v55 }
 0xb32   :  { %11179 = vmatprep.subr.bf16.mxu0 %v14216_v59  ;;  %11211 = vmatprep.subr.bf16.mxu1 %v14311_v46 }
 0xbe7   :  { %v3712_v14 = vpop.f32.mrb[16].mxu0  ;;  %v3783_v47 = vpop.f32.mrb[36].mxu1 }
 0xbe8   :  { %v3714_v37 = vpop.f32.mrb[17].mxu0  ;;  %v3785_v54 = vpop.f32.mrb[37].mxu1 }
 0xbe9   :  { %v3792_v27 = vcombine.low %v3712_v14, %v3714_v37  ;;  %v3793_v26 = vcombine.low %v3783_v47, %v3785_v54 }
 0xbeb   :  { %v3800_v29 = vrot.slane %v3792_v27, %v13929_v21  ;;  %v3807_v53 = vrot.slane %v3793_v26, %v13929_v21 }
 0xbed   :  { %v3808_v36 = vcombine.low %v3800_v29, %v3807_v53 }
 0xbef   :  { %v3815_v38 = vrot.slane %v3808_v36, %v13929_v21 }
 0xbf1   :  { %v3817_v40 = vadd.f32 %v3815_v38, %v3581_v50 }
 0xbf3   :  { %v10406_v7 = vmul.f32 -1.442695, %v3817_v40  ;;  %v3825_v31 = vrot.slane %v3817_v40, 1  ;;  %v3836_v33 = vrot.slane %v3817_v40, 3  ;;  %v3833_v10 = vrot.slane %v3817_v40, 2 }
 0xbf5   :  { %13018 = vpow2.f32 %v10406_v7  ;;  %v10407_v59 = vmul.f32 -1.442695, %v3825_v31  ;;  %v10408_v42 = vmul.f32 -1.442695, %v3836_v33  ;;  %v4393_v7 = vld [vmem:[#allocation13 + $0x8] sm:$0xff] }
 0xbf7   :  { %13020 = vpow2.f32 %v10407_v59  ;;  %v4392_v59 = vld [vmem:[#allocation13] sm:$0xff] }
 0xbf8   :  { %13022 = vpow2.f32 %v10408_v42  ;;  %v4409_v42 = vld [vmem:[#allocation13 + $0x88] sm:$0xff] }
 0xbff   :  { %v13019_v48 = vpop.eup %13018 }
 0xc00   :  { %v3821_v19 = vadd.f32 1.0, %v13019_v48 }
 0xc01   :  { %v13021_v8 = vpop.eup %13020 }
 0xc02   :  { %13024 = vrcp.f32 %v3821_v19  ;;  %v3830_v20 = vadd.f32 1.0, %v13021_v8  ;;  %v13023_v13 = vpop.eup %13022  ;;  %v4408_v19 = vld [vmem:[#allocation13 + $0x80] sm:$0xff] }
 0xc03   :  { %13026 = vtanh.f32 %v3833_v10  ;;  %v3841_v63 = vadd.f32 1.0, %v13023_v13  ;;  %v4412_v8 = vld [vmem:[#allocation13 + $0xa0] sm:$0xff]  ;;  %v4421_v13 = vld [vmem:[#allocation13 + $0xe8] sm:$0xff] }
 0xc04   :  { %13028 = vrcp.f32 %v3830_v20  ;;  %v4417_v20 = vld [vmem:[#allocation13 + $0xc8] sm:$0xff] }
 0xc05   :  { %13030 = vrcp.f32 %v3841_v63  ;;  %v4420_v63 = vld [vmem:[#allocation13 + $0xe0] sm:$0xff] }
 0xc0c   :  { %v13025_v25 = vpop.eup %13024 }
 0xc0d   :  { %v13027_v43 = vpop.eup %13026 }
 0xc0e   :  { %v13029_v51 = vpop.eup %13028  ;;  %v3845_v23 = vmul.f32 %v13027_v43, %v13025_v25  ;;  %v14458_v25 = vpack.c.bf16 %v4412_v8, %v4408_v19  ;;  %v4416_v43 = vld [vmem:[#allocation13 + $0xc0] sm:$0xff] }
 0xc0f   :  { %v3844_v15 = vmul.f32 %v13029_v51, %v14350_v6  ;;  %v13031_v14 = vpop.eup %13030  ;;  %v14461_v51 = vpack.c.bf16 %v4421_v13, %v4417_v20 }
 0xc11   :  { %v14391_v39 = vadd.f32 %v3845_v23, %v3844_v15  ;;  %v4426_v15 = vld [vmem:[#allocation13 + $0x110] sm:$0xff] }
 0xc12   :  { %v4430_v23 = vld [vmem:[#allocation13 + $0x130] sm:$0xff] }
 0xc13   :  { %13032 = vtanh.f32 %v14391_v39 }
 0xc1d   :  { %v13033_v47 = vpop.eup %13032 }
 0xc1e   :  { %v3848_v37 = vmul.f32 %v13033_v47, %v13031_v14  ;;  %v4429_v14 = vld [vmem:[#allocation13 + $0x128] sm:$0xff]  ;;  %v14463_v47 = vpack.c.bf16 %v4430_v23, %v4426_v15 }
 0xc20   :  { %3849 = vst [vmem:[#allocation3 + $0x8] sm:$0x1] %v3848_v37  ;;  %3981 = vmatmul.mubr.f32.vlgmr.msra.gmra.mrb[18].mxu0 %v3848_v37  ;;  %4052 = vmatmul.mubr.f32.vlgmr.msra.gmra.mrb[38].mxu1 %v3848_v37  ;;  %v4435_v37 = vld [vmem:[#allocation13 + $0x158] sm:$0xff] }
 0xc21   :  { %11181 = vmatpush1.bf16.msra.mxu0 %v14218_v5  ;;  %11213 = vmatpush1.bf16.msra.mxu1 %v14313_v52 }
 0xc22   :  { %11183 = vmatprep.subr.bf16.mxu0 %v14222_v49  ;;  %11215 = vmatprep.subr.bf16.mxu1 %v14317_v34 }
 0xc23   :  { %4250 = vmatprep.mubr.f32.mxu0 %v13602_v2  ;;  %4321 = vmatprep.mubr.f32.mxu1 %v13602_v2 }
 0xc25   :  { %11185 = vmatpush1.bf16.msra.mxu0 %v14224_v61  ;;  %11217 = vmatpush1.bf16.msra.mxu1 %v14319_v60 }
 0xc26   :  { %11187 = vmatprep.subr.bf16.mxu0 %v14227_v35  ;;  %11219 = vmatprep.subr.bf16.mxu1 %v14321_v22 }
 0xc29   :  { %11189 = vmatpush1.bf16.msra.mxu0 %v14230_v58  ;;  %11221 = vmatpush1.bf16.msra.mxu1 %v14325_v56 }
 0xc2a   :  { %11191 = vmatprep.subr.bf16.mxu0 %v14233_v0  ;;  %11223 = vmatprep.subr.bf16.mxu1 %v14328_v1 }
 0xc2d   :  { %11193 = vmatpush1.bf16.msra.mxu0 %v14238_v45  ;;  %11225 = vmatpush1.bf16.msra.mxu1 %v14331_v16 }
 0xc2e   :  { %11195 = vmatprep.subr.bf16.mxu0 %v14243_v30  ;;  %11227 = vmatprep.subr.bf16.mxu1 %v14334_v3 }
 0xc31   :  { %11197 = vmatpush1.bf16.msra.mxu0 %v14252_v32  ;;  %11229 = vmatpush1.bf16.msra.mxu1 %v14235_v9 }
 0xc32   :  { %11199 = vmatprep.subr.bf16.mxu0 %v14255_v28  ;;  %11231 = vmatprep.subr.bf16.mxu1 %v14240_v4 }
 0xc35   :  { %11201 = vmatpush1.bf16.msra.mxu0 %v14264_v41  ;;  %11233 = vmatpush1.bf16.msra.mxu1 %v14246_v57  ;;  %v3851_v57 = vld [vmem:[#allocation2 + $0x21] ss:$8 sm:$0xf] }
 0xc36   :  { %11203 = vmatprep.subr.bf16.mxu0 %v14267_v44  ;;  %11235 = vmatprep.subr.bf16.mxu1 %v14249_v12 }
 0xc39   :  { %11205 = vmatpush1.bf16.msra.mxu0 %v14274_v62  ;;  %11237 = vmatpush1.bf16.msra.mxu1 %v14258_v17 }
 0xc3a   :  { %11207 = vmatprep.subr.bf16.mxu0 %v14277_v24  ;;  %11239 = vmatprep.subr.bf16.mxu1 %v14261_v18 }
 0xc3d   :  { %11209 = vmatpush1.bf16.msra.mxu0 %v14281_v11  ;;  %11241 = vmatpush1.bf16.msra.mxu1 %v14270_v55 }
 0xc3e   :  { %11275 = vmatprep.subr.bf16.mxu1 %v14311_v46 }
 0xcf3   :  { %v3982_v5 = vpop.f32.mrb[18].mxu0  ;;  %v4053_v49 = vpop.f32.mrb[38].mxu1 }
 0xcf4   :  { %v3984_v61 = vpop.f32.mrb[19].mxu0  ;;  %v4055_v35 = vpop.f32.mrb[39].mxu1 }
 0xcf5   :  { %v4062_v58 = vcombine.low %v3982_v5, %v3984_v61  ;;  %v4063_v0 = vcombine.low %v4053_v49, %v4055_v35  ;;  %v4439_v5 = vld [vmem:[#allocation13 + $0x178] sm:$0xff]  ;;  %v14466_v49 = vpack.c.bf16 %v4420_v63, %v4416_v43  ;;  %v4424_v61 = vld [vmem:[#allocation13 + $0x100] sm:$0xff] }
 0xcf6   :  { %v14469_v35 = vpack.c.bf16 %v4439_v5, %v4435_v37 }
 0xcf7   :  { %v4070_v9 = vrot.slane %v4062_v58, %v13929_v21  ;;  %v4077_v45 = vrot.slane %v4063_v0, %v13929_v21  ;;  %v4434_v58 = vld [vmem:[#allocation13 + $0x150] sm:$0xff] }
 0xcf8   :  { %v4438_v0 = vld [vmem:[#allocation13 + $0x170] sm:$0xff] }
 0xcf9   :  { %v4078_v4 = vcombine.low %v4070_v9, %v4077_v45  ;;  %v4428_v45 = vld [vmem:[#allocation13 + $0x120] sm:$0xff] }
 0xcfb   :  { %v4085_v30 = vrot.slane %v4078_v4, %v13929_v21  ;;  %v14474_v4 = vpack.c.bf16 %v4438_v0, %v4434_v58 }
 0xcfd   :  { %v4087_v12 = vadd.f32 %v4085_v30, %v3851_v57  ;;  %v4443_v30 = vld [vmem:[#allocation13 + $0x198] sm:$0xff] }
 0xcfe   :  { %v4447_v57 = vld [vmem:[#allocation13 + $0x1b8] sm:$0xff] }
 0xcff   :  { %v10409_v32 = vmul.f32 -1.442695, %v4087_v12  ;;  %v4095_v28 = vrot.slane %v4087_v12, 1  ;;  %v4106_v18 = vrot.slane %v4087_v12, 3  ;;  %v4103_v55 = vrot.slane %v4087_v12, 2  ;;  %v4433_v12 = vld [vmem:[#allocation13 + $0x148] sm:$0xff] }
 0xd01   :  { %13034 = vpow2.f32 %v10409_v32  ;;  %v10410_v17 = vmul.f32 -1.442695, %v4095_v28  ;;  %v10411_v41 = vmul.f32 -1.442695, %v4106_v18  ;;  %v4437_v32 = vld [vmem:[#allocation13 + $0x168] sm:$0xff]  ;;  %v14477_v28 = vpack.c.bf16 %v4447_v57, %v4443_v30  ;;  %v4446_v18 = vld [vmem:[#allocation13 + $0x1b0] sm:$0xff] }
 0xd03   :  { %13036 = vpow2.f32 %v10410_v17  ;;  %v4442_v17 = vld [vmem:[#allocation13 + $0x190] sm:$0xff] }
 0xd04   :  { %13038 = vpow2.f32 %v10411_v41  ;;  %v14480_v41 = vpack.c.bf16 %v4428_v45, %v4424_v61 }
 0xd0b   :  { %v13035_v44 = vpop.eup %13034 }
 0xd0c   :  { %v4091_v62 = vadd.f32 1.0, %v13035_v44  ;;  %v4432_v44 = vld [vmem:[#allocation13 + $0x140] sm:$0xff] }
 0xd0d   :  { %v13037_v24 = vpop.eup %13036 }
 0xd0e   :  { %13040 = vrcp.f32 %v4091_v62  ;;  %v4100_v11 = vadd.f32 1.0, %v13037_v24  ;;  %v13039_v46 = vpop.eup %13038  ;;  %v4451_v62 = vld [vmem:[#allocation13 + $0x1d8] sm:$0xff] }
 0xd0f   :  { %13042 = vtanh.f32 %v4103_v55  ;;  %v4111_v26 = vadd.f32 1.0, %v13039_v46  ;;  %v14483_v55 = vpack.c.bf16 %v4446_v18, %v4442_v17  ;;  %v4455_v24 = vld [vmem:[#allocation13 + $0x1f8] sm:$0xff]  ;;  %v4436_v46 = vld [vmem:[#allocation13 + $0x160] sm:$0xff] }
 0xd10   :  { %13044 = vrcp.f32 %v4100_v11  ;;  %v14486_v11 = vpack.c.bf16 %v4437_v32, %v4433_v12 }
 0xd11   :  { %13046 = vrcp.f32 %v4111_v26  ;;  %v4441_v26 = vld [vmem:[#allocation13 + $0x188] sm:$0xff] }
 0xd18   :  { %v13041_v6 = vpop.eup %13040 }
 0xd19   :  { %v13043_v54 = vpop.eup %13042 }
 0xd1a   :  { %v13045_v27 = vpop.eup %13044  ;;  %v4115_v53 = vmul.f32 %v13043_v54, %v13041_v6  ;;  %v14489_v6 = vpack.c.bf16 %v4455_v24, %v4451_v62  ;;  %v4450_v54 = vld [vmem:[#allocation13 + $0x1d0] sm:$0xff] }
 0xd1b   :  { %v4114_v29 = vmul.f32 %v13045_v27, %v14391_v39  ;;  %v13047_v38 = vpop.eup %13046  ;;  %v4425_v39 = vld [vmem:[#allocation13 + $0x108] sm:$0xff]  ;;  %v4454_v27 = vld [vmem:[#allocation13 + $0x1f0] sm:$0xff] }
 0xd1c   :  { %v14472_v9 = vpack.c.bf16 %v4429_v14, %v4425_v39  ;;  %v4121_v39 = vld [vmem:[#allocation2 + $0x22] ss:$8 sm:$0xf] }
 0xd1d   :  { %v14431_v36 = vadd.f32 %v4115_v53, %v4114_v29  ;;  %v4445_v29 = vld [vmem:[#allocation13 + $0x1a8] sm:$0xff]  ;;  %v14492_v53 = vpack.c.bf16 %v4436_v46, %v4432_v44 }
 0xd1f   :  { %13048 = vtanh.f32 %v14431_v36 }
 0xd29   :  { %v13049_v50 = vpop.eup %13048 }
 0xd2a   :  { %v4118_v40 = vmul.f32 %v13049_v50, %v13047_v38  ;;  %v14495_v38 = vpack.c.bf16 %v4454_v27, %v4450_v54  ;;  %v14498_v50 = vpack.c.bf16 %v4445_v29, %v4441_v26 }
 0xd2c   :  { %4119 = vst [vmem:[#allocation3 + $0x9] sm:$0x1] %v4118_v40  ;;  %4251 = vmatmul.mubr.f32.vlgmr.msra.gmra.mrb[20].mxu0 %v4118_v40  ;;  %4322 = vmatmul.mubr.f32.vlgmr.msra.gmra.mrb[40].mxu1 %v4118_v40  ;;  %v4440_v40 = vld [vmem:[#allocation13 + $0x180] sm:$0xff] }
 0xd2d   :  { %11277 = vmatpush1.bf16.msra.mxu1 %v14313_v52  ;;  %4520 = vmatprep.mubr.f32.mxu0 %v13602_v2  ;;  %v4397_v52 = vld [vmem:[#allocation13 + $0x28] sm:$0xff] }
 0xd2e   :  { %11279 = vmatprep.subr.bf16.mxu1 %v14317_v34  ;;  %4591 = vmatprep.mubr.f32.mxu1 %v13602_v2  ;;  %v14444_v31 = vpack.c.bf16 %v4397_v52, %v4393_v7  ;;  %v4396_v34 = vld [vmem:[#allocation13 + $0x20] sm:$0xff]  ;;  %v4449_v52 = vld [vmem:[#allocation13 + $0x1c8] sm:$0xff] }
 0xd2f   :  { %v14446_v33 = vpack.c.bf16 %v4396_v34, %v4392_v59  ;;  %v4444_v7 = vld [vmem:[#allocation13 + $0x1a0] sm:$0xff]  ;;  %v4453_v59 = vld [vmem:[#allocation13 + $0x1e8] sm:$0xff] }
 0xd30   :  { %11243 = vmatprep.subr.bf16.mxu0 %v14444_v31  ;;  %v14502_v34 = vpack.c.bf16 %v4444_v7, %v4440_v40  ;;  %v4669_v7 = vld [vmem:[#allocation13 + $0x38] sm:$0xff] }
 0xd31   :  { %11281 = vmatpush1.bf16.msra.mxu1 %v14319_v60  ;;  %11245 = vmatpush1.bf16.msra.mxu0 %v14446_v33  ;;  %v4401_v60 = vld [vmem:[#allocation13 + $0x48] sm:$0xff] }
 0xd32   :  { %11283 = vmatprep.subr.bf16.mxu1 %v14321_v22  ;;  %v4405_v22 = vld [vmem:[#allocation13 + $0x68] sm:$0xff] }
 0xd35   :  { %11285 = vmatpush1.bf16.msra.mxu1 %v14325_v56  ;;  %v4400_v56 = vld [vmem:[#allocation13 + $0x40] sm:$0xff] }
 0xd36   :  { %11287 = vmatprep.subr.bf16.mxu1 %v14328_v1  ;;  %v14450_v1 = vpack.c.bf16 %v4405_v22, %v4401_v60  ;;  %v14506_v60 = vpack.c.bf16 %v4453_v59, %v4449_v52  ;;  %v4448_v22 = vld [vmem:[#allocation13 + $0x1c0] sm:$0xff]  ;;  %v4664_v59 = vld [vmem:[#allocation13 + $0x10] sm:$0xff] }
 0xd38   :  { %11247 = vmatprep.subr.bf16.mxu0 %v14450_v1 }
 0xd39   :  { %11289 = vmatpush1.bf16.msra.mxu1 %v14331_v16  ;;  %v4404_v16 = vld [vmem:[#allocation13 + $0x60] sm:$0xff] }
 0xd3a   :  { %11291 = vmatprep.subr.bf16.mxu1 %v14334_v3  ;;  %v4413_v3 = vld [vmem:[#allocation13 + $0xa8] sm:$0xff]  ;;  %v14452_v48 = vpack.c.bf16 %v4404_v16, %v4400_v56  ;;  %v4452_v56 = vld [vmem:[#allocation13 + $0x1e0] sm:$0xff] }
 0xd3b   :  { %v14454_v10 = vpack.c.bf16 %v4413_v3, %v4409_v42  ;;  %v14509_v16 = vpack.c.bf16 %v4452_v56, %v4448_v22  ;;  %v4668_v22 = vld [vmem:[#allocation13 + $0x30] sm:$0xff] }
 0xd3c   :  { %11249 = vmatpush1.bf16.msra.mxu0 %v14452_v48  ;;  %v14541_v56 = vpack.c.bf16 %v4668_v22, %v4664_v59 }
 0xd3d   :  { %11251 = vmatprep.subr.bf16.mxu0 %v14454_v10  ;;  %11293 = vmatpush1.bf16.msra.mxu1 %v14463_v47 }
 0xd3e   :  { %11295 = vmatprep.subr.bf16.mxu1 %v14469_v35 }
 0xd40   :  { %11253 = vmatpush1.bf16.msra.mxu0 %v14458_v25 }
 0xd41   :  { %11255 = vmatprep.subr.bf16.mxu0 %v14461_v51  ;;  %11297 = vmatpush1.bf16.msra.mxu1 %v14474_v4 }
 0xd42   :  { %11299 = vmatprep.subr.bf16.mxu1 %v14477_v28 }
 0xd44   :  { %11257 = vmatpush1.bf16.msra.mxu0 %v14466_v49 }
 0xd45   :  { %11259 = vmatprep.subr.bf16.mxu0 %v14472_v9  ;;  %11301 = vmatpush1.bf16.msra.mxu1 %v14483_v55 }
 0xd46   :  { %11303 = vmatprep.subr.bf16.mxu1 %v14489_v6 }
 0xd48   :  { %11261 = vmatpush1.bf16.msra.mxu0 %v14480_v41 }
 0xd49   :  { %11263 = vmatprep.subr.bf16.mxu0 %v14486_v11  ;;  %11305 = vmatpush1.bf16.msra.mxu1 %v14495_v38 }
 0xd4c   :  { %11265 = vmatpush1.bf16.msra.mxu0 %v14492_v53 }
 0xd4d   :  { %11267 = vmatprep.subr.bf16.mxu0 %v14498_v50 }
 0xd50   :  { %11269 = vmatpush1.bf16.msra.mxu0 %v14502_v34 }
 0xd51   :  { %11271 = vmatprep.subr.bf16.mxu0 %v14506_v60 }
 0xd54   :  { %11273 = vmatpush1.bf16.msra.mxu0 %v14509_v16 }
 0xd55   :  { %11307 = vmatprep.subr.bf16.mxu0 %v14444_v31 }
 0xdff   :  { %v4252_v42 = vpop.f32.mrb[20].mxu0  ;;  %v4323_v3 = vpop.f32.mrb[40].mxu1 }
 0xe00   :  { %v4254_v19 = vpop.f32.mrb[21].mxu0  ;;  %v4325_v8 = vpop.f32.mrb[41].mxu1 }
 0xe01   :  { %v4332_v20 = vcombine.low %v4252_v42, %v4254_v19  ;;  %v4333_v13 = vcombine.low %v4323_v3, %v4325_v8  ;;  %v4673_v42 = vld [vmem:[#allocation13 + $0x58] sm:$0xff]  ;;  %v4672_v19 = vld [vmem:[#allocation13 + $0x50] sm:$0xff] }
 0xe02   :  { %v4677_v3 = vld [vmem:[#allocation13 + $0x78] sm:$0xff] }
 0xe03   :  { %v4340_v43 = vrot.slane %v4332_v20, %v13929_v21  ;;  %v4347_v63 = vrot.slane %v4333_v13, %v13929_v21  ;;  %v14545_v8 = vpack.c.bf16 %v4677_v3, %v4673_v42  ;;  %v4676_v20 = vld [vmem:[#allocation13 + $0x70] sm:$0xff]  ;;  %v4681_v13 = vld [vmem:[#allocation13 + $0x98] sm:$0xff] }
 0xe05   :  { %v4348_v15 = vcombine.low %v4340_v43, %v4347_v63  ;;  %v4685_v43 = vld [vmem:[#allocation13 + $0xb8] sm:$0xff]  ;;  %v14547_v63 = vpack.c.bf16 %v4676_v20, %v4672_v19 }
 0xe07   :  { %v4355_v23 = vrot.slane %v4348_v15, %v13929_v21  ;;  %v14549_v15 = vpack.c.bf16 %v4685_v43, %v4681_v13 }
 0xe09   :  { %v4357_v14 = vadd.f32 %v4355_v23, %v4121_v39  ;;  %v4680_v23 = vld [vmem:[#allocation13 + $0x90] sm:$0xff] }
 0xe0a   :  { %v4684_v39 = vld [vmem:[#allocation13 + $0xb0] sm:$0xff] }
 0xe0b   :  { %v10412_v37 = vmul.f32 -1.442695, %v4357_v14  ;;  %v4365_v5 = vrot.slane %v4357_v14, 1  ;;  %v4376_v58 = vrot.slane %v4357_v14, 3  ;;  %v4373_v30 = vrot.slane %v4357_v14, 2  ;;  %v4689_v14 = vld [vmem:[#allocation13 + $0xd8] sm:$0xff] }
 0xe0d   :  { %13050 = vpow2.f32 %v10412_v37  ;;  %v10413_v61 = vmul.f32 -1.442695, %v4365_v5  ;;  %v10414_v0 = vmul.f32 -1.442695, %v4376_v58  ;;  %v4693_v37 = vld [vmem:[#allocation13 + $0xf8] sm:$0xff]  ;;  %v14553_v5 = vpack.c.bf16 %v4684_v39, %v4680_v23  ;;  %v4688_v58 = vld [vmem:[#allocation13 + $0xd0] sm:$0xff] }
 0xe0f   :  { %13052 = vpow2.f32 %v10413_v61  ;;  %v14556_v61 = vpack.c.bf16 %v4693_v37, %v4689_v14 }
 0xe10   :  { %13054 = vpow2.f32 %v10414_v0  ;;  %v4692_v0 = vld [vmem:[#allocation13 + $0xf0] sm:$0xff] }
 0xe17   :  { %v13051_v45 = vpop.eup %13050 }
 0xe18   :  { %v4361_v57 = vadd.f32 1.0, %v13051_v45  ;;  %v4697_v45 = vld [vmem:[#allocation13 + $0x118] sm:$0xff] }
 0xe19   :  { %v13053_v12 = vpop.eup %13052 }
 0xe1a   :  { %13056 = vrcp.f32 %v4361_v57  ;;  %v4370_v32 = vadd.f32 1.0, %v13053_v12  ;;  %v13055_v17 = vpop.eup %13054  ;;  %v14559_v57 = vpack.c.bf16 %v4692_v0, %v4688_v58 }
 0xe1b   :  { %13058 = vtanh.f32 %v4373_v30  ;;  %v4381_v24 = vadd.f32 1.0, %v13055_v17  ;;  %v4701_v30 = vld [vmem:[#allocation13 + $0x138] sm:$0xff] }
 0xe1c   :  { %13060 = vrcp.f32 %v4370_v32  ;;  %v14562_v12 = vpack.c.bf16 %v4701_v30, %v4697_v45 }
 0xe1d   :  { %13062 = vrcp.f32 %v4381_v24 }
 0xe24   :  { %v13057_v18 = vpop.eup %13056 }
 0xe25   :  { %v13059_v44 = vpop.eup %13058 }
 0xe26   :  { %v13061_v62 = vpop.eup %13060  ;;  %v4385_v54 = vmul.f32 %v13059_v44, %v13057_v18 }
 0xe27   :  { %v4384_v46 = vmul.f32 %v13061_v62, %v14431_v36  ;;  %v13063_v26 = vpop.eup %13062  ;;  %v4665_v36 = vld [vmem:[#allocation13 + $0x18] sm:$0xff] }
 0xe28   :  { %v14539_v52 = vpack.c.bf16 %v4669_v7, %v4665_v36 }
 0xe29   :  { %v14518_v27 = vadd.f32 %v4385_v54, %v4384_v46 }
 0xe2a   :  { %11339 = vmatprep.subr.bf16.mxu1 %v14539_v52 }
 0xe2b   :  { %13064 = vtanh.f32 %v14518_v27 }
 0xe35   :  { %v13065_v29 = vpop.eup %13064 }
 0xe36   :  { %v4388_v40 = vmul.f32 %v13065_v29, %v13063_v26 }
 0xe38   :  { %4389 = vst [vmem:[#allocation3 + $0xa] sm:$0x1] %v4388_v40  ;;  %4521 = vmatmul.mubr.f32.vlgmr.msra.gmra.mrb[22].mxu0 %v4388_v40  ;;  %4592 = vmatmul.mubr.f32.vlgmr.msra.gmra.mrb[42].mxu1 %v4388_v40  ;;  %v4391_v40 = vld [vmem:[#allocation2 + $0x23] ss:$8 sm:$0xf] }
 0xe39   :  { %11309 = vmatpush1.bf16.msra.mxu0 %v14446_v33  ;;  %4790 = vmatprep.mubr.f32.mxu0 %v13602_v2 }
 0xe3a   :  { %11311 = vmatprep.subr.bf16.mxu0 %v14450_v1  ;;  %4861 = vmatprep.mubr.f32.mxu1 %v13602_v2 }
 0xe3b   :  { %11341 = vmatpush1.bf16.msra.mxu1 %v14541_v56 }
 0xe3c   :  { %11343 = vmatprep.subr.bf16.mxu1 %v14545_v8 }
 0xe3d   :  { %11313 = vmatpush1.bf16.msra.mxu0 %v14452_v48 }
 0xe3e   :  { %11315 = vmatprep.subr.bf16.mxu0 %v14454_v10 }
 0xe3f   :  { %11345 = vmatpush1.bf16.msra.mxu1 %v14547_v63 }
 0xe40   :  { %11347 = vmatprep.subr.bf16.mxu1 %v14549_v15 }
 0xe41   :  { %11317 = vmatpush1.bf16.msra.mxu0 %v14458_v25 }
 0xe42   :  { %11319 = vmatprep.subr.bf16.mxu0 %v14461_v51 }
 0xe43   :  { %11349 = vmatpush1.bf16.msra.mxu1 %v14553_v5 }
 0xe44   :  { %11351 = vmatprep.subr.bf16.mxu1 %v14556_v61 }
 0xe45   :  { %11321 = vmatpush1.bf16.msra.mxu0 %v14466_v49 }
 0xe46   :  { %11323 = vmatprep.subr.bf16.mxu0 %v14472_v9 }
 0xe47   :  { %11353 = vmatpush1.bf16.msra.mxu1 %v14559_v57 }
 0xe48   :  { %11355 = vmatprep.subr.bf16.mxu1 %v14562_v12 }
 0xe49   :  { %11325 = vmatpush1.bf16.msra.mxu0 %v14480_v41 }
 0xe4a   :  { %11327 = vmatprep.subr.bf16.mxu0 %v14486_v11 }
 0xe4b   :  { %11357 = vmatpush1.bf16.msra.mxu1 %v14463_v47 }
 0xe4c   :  { %11359 = vmatprep.subr.bf16.mxu1 %v14469_v35 }
 0xe4d   :  { %11329 = vmatpush1.bf16.msra.mxu0 %v14492_v53 }
 0xe4e   :  { %11331 = vmatprep.subr.bf16.mxu0 %v14498_v50 }
 0xe4f   :  { %11361 = vmatpush1.bf16.msra.mxu1 %v14474_v4 }
 0xe50   :  { %11363 = vmatprep.subr.bf16.mxu1 %v14477_v28 }
 0xe51   :  { %11333 = vmatpush1.bf16.msra.mxu0 %v14502_v34 }
 0xe52   :  { %11335 = vmatprep.subr.bf16.mxu0 %v14506_v60 }
 0xe53   :  { %11365 = vmatpush1.bf16.msra.mxu1 %v14483_v55 }
 0xe54   :  { %11367 = vmatprep.subr.bf16.mxu1 %v14489_v6 }
 0xe55   :  { %11337 = vmatpush1.bf16.msra.mxu0 %v14509_v16 }
 0xe56   :  { %11371 = vmatprep.subr.bf16.mxu0 %v14444_v31 }
 0xe57   :  { %11369 = vmatpush1.bf16.msra.mxu1 %v14495_v38 }
 0xe58   :  { %11403 = vmatprep.subr.bf16.mxu1 %v14539_v52 }
 0xf0b   :  { %v4522_v32 = vpop.f32.mrb[22].mxu0  ;;  %v4593_v17 = vpop.f32.mrb[42].mxu1 }
 0xf0c   :  { %v4524_v18 = vpop.f32.mrb[23].mxu0  ;;  %v4595_v44 = vpop.f32.mrb[43].mxu1 }
 0xf0d   :  { %v4602_v62 = vcombine.low %v4522_v32, %v4524_v18  ;;  %v4603_v24 = vcombine.low %v4593_v17, %v4595_v44 }
 0xf0f   :  { %v4610_v46 = vrot.slane %v4602_v62, %v13929_v21  ;;  %v4617_v54 = vrot.slane %v4603_v24, %v13929_v21 }
 0xf11   :  { %v4618_v26 = vcombine.low %v4610_v46, %v4617_v54 }
 0xf13   :  { %v4625_v29 = vrot.slane %v4618_v26, %v13929_v21 }
 0xf15   :  { %v4627_v36 = vadd.f32 %v4625_v29, %v4391_v40 }
 0xf17   :  { %v10415_v7 = vmul.f32 -1.442695, %v4627_v36  ;;  %v4635_v59 = vrot.slane %v4627_v36, 1  ;;  %v4646_v42 = vrot.slane %v4627_v36, 3  ;;  %v4643_v20 = vrot.slane %v4627_v36, 2 }
 0xf19   :  { %13066 = vpow2.f32 %v10415_v7  ;;  %v10416_v22 = vmul.f32 -1.442695, %v4635_v59  ;;  %v10417_v3 = vmul.f32 -1.442695, %v4646_v42 }
 0xf1a   :  { %v4661_v59 = vld [vmem:[#allocation2 + $0x24] ss:$8 sm:$0xf] }
 0xf1b   :  { %13068 = vpow2.f32 %v10416_v22 }
 0xf1c   :  { %13070 = vpow2.f32 %v10417_v3 }
 0xf23   :  { %v13067_v19 = vpop.eup %13066 }
 0xf24   :  { %v4631_v13 = vadd.f32 1.0, %v13067_v19 }
 0xf25   :  { %v13069_v43 = vpop.eup %13068 }
 0xf26   :  { %13072 = vrcp.f32 %v4631_v13  ;;  %v4640_v23 = vadd.f32 1.0, %v13069_v43  ;;  %v13071_v39 = vpop.eup %13070 }
 0xf27   :  { %13074 = vtanh.f32 %v4643_v20  ;;  %v4651_v0 = vadd.f32 1.0, %v13071_v39 }
 0xf28   :  { %13076 = vrcp.f32 %v4640_v23 }
 0xf29   :  { %13078 = vrcp.f32 %v4651_v0 }
 0xf30   :  { %v13073_v14 = vpop.eup %13072 }
 0xf31   :  { %v13075_v37 = vpop.eup %13074 }
 0xf32   :  { %v13077_v58 = vpop.eup %13076  ;;  %v4655_v30 = vmul.f32 %v13075_v37, %v13073_v14 }
 0xf33   :  { %v4654_v45 = vmul.f32 %v13077_v58, %v14518_v27  ;;  %v13079_v17 = vpop.eup %13078 }
 0xf35   :  { %v14578_v32 = vadd.f32 %v4655_v30, %v4654_v45 }
 0xf37   :  { %13080 = vtanh.f32 %v14578_v32 }
 0xf41   :  { %v13081_v18 = vpop.eup %13080 }
 0xf42   :  { %v4658_v44 = vmul.f32 %v13081_v18, %v13079_v17 }
 0xf44   :  { %4659 = vst [vmem:[#allocation3 + $0xb] sm:$0x1] %v4658_v44  ;;  %4791 = vmatmul.mubr.f32.vlgmr.msra.gmra.mrb[24].mxu0 %v4658_v44  ;;  %4862 = vmatmul.mubr.f32.vlgmr.msra.gmra.mrb[44].mxu1 %v4658_v44 }
 0xf45   :  { %11373 = vmatpush1.bf16.msra.mxu0 %v14446_v33  ;;  %11405 = vmatpush1.bf16.msra.mxu1 %v14541_v56 }
 0xf46   :  { %11375 = vmatprep.subr.bf16.mxu0 %v14450_v1  ;;  %11407 = vmatprep.subr.bf16.mxu1 %v14545_v8 }
 0xf47   :  { %5060 = vmatprep.mubr.f32.mxu0 %v13602_v2  ;;  %5131 = vmatprep.mubr.f32.mxu1 %v13602_v2 }
 0xf49   :  { %11377 = vmatpush1.bf16.msra.mxu0 %v14452_v48  ;;  %11409 = vmatpush1.bf16.msra.mxu1 %v14547_v63 }
 0xf4a   :  { %11379 = vmatprep.subr.bf16.mxu0 %v14454_v10  ;;  %11411 = vmatprep.subr.bf16.mxu1 %v14549_v15 }
 0xf4d   :  { %11381 = vmatpush1.bf16.msra.mxu0 %v14458_v25  ;;  %11413 = vmatpush1.bf16.msra.mxu1 %v14553_v5 }
 0xf4e   :  { %11383 = vmatprep.subr.bf16.mxu0 %v14461_v51  ;;  %11415 = vmatprep.subr.bf16.mxu1 %v14556_v61 }
 0xf51   :  { %11385 = vmatpush1.bf16.msra.mxu0 %v14466_v49  ;;  %11417 = vmatpush1.bf16.msra.mxu1 %v14559_v57 }
 0xf52   :  { %11387 = vmatprep.subr.bf16.mxu0 %v14472_v9  ;;  %11419 = vmatprep.subr.bf16.mxu1 %v14562_v12 }
 0xf55   :  { %11389 = vmatpush1.bf16.msra.mxu0 %v14480_v41  ;;  %11421 = vmatpush1.bf16.msra.mxu1 %v14463_v47 }
 0xf56   :  { %11391 = vmatprep.subr.bf16.mxu0 %v14486_v11  ;;  %11423 = vmatprep.subr.bf16.mxu1 %v14469_v35 }
 0xf59   :  { %11393 = vmatpush1.bf16.msra.mxu0 %v14492_v53  ;;  %11425 = vmatpush1.bf16.msra.mxu1 %v14474_v4 }
 0xf5a   :  { %11395 = vmatprep.subr.bf16.mxu0 %v14498_v50  ;;  %11427 = vmatprep.subr.bf16.mxu1 %v14477_v28 }
 0xf5d   :  { %11397 = vmatpush1.bf16.msra.mxu0 %v14502_v34  ;;  %11429 = vmatpush1.bf16.msra.mxu1 %v14483_v55 }
 0xf5e   :  { %11399 = vmatprep.subr.bf16.mxu0 %v14506_v60  ;;  %11431 = vmatprep.subr.bf16.mxu1 %v14489_v6 }
 0xf61   :  { %11401 = vmatpush1.bf16.msra.mxu0 %v14509_v16  ;;  %11433 = vmatpush1.bf16.msra.mxu1 %v14495_v38 }
 0xf62   :  { %11435 = vmatprep.subr.bf16.mxu0 %v14444_v31  ;;  %11467 = vmatprep.subr.bf16.mxu1 %v14539_v52 }
0x1017   :  { %v4792_v27 = vpop.f32.mrb[24].mxu0  ;;  %v4863_v62 = vpop.f32.mrb[44].mxu1 }
0x1018   :  { %v4794_v24 = vpop.f32.mrb[25].mxu0  ;;  %v4865_v46 = vpop.f32.mrb[45].mxu1 }
0x1019   :  { %v4872_v54 = vcombine.low %v4792_v27, %v4794_v24  ;;  %v4873_v26 = vcombine.low %v4863_v62, %v4865_v46 }
0x101b   :  { %v4880_v29 = vrot.slane %v4872_v54, %v13929_v21  ;;  %v4887_v40 = vrot.slane %v4873_v26, %v13929_v21 }
0x101d   :  { %v4888_v36 = vcombine.low %v4880_v29, %v4887_v40 }
0x101f   :  { %v4895_v7 = vrot.slane %v4888_v36, %v13929_v21 }
0x1021   :  { %v4897_v22 = vadd.f32 %v4895_v7, %v4661_v59 }
0x1023   :  { %v10418_v42 = vmul.f32 -1.442695, %v4897_v22  ;;  %v4905_v3 = vrot.slane %v4897_v22, 1  ;;  %v4916_v19 = vrot.slane %v4897_v22, 3  ;;  %v4913_v43 = vrot.slane %v4897_v22, 2 }
0x1025   :  { %13082 = vpow2.f32 %v10418_v42  ;;  %v10419_v31 = vmul.f32 -1.442695, %v4905_v3  ;;  %v10420_v20 = vmul.f32 -1.442695, %v4916_v19  ;;  %v5473_v42 = vld [vmem:[#allocation13 + $0x8] sm:$0xff] }
0x1027   :  { %13084 = vpow2.f32 %v10419_v31  ;;  %v5472_v31 = vld [vmem:[#allocation13] sm:$0xff] }
0x1028   :  { %13086 = vpow2.f32 %v10420_v20  ;;  %v5480_v20 = vld [vmem:[#allocation13 + $0x40] sm:$0xff] }
0x102f   :  { %v13083_v13 = vpop.eup %13082 }
0x1030   :  { %v4901_v23 = vadd.f32 1.0, %v13083_v13 }
0x1031   :  { %v13085_v39 = vpop.eup %13084 }
0x1032   :  { %13088 = vrcp.f32 %v4901_v23  ;;  %v4910_v14 = vadd.f32 1.0, %v13085_v39  ;;  %v13087_v37 = vpop.eup %13086  ;;  %v5488_v23 = vld [vmem:[#allocation13 + $0x80] sm:$0xff] }
0x1033   :  { %13090 = vtanh.f32 %v4913_v43  ;;  %v4921_v30 = vadd.f32 1.0, %v13087_v37  ;;  %v5492_v39 = vld [vmem:[#allocation13 + $0xa0] sm:$0xff]  ;;  %v5501_v37 = vld [vmem:[#allocation13 + $0xe8] sm:$0xff] }
0x1034   :  { %13092 = vrcp.f32 %v4910_v14  ;;  %v5497_v14 = vld [vmem:[#allocation13 + $0xc8] sm:$0xff] }
0x1035   :  { %13094 = vrcp.f32 %v4921_v30  ;;  %v14689_v30 = vpack.c.bf16 %v5501_v37, %v5497_v14 }
0x103c   :  { %v13089_v58 = vpop.eup %13088 }
0x103d   :  { %v13091_v0 = vpop.eup %13090 }
0x103e   :  { %v13093_v45 = vpop.eup %13092  ;;  %v4925_v18 = vmul.f32 %v13091_v0, %v13089_v58  ;;  %v14686_v58 = vpack.c.bf16 %v5492_v39, %v5488_v23  ;;  %v5506_v0 = vld [vmem:[#allocation13 + $0x110] sm:$0xff] }
0x103f   :  { %v4924_v17 = vmul.f32 %v13093_v45, %v14578_v32  ;;  %v13095_v27 = vpop.eup %13094  ;;  %v5510_v45 = vld [vmem:[#allocation13 + $0x130] sm:$0xff] }
0x1041   :  { %v14619_v44 = vadd.f32 %v4925_v18, %v4924_v17  ;;  %v5496_v17 = vld [vmem:[#allocation13 + $0xc0] sm:$0xff] }
0x1042   :  { %v5500_v18 = vld [vmem:[#allocation13 + $0xe0] sm:$0xff] }
0x1043   :  { %13096 = vtanh.f32 %v14619_v44 }
0x104d   :  { %v13097_v62 = vpop.eup %13096 }
0x104e   :  { %v4928_v24 = vmul.f32 %v13097_v62, %v13095_v27  ;;  %v5515_v27 = vld [vmem:[#allocation13 + $0x158] sm:$0xff]  ;;  %v5505_v62 = vld [vmem:[#allocation13 + $0x108] sm:$0xff] }
0x1050   :  { %4929 = vst [vmem:[#allocation3 + $0xc] sm:$0x1] %v4928_v24  ;;  %5061 = vmatmul.mubr.f32.vlgmr.msra.gmra.mrb[26].mxu0 %v4928_v24  ;;  %5132 = vmatmul.mubr.f32.vlgmr.msra.gmra.mrb[46].mxu1 %v4928_v24  ;;  %v5509_v24 = vld [vmem:[#allocation13 + $0x128] sm:$0xff] }
0x1051   :  { %11437 = vmatpush1.bf16.msra.mxu0 %v14446_v33  ;;  %11469 = vmatpush1.bf16.msra.mxu1 %v14541_v56 }
0x1052   :  { %11439 = vmatprep.subr.bf16.mxu0 %v14450_v1  ;;  %11471 = vmatprep.subr.bf16.mxu1 %v14545_v8 }
0x1053   :  { %5330 = vmatprep.mubr.f32.mxu0 %v13602_v2  ;;  %5401 = vmatprep.mubr.f32.mxu1 %v13602_v2 }
0x1055   :  { %11441 = vmatpush1.bf16.msra.mxu0 %v14452_v48  ;;  %11473 = vmatpush1.bf16.msra.mxu1 %v14547_v63 }
0x1056   :  { %11443 = vmatprep.subr.bf16.mxu0 %v14454_v10  ;;  %11475 = vmatprep.subr.bf16.mxu1 %v14549_v15 }
0x1059   :  { %11445 = vmatpush1.bf16.msra.mxu0 %v14458_v25  ;;  %11477 = vmatpush1.bf16.msra.mxu1 %v14553_v5 }
0x105a   :  { %11447 = vmatprep.subr.bf16.mxu0 %v14461_v51  ;;  %11479 = vmatprep.subr.bf16.mxu1 %v14556_v61 }
0x105d   :  { %11449 = vmatpush1.bf16.msra.mxu0 %v14466_v49  ;;  %11481 = vmatpush1.bf16.msra.mxu1 %v14559_v57 }
0x105e   :  { %11451 = vmatprep.subr.bf16.mxu0 %v14472_v9  ;;  %11483 = vmatprep.subr.bf16.mxu1 %v14562_v12 }
0x1061   :  { %11453 = vmatpush1.bf16.msra.mxu0 %v14480_v41  ;;  %11485 = vmatpush1.bf16.msra.mxu1 %v14463_v47 }
0x1062   :  { %11455 = vmatprep.subr.bf16.mxu0 %v14486_v11  ;;  %11487 = vmatprep.subr.bf16.mxu1 %v14469_v35 }
0x1065   :  { %11457 = vmatpush1.bf16.msra.mxu0 %v14492_v53  ;;  %11489 = vmatpush1.bf16.msra.mxu1 %v14474_v4  ;;  %v4931_v4 = vld [vmem:[#allocation2 + $0x25] ss:$8 sm:$0xf] }
0x1066   :  { %11459 = vmatprep.subr.bf16.mxu0 %v14498_v50  ;;  %11491 = vmatprep.subr.bf16.mxu1 %v14477_v28 }
0x1069   :  { %11461 = vmatpush1.bf16.msra.mxu0 %v14502_v34  ;;  %11493 = vmatpush1.bf16.msra.mxu1 %v14483_v55 }
0x106a   :  { %11463 = vmatprep.subr.bf16.mxu0 %v14506_v60  ;;  %11495 = vmatprep.subr.bf16.mxu1 %v14489_v6 }
0x106d   :  { %11465 = vmatpush1.bf16.msra.mxu0 %v14509_v16  ;;  %11497 = vmatpush1.bf16.msra.mxu1 %v14495_v38 }
0x106e   :  { %11531 = vmatprep.subr.bf16.mxu1 %v14539_v52 }
0x1123   :  { %v5062_v33 = vpop.f32.mrb[26].mxu0  ;;  %v5133_v1 = vpop.f32.mrb[46].mxu1 }
0x1124   :  { %v5064_v48 = vpop.f32.mrb[27].mxu0  ;;  %v5135_v10 = vpop.f32.mrb[47].mxu1 }
0x1125   :  { %v5142_v25 = vcombine.low %v5062_v33, %v5064_v48  ;;  %v5143_v51 = vcombine.low %v5133_v1, %v5135_v10  ;;  %v5519_v33 = vld [vmem:[#allocation13 + $0x178] sm:$0xff]  ;;  %v5514_v48 = vld [vmem:[#allocation13 + $0x150] sm:$0xff] }
0x1126   :  { %v14694_v1 = vpack.c.bf16 %v5519_v33, %v5515_v27  ;;  %v5518_v10 = vld [vmem:[#allocation13 + $0x170] sm:$0xff] }
0x1127   :  { %v5150_v47 = vrot.slane %v5142_v25, %v13929_v21  ;;  %v5157_v49 = vrot.slane %v5143_v51, %v13929_v21  ;;  %v14697_v25 = vpack.c.bf16 %v5500_v18, %v5496_v17  ;;  %v14699_v51 = vpack.c.bf16 %v5518_v10, %v5514_v48  ;;  %v5201_v27 = vld [vmem:[#allocation2 + $0x26] ss:$8 sm:$0xf] }
0x1129   :  { %v5158_v35 = vcombine.low %v5150_v47, %v5157_v49  ;;  %v5523_v47 = vld [vmem:[#allocation13 + $0x198] sm:$0xff] }
0x112a   :  { %v5527_v49 = vld [vmem:[#allocation13 + $0x1b8] sm:$0xff] }
0x112b   :  { %v5165_v9 = vrot.slane %v5158_v35, %v13929_v21  ;;  %v14702_v35 = vpack.c.bf16 %v5509_v24, %v5505_v62 }
0x112d   :  { %v5167_v28 = vadd.f32 %v5165_v9, %v4931_v4  ;;  %v5504_v9 = vld [vmem:[#allocation13 + $0x100] sm:$0xff] }
0x112e   :  { %v5508_v4 = vld [vmem:[#allocation13 + $0x120] sm:$0xff] }
0x112f   :  { %v10421_v41 = vmul.f32 -1.442695, %v5167_v28  ;;  %v5175_v55 = vrot.slane %v5167_v28, 1  ;;  %v5186_v6 = vrot.slane %v5167_v28, 3  ;;  %v5183_v50 = vrot.slane %v5167_v28, 2 }
0x1130   :  { %v14705_v28 = vpack.c.bf16 %v5527_v49, %v5523_v47 }
0x1131   :  { %13098 = vpow2.f32 %v10421_v41  ;;  %v10422_v11 = vmul.f32 -1.442695, %v5175_v55  ;;  %v10423_v53 = vmul.f32 -1.442695, %v5186_v6  ;;  %v5522_v41 = vld [vmem:[#allocation13 + $0x190] sm:$0xff]  ;;  %v5513_v55 = vld [vmem:[#allocation13 + $0x148] sm:$0xff] }
0x1132   :  { %v5526_v6 = vld [vmem:[#allocation13 + $0x1b0] sm:$0xff] }
0x1133   :  { %13100 = vpow2.f32 %v10422_v11  ;;  %v5517_v11 = vld [vmem:[#allocation13 + $0x168] sm:$0xff] }
0x1134   :  { %13102 = vpow2.f32 %v10423_v53  ;;  %v14708_v53 = vpack.c.bf16 %v5526_v6, %v5522_v41 }
0x113b   :  { %v13099_v38 = vpop.eup %13098 }
0x113c   :  { %v5171_v34 = vadd.f32 1.0, %v13099_v38  ;;  %v5531_v38 = vld [vmem:[#allocation13 + $0x1d8] sm:$0xff] }
0x113d   :  { %v13101_v60 = vpop.eup %13100 }
0x113e   :  { %13104 = vrcp.f32 %v5171_v34  ;;  %v5180_v16 = vadd.f32 1.0, %v13101_v60  ;;  %v13103_v52 = vpop.eup %13102  ;;  %v14711_v34 = vpack.c.bf16 %v5508_v4, %v5504_v9 }
0x113f   :  { %13106 = vtanh.f32 %v5183_v50  ;;  %v5191_v26 = vadd.f32 1.0, %v13103_v52  ;;  %v5535_v50 = vld [vmem:[#allocation13 + $0x1f8] sm:$0xff]  ;;  %v5534_v52 = vld [vmem:[#allocation13 + $0x1f0] sm:$0xff] }
0x1140   :  { %13108 = vrcp.f32 %v5180_v16  ;;  %v14714_v60 = vpack.c.bf16 %v5535_v50, %v5531_v38  ;;  %v5530_v16 = vld [vmem:[#allocation13 + $0x1d0] sm:$0xff] }
0x1141   :  { %13110 = vrcp.f32 %v5191_v26  ;;  %v5521_v26 = vld [vmem:[#allocation13 + $0x188] sm:$0xff] }
0x1148   :  { %v13105_v32 = vpop.eup %13104 }
0x1149   :  { %v13107_v46 = vpop.eup %13106 }
0x114a   :  { %v13109_v54 = vpop.eup %13108  ;;  %v5195_v40 = vmul.f32 %v13107_v46, %v13105_v32  ;;  %v14717_v32 = vpack.c.bf16 %v5517_v11, %v5513_v55  ;;  %v5512_v46 = vld [vmem:[#allocation13 + $0x140] sm:$0xff] }
0x114b   :  { %v5194_v29 = vmul.f32 %v13109_v54, %v14619_v44  ;;  %v13111_v7 = vpop.eup %13110  ;;  %v14691_v44 = vpack.c.bf16 %v5510_v45, %v5506_v0  ;;  %v5516_v54 = vld [vmem:[#allocation13 + $0x160] sm:$0xff] }
0x114d   :  { %v14659_v36 = vadd.f32 %v5195_v40, %v5194_v29  ;;  %v5525_v29 = vld [vmem:[#allocation13 + $0x1a8] sm:$0xff]  ;;  %v14720_v40 = vpack.c.bf16 %v5534_v52, %v5530_v16 }
0x114f   :  { %13112 = vtanh.f32 %v14659_v36 }
0x1159   :  { %v13113_v59 = vpop.eup %13112 }
0x115a   :  { %v5198_v22 = vmul.f32 %v13113_v59, %v13111_v7  ;;  %v14723_v7 = vpack.c.bf16 %v5516_v54, %v5512_v46  ;;  %v14727_v59 = vpack.c.bf16 %v5525_v29, %v5521_v26 }
0x115c   :  { %5199 = vst [vmem:[#allocation3 + $0xd] sm:$0x1] %v5198_v22  ;;  %5331 = vmatmul.mubr.f32.vlgmr.msra.gmra.mrb[28].mxu0 %v5198_v22  ;;  %5402 = vmatmul.mubr.f32.vlgmr.msra.gmra.mrb[48].mxu1 %v5198_v22  ;;  %v5520_v22 = vld [vmem:[#allocation13 + $0x180] sm:$0xff] }
0x115d   :  { %11533 = vmatpush1.bf16.msra.mxu1 %v14541_v56  ;;  %5600 = vmatprep.mubr.f32.mxu0 %v13602_v2  ;;  %v5477_v56 = vld [vmem:[#allocation13 + $0x28] sm:$0xff] }
0x115e   :  { %11535 = vmatprep.subr.bf16.mxu1 %v14545_v8  ;;  %5671 = vmatprep.mubr.f32.mxu1 %v13602_v2  ;;  %v14672_v3 = vpack.c.bf16 %v5477_v56, %v5473_v42  ;;  %v5476_v8 = vld [vmem:[#allocation13 + $0x20] sm:$0xff]  ;;  %v5529_v56 = vld [vmem:[#allocation13 + $0x1c8] sm:$0xff] }
0x115f   :  { %v14674_v19 = vpack.c.bf16 %v5476_v8, %v5472_v31  ;;  %v5524_v42 = vld [vmem:[#allocation13 + $0x1a0] sm:$0xff]  ;;  %v5533_v31 = vld [vmem:[#allocation13 + $0x1e8] sm:$0xff] }
0x1160   :  { %11499 = vmatprep.subr.bf16.mxu0 %v14672_v3  ;;  %v14731_v8 = vpack.c.bf16 %v5524_v42, %v5520_v22  ;;  %v5749_v42 = vld [vmem:[#allocation13 + $0x38] sm:$0xff] }
0x1161   :  { %11537 = vmatpush1.bf16.msra.mxu1 %v14547_v63  ;;  %v5481_v63 = vld [vmem:[#allocation13 + $0x48] sm:$0xff]  ;;  %11501 = vmatpush1.bf16.msra.mxu0 %v14674_v19 }
0x1162   :  { %11539 = vmatprep.subr.bf16.mxu1 %v14549_v15  ;;  %v5485_v15 = vld [vmem:[#allocation13 + $0x68] sm:$0xff] }
0x1165   :  { %11541 = vmatpush1.bf16.msra.mxu1 %v14553_v5  ;;  %v14678_v5 = vpack.c.bf16 %v5485_v15, %v5481_v63  ;;  %v14734_v63 = vpack.c.bf16 %v5533_v31, %v5529_v56  ;;  %v5528_v15 = vld [vmem:[#allocation13 + $0x1c0] sm:$0xff]  ;;  %v5744_v31 = vld [vmem:[#allocation13 + $0x10] sm:$0xff] }
0x1166   :  { %11543 = vmatprep.subr.bf16.mxu1 %v14556_v61  ;;  %v5484_v61 = vld [vmem:[#allocation13 + $0x60] sm:$0xff] }
0x1167   :  { %v14680_v13 = vpack.c.bf16 %v5484_v61, %v5480_v20  ;;  %11503 = vmatprep.subr.bf16.mxu0 %v14678_v5  ;;  %v5532_v20 = vld [vmem:[#allocation13 + $0x1e0] sm:$0xff] }
0x1168   :  { %v14737_v61 = vpack.c.bf16 %v5532_v20, %v5528_v15  ;;  %v5748_v15 = vld [vmem:[#allocation13 + $0x30] sm:$0xff] }
0x1169   :  { %11545 = vmatpush1.bf16.msra.mxu1 %v14559_v57  ;;  %v5489_v57 = vld [vmem:[#allocation13 + $0x88] sm:$0xff]  ;;  %11505 = vmatpush1.bf16.msra.mxu0 %v14680_v13  ;;  %v14769_v20 = vpack.c.bf16 %v5748_v15, %v5744_v31 }
0x116a   :  { %11547 = vmatprep.subr.bf16.mxu1 %v14562_v12  ;;  %v5493_v12 = vld [vmem:[#allocation13 + $0xa8] sm:$0xff] }
0x116b   :  { %v14682_v43 = vpack.c.bf16 %v5493_v12, %v5489_v57 }
0x116d   :  { %11507 = vmatprep.subr.bf16.mxu0 %v14682_v43  ;;  %11549 = vmatpush1.bf16.msra.mxu1 %v14691_v44 }
0x116e   :  { %11509 = vmatpush1.bf16.msra.mxu0 %v14686_v58  ;;  %11551 = vmatprep.subr.bf16.mxu1 %v14694_v1 }
0x116f   :  { %11511 = vmatprep.subr.bf16.mxu0 %v14689_v30 }
0x1171   :  { %11553 = vmatpush1.bf16.msra.mxu1 %v14699_v51 }
0x1172   :  { %11513 = vmatpush1.bf16.msra.mxu0 %v14697_v25  ;;  %11555 = vmatprep.subr.bf16.mxu1 %v14705_v28 }
0x1173   :  { %11515 = vmatprep.subr.bf16.mxu0 %v14702_v35 }
0x1175   :  { %11557 = vmatpush1.bf16.msra.mxu1 %v14708_v53 }
0x1176   :  { %11517 = vmatpush1.bf16.msra.mxu0 %v14711_v34  ;;  %11559 = vmatprep.subr.bf16.mxu1 %v14714_v60 }
0x1177   :  { %11519 = vmatprep.subr.bf16.mxu0 %v14717_v32 }
0x1179   :  { %11561 = vmatpush1.bf16.msra.mxu1 %v14720_v40 }
0x117a   :  { %11521 = vmatpush1.bf16.msra.mxu0 %v14723_v7 }
0x117b   :  { %11523 = vmatprep.subr.bf16.mxu0 %v14727_v59 }
0x117e   :  { %11525 = vmatpush1.bf16.msra.mxu0 %v14731_v8 }
0x117f   :  { %11527 = vmatprep.subr.bf16.mxu0 %v14734_v63 }
0x1182   :  { %11529 = vmatpush1.bf16.msra.mxu0 %v14737_v61 }
0x1183   :  { %11563 = vmatprep.subr.bf16.mxu0 %v14672_v3 }
0x122f   :  { %v5332_v57 = vpop.f32.mrb[28].mxu0  ;;  %v5403_v12 = vpop.f32.mrb[48].mxu1 }
0x1230   :  { %v5334_v23 = vpop.f32.mrb[29].mxu0  ;;  %v5405_v39 = vpop.f32.mrb[49].mxu1 }
0x1231   :  { %v5412_v14 = vcombine.low %v5332_v57, %v5334_v23  ;;  %v5413_v37 = vcombine.low %v5403_v12, %v5405_v39  ;;  %v5753_v57 = vld [vmem:[#allocation13 + $0x58] sm:$0xff]  ;;  %v5752_v23 = vld [vmem:[#allocation13 + $0x50] sm:$0xff] }
0x1232   :  { %v5757_v12 = vld [vmem:[#allocation13 + $0x78] sm:$0xff] }
0x1233   :  { %v5420_v0 = vrot.slane %v5412_v14, %v13929_v21  ;;  %v5427_v45 = vrot.slane %v5413_v37, %v13929_v21  ;;  %v14772_v39 = vpack.c.bf16 %v5757_v12, %v5753_v57  ;;  %v5756_v14 = vld [vmem:[#allocation13 + $0x70] sm:$0xff]  ;;  %v5761_v37 = vld [vmem:[#allocation13 + $0x98] sm:$0xff] }
0x1235   :  { %v5428_v17 = vcombine.low %v5420_v0, %v5427_v45  ;;  %v5765_v0 = vld [vmem:[#allocation13 + $0xb8] sm:$0xff]  ;;  %v14775_v45 = vpack.c.bf16 %v5756_v14, %v5752_v23 }
0x1237   :  { %v5435_v18 = vrot.slane %v5428_v17, %v13929_v21  ;;  %v14778_v17 = vpack.c.bf16 %v5765_v0, %v5761_v37 }
0x1239   :  { %v5437_v62 = vadd.f32 %v5435_v18, %v5201_v27  ;;  %v5760_v18 = vld [vmem:[#allocation13 + $0x90] sm:$0xff] }
0x123a   :  { %v5764_v27 = vld [vmem:[#allocation13 + $0xb0] sm:$0xff] }
0x123b   :  { %v10424_v24 = vmul.f32 -1.442695, %v5437_v62  ;;  %v5445_v33 = vrot.slane %v5437_v62, 1  ;;  %v5456_v10 = vrot.slane %v5437_v62, 3  ;;  %v5453_v9 = vrot.slane %v5437_v62, 2  ;;  %v5769_v62 = vld [vmem:[#allocation13 + $0xd8] sm:$0xff] }
0x123d   :  { %13114 = vpow2.f32 %v10424_v24  ;;  %v10425_v48 = vmul.f32 -1.442695, %v5445_v33  ;;  %v10426_v47 = vmul.f32 -1.442695, %v5456_v10  ;;  %v5773_v24 = vld [vmem:[#allocation13 + $0xf8] sm:$0xff]  ;;  %v14781_v33 = vpack.c.bf16 %v5764_v27, %v5760_v18  ;;  %v5768_v10 = vld [vmem:[#allocation13 + $0xd0] sm:$0xff] }
0x123f   :  { %13116 = vpow2.f32 %v10425_v48  ;;  %v14784_v48 = vpack.c.bf16 %v5773_v24, %v5769_v62 }
0x1240   :  { %13118 = vpow2.f32 %v10426_v47  ;;  %v5772_v47 = vld [vmem:[#allocation13 + $0xf0] sm:$0xff] }
0x1247   :  { %v13115_v49 = vpop.eup %13114 }
0x1248   :  { %v5441_v4 = vadd.f32 1.0, %v13115_v49  ;;  %v5777_v49 = vld [vmem:[#allocation13 + $0x118] sm:$0xff] }
0x1249   :  { %v13117_v41 = vpop.eup %13116 }
0x124a   :  { %13120 = vrcp.f32 %v5441_v4  ;;  %v5450_v55 = vadd.f32 1.0, %v13117_v41  ;;  %v13119_v11 = vpop.eup %13118  ;;  %v14787_v4 = vpack.c.bf16 %v5772_v47, %v5768_v10 }
0x124b   :  { %13122 = vtanh.f32 %v5453_v9  ;;  %v5461_v16 = vadd.f32 1.0, %v13119_v11  ;;  %v5781_v9 = vld [vmem:[#allocation13 + $0x138] sm:$0xff] }
0x124c   :  { %13124 = vrcp.f32 %v5450_v55  ;;  %v14790_v41 = vpack.c.bf16 %v5781_v9, %v5777_v49 }
0x124d   :  { %13126 = vrcp.f32 %v5461_v16 }
0x1254   :  { %v13121_v6 = vpop.eup %13120 }
0x1255   :  { %v13123_v38 = vpop.eup %13122 }
0x1256   :  { %v13125_v50 = vpop.eup %13124  ;;  %v5465_v46 = vmul.f32 %v13123_v38, %v13121_v6 }
0x1257   :  { %v5464_v52 = vmul.f32 %v13125_v50, %v14659_v36  ;;  %v13127_v26 = vpop.eup %13126  ;;  %v5745_v36 = vld [vmem:[#allocation13 + $0x18] sm:$0xff] }
0x1258   :  { %v14767_v56 = vpack.c.bf16 %v5749_v42, %v5745_v36 }
0x1259   :  { %v14746_v54 = vadd.f32 %v5465_v46, %v5464_v52 }
0x125a   :  { %11595 = vmatprep.subr.bf16.mxu1 %v14767_v56 }
0x125b   :  { %13128 = vtanh.f32 %v14746_v54 }
0x1265   :  { %v13129_v29 = vpop.eup %13128 }
0x1266   :  { %v5468_v22 = vmul.f32 %v13129_v29, %v13127_v26 }
0x1268   :  { %5469 = vst [vmem:[#allocation3 + $0xe] sm:$0x1] %v5468_v22  ;;  %5601 = vmatmul.mubr.f32.vlgmr.msra.gmra.mrb[30].mxu0 %v5468_v22  ;;  %5672 = vmatmul.mubr.f32.vlgmr.msra.gmra.mrb[50].mxu1 %v5468_v22  ;;  %v5471_v22 = vld [vmem:[#allocation2 + $0x27] ss:$8 sm:$0xf] }
0x1269   :  { %11565 = vmatpush1.bf16.msra.mxu0 %v14674_v19  ;;  %5870 = vmatprep.mubr.f32.mxu0 %v13602_v2 }
0x126a   :  { %11567 = vmatprep.subr.bf16.mxu0 %v14678_v5  ;;  %5941 = vmatprep.mubr.f32.mxu1 %v13602_v2 }
0x126b   :  { %11597 = vmatpush1.bf16.msra.mxu1 %v14769_v20 }
0x126c   :  { %11599 = vmatprep.subr.bf16.mxu1 %v14772_v39 }
0x126d   :  { %11569 = vmatpush1.bf16.msra.mxu0 %v14680_v13 }
0x126e   :  { %11571 = vmatprep.subr.bf16.mxu0 %v14682_v43 }
0x126f   :  { %11601 = vmatpush1.bf16.msra.mxu1 %v14775_v45 }
0x1270   :  { %11603 = vmatprep.subr.bf16.mxu1 %v14778_v17 }
0x1271   :  { %11573 = vmatpush1.bf16.msra.mxu0 %v14686_v58 }
0x1272   :  { %11575 = vmatprep.subr.bf16.mxu0 %v14689_v30 }
0x1273   :  { %11605 = vmatpush1.bf16.msra.mxu1 %v14781_v33 }
0x1274   :  { %11607 = vmatprep.subr.bf16.mxu1 %v14784_v48 }
0x1275   :  { %11577 = vmatpush1.bf16.msra.mxu0 %v14697_v25 }
0x1276   :  { %11579 = vmatprep.subr.bf16.mxu0 %v14702_v35 }
0x1277   :  { %11609 = vmatpush1.bf16.msra.mxu1 %v14787_v4 }
0x1278   :  { %11611 = vmatprep.subr.bf16.mxu1 %v14790_v41 }
0x1279   :  { %11581 = vmatpush1.bf16.msra.mxu0 %v14711_v34 }
0x127a   :  { %11583 = vmatprep.subr.bf16.mxu0 %v14717_v32 }
0x127b   :  { %11613 = vmatpush1.bf16.msra.mxu1 %v14691_v44 }
0x127c   :  { %11615 = vmatprep.subr.bf16.mxu1 %v14694_v1 }
0x127d   :  { %11585 = vmatpush1.bf16.msra.mxu0 %v14723_v7 }
0x127e   :  { %11587 = vmatprep.subr.bf16.mxu0 %v14727_v59 }
0x127f   :  { %11617 = vmatpush1.bf16.msra.mxu1 %v14699_v51 }
0x1280   :  { %11619 = vmatprep.subr.bf16.mxu1 %v14705_v28 }
0x1281   :  { %11589 = vmatpush1.bf16.msra.mxu0 %v14731_v8 }
0x1282   :  { %11591 = vmatprep.subr.bf16.mxu0 %v14734_v63 }
0x1283   :  { %11621 = vmatpush1.bf16.msra.mxu1 %v14708_v53 }
0x1284   :  { %11623 = vmatprep.subr.bf16.mxu1 %v14714_v60 }
0x1285   :  { %11593 = vmatpush1.bf16.msra.mxu0 %v14737_v61 }
0x1286   :  { %11627 = vmatprep.subr.bf16.mxu0 %v14672_v3 }
0x1287   :  { %11625 = vmatpush1.bf16.msra.mxu1 %v14720_v40 }
0x1288   :  { %11659 = vmatprep.subr.bf16.mxu1 %v14767_v56 }
0x133b   :  { %v5602_v55 = vpop.f32.mrb[30].mxu0  ;;  %v5673_v11 = vpop.f32.mrb[50].mxu1 }
0x133c   :  { %v5604_v6 = vpop.f32.mrb[31].mxu0  ;;  %v5675_v38 = vpop.f32.mrb[51].mxu1 }
0x133d   :  { %v5682_v50 = vcombine.low %v5602_v55, %v5604_v6  ;;  %v5683_v16 = vcombine.low %v5673_v11, %v5675_v38 }
0x133f   :  { %v5690_v52 = vrot.slane %v5682_v50, %v13929_v21  ;;  %v5697_v46 = vrot.slane %v5683_v16, %v13929_v21 }
0x1341   :  { %v5698_v26 = vcombine.low %v5690_v52, %v5697_v46 }
0x1343   :  { %v5705_v29 = vrot.slane %v5698_v26, %v13929_v21 }
0x1345   :  { %v5707_v36 = vadd.f32 %v5705_v29, %v5471_v22 }
0x1347   :  { %v10427_v42 = vmul.f32 -1.442695, %v5707_v36  ;;  %v5715_v31 = vrot.slane %v5707_v36, 1  ;;  %v5726_v57 = vrot.slane %v5707_v36, 3  ;;  %v5723_v14 = vrot.slane %v5707_v36, 2 }
0x1349   :  { %13130 = vpow2.f32 %v10427_v42  ;;  %v10428_v15 = vmul.f32 -1.442695, %v5715_v31  ;;  %v10429_v12 = vmul.f32 -1.442695, %v5726_v57 }
0x134a   :  { %v5741_v31 = vld [vmem:[#allocation2 + $0x40] ss:$8 sm:$0xf] }
0x134b   :  { %13132 = vpow2.f32 %v10428_v15 }
0x134c   :  { %13134 = vpow2.f32 %v10429_v12 }
0x1353   :  { %v13131_v23 = vpop.eup %13130 }
0x1354   :  { %v5711_v37 = vadd.f32 1.0, %v13131_v23 }
0x1355   :  { %v13133_v0 = vpop.eup %13132 }
0x1356   :  { %13136 = vrcp.f32 %v5711_v37  ;;  %v5720_v18 = vadd.f32 1.0, %v13133_v0  ;;  %v13135_v27 = vpop.eup %13134 }
0x1357   :  { %13138 = vtanh.f32 %v5723_v14  ;;  %v5731_v47 = vadd.f32 1.0, %v13135_v27 }
0x1358   :  { %13140 = vrcp.f32 %v5720_v18 }
0x1359   :  { %13142 = vrcp.f32 %v5731_v47 }
0x1360   :  { %v13137_v62 = vpop.eup %13136 }
0x1361   :  { %v13139_v24 = vpop.eup %13138 }
0x1362   :  { %v13141_v10 = vpop.eup %13140  ;;  %v5735_v9 = vmul.f32 %v13139_v24, %v13137_v62 }
0x1363   :  { %v5734_v49 = vmul.f32 %v13141_v10, %v14746_v54  ;;  %v13143_v11 = vpop.eup %13142 }
0x1365   :  { %v14806_v55 = vadd.f32 %v5735_v9, %v5734_v49 }
0x1367   :  { %13144 = vtanh.f32 %v14806_v55 }
0x1371   :  { %v13145_v6 = vpop.eup %13144 }
0x1372   :  { %v5738_v38 = vmul.f32 %v13145_v6, %v13143_v11 }
0x1374   :  { %5739 = vst [vmem:[#allocation3 + $0xf] sm:$0x1] %v5738_v38  ;;  %5871 = vmatmul.mubr.f32.vlgmr.msra.gmra.mrb[32].mxu0 %v5738_v38  ;;  %5942 = vmatmul.mubr.f32.vlgmr.msra.gmra.mrb[52].mxu1 %v5738_v38 }
0x1375   :  { %11629 = vmatpush1.bf16.msra.mxu0 %v14674_v19  ;;  %11661 = vmatpush1.bf16.msra.mxu1 %v14769_v20 }
0x1376   :  { %11631 = vmatprep.subr.bf16.mxu0 %v14678_v5  ;;  %11663 = vmatprep.subr.bf16.mxu1 %v14772_v39 }
0x1377   :  { %6140 = vmatprep.mubr.f32.mxu0 %v13602_v2  ;;  %6211 = vmatprep.mubr.f32.mxu1 %v13602_v2 }
0x1379   :  { %11633 = vmatpush1.bf16.msra.mxu0 %v14680_v13  ;;  %11665 = vmatpush1.bf16.msra.mxu1 %v14775_v45 }
0x137a   :  { %11635 = vmatprep.subr.bf16.mxu0 %v14682_v43  ;;  %11667 = vmatprep.subr.bf16.mxu1 %v14778_v17 }
0x137d   :  { %11637 = vmatpush1.bf16.msra.mxu0 %v14686_v58  ;;  %11669 = vmatpush1.bf16.msra.mxu1 %v14781_v33 }
0x137e   :  { %11639 = vmatprep.subr.bf16.mxu0 %v14689_v30  ;;  %11671 = vmatprep.subr.bf16.mxu1 %v14784_v48 }
0x1381   :  { %11641 = vmatpush1.bf16.msra.mxu0 %v14697_v25  ;;  %11673 = vmatpush1.bf16.msra.mxu1 %v14787_v4 }
0x1382   :  { %11643 = vmatprep.subr.bf16.mxu0 %v14702_v35  ;;  %11675 = vmatprep.subr.bf16.mxu1 %v14790_v41 }
0x1385   :  { %11645 = vmatpush1.bf16.msra.mxu0 %v14711_v34  ;;  %11677 = vmatpush1.bf16.msra.mxu1 %v14691_v44 }
0x1386   :  { %11647 = vmatprep.subr.bf16.mxu0 %v14717_v32  ;;  %11679 = vmatprep.subr.bf16.mxu1 %v14694_v1 }
0x1389   :  { %11649 = vmatpush1.bf16.msra.mxu0 %v14723_v7  ;;  %11681 = vmatpush1.bf16.msra.mxu1 %v14699_v51 }
0x138a   :  { %11651 = vmatprep.subr.bf16.mxu0 %v14727_v59  ;;  %11683 = vmatprep.subr.bf16.mxu1 %v14705_v28 }
0x138d   :  { %11653 = vmatpush1.bf16.msra.mxu0 %v14731_v8  ;;  %11685 = vmatpush1.bf16.msra.mxu1 %v14708_v53 }
0x138e   :  { %11655 = vmatprep.subr.bf16.mxu0 %v14734_v63  ;;  %11687 = vmatprep.subr.bf16.mxu1 %v14714_v60 }
0x1391   :  { %11657 = vmatpush1.bf16.msra.mxu0 %v14737_v61  ;;  %11689 = vmatpush1.bf16.msra.mxu1 %v14720_v40 }
0x1392   :  { %11691 = vmatprep.subr.bf16.mxu0 %v14672_v3  ;;  %11723 = vmatprep.subr.bf16.mxu1 %v14767_v56 }
0x1447   :  { %v5872_v54 = vpop.f32.mrb[32].mxu0  ;;  %v5943_v50 = vpop.f32.mrb[52].mxu1 }
0x1448   :  { %v5874_v16 = vpop.f32.mrb[33].mxu0  ;;  %v5945_v52 = vpop.f32.mrb[53].mxu1 }
0x1449   :  { %v5952_v46 = vcombine.low %v5872_v54, %v5874_v16  ;;  %v5953_v26 = vcombine.low %v5943_v50, %v5945_v52 }
0x144b   :  { %v5960_v29 = vrot.slane %v5952_v46, %v13929_v21  ;;  %v5967_v22 = vrot.slane %v5953_v26, %v13929_v21 }
0x144d   :  { %v5968_v36 = vcombine.low %v5960_v29, %v5967_v22 }
0x144f   :  { %v5975_v42 = vrot.slane %v5968_v36, %v13929_v21 }
0x1451   :  { %v5977_v15 = vadd.f32 %v5975_v42, %v5741_v31 }
0x1453   :  { %v10430_v57 = vmul.f32 -1.442695, %v5977_v15  ;;  %v5985_v12 = vrot.slane %v5977_v15, 1  ;;  %v5996_v23 = vrot.slane %v5977_v15, 3  ;;  %v5993_v0 = vrot.slane %v5977_v15, 2 }
0x1455   :  { %13146 = vpow2.f32 %v10430_v57  ;;  %v10431_v3 = vmul.f32 -1.442695, %v5985_v12  ;;  %v10432_v14 = vmul.f32 -1.442695, %v5996_v23  ;;  %v6553_v57 = vld [vmem:[#allocation13 + $0x8] sm:$0xff] }
0x1457   :  { %13148 = vpow2.f32 %v10431_v3  ;;  %v6552_v3 = vld [vmem:[#allocation13] sm:$0xff] }
0x1458   :  { %13150 = vpow2.f32 %v10432_v14  ;;  %v6561_v14 = vld [vmem:[#allocation13 + $0x48] sm:$0xff] }
0x145f   :  { %v13147_v37 = vpop.eup %13146 }
0x1460   :  { %v5981_v18 = vadd.f32 1.0, %v13147_v37  ;;  %v6560_v37 = vld [vmem:[#allocation13 + $0x40] sm:$0xff] }
0x1461   :  { %v13149_v27 = vpop.eup %13148 }
0x1462   :  { %13152 = vrcp.f32 %v5981_v18  ;;  %v5990_v62 = vadd.f32 1.0, %v13149_v27  ;;  %v13151_v24 = vpop.eup %13150  ;;  %v6568_v18 = vld [vmem:[#allocation13 + $0x80] sm:$0xff] }
0x1463   :  { %13154 = vtanh.f32 %v5993_v0  ;;  %v6001_v9 = vadd.f32 1.0, %v13151_v24  ;;  %v6572_v27 = vld [vmem:[#allocation13 + $0xa0] sm:$0xff]  ;;  %v6581_v24 = vld [vmem:[#allocation13 + $0xe8] sm:$0xff] }
0x1464   :  { %13156 = vrcp.f32 %v5990_v62  ;;  %v6577_v62 = vld [vmem:[#allocation13 + $0xc8] sm:$0xff] }
0x1465   :  { %13158 = vrcp.f32 %v6001_v9  ;;  %v6576_v9 = vld [vmem:[#allocation13 + $0xc0] sm:$0xff] }
0x146c   :  { %v13153_v10 = vpop.eup %13152 }
0x146d   :  { %v13155_v47 = vpop.eup %13154 }
0x146e   :  { %v13157_v49 = vpop.eup %13156  ;;  %v6005_v6 = vmul.f32 %v13155_v47, %v13153_v10  ;;  %v6586_v10 = vld [vmem:[#allocation13 + $0x110] sm:$0xff] }
0x146f   :  { %v6004_v11 = vmul.f32 %v13157_v49, %v14806_v55  ;;  %v13159_v54 = vpop.eup %13158  ;;  %v6590_v47 = vld [vmem:[#allocation13 + $0x130] sm:$0xff]  ;;  %v14914_v49 = vpack.c.bf16 %v6572_v27, %v6568_v18 }
0x1471   :  { %v14847_v38 = vadd.f32 %v6005_v6, %v6004_v11  ;;  %v14916_v11 = vpack.c.bf16 %v6590_v47, %v6586_v10  ;;  %v6595_v6 = vld [vmem:[#allocation13 + $0x158] sm:$0xff] }
0x1473   :  { %13160 = vtanh.f32 %v14847_v38 }
0x147d   :  { %v13161_v50 = vpop.eup %13160 }
0x147e   :  { %v6008_v16 = vmul.f32 %v13161_v50, %v13159_v54  ;;  %v6580_v54 = vld [vmem:[#allocation13 + $0xe0] sm:$0xff]  ;;  %v6585_v50 = vld [vmem:[#allocation13 + $0x108] sm:$0xff] }
0x1480   :  { %6009 = vst [vmem:[#allocation3 + $0x10] sm:$0x1] %v6008_v16  ;;  %6141 = vmatmul.mubr.f32.vlgmr.msra.gmra.mrb[34].mxu0 %v6008_v16  ;;  %6212 = vmatmul.mubr.f32.vlgmr.msra.gmra.mrb[54].mxu1 %v6008_v16  ;;  %v6599_v16 = vld [vmem:[#allocation13 + $0x178] sm:$0xff] }
0x1481   :  { %11693 = vmatpush1.bf16.msra.mxu0 %v14674_v19  ;;  %11725 = vmatpush1.bf16.msra.mxu1 %v14769_v20 }
0x1482   :  { %11695 = vmatprep.subr.bf16.mxu0 %v14678_v5  ;;  %11727 = vmatprep.subr.bf16.mxu1 %v14772_v39 }
0x1483   :  { %6410 = vmatprep.mubr.f32.mxu0 %v13602_v2  ;;  %6481 = vmatprep.mubr.f32.mxu1 %v13602_v2 }
0x1485   :  { %11697 = vmatpush1.bf16.msra.mxu0 %v14680_v13  ;;  %11729 = vmatpush1.bf16.msra.mxu1 %v14775_v45 }
0x1486   :  { %11699 = vmatprep.subr.bf16.mxu0 %v14682_v43  ;;  %11731 = vmatprep.subr.bf16.mxu1 %v14778_v17 }
0x1489   :  { %11701 = vmatpush1.bf16.msra.mxu0 %v14686_v58  ;;  %11733 = vmatpush1.bf16.msra.mxu1 %v14781_v33 }
0x148a   :  { %11703 = vmatprep.subr.bf16.mxu0 %v14689_v30  ;;  %11735 = vmatprep.subr.bf16.mxu1 %v14784_v48 }
0x148d   :  { %11705 = vmatpush1.bf16.msra.mxu0 %v14697_v25  ;;  %11737 = vmatpush1.bf16.msra.mxu1 %v14787_v4 }
0x148e   :  { %11707 = vmatprep.subr.bf16.mxu0 %v14702_v35  ;;  %11739 = vmatprep.subr.bf16.mxu1 %v14790_v41  ;;  %v6011_v35 = vld [vmem:[#allocation2 + $0x41] ss:$8 sm:$0xf] }
0x1491   :  { %11709 = vmatpush1.bf16.msra.mxu0 %v14711_v34  ;;  %11741 = vmatpush1.bf16.msra.mxu1 %v14691_v44 }
0x1492   :  { %11711 = vmatprep.subr.bf16.mxu0 %v14717_v32  ;;  %11743 = vmatprep.subr.bf16.mxu1 %v14694_v1 }
0x1495   :  { %11713 = vmatpush1.bf16.msra.mxu0 %v14723_v7  ;;  %11745 = vmatpush1.bf16.msra.mxu1 %v14699_v51 }
0x1496   :  { %11715 = vmatprep.subr.bf16.mxu0 %v14727_v59  ;;  %11747 = vmatprep.subr.bf16.mxu1 %v14705_v28 }
0x1499   :  { %11717 = vmatpush1.bf16.msra.mxu0 %v14731_v8  ;;  %11749 = vmatpush1.bf16.msra.mxu1 %v14708_v53 }
0x149a   :  { %11719 = vmatprep.subr.bf16.mxu0 %v14734_v63  ;;  %11751 = vmatprep.subr.bf16.mxu1 %v14714_v60 }
0x149d   :  { %11721 = vmatpush1.bf16.msra.mxu0 %v14737_v61  ;;  %11753 = vmatpush1.bf16.msra.mxu1 %v14720_v40 }
0x149e   :  { %11787 = vmatprep.subr.bf16.mxu1 %v14767_v56 }
0x1553   :  { %v6142_v19 = vpop.f32.mrb[34].mxu0  ;;  %v6213_v5 = vpop.f32.mrb[54].mxu1 }
0x1554   :  { %v6144_v13 = vpop.f32.mrb[35].mxu0  ;;  %v6215_v43 = vpop.f32.mrb[55].mxu1 }
0x1555   :  { %v6222_v58 = vcombine.low %v6142_v19, %v6144_v13  ;;  %v6223_v30 = vcombine.low %v6213_v5, %v6215_v43  ;;  %v6589_v19 = vld [vmem:[#allocation13 + $0x128] sm:$0xff]  ;;  %v14922_v5 = vpack.c.bf16 %v6599_v16, %v6595_v6  ;;  %v6594_v13 = vld [vmem:[#allocation13 + $0x150] sm:$0xff] }
0x1556   :  { %v6598_v43 = vld [vmem:[#allocation13 + $0x170] sm:$0xff] }
0x1557   :  { %v6230_v44 = vrot.slane %v6222_v58, %v13929_v21  ;;  %v6237_v1 = vrot.slane %v6223_v30, %v13929_v21  ;;  %v14924_v58 = vpack.c.bf16 %v6598_v43, %v6594_v13  ;;  %v6603_v30 = vld [vmem:[#allocation13 + $0x198] sm:$0xff] }
0x1559   :  { %v6238_v25 = vcombine.low %v6230_v44, %v6237_v1  ;;  %v6607_v44 = vld [vmem:[#allocation13 + $0x1b8] sm:$0xff]  ;;  %v14927_v1 = vpack.c.bf16 %v6580_v54, %v6576_v9 }
0x155a   :  { %v6281_v54 = vld [vmem:[#allocation2 + $0x42] ss:$8 sm:$0xf] }
0x155b   :  { %v6245_v51 = vrot.slane %v6238_v25, %v13929_v21  ;;  %v6584_v25 = vld [vmem:[#allocation13 + $0x100] sm:$0xff] }
0x155d   :  { %v6247_v28 = vadd.f32 %v6245_v51, %v6011_v35  ;;  %v14930_v51 = vpack.c.bf16 %v6607_v44, %v6603_v30  ;;  %v6602_v35 = vld [vmem:[#allocation13 + $0x190] sm:$0xff] }
0x155f   :  { %v10433_v53 = vmul.f32 -1.442695, %v6247_v28  ;;  %v6255_v34 = vrot.slane %v6247_v28, 1  ;;  %v6266_v32 = vrot.slane %v6247_v28, 3  ;;  %v6263_v59 = vrot.slane %v6247_v28, 2 }
0x1560   :  { %v14933_v28 = vpack.c.bf16 %v6589_v19, %v6585_v50 }
0x1561   :  { %13162 = vpow2.f32 %v10433_v53  ;;  %v10434_v60 = vmul.f32 -1.442695, %v6255_v34  ;;  %v10435_v40 = vmul.f32 -1.442695, %v6266_v32  ;;  %v6588_v53 = vld [vmem:[#allocation13 + $0x120] sm:$0xff]  ;;  %v6593_v34 = vld [vmem:[#allocation13 + $0x148] sm:$0xff] }
0x1562   :  { %v6597_v32 = vld [vmem:[#allocation13 + $0x168] sm:$0xff] }
0x1563   :  { %13164 = vpow2.f32 %v10434_v60  ;;  %v6606_v60 = vld [vmem:[#allocation13 + $0x1b0] sm:$0xff] }
0x1564   :  { %13166 = vpow2.f32 %v10435_v40  ;;  %v14936_v40 = vpack.c.bf16 %v6606_v60, %v6602_v35 }
0x156b   :  { %v13163_v7 = vpop.eup %13162 }
0x156c   :  { %v6251_v8 = vadd.f32 1.0, %v13163_v7  ;;  %v6611_v7 = vld [vmem:[#allocation13 + $0x1d8] sm:$0xff] }
0x156d   :  { %v13165_v63 = vpop.eup %13164 }
0x156e   :  { %13168 = vrcp.f32 %v6251_v8  ;;  %v6260_v61 = vadd.f32 1.0, %v13165_v63  ;;  %v13167_v56 = vpop.eup %13166  ;;  %v6610_v63 = vld [vmem:[#allocation13 + $0x1d0] sm:$0xff] }
0x156f   :  { %13170 = vtanh.f32 %v6263_v59  ;;  %v6271_v26 = vadd.f32 1.0, %v13167_v56  ;;  %v6615_v59 = vld [vmem:[#allocation13 + $0x1f8] sm:$0xff]  ;;  %v14942_v56 = vpack.c.bf16 %v6588_v53, %v6584_v25 }
0x1570   :  { %13172 = vrcp.f32 %v6260_v61  ;;  %v14939_v8 = vpack.c.bf16 %v6615_v59, %v6611_v7  ;;  %v6614_v61 = vld [vmem:[#allocation13 + $0x1f0] sm:$0xff] }
0x1571   :  { %13174 = vrcp.f32 %v6271_v26  ;;  %v6601_v26 = vld [vmem:[#allocation13 + $0x188] sm:$0xff] }
0x1578   :  { %v13169_v55 = vpop.eup %13168 }
0x1579   :  { %v13171_v52 = vpop.eup %13170 }
0x157a   :  { %v13173_v46 = vpop.eup %13172  ;;  %v6275_v22 = vmul.f32 %v13171_v52, %v13169_v55  ;;  %v14945_v55 = vpack.c.bf16 %v6597_v32, %v6593_v34  ;;  %v6592_v52 = vld [vmem:[#allocation13 + $0x140] sm:$0xff] }
0x157b   :  { %v6274_v29 = vmul.f32 %v13173_v46, %v14847_v38  ;;  %v13175_v42 = vpop.eup %13174  ;;  %v14919_v38 = vpack.c.bf16 %v6581_v24, %v6577_v62  ;;  %v6596_v46 = vld [vmem:[#allocation13 + $0x160] sm:$0xff] }
0x157d   :  { %v14887_v36 = vadd.f32 %v6275_v22, %v6274_v29  ;;  %v6605_v29 = vld [vmem:[#allocation13 + $0x1a8] sm:$0xff]  ;;  %v14948_v22 = vpack.c.bf16 %v6614_v61, %v6610_v63 }
0x157f   :  { %13176 = vtanh.f32 %v14887_v36 }
0x1589   :  { %v13177_v31 = vpop.eup %13176 }
0x158a   :  { %v6278_v15 = vmul.f32 %v13177_v31, %v13175_v42  ;;  %v14952_v42 = vpack.c.bf16 %v6596_v46, %v6592_v52  ;;  %v14955_v31 = vpack.c.bf16 %v6605_v29, %v6601_v26 }
0x158c   :  { %6279 = vst [vmem:[#allocation3 + $0x11] sm:$0x1] %v6278_v15  ;;  %6411 = vmatmul.mubr.f32.vlgmr.msra.gmra.mrb[36].mxu0 %v6278_v15  ;;  %6482 = vmatmul.mubr.f32.vlgmr.msra.gmra.mrb[56].mxu1 %v6278_v15  ;;  %v6600_v15 = vld [vmem:[#allocation13 + $0x180] sm:$0xff] }
0x158d   :  { %11789 = vmatpush1.bf16.msra.mxu1 %v14769_v20  ;;  %6680 = vmatprep.mubr.f32.mxu0 %v13602_v2  ;;  %v6557_v20 = vld [vmem:[#allocation13 + $0x28] sm:$0xff] }
0x158e   :  { %11791 = vmatprep.subr.bf16.mxu1 %v14772_v39  ;;  %6751 = vmatprep.mubr.f32.mxu1 %v13602_v2  ;;  %v14900_v12 = vpack.c.bf16 %v6557_v20, %v6553_v57  ;;  %v6556_v39 = vld [vmem:[#allocation13 + $0x20] sm:$0xff]  ;;  %v6609_v20 = vld [vmem:[#allocation13 + $0x1c8] sm:$0xff] }
0x158f   :  { %v14902_v23 = vpack.c.bf16 %v6556_v39, %v6552_v3  ;;  %v6604_v57 = vld [vmem:[#allocation13 + $0x1a0] sm:$0xff]  ;;  %v6613_v3 = vld [vmem:[#allocation13 + $0x1e8] sm:$0xff] }
0x1590   :  { %11755 = vmatprep.subr.bf16.mxu0 %v14900_v12  ;;  %v14959_v39 = vpack.c.bf16 %v6604_v57, %v6600_v15  ;;  %v6829_v57 = vld [vmem:[#allocation13 + $0x38] sm:$0xff] }
0x1591   :  { %11793 = vmatpush1.bf16.msra.mxu1 %v14775_v45  ;;  %v6565_v45 = vld [vmem:[#allocation13 + $0x68] sm:$0xff]  ;;  %11757 = vmatpush1.bf16.msra.mxu0 %v14902_v23 }
0x1592   :  { %11795 = vmatprep.subr.bf16.mxu1 %v14778_v17  ;;  %v14905_v17 = vpack.c.bf16 %v6565_v45, %v6561_v14  ;;  %v14962_v14 = vpack.c.bf16 %v6613_v3, %v6609_v20  ;;  %v6608_v45 = vld [vmem:[#allocation13 + $0x1c0] sm:$0xff]  ;;  %v6824_v3 = vld [vmem:[#allocation13 + $0x10] sm:$0xff] }
0x1594   :  { %11759 = vmatprep.subr.bf16.mxu0 %v14905_v17 }
0x1595   :  { %11797 = vmatpush1.bf16.msra.mxu1 %v14781_v33  ;;  %v6564_v33 = vld [vmem:[#allocation13 + $0x60] sm:$0xff] }
0x1596   :  { %11799 = vmatprep.subr.bf16.mxu1 %v14784_v48  ;;  %v6569_v48 = vld [vmem:[#allocation13 + $0x88] sm:$0xff] }
0x1599   :  { %11801 = vmatpush1.bf16.msra.mxu1 %v14787_v4  ;;  %v6573_v4 = vld [vmem:[#allocation13 + $0xa8] sm:$0xff] }
0x159a   :  { %11803 = vmatprep.subr.bf16.mxu1 %v14790_v41  ;;  %v14908_v41 = vpack.c.bf16 %v6564_v33, %v6560_v37  ;;  %v14911_v0 = vpack.c.bf16 %v6573_v4, %v6569_v48  ;;  %v6612_v37 = vld [vmem:[#allocation13 + $0x1e0] sm:$0xff] }
0x159b   :  { %v14965_v33 = vpack.c.bf16 %v6612_v37, %v6608_v45  ;;  %v6828_v45 = vld [vmem:[#allocation13 + $0x30] sm:$0xff] }
0x159c   :  { %11761 = vmatpush1.bf16.msra.mxu0 %v14908_v41  ;;  %v14997_v37 = vpack.c.bf16 %v6828_v45, %v6824_v3 }
0x159d   :  { %11763 = vmatprep.subr.bf16.mxu0 %v14911_v0  ;;  %11805 = vmatpush1.bf16.msra.mxu1 %v14916_v11 }
0x159e   :  { %11807 = vmatprep.subr.bf16.mxu1 %v14922_v5 }
0x15a0   :  { %11765 = vmatpush1.bf16.msra.mxu0 %v14914_v49 }
0x15a1   :  { %11767 = vmatprep.subr.bf16.mxu0 %v14919_v38  ;;  %11809 = vmatpush1.bf16.msra.mxu1 %v14924_v58 }
0x15a2   :  { %11811 = vmatprep.subr.bf16.mxu1 %v14930_v51 }
0x15a4   :  { %11769 = vmatpush1.bf16.msra.mxu0 %v14927_v1 }
0x15a5   :  { %11771 = vmatprep.subr.bf16.mxu0 %v14933_v28  ;;  %11813 = vmatpush1.bf16.msra.mxu1 %v14936_v40 }
0x15a6   :  { %11815 = vmatprep.subr.bf16.mxu1 %v14939_v8 }
0x15a8   :  { %11773 = vmatpush1.bf16.msra.mxu0 %v14942_v56 }
0x15a9   :  { %11775 = vmatprep.subr.bf16.mxu0 %v14945_v55  ;;  %11817 = vmatpush1.bf16.msra.mxu1 %v14948_v22 }
0x15ac   :  { %11777 = vmatpush1.bf16.msra.mxu0 %v14952_v42 }
0x15ad   :  { %11779 = vmatprep.subr.bf16.mxu0 %v14955_v31 }
0x15b0   :  { %11781 = vmatpush1.bf16.msra.mxu0 %v14959_v39 }
0x15b1   :  { %11783 = vmatprep.subr.bf16.mxu0 %v14962_v14 }
0x15b4   :  { %11785 = vmatpush1.bf16.msra.mxu0 %v14965_v33 }
0x15b5   :  { %11819 = vmatprep.subr.bf16.mxu0 %v14900_v12 }
0x165f   :  { %v6412_v48 = vpop.f32.mrb[36].mxu0  ;;  %v6483_v4 = vpop.f32.mrb[56].mxu1 }
0x1660   :  { %v6414_v18 = vpop.f32.mrb[37].mxu0  ;;  %v6485_v27 = vpop.f32.mrb[57].mxu1 }
0x1661   :  { %v6492_v62 = vcombine.low %v6412_v48, %v6414_v18  ;;  %v6493_v24 = vcombine.low %v6483_v4, %v6485_v27  ;;  %v6833_v48 = vld [vmem:[#allocation13 + $0x58] sm:$0xff]  ;;  %v6832_v18 = vld [vmem:[#allocation13 + $0x50] sm:$0xff] }
0x1662   :  { %v6837_v4 = vld [vmem:[#allocation13 + $0x78] sm:$0xff] }
0x1663   :  { %v6500_v10 = vrot.slane %v6492_v62, %v13929_v21  ;;  %v6507_v47 = vrot.slane %v6493_v24, %v13929_v21  ;;  %v15000_v27 = vpack.c.bf16 %v6837_v4, %v6833_v48  ;;  %v6836_v62 = vld [vmem:[#allocation13 + $0x70] sm:$0xff]  ;;  %v6841_v24 = vld [vmem:[#allocation13 + $0x98] sm:$0xff] }
0x1665   :  { %v6508_v9 = vcombine.low %v6500_v10, %v6507_v47  ;;  %v6845_v10 = vld [vmem:[#allocation13 + $0xb8] sm:$0xff]  ;;  %v15003_v47 = vpack.c.bf16 %v6836_v62, %v6832_v18 }
0x1667   :  { %v6515_v6 = vrot.slane %v6508_v9, %v13929_v21  ;;  %v15006_v9 = vpack.c.bf16 %v6845_v10, %v6841_v24 }
0x1669   :  { %v6517_v50 = vadd.f32 %v6515_v6, %v6281_v54  ;;  %v6840_v6 = vld [vmem:[#allocation13 + $0x90] sm:$0xff] }
0x166a   :  { %v6844_v54 = vld [vmem:[#allocation13 + $0xb0] sm:$0xff] }
0x166b   :  { %v10436_v16 = vmul.f32 -1.442695, %v6517_v50  ;;  %v6525_v19 = vrot.slane %v6517_v50, 1  ;;  %v6536_v43 = vrot.slane %v6517_v50, 3  ;;  %v6533_v25 = vrot.slane %v6517_v50, 2  ;;  %v6849_v50 = vld [vmem:[#allocation13 + $0xd8] sm:$0xff] }
0x166d   :  { %13178 = vpow2.f32 %v10436_v16  ;;  %v10437_v13 = vmul.f32 -1.442695, %v6525_v19  ;;  %v10438_v30 = vmul.f32 -1.442695, %v6536_v43  ;;  %v6853_v16 = vld [vmem:[#allocation13 + $0xf8] sm:$0xff]  ;;  %v15009_v19 = vpack.c.bf16 %v6844_v54, %v6840_v6  ;;  %v6848_v43 = vld [vmem:[#allocation13 + $0xd0] sm:$0xff] }
0x166f   :  { %13180 = vpow2.f32 %v10437_v13  ;;  %v15012_v13 = vpack.c.bf16 %v6853_v16, %v6849_v50 }
0x1670   :  { %13182 = vpow2.f32 %v10438_v30  ;;  %v6852_v30 = vld [vmem:[#allocation13 + $0xf0] sm:$0xff] }
0x1677   :  { %v13179_v44 = vpop.eup %13178 }
0x1678   :  { %v6521_v35 = vadd.f32 1.0, %v13179_v44  ;;  %v6857_v44 = vld [vmem:[#allocation13 + $0x118] sm:$0xff] }
0x1679   :  { %v13181_v53 = vpop.eup %13180 }
0x167a   :  { %13184 = vrcp.f32 %v6521_v35  ;;  %v6530_v34 = vadd.f32 1.0, %v13181_v53  ;;  %v13183_v60 = vpop.eup %13182  ;;  %v15015_v35 = vpack.c.bf16 %v6852_v30, %v6848_v43 }
0x167b   :  { %13186 = vtanh.f32 %v6533_v25  ;;  %v6541_v63 = vadd.f32 1.0, %v13183_v60  ;;  %v6861_v25 = vld [vmem:[#allocation13 + $0x138] sm:$0xff] }
0x167c   :  { %13188 = vrcp.f32 %v6530_v34  ;;  %v15018_v53 = vpack.c.bf16 %v6861_v25, %v6857_v44 }
0x167d   :  { %13190 = vrcp.f32 %v6541_v63 }
0x1684   :  { %v13185_v32 = vpop.eup %13184 }
0x1685   :  { %v13187_v7 = vpop.eup %13186 }
0x1686   :  { %v13189_v59 = vpop.eup %13188  ;;  %v6545_v52 = vmul.f32 %v13187_v7, %v13185_v32 }
0x1687   :  { %v6544_v61 = vmul.f32 %v13189_v59, %v14887_v36  ;;  %v13191_v26 = vpop.eup %13190  ;;  %v6825_v36 = vld [vmem:[#allocation13 + $0x18] sm:$0xff] }
0x1688   :  { %v14995_v20 = vpack.c.bf16 %v6829_v57, %v6825_v36 }
0x1689   :  { %v14974_v46 = vadd.f32 %v6545_v52, %v6544_v61 }
0x168a   :  { %11851 = vmatprep.subr.bf16.mxu1 %v14995_v20 }
0x168b   :  { %13192 = vtanh.f32 %v14974_v46 }
0x1695   :  { %v13193_v29 = vpop.eup %13192 }
0x1696   :  { %v6548_v15 = vmul.f32 %v13193_v29, %v13191_v26 }
0x1698   :  { %6549 = vst [vmem:[#allocation3 + $0x12] sm:$0x1] %v6548_v15  ;;  %6681 = vmatmul.mubr.f32.vlgmr.msra.gmra.mrb[38].mxu0 %v6548_v15  ;;  %6752 = vmatmul.mubr.f32.vlgmr.msra.gmra.mrb[58].mxu1 %v6548_v15  ;;  %v6551_v15 = vld [vmem:[#allocation2 + $0x43] ss:$8 sm:$0xf] }
0x1699   :  { %11821 = vmatpush1.bf16.msra.mxu0 %v14902_v23  ;;  %6950 = vmatprep.mubr.f32.mxu0 %v13602_v2 }
0x169a   :  { %11823 = vmatprep.subr.bf16.mxu0 %v14905_v17  ;;  %7021 = vmatprep.mubr.f32.mxu1 %v13602_v2 }
0x169b   :  { %11853 = vmatpush1.bf16.msra.mxu1 %v14997_v37 }
0x169c   :  { %11855 = vmatprep.subr.bf16.mxu1 %v15000_v27 }
0x169d   :  { %11825 = vmatpush1.bf16.msra.mxu0 %v14908_v41 }
0x169e   :  { %11827 = vmatprep.subr.bf16.mxu0 %v14911_v0 }
0x169f   :  { %11857 = vmatpush1.bf16.msra.mxu1 %v15003_v47 }
0x16a0   :  { %11859 = vmatprep.subr.bf16.mxu1 %v15006_v9 }
0x16a1   :  { %11829 = vmatpush1.bf16.msra.mxu0 %v14914_v49 }
0x16a2   :  { %11831 = vmatprep.subr.bf16.mxu0 %v14919_v38 }
0x16a3   :  { %11861 = vmatpush1.bf16.msra.mxu1 %v15009_v19 }
0x16a4   :  { %11863 = vmatprep.subr.bf16.mxu1 %v15012_v13 }
0x16a5   :  { %11833 = vmatpush1.bf16.msra.mxu0 %v14927_v1 }
0x16a6   :  { %11835 = vmatprep.subr.bf16.mxu0 %v14933_v28 }
0x16a7   :  { %11865 = vmatpush1.bf16.msra.mxu1 %v15015_v35 }
0x16a8   :  { %11867 = vmatprep.subr.bf16.mxu1 %v15018_v53 }
0x16a9   :  { %11837 = vmatpush1.bf16.msra.mxu0 %v14942_v56 }
0x16aa   :  { %11839 = vmatprep.subr.bf16.mxu0 %v14945_v55 }
0x16ab   :  { %11869 = vmatpush1.bf16.msra.mxu1 %v14916_v11 }
0x16ac   :  { %11871 = vmatprep.subr.bf16.mxu1 %v14922_v5 }
0x16ad   :  { %11841 = vmatpush1.bf16.msra.mxu0 %v14952_v42 }
0x16ae   :  { %11843 = vmatprep.subr.bf16.mxu0 %v14955_v31 }
0x16af   :  { %11873 = vmatpush1.bf16.msra.mxu1 %v14924_v58 }
0x16b0   :  { %11875 = vmatprep.subr.bf16.mxu1 %v14930_v51 }
0x16b1   :  { %11845 = vmatpush1.bf16.msra.mxu0 %v14959_v39 }
0x16b2   :  { %11847 = vmatprep.subr.bf16.mxu0 %v14962_v14 }
0x16b3   :  { %11877 = vmatpush1.bf16.msra.mxu1 %v14936_v40 }
0x16b4   :  { %11879 = vmatprep.subr.bf16.mxu1 %v14939_v8 }
0x16b5   :  { %11849 = vmatpush1.bf16.msra.mxu0 %v14965_v33 }
0x16b6   :  { %11883 = vmatprep.subr.bf16.mxu0 %v14900_v12 }
0x16b7   :  { %11881 = vmatpush1.bf16.msra.mxu1 %v14948_v22 }
0x16b8   :  { %11915 = vmatprep.subr.bf16.mxu1 %v14995_v20 }
0x176b   :  { %v6682_v34 = vpop.f32.mrb[38].mxu0  ;;  %v6753_v60 = vpop.f32.mrb[58].mxu1 }
0x176c   :  { %v6684_v32 = vpop.f32.mrb[39].mxu0  ;;  %v6755_v7 = vpop.f32.mrb[59].mxu1 }
0x176d   :  { %v6762_v59 = vcombine.low %v6682_v34, %v6684_v32  ;;  %v6763_v63 = vcombine.low %v6753_v60, %v6755_v7 }
0x176f   :  { %v6770_v61 = vrot.slane %v6762_v59, %v13929_v21  ;;  %v6777_v52 = vrot.slane %v6763_v63, %v13929_v21 }
0x1771   :  { %v6778_v26 = vcombine.low %v6770_v61, %v6777_v52 }
0x1773   :  { %v6785_v29 = vrot.slane %v6778_v26, %v13929_v21 }
0x1775   :  { %v6787_v36 = vadd.f32 %v6785_v29, %v6551_v15 }
0x1777   :  { %v10439_v57 = vmul.f32 -1.442695, %v6787_v36  ;;  %v6795_v3 = vrot.slane %v6787_v36, 1  ;;  %v6806_v48 = vrot.slane %v6787_v36, 3  ;;  %v6803_v62 = vrot.slane %v6787_v36, 2 }
0x1779   :  { %13194 = vpow2.f32 %v10439_v57  ;;  %v10440_v45 = vmul.f32 -1.442695, %v6795_v3  ;;  %v10441_v4 = vmul.f32 -1.442695, %v6806_v48 }
0x177a   :  { %v6821_v3 = vld [vmem:[#allocation2 + $0x44] ss:$8 sm:$0xf] }
0x177b   :  { %13196 = vpow2.f32 %v10440_v45 }
0x177c   :  { %13198 = vpow2.f32 %v10441_v4 }
0x1783   :  { %v13195_v18 = vpop.eup %13194 }
0x1784   :  { %v6791_v24 = vadd.f32 1.0, %v13195_v18 }
0x1785   :  { %v13197_v10 = vpop.eup %13196 }
0x1786   :  { %13200 = vrcp.f32 %v6791_v24  ;;  %v6800_v6 = vadd.f32 1.0, %v13197_v10  ;;  %v13199_v54 = vpop.eup %13198 }
0x1787   :  { %13202 = vtanh.f32 %v6803_v62  ;;  %v6811_v30 = vadd.f32 1.0, %v13199_v54 }
0x1788   :  { %13204 = vrcp.f32 %v6800_v6 }
0x1789   :  { %13206 = vrcp.f32 %v6811_v30 }
0x1790   :  { %v13201_v50 = vpop.eup %13200 }
0x1791   :  { %v13203_v16 = vpop.eup %13202 }
0x1792   :  { %v13205_v43 = vpop.eup %13204  ;;  %v6815_v25 = vmul.f32 %v13203_v16, %v13201_v50 }
0x1793   :  { %v6814_v44 = vmul.f32 %v13205_v43, %v14974_v46  ;;  %v13207_v60 = vpop.eup %13206 }
0x1795   :  { %v15034_v34 = vadd.f32 %v6815_v25, %v6814_v44 }
0x1797   :  { %13208 = vtanh.f32 %v15034_v34 }
0x17a1   :  { %v13209_v32 = vpop.eup %13208 }
0x17a2   :  { %v6818_v7 = vmul.f32 %v13209_v32, %v13207_v60 }
0x17a4   :  { %6819 = vst [vmem:[#allocation3 + $0x13] sm:$0x1] %v6818_v7  ;;  %6951 = vmatmul.mubr.f32.vlgmr.msra.gmra.mrb[40].mxu0 %v6818_v7  ;;  %7022 = vmatmul.mubr.f32.vlgmr.msra.gmra.mrb[60].mxu1 %v6818_v7 }
0x17a5   :  { %11885 = vmatpush1.bf16.msra.mxu0 %v14902_v23  ;;  %11917 = vmatpush1.bf16.msra.mxu1 %v14997_v37 }
0x17a6   :  { %11887 = vmatprep.subr.bf16.mxu0 %v14905_v17  ;;  %11919 = vmatprep.subr.bf16.mxu1 %v15000_v27 }
0x17a7   :  { %7220 = vmatprep.mubr.f32.mxu0 %v13602_v2  ;;  %7291 = vmatprep.mubr.f32.mxu1 %v13602_v2 }
0x17a9   :  { %11889 = vmatpush1.bf16.msra.mxu0 %v14908_v41  ;;  %11921 = vmatpush1.bf16.msra.mxu1 %v15003_v47 }
0x17aa   :  { %11891 = vmatprep.subr.bf16.mxu0 %v14911_v0  ;;  %11923 = vmatprep.subr.bf16.mxu1 %v15006_v9 }
0x17ad   :  { %11893 = vmatpush1.bf16.msra.mxu0 %v14914_v49  ;;  %11925 = vmatpush1.bf16.msra.mxu1 %v15009_v19 }
0x17ae   :  { %11895 = vmatprep.subr.bf16.mxu0 %v14919_v38  ;;  %11927 = vmatprep.subr.bf16.mxu1 %v15012_v13 }
0x17b1   :  { %11897 = vmatpush1.bf16.msra.mxu0 %v14927_v1  ;;  %11929 = vmatpush1.bf16.msra.mxu1 %v15015_v35 }
0x17b2   :  { %11899 = vmatprep.subr.bf16.mxu0 %v14933_v28  ;;  %11931 = vmatprep.subr.bf16.mxu1 %v15018_v53 }
0x17b5   :  { %11901 = vmatpush1.bf16.msra.mxu0 %v14942_v56  ;;  %11933 = vmatpush1.bf16.msra.mxu1 %v14916_v11 }
0x17b6   :  { %11903 = vmatprep.subr.bf16.mxu0 %v14945_v55  ;;  %11935 = vmatprep.subr.bf16.mxu1 %v14922_v5 }
0x17b9   :  { %11905 = vmatpush1.bf16.msra.mxu0 %v14952_v42  ;;  %11937 = vmatpush1.bf16.msra.mxu1 %v14924_v58 }
0x17ba   :  { %11907 = vmatprep.subr.bf16.mxu0 %v14955_v31  ;;  %11939 = vmatprep.subr.bf16.mxu1 %v14930_v51 }
0x17bd   :  { %11909 = vmatpush1.bf16.msra.mxu0 %v14959_v39  ;;  %11941 = vmatpush1.bf16.msra.mxu1 %v14936_v40 }
0x17be   :  { %11911 = vmatprep.subr.bf16.mxu0 %v14962_v14  ;;  %11943 = vmatprep.subr.bf16.mxu1 %v14939_v8 }
0x17c1   :  { %11913 = vmatpush1.bf16.msra.mxu0 %v14965_v33  ;;  %11945 = vmatpush1.bf16.msra.mxu1 %v14948_v22 }
0x17c2   :  { %11947 = vmatprep.subr.bf16.mxu0 %v14900_v12  ;;  %11979 = vmatprep.subr.bf16.mxu1 %v14995_v20 }
0x1877   :  { %v6952_v46 = vpop.f32.mrb[40].mxu0  ;;  %v7023_v59 = vpop.f32.mrb[60].mxu1 }
0x1878   :  { %v6954_v63 = vpop.f32.mrb[41].mxu0  ;;  %v7025_v61 = vpop.f32.mrb[61].mxu1 }
0x1879   :  { %v7032_v52 = vcombine.low %v6952_v46, %v6954_v63  ;;  %v7033_v26 = vcombine.low %v7023_v59, %v7025_v61 }
0x187b   :  { %v7040_v29 = vrot.slane %v7032_v52, %v13929_v21  ;;  %v7047_v15 = vrot.slane %v7033_v26, %v13929_v21 }
0x187d   :  { %v7048_v36 = vcombine.low %v7040_v29, %v7047_v15 }
0x187f   :  { %v7055_v57 = vrot.slane %v7048_v36, %v13929_v21 }
0x1881   :  { %v7057_v45 = vadd.f32 %v7055_v57, %v6821_v3 }
0x1883   :  { %v10442_v48 = vmul.f32 -1.442695, %v7057_v45  ;;  %v7065_v4 = vrot.slane %v7057_v45, 1  ;;  %v7076_v18 = vrot.slane %v7057_v45, 3  ;;  %v7073_v10 = vrot.slane %v7057_v45, 2 }
0x1885   :  { %13210 = vpow2.f32 %v10442_v48  ;;  %v10443_v12 = vmul.f32 -1.442695, %v7065_v4  ;;  %v10444_v62 = vmul.f32 -1.442695, %v7076_v18  ;;  %v7633_v48 = vld [vmem:[#allocation13 + $0x8] sm:$0xff] }
0x1887   :  { %13212 = vpow2.f32 %v10443_v12  ;;  %v7632_v12 = vld [vmem:[#allocation13] sm:$0xff] }
0x1888   :  { %13214 = vpow2.f32 %v10444_v62  ;;  %v7641_v62 = vld [vmem:[#allocation13 + $0x48] sm:$0xff] }
0x188f   :  { %v13211_v24 = vpop.eup %13210 }
0x1890   :  { %v7061_v6 = vadd.f32 1.0, %v13211_v24  ;;  %v7640_v24 = vld [vmem:[#allocation13 + $0x40] sm:$0xff] }
0x1891   :  { %v13213_v54 = vpop.eup %13212 }
0x1892   :  { %13216 = vrcp.f32 %v7061_v6  ;;  %v7070_v50 = vadd.f32 1.0, %v13213_v54  ;;  %v13215_v16 = vpop.eup %13214  ;;  %v7648_v6 = vld [vmem:[#allocation13 + $0x80] sm:$0xff] }
0x1893   :  { %13218 = vtanh.f32 %v7073_v10  ;;  %v7081_v25 = vadd.f32 1.0, %v13215_v16  ;;  %v7652_v54 = vld [vmem:[#allocation13 + $0xa0] sm:$0xff]  ;;  %v7661_v16 = vld [vmem:[#allocation13 + $0xe8] sm:$0xff] }
0x1894   :  { %13220 = vrcp.f32 %v7070_v50  ;;  %v7657_v50 = vld [vmem:[#allocation13 + $0xc8] sm:$0xff] }
0x1895   :  { %13222 = vrcp.f32 %v7081_v25  ;;  %v7656_v25 = vld [vmem:[#allocation13 + $0xc0] sm:$0xff] }
0x189c   :  { %v13217_v43 = vpop.eup %13216 }
0x189d   :  { %v13219_v30 = vpop.eup %13218 }
0x189e   :  { %v13221_v44 = vpop.eup %13220  ;;  %v7085_v32 = vmul.f32 %v13219_v30, %v13217_v43  ;;  %v7666_v43 = vld [vmem:[#allocation13 + $0x110] sm:$0xff] }
0x189f   :  { %v7084_v60 = vmul.f32 %v13221_v44, %v15034_v34  ;;  %v13223_v46 = vpop.eup %13222  ;;  %v7670_v30 = vld [vmem:[#allocation13 + $0x130] sm:$0xff]  ;;  %v15142_v44 = vpack.c.bf16 %v7652_v54, %v7648_v6 }
0x18a1   :  { %v15075_v7 = vadd.f32 %v7085_v32, %v7084_v60  ;;  %v15144_v60 = vpack.c.bf16 %v7670_v30, %v7666_v43  ;;  %v7675_v32 = vld [vmem:[#allocation13 + $0x158] sm:$0xff] }
0x18a3   :  { %13224 = vtanh.f32 %v15075_v7 }
0x18ad   :  { %v13225_v59 = vpop.eup %13224 }
0x18ae   :  { %v7088_v63 = vmul.f32 %v13225_v59, %v13223_v46  ;;  %v7660_v46 = vld [vmem:[#allocation13 + $0xe0] sm:$0xff]  ;;  %v7665_v59 = vld [vmem:[#allocation13 + $0x108] sm:$0xff] }
0x18b0   :  { %7089 = vst [vmem:[#allocation3 + $0x14] sm:$0x1] %v7088_v63  ;;  %7221 = vmatmul.mubr.f32.vlgmr.msra.gmra.mrb[42].mxu0 %v7088_v63  ;;  %7292 = vmatmul.mubr.f32.vlgmr.msra.gmra.mrb[62].mxu1 %v7088_v63  ;;  %v7679_v63 = vld [vmem:[#allocation13 + $0x178] sm:$0xff] }
0x18b1   :  { %11949 = vmatpush1.bf16.msra.mxu0 %v14902_v23  ;;  %11981 = vmatpush1.bf16.msra.mxu1 %v14997_v37 }
0x18b2   :  { %11951 = vmatprep.subr.bf16.mxu0 %v14905_v17  ;;  %11983 = vmatprep.subr.bf16.mxu1 %v15000_v27 }
0x18b3   :  { %7490 = vmatprep.mubr.f32.mxu0 %v13602_v2  ;;  %7561 = vmatprep.mubr.f32.mxu1 %v13602_v2 }
0x18b5   :  { %11953 = vmatpush1.bf16.msra.mxu0 %v14908_v41  ;;  %11985 = vmatpush1.bf16.msra.mxu1 %v15003_v47 }
0x18b6   :  { %11955 = vmatprep.subr.bf16.mxu0 %v14911_v0  ;;  %11987 = vmatprep.subr.bf16.mxu1 %v15006_v9 }
0x18b9   :  { %11957 = vmatpush1.bf16.msra.mxu0 %v14914_v49  ;;  %11989 = vmatpush1.bf16.msra.mxu1 %v15009_v19 }
0x18ba   :  { %11959 = vmatprep.subr.bf16.mxu0 %v14919_v38  ;;  %11991 = vmatprep.subr.bf16.mxu1 %v15012_v13 }
0x18bd   :  { %11961 = vmatpush1.bf16.msra.mxu0 %v14927_v1  ;;  %11993 = vmatpush1.bf16.msra.mxu1 %v15015_v35 }
0x18be   :  { %11963 = vmatprep.subr.bf16.mxu0 %v14933_v28  ;;  %11995 = vmatprep.subr.bf16.mxu1 %v15018_v53 }
0x18c1   :  { %11965 = vmatpush1.bf16.msra.mxu0 %v14942_v56  ;;  %11997 = vmatpush1.bf16.msra.mxu1 %v14916_v11 }
0x18c2   :  { %11967 = vmatprep.subr.bf16.mxu0 %v14945_v55  ;;  %11999 = vmatprep.subr.bf16.mxu1 %v14922_v5 }
0x18c5   :  { %11969 = vmatpush1.bf16.msra.mxu0 %v14952_v42  ;;  %12001 = vmatpush1.bf16.msra.mxu1 %v14924_v58 }
0x18c6   :  { %11971 = vmatprep.subr.bf16.mxu0 %v14955_v31  ;;  %12003 = vmatprep.subr.bf16.mxu1 %v14930_v51  ;;  %v7091_v51 = vld [vmem:[#allocation2 + $0x45] ss:$8 sm:$0xf] }
0x18c9   :  { %11973 = vmatpush1.bf16.msra.mxu0 %v14959_v39  ;;  %12005 = vmatpush1.bf16.msra.mxu1 %v14936_v40 }
0x18ca   :  { %11975 = vmatprep.subr.bf16.mxu0 %v14962_v14  ;;  %12007 = vmatprep.subr.bf16.mxu1 %v14939_v8 }
0x18cd   :  { %11977 = vmatpush1.bf16.msra.mxu0 %v14965_v33  ;;  %12009 = vmatpush1.bf16.msra.mxu1 %v14948_v22 }
0x18ce   :  { %12043 = vmatprep.subr.bf16.mxu1 %v14995_v20 }
0x1983   :  { %v7222_v23 = vpop.f32.mrb[42].mxu0  ;;  %v7293_v17 = vpop.f32.mrb[62].mxu1 }
0x1984   :  { %v7224_v41 = vpop.f32.mrb[43].mxu0  ;;  %v7295_v0 = vpop.f32.mrb[63].mxu1 }
0x1985   :  { %v7302_v49 = vcombine.low %v7222_v23, %v7224_v41  ;;  %v7303_v11 = vcombine.low %v7293_v17, %v7295_v0  ;;  %v7669_v23 = vld [vmem:[#allocation13 + $0x128] sm:$0xff]  ;;  %v15150_v17 = vpack.c.bf16 %v7679_v63, %v7675_v32  ;;  %v7674_v41 = vld [vmem:[#allocation13 + $0x150] sm:$0xff] }
0x1986   :  { %v7678_v0 = vld [vmem:[#allocation13 + $0x170] sm:$0xff] }
0x1987   :  { %v7310_v38 = vrot.slane %v7302_v49, %v13929_v21  ;;  %v7317_v5 = vrot.slane %v7303_v11, %v13929_v21  ;;  %v15152_v49 = vpack.c.bf16 %v7678_v0, %v7674_v41  ;;  %v7683_v11 = vld [vmem:[#allocation13 + $0x198] sm:$0xff] }
0x1989   :  { %v7318_v58 = vcombine.low %v7310_v38, %v7317_v5  ;;  %v7687_v38 = vld [vmem:[#allocation13 + $0x1b8] sm:$0xff]  ;;  %v15155_v5 = vpack.c.bf16 %v7660_v46, %v7656_v25 }
0x198a   :  { %v7361_v46 = vld [vmem:[#allocation2 + $0x46] ss:$8 sm:$0xf] }
0x198b   :  { %v7325_v1 = vrot.slane %v7318_v58, %v13929_v21  ;;  %v7664_v58 = vld [vmem:[#allocation13 + $0x100] sm:$0xff] }
0x198d   :  { %v7327_v28 = vadd.f32 %v7325_v1, %v7091_v51  ;;  %v15158_v1 = vpack.c.bf16 %v7687_v38, %v7683_v11  ;;  %v7682_v51 = vld [vmem:[#allocation13 + $0x190] sm:$0xff] }
0x198f   :  { %v10445_v40 = vmul.f32 -1.442695, %v7327_v28  ;;  %v7335_v8 = vrot.slane %v7327_v28, 1  ;;  %v7346_v55 = vrot.slane %v7327_v28, 3  ;;  %v7343_v31 = vrot.slane %v7327_v28, 2 }
0x1990   :  { %v15161_v28 = vpack.c.bf16 %v7669_v23, %v7665_v59 }
0x1991   :  { %13226 = vpow2.f32 %v10445_v40  ;;  %v10446_v56 = vmul.f32 -1.442695, %v7335_v8  ;;  %v10447_v22 = vmul.f32 -1.442695, %v7346_v55  ;;  %v7668_v40 = vld [vmem:[#allocation13 + $0x120] sm:$0xff]  ;;  %v7673_v8 = vld [vmem:[#allocation13 + $0x148] sm:$0xff] }
0x1992   :  { %v7677_v55 = vld [vmem:[#allocation13 + $0x168] sm:$0xff] }
0x1993   :  { %13228 = vpow2.f32 %v10446_v56  ;;  %v7686_v56 = vld [vmem:[#allocation13 + $0x1b0] sm:$0xff] }
0x1994   :  { %13230 = vpow2.f32 %v10447_v22  ;;  %v15164_v22 = vpack.c.bf16 %v7686_v56, %v7682_v51 }
0x199b   :  { %v13227_v42 = vpop.eup %13226 }
0x199c   :  { %v7331_v39 = vadd.f32 1.0, %v13227_v42  ;;  %v7691_v42 = vld [vmem:[#allocation13 + $0x1d8] sm:$0xff] }
0x199d   :  { %v13229_v14 = vpop.eup %13228 }
0x199e   :  { %13232 = vrcp.f32 %v7331_v39  ;;  %v7340_v33 = vadd.f32 1.0, %v13229_v14  ;;  %v13231_v20 = vpop.eup %13230  ;;  %v7690_v14 = vld [vmem:[#allocation13 + $0x1d0] sm:$0xff] }
0x199f   :  { %13234 = vtanh.f32 %v7343_v31  ;;  %v7351_v26 = vadd.f32 1.0, %v13231_v20  ;;  %v7695_v31 = vld [vmem:[#allocation13 + $0x1f8] sm:$0xff]  ;;  %v15170_v20 = vpack.c.bf16 %v7668_v40, %v7664_v58 }
0x19a0   :  { %13236 = vrcp.f32 %v7340_v33  ;;  %v15167_v39 = vpack.c.bf16 %v7695_v31, %v7691_v42  ;;  %v7694_v33 = vld [vmem:[#allocation13 + $0x1f0] sm:$0xff] }
0x19a1   :  { %13238 = vrcp.f32 %v7351_v26  ;;  %v7681_v26 = vld [vmem:[#allocation13 + $0x188] sm:$0xff] }
0x19a8   :  { %v13233_v34 = vpop.eup %13232 }
0x19a9   :  { %v13235_v61 = vpop.eup %13234 }
0x19aa   :  { %v13237_v52 = vpop.eup %13236  ;;  %v7355_v15 = vmul.f32 %v13235_v61, %v13233_v34  ;;  %v15173_v34 = vpack.c.bf16 %v7677_v55, %v7673_v8  ;;  %v7672_v61 = vld [vmem:[#allocation13 + $0x140] sm:$0xff] }
0x19ab   :  { %v7354_v29 = vmul.f32 %v13237_v52, %v15075_v7  ;;  %v13239_v57 = vpop.eup %13238  ;;  %v15147_v7 = vpack.c.bf16 %v7661_v16, %v7657_v50  ;;  %v7676_v52 = vld [vmem:[#allocation13 + $0x160] sm:$0xff] }
0x19ad   :  { %v15115_v36 = vadd.f32 %v7355_v15, %v7354_v29  ;;  %v7685_v29 = vld [vmem:[#allocation13 + $0x1a8] sm:$0xff]  ;;  %v15176_v15 = vpack.c.bf16 %v7694_v33, %v7690_v14 }
0x19af   :  { %13240 = vtanh.f32 %v15115_v36 }
0x19b9   :  { %v13241_v3 = vpop.eup %13240 }
0x19ba   :  { %v7358_v45 = vmul.f32 %v13241_v3, %v13239_v57  ;;  %v15180_v57 = vpack.c.bf16 %v7676_v52, %v7672_v61  ;;  %v15183_v3 = vpack.c.bf16 %v7685_v29, %v7681_v26 }
0x19bc   :  { %7359 = vst [vmem:[#allocation3 + $0x15] sm:$0x1] %v7358_v45  ;;  %7491 = vmatmul.mubr.f32.vlgmr.msra.gmra.mrb[44].mxu0 %v7358_v45  ;;  %7562 = vmatmul.mubr.f32.vlgmr.msra.gmra.mrb[64].mxu1 %v7358_v45  ;;  %v7680_v45 = vld [vmem:[#allocation13 + $0x180] sm:$0xff] }
0x19bd   :  { %12045 = vmatpush1.bf16.msra.mxu1 %v14997_v37  ;;  %7760 = vmatprep.mubr.f32.mxu0 %v13602_v2  ;;  %v7637_v37 = vld [vmem:[#allocation13 + $0x28] sm:$0xff] }
0x19be   :  { %12047 = vmatprep.subr.bf16.mxu1 %v15000_v27  ;;  %7831 = vmatprep.mubr.f32.mxu1 %v13602_v2  ;;  %v15128_v4 = vpack.c.bf16 %v7637_v37, %v7633_v48  ;;  %v7636_v27 = vld [vmem:[#allocation13 + $0x20] sm:$0xff]  ;;  %v7689_v37 = vld [vmem:[#allocation13 + $0x1c8] sm:$0xff] }
0x19bf   :  { %v15130_v18 = vpack.c.bf16 %v7636_v27, %v7632_v12  ;;  %v7684_v48 = vld [vmem:[#allocation13 + $0x1a0] sm:$0xff]  ;;  %v7693_v12 = vld [vmem:[#allocation13 + $0x1e8] sm:$0xff] }
0x19c0   :  { %12011 = vmatprep.subr.bf16.mxu0 %v15128_v4  ;;  %v15187_v27 = vpack.c.bf16 %v7684_v48, %v7680_v45  ;;  %v7909_v48 = vld [vmem:[#allocation13 + $0x38] sm:$0xff] }
0x19c1   :  { %12049 = vmatpush1.bf16.msra.mxu1 %v15003_v47  ;;  %v7645_v47 = vld [vmem:[#allocation13 + $0x68] sm:$0xff]  ;;  %12013 = vmatpush1.bf16.msra.mxu0 %v15130_v18 }
0x19c2   :  { %12051 = vmatprep.subr.bf16.mxu1 %v15006_v9  ;;  %v15133_v9 = vpack.c.bf16 %v7645_v47, %v7641_v62  ;;  %v15190_v62 = vpack.c.bf16 %v7693_v12, %v7689_v37  ;;  %v7688_v47 = vld [vmem:[#allocation13 + $0x1c0] sm:$0xff]  ;;  %v7904_v12 = vld [vmem:[#allocation13 + $0x10] sm:$0xff] }
0x19c4   :  { %12015 = vmatprep.subr.bf16.mxu0 %v15133_v9 }
0x19c5   :  { %12053 = vmatpush1.bf16.msra.mxu1 %v15009_v19  ;;  %v7644_v19 = vld [vmem:[#allocation13 + $0x60] sm:$0xff] }
0x19c6   :  { %12055 = vmatprep.subr.bf16.mxu1 %v15012_v13  ;;  %v7649_v13 = vld [vmem:[#allocation13 + $0x88] sm:$0xff] }
0x19c9   :  { %12057 = vmatpush1.bf16.msra.mxu1 %v15015_v35  ;;  %v7653_v35 = vld [vmem:[#allocation13 + $0xa8] sm:$0xff] }
0x19ca   :  { %12059 = vmatprep.subr.bf16.mxu1 %v15018_v53  ;;  %v15136_v53 = vpack.c.bf16 %v7644_v19, %v7640_v24  ;;  %v15139_v10 = vpack.c.bf16 %v7653_v35, %v7649_v13  ;;  %v7692_v24 = vld [vmem:[#allocation13 + $0x1e0] sm:$0xff] }
0x19cb   :  { %v15193_v19 = vpack.c.bf16 %v7692_v24, %v7688_v47  ;;  %v7908_v47 = vld [vmem:[#allocation13 + $0x30] sm:$0xff] }
0x19cc   :  { %12017 = vmatpush1.bf16.msra.mxu0 %v15136_v53  ;;  %v15225_v24 = vpack.c.bf16 %v7908_v47, %v7904_v12 }
0x19cd   :  { %12019 = vmatprep.subr.bf16.mxu0 %v15139_v10  ;;  %12061 = vmatpush1.bf16.msra.mxu1 %v15144_v60 }
0x19ce   :  { %12063 = vmatprep.subr.bf16.mxu1 %v15150_v17 }
0x19d0   :  { %12021 = vmatpush1.bf16.msra.mxu0 %v15142_v44 }
0x19d1   :  { %12023 = vmatprep.subr.bf16.mxu0 %v15147_v7  ;;  %12065 = vmatpush1.bf16.msra.mxu1 %v15152_v49 }
0x19d2   :  { %12067 = vmatprep.subr.bf16.mxu1 %v15158_v1 }
0x19d4   :  { %12025 = vmatpush1.bf16.msra.mxu0 %v15155_v5 }
0x19d5   :  { %12027 = vmatprep.subr.bf16.mxu0 %v15161_v28  ;;  %12069 = vmatpush1.bf16.msra.mxu1 %v15164_v22 }
0x19d6   :  { %12071 = vmatprep.subr.bf16.mxu1 %v15167_v39 }
0x19d8   :  { %12029 = vmatpush1.bf16.msra.mxu0 %v15170_v20 }
0x19d9   :  { %12031 = vmatprep.subr.bf16.mxu0 %v15173_v34  ;;  %12073 = vmatpush1.bf16.msra.mxu1 %v15176_v15 }
0x19dc   :  { %12033 = vmatpush1.bf16.msra.mxu0 %v15180_v57 }
0x19dd   :  { %12035 = vmatprep.subr.bf16.mxu0 %v15183_v3 }
0x19e0   :  { %12037 = vmatpush1.bf16.msra.mxu0 %v15187_v27 }
0x19e1   :  { %12039 = vmatprep.subr.bf16.mxu0 %v15190_v62 }
0x19e4   :  { %12041 = vmatpush1.bf16.msra.mxu0 %v15193_v19 }
0x19e5   :  { %12075 = vmatprep.subr.bf16.mxu0 %v15128_v4 }
0x1a8f   :  { %v7492_v13 = vpop.f32.mrb[44].mxu0  ;;  %v7563_v35 = vpop.f32.mrb[64].mxu1 }
0x1a90   :  { %v7494_v6 = vpop.f32.mrb[45].mxu0  ;;  %v7565_v54 = vpop.f32.mrb[65].mxu1 }
0x1a91   :  { %v7572_v50 = vcombine.low %v7492_v13, %v7494_v6  ;;  %v7573_v16 = vcombine.low %v7563_v35, %v7565_v54  ;;  %v7913_v13 = vld [vmem:[#allocation13 + $0x58] sm:$0xff]  ;;  %v7912_v6 = vld [vmem:[#allocation13 + $0x50] sm:$0xff] }
0x1a92   :  { %v7917_v35 = vld [vmem:[#allocation13 + $0x78] sm:$0xff] }
0x1a93   :  { %v7580_v43 = vrot.slane %v7572_v50, %v13929_v21  ;;  %v7587_v30 = vrot.slane %v7573_v16, %v13929_v21  ;;  %v15228_v54 = vpack.c.bf16 %v7917_v35, %v7913_v13  ;;  %v7916_v50 = vld [vmem:[#allocation13 + $0x70] sm:$0xff]  ;;  %v7921_v16 = vld [vmem:[#allocation13 + $0x98] sm:$0xff] }
0x1a95   :  { %v7588_v25 = vcombine.low %v7580_v43, %v7587_v30  ;;  %v7925_v43 = vld [vmem:[#allocation13 + $0xb8] sm:$0xff]  ;;  %v15231_v30 = vpack.c.bf16 %v7916_v50, %v7912_v6 }
0x1a97   :  { %v7595_v32 = vrot.slane %v7588_v25, %v13929_v21  ;;  %v15234_v25 = vpack.c.bf16 %v7925_v43, %v7921_v16 }
0x1a99   :  { %v7597_v59 = vadd.f32 %v7595_v32, %v7361_v46  ;;  %v7920_v32 = vld [vmem:[#allocation13 + $0x90] sm:$0xff] }
0x1a9a   :  { %v7924_v46 = vld [vmem:[#allocation13 + $0xb0] sm:$0xff] }
0x1a9b   :  { %v10448_v63 = vmul.f32 -1.442695, %v7597_v59  ;;  %v7605_v23 = vrot.slane %v7597_v59, 1  ;;  %v7616_v0 = vrot.slane %v7597_v59, 3  ;;  %v7613_v58 = vrot.slane %v7597_v59, 2  ;;  %v7929_v59 = vld [vmem:[#allocation13 + $0xd8] sm:$0xff] }
0x1a9d   :  { %13242 = vpow2.f32 %v10448_v63  ;;  %v10449_v41 = vmul.f32 -1.442695, %v7605_v23  ;;  %v10450_v11 = vmul.f32 -1.442695, %v7616_v0  ;;  %v7933_v63 = vld [vmem:[#allocation13 + $0xf8] sm:$0xff]  ;;  %v15237_v23 = vpack.c.bf16 %v7924_v46, %v7920_v32  ;;  %v7928_v0 = vld [vmem:[#allocation13 + $0xd0] sm:$0xff] }
0x1a9f   :  { %13244 = vpow2.f32 %v10449_v41  ;;  %v15240_v41 = vpack.c.bf16 %v7933_v63, %v7929_v59 }
0x1aa0   :  { %13246 = vpow2.f32 %v10450_v11  ;;  %v7932_v11 = vld [vmem:[#allocation13 + $0xf0] sm:$0xff] }
0x1aa7   :  { %v13243_v38 = vpop.eup %13242 }
0x1aa8   :  { %v7601_v51 = vadd.f32 1.0, %v13243_v38  ;;  %v7937_v38 = vld [vmem:[#allocation13 + $0x118] sm:$0xff] }
0x1aa9   :  { %v13245_v40 = vpop.eup %13244 }
0x1aaa   :  { %13248 = vrcp.f32 %v7601_v51  ;;  %v7610_v8 = vadd.f32 1.0, %v13245_v40  ;;  %v13247_v56 = vpop.eup %13246  ;;  %v15243_v51 = vpack.c.bf16 %v7932_v11, %v7928_v0 }
0x1aab   :  { %13250 = vtanh.f32 %v7613_v58  ;;  %v7621_v14 = vadd.f32 1.0, %v13247_v56  ;;  %v7941_v58 = vld [vmem:[#allocation13 + $0x138] sm:$0xff] }
0x1aac   :  { %13252 = vrcp.f32 %v7610_v8  ;;  %v15246_v40 = vpack.c.bf16 %v7941_v58, %v7937_v38 }
0x1aad   :  { %13254 = vrcp.f32 %v7621_v14 }
0x1ab4   :  { %v13249_v55 = vpop.eup %13248 }
0x1ab5   :  { %v13251_v42 = vpop.eup %13250 }
0x1ab6   :  { %v13253_v31 = vpop.eup %13252  ;;  %v7625_v61 = vmul.f32 %v13251_v42, %v13249_v55 }
0x1ab7   :  { %v7624_v33 = vmul.f32 %v13253_v31, %v15115_v36  ;;  %v13255_v26 = vpop.eup %13254  ;;  %v7905_v36 = vld [vmem:[#allocation13 + $0x18] sm:$0xff] }
0x1ab8   :  { %v15223_v37 = vpack.c.bf16 %v7909_v48, %v7905_v36 }
0x1ab9   :  { %v15202_v52 = vadd.f32 %v7625_v61, %v7624_v33 }
0x1aba   :  { %12107 = vmatprep.subr.bf16.mxu1 %v15223_v37 }
0x1abb   :  { %13256 = vtanh.f32 %v15202_v52 }
0x1ac5   :  { %v13257_v29 = vpop.eup %13256 }
0x1ac6   :  { %v7628_v45 = vmul.f32 %v13257_v29, %v13255_v26 }
0x1ac8   :  { %7629 = vst [vmem:[#allocation3 + $0x16] sm:$0x1] %v7628_v45  ;;  %7761 = vmatmul.mubr.f32.vlgmr.msra.gmra.mrb[46].mxu0 %v7628_v45  ;;  %7832 = vmatmul.mubr.f32.vlgmr.msra.gmra.mrb[66].mxu1 %v7628_v45  ;;  %v7631_v45 = vld [vmem:[#allocation2 + $0x47] ss:$8 sm:$0xf] }
0x1ac9   :  { %12077 = vmatpush1.bf16.msra.mxu0 %v15130_v18  ;;  %8030 = vmatprep.mubr.f32.mxu0 %v13602_v2 }
0x1aca   :  { %12079 = vmatprep.subr.bf16.mxu0 %v15133_v9  ;;  %8101 = vmatprep.mubr.f32.mxu1 %v13602_v2 }
0x1acb   :  { %12109 = vmatpush1.bf16.msra.mxu1 %v15225_v24 }
0x1acc   :  { %12111 = vmatprep.subr.bf16.mxu1 %v15228_v54 }
0x1acd   :  { %12081 = vmatpush1.bf16.msra.mxu0 %v15136_v53 }
0x1ace   :  { %12083 = vmatprep.subr.bf16.mxu0 %v15139_v10 }
0x1acf   :  { %12113 = vmatpush1.bf16.msra.mxu1 %v15231_v30 }
0x1ad0   :  { %12115 = vmatprep.subr.bf16.mxu1 %v15234_v25 }
0x1ad1   :  { %12085 = vmatpush1.bf16.msra.mxu0 %v15142_v44 }
0x1ad2   :  { %12087 = vmatprep.subr.bf16.mxu0 %v15147_v7 }
0x1ad3   :  { %12117 = vmatpush1.bf16.msra.mxu1 %v15237_v23 }
0x1ad4   :  { %12119 = vmatprep.subr.bf16.mxu1 %v15240_v41 }
0x1ad5   :  { %12089 = vmatpush1.bf16.msra.mxu0 %v15155_v5 }
0x1ad6   :  { %12091 = vmatprep.subr.bf16.mxu0 %v15161_v28 }
0x1ad7   :  { %12121 = vmatpush1.bf16.msra.mxu1 %v15243_v51 }
0x1ad8   :  { %12123 = vmatprep.subr.bf16.mxu1 %v15246_v40 }
0x1ad9   :  { %12093 = vmatpush1.bf16.msra.mxu0 %v15170_v20 }
0x1ada   :  { %12095 = vmatprep.subr.bf16.mxu0 %v15173_v34 }
0x1adb   :  { %12125 = vmatpush1.bf16.msra.mxu1 %v15144_v60 }
0x1adc   :  { %12127 = vmatprep.subr.bf16.mxu1 %v15150_v17 }
0x1add   :  { %12097 = vmatpush1.bf16.msra.mxu0 %v15180_v57 }
0x1ade   :  { %12099 = vmatprep.subr.bf16.mxu0 %v15183_v3 }
0x1adf   :  { %12129 = vmatpush1.bf16.msra.mxu1 %v15152_v49 }
0x1ae0   :  { %12131 = vmatprep.subr.bf16.mxu1 %v15158_v1 }
0x1ae1   :  { %12101 = vmatpush1.bf16.msra.mxu0 %v15187_v27 }
0x1ae2   :  { %12103 = vmatprep.subr.bf16.mxu0 %v15190_v62 }
0x1ae3   :  { %12133 = vmatpush1.bf16.msra.mxu1 %v15164_v22 }
0x1ae4   :  { %12135 = vmatprep.subr.bf16.mxu1 %v15167_v39 }
0x1ae5   :  { %12105 = vmatpush1.bf16.msra.mxu0 %v15193_v19 }
0x1ae6   :  { %12139 = vmatprep.subr.bf16.mxu0 %v15128_v4 }
0x1ae7   :  { %12137 = vmatpush1.bf16.msra.mxu1 %v15176_v15 }
0x1ae8   :  { %12171 = vmatprep.subr.bf16.mxu1 %v15223_v37 }
0x1b9b   :  { %v7762_v8 = vpop.f32.mrb[46].mxu0  ;;  %v7833_v56 = vpop.f32.mrb[66].mxu1 }
0x1b9c   :  { %v7764_v55 = vpop.f32.mrb[47].mxu0  ;;  %v7835_v42 = vpop.f32.mrb[67].mxu1 }
0x1b9d   :  { %v7842_v31 = vcombine.low %v7762_v8, %v7764_v55  ;;  %v7843_v14 = vcombine.low %v7833_v56, %v7835_v42 }
0x1b9f   :  { %v7850_v33 = vrot.slane %v7842_v31, %v13929_v21  ;;  %v7857_v61 = vrot.slane %v7843_v14, %v13929_v21 }
0x1ba1   :  { %v7858_v26 = vcombine.low %v7850_v33, %v7857_v61 }
0x1ba3   :  { %v7865_v29 = vrot.slane %v7858_v26, %v13929_v21 }
0x1ba5   :  { %v7867_v36 = vadd.f32 %v7865_v29, %v7631_v45 }
0x1ba7   :  { %v10451_v48 = vmul.f32 -1.442695, %v7867_v36  ;;  %v7875_v12 = vrot.slane %v7867_v36, 1  ;;  %v7886_v13 = vrot.slane %v7867_v36, 3  ;;  %v7883_v50 = vrot.slane %v7867_v36, 2 }
0x1ba9   :  { %13258 = vpow2.f32 %v10451_v48  ;;  %v10452_v47 = vmul.f32 -1.442695, %v7875_v12  ;;  %v10453_v35 = vmul.f32 -1.442695, %v7886_v13 }
0x1baa   :  { %v7901_v12 = vld [vmem:[#allocation2 + $0x60] ss:$8 sm:$0xf] }
0x1bab   :  { %13260 = vpow2.f32 %v10452_v47 }
0x1bac   :  { %13262 = vpow2.f32 %v10453_v35 }
0x1bb3   :  { %v13259_v6 = vpop.eup %13258 }
0x1bb4   :  { %v7871_v16 = vadd.f32 1.0, %v13259_v6 }
0x1bb5   :  { %v13261_v43 = vpop.eup %13260 }
0x1bb6   :  { %13264 = vrcp.f32 %v7871_v16  ;;  %v7880_v32 = vadd.f32 1.0, %v13261_v43  ;;  %v13263_v46 = vpop.eup %13262 }
0x1bb7   :  { %13266 = vtanh.f32 %v7883_v50  ;;  %v7891_v11 = vadd.f32 1.0, %v13263_v46 }
0x1bb8   :  { %13268 = vrcp.f32 %v7880_v32 }
0x1bb9   :  { %13270 = vrcp.f32 %v7891_v11 }
0x1bc0   :  { %v13265_v59 = vpop.eup %13264 }
0x1bc1   :  { %v13267_v63 = vpop.eup %13266 }
0x1bc2   :  { %v13269_v0 = vpop.eup %13268  ;;  %v7895_v58 = vmul.f32 %v13267_v63, %v13265_v59 }
0x1bc3   :  { %v7894_v38 = vmul.f32 %v13269_v0, %v15202_v52  ;;  %v13271_v56 = vpop.eup %13270 }
0x1bc5   :  { %v15262_v8 = vadd.f32 %v7895_v58, %v7894_v38 }
0x1bc7   :  { %13272 = vtanh.f32 %v15262_v8 }
0x1bd1   :  { %v13273_v55 = vpop.eup %13272 }
0x1bd2   :  { %v7898_v42 = vmul.f32 %v13273_v55, %v13271_v56 }
0x1bd4   :  { %7899 = vst [vmem:[#allocation3 + $0x17] sm:$0x1] %v7898_v42  ;;  %8031 = vmatmul.mubr.f32.vlgmr.msra.gmra.mrb[48].mxu0 %v7898_v42  ;;  %8102 = vmatmul.mubr.f32.vlgmr.msra.gmra.mrb[68].mxu1 %v7898_v42 }
0x1bd5   :  { %12141 = vmatpush1.bf16.msra.mxu0 %v15130_v18  ;;  %12173 = vmatpush1.bf16.msra.mxu1 %v15225_v24 }
0x1bd6   :  { %12143 = vmatprep.subr.bf16.mxu0 %v15133_v9  ;;  %12175 = vmatprep.subr.bf16.mxu1 %v15228_v54 }
0x1bd7   :  { %8300 = vmatprep.mubr.f32.mxu0 %v13602_v2  ;;  %8371 = vmatprep.mubr.f32.mxu1 %v13602_v2 }
0x1bd9   :  { %12145 = vmatpush1.bf16.msra.mxu0 %v15136_v53  ;;  %12177 = vmatpush1.bf16.msra.mxu1 %v15231_v30 }
0x1bda   :  { %12147 = vmatprep.subr.bf16.mxu0 %v15139_v10  ;;  %12179 = vmatprep.subr.bf16.mxu1 %v15234_v25 }
0x1bdd   :  { %12149 = vmatpush1.bf16.msra.mxu0 %v15142_v44  ;;  %12181 = vmatpush1.bf16.msra.mxu1 %v15237_v23 }
0x1bde   :  { %12151 = vmatprep.subr.bf16.mxu0 %v15147_v7  ;;  %12183 = vmatprep.subr.bf16.mxu1 %v15240_v41 }
0x1be1   :  { %12153 = vmatpush1.bf16.msra.mxu0 %v15155_v5  ;;  %12185 = vmatpush1.bf16.msra.mxu1 %v15243_v51 }
0x1be2   :  { %12155 = vmatprep.subr.bf16.mxu0 %v15161_v28  ;;  %12187 = vmatprep.subr.bf16.mxu1 %v15246_v40 }
0x1be5   :  { %12157 = vmatpush1.bf16.msra.mxu0 %v15170_v20  ;;  %12189 = vmatpush1.bf16.msra.mxu1 %v15144_v60 }
0x1be6   :  { %12159 = vmatprep.subr.bf16.mxu0 %v15173_v34  ;;  %12191 = vmatprep.subr.bf16.mxu1 %v15150_v17 }
0x1be9   :  { %12161 = vmatpush1.bf16.msra.mxu0 %v15180_v57  ;;  %12193 = vmatpush1.bf16.msra.mxu1 %v15152_v49 }
0x1bea   :  { %12163 = vmatprep.subr.bf16.mxu0 %v15183_v3  ;;  %12195 = vmatprep.subr.bf16.mxu1 %v15158_v1 }
0x1bed   :  { %12165 = vmatpush1.bf16.msra.mxu0 %v15187_v27  ;;  %12197 = vmatpush1.bf16.msra.mxu1 %v15164_v22 }
0x1bee   :  { %12167 = vmatprep.subr.bf16.mxu0 %v15190_v62  ;;  %12199 = vmatprep.subr.bf16.mxu1 %v15167_v39 }
0x1bf1   :  { %12169 = vmatpush1.bf16.msra.mxu0 %v15193_v19  ;;  %12201 = vmatpush1.bf16.msra.mxu1 %v15176_v15 }
0x1bf2   :  { %12203 = vmatprep.subr.bf16.mxu0 %v15128_v4  ;;  %12235 = vmatprep.subr.bf16.mxu1 %v15223_v37 }
0x1ca7   :  { %v8032_v52 = vpop.f32.mrb[48].mxu0  ;;  %v8103_v31 = vpop.f32.mrb[68].mxu1 }
0x1ca8   :  { %v8034_v14 = vpop.f32.mrb[49].mxu0  ;;  %v8105_v33 = vpop.f32.mrb[69].mxu1 }
0x1ca9   :  { %v8112_v61 = vcombine.low %v8032_v52, %v8034_v14  ;;  %v8113_v26 = vcombine.low %v8103_v31, %v8105_v33 }
0x1cab   :  { %v8120_v29 = vrot.slane %v8112_v61, %v13929_v21  ;;  %v8127_v45 = vrot.slane %v8113_v26, %v13929_v21 }
0x1cad   :  { %v8128_v36 = vcombine.low %v8120_v29, %v8127_v45 }
0x1caf   :  { %v8135_v48 = vrot.slane %v8128_v36, %v13929_v21 }
0x1cb1   :  { %v8137_v47 = vadd.f32 %v8135_v48, %v7901_v12 }
0x1cb3   :  { %v10454_v13 = vmul.f32 -1.442695, %v8137_v47  ;;  %v8145_v35 = vrot.slane %v8137_v47, 1  ;;  %v8156_v6 = vrot.slane %v8137_v47, 3  ;;  %v8153_v43 = vrot.slane %v8137_v47, 2 }
0x1cb5   :  { %13274 = vpow2.f32 %v10454_v13  ;;  %v10455_v4 = vmul.f32 -1.442695, %v8145_v35  ;;  %v10456_v50 = vmul.f32 -1.442695, %v8156_v6  ;;  %v8713_v13 = vld [vmem:[#allocation13 + $0x8] sm:$0xff] }
0x1cb7   :  { %13276 = vpow2.f32 %v10455_v4  ;;  %v8712_v4 = vld [vmem:[#allocation13] sm:$0xff] }
0x1cb8   :  { %13278 = vpow2.f32 %v10456_v50  ;;  %v8721_v50 = vld [vmem:[#allocation13 + $0x48] sm:$0xff] }
0x1cbf   :  { %v13275_v16 = vpop.eup %13274 }
0x1cc0   :  { %v8141_v32 = vadd.f32 1.0, %v13275_v16  ;;  %v8720_v16 = vld [vmem:[#allocation13 + $0x40] sm:$0xff] }
0x1cc1   :  { %v13277_v46 = vpop.eup %13276 }
0x1cc2   :  { %13280 = vrcp.f32 %v8141_v32  ;;  %v8150_v59 = vadd.f32 1.0, %v13277_v46  ;;  %v13279_v63 = vpop.eup %13278  ;;  %v8728_v32 = vld [vmem:[#allocation13 + $0x80] sm:$0xff] }
0x1cc3   :  { %13282 = vtanh.f32 %v8153_v43  ;;  %v8161_v58 = vadd.f32 1.0, %v13279_v63  ;;  %v8732_v46 = vld [vmem:[#allocation13 + $0xa0] sm:$0xff]  ;;  %v8741_v63 = vld [vmem:[#allocation13 + $0xe8] sm:$0xff] }
0x1cc4   :  { %13284 = vrcp.f32 %v8150_v59  ;;  %v8737_v59 = vld [vmem:[#allocation13 + $0xc8] sm:$0xff] }
0x1cc5   :  { %13286 = vrcp.f32 %v8161_v58  ;;  %v8736_v58 = vld [vmem:[#allocation13 + $0xc0] sm:$0xff] }
0x1ccc   :  { %v13281_v0 = vpop.eup %13280 }
0x1ccd   :  { %v13283_v11 = vpop.eup %13282 }
0x1cce   :  { %v13285_v38 = vpop.eup %13284  ;;  %v8165_v55 = vmul.f32 %v13283_v11, %v13281_v0  ;;  %v8746_v0 = vld [vmem:[#allocation13 + $0x110] sm:$0xff] }
0x1ccf   :  { %v8164_v56 = vmul.f32 %v13285_v38, %v15262_v8  ;;  %v13287_v52 = vpop.eup %13286  ;;  %v8750_v11 = vld [vmem:[#allocation13 + $0x130] sm:$0xff]  ;;  %v15370_v38 = vpack.c.bf16 %v8732_v46, %v8728_v32 }
0x1cd1   :  { %v15303_v42 = vadd.f32 %v8165_v55, %v8164_v56  ;;  %v15372_v56 = vpack.c.bf16 %v8750_v11, %v8746_v0  ;;  %v8755_v55 = vld [vmem:[#allocation13 + $0x158] sm:$0xff] }
0x1cd3   :  { %13288 = vtanh.f32 %v15303_v42 }
0x1cdd   :  { %v13289_v31 = vpop.eup %13288 }
0x1cde   :  { %v8168_v14 = vmul.f32 %v13289_v31, %v13287_v52  ;;  %v8740_v52 = vld [vmem:[#allocation13 + $0xe0] sm:$0xff]  ;;  %v8745_v31 = vld [vmem:[#allocation13 + $0x108] sm:$0xff] }
0x1ce0   :  { %8169 = vst [vmem:[#allocation3 + $0x18] sm:$0x1] %v8168_v14  ;;  %8301 = vmatmul.mubr.f32.vlgmr.msra.gmra.mrb[50].mxu0 %v8168_v14  ;;  %8372 = vmatmul.mubr.f32.vlgmr.msra.gmra.mrb[70].mxu1 %v8168_v14  ;;  %v8759_v14 = vld [vmem:[#allocation13 + $0x178] sm:$0xff] }
0x1ce1   :  { %12205 = vmatpush1.bf16.msra.mxu0 %v15130_v18  ;;  %12237 = vmatpush1.bf16.msra.mxu1 %v15225_v24 }
0x1ce2   :  { %12207 = vmatprep.subr.bf16.mxu0 %v15133_v9  ;;  %12239 = vmatprep.subr.bf16.mxu1 %v15228_v54 }
0x1ce3   :  { %8570 = vmatprep.mubr.f32.mxu0 %v13602_v2  ;;  %8641 = vmatprep.mubr.f32.mxu1 %v13602_v2 }
0x1ce5   :  { %12209 = vmatpush1.bf16.msra.mxu0 %v15136_v53  ;;  %12241 = vmatpush1.bf16.msra.mxu1 %v15231_v30 }
0x1ce6   :  { %12211 = vmatprep.subr.bf16.mxu0 %v15139_v10  ;;  %12243 = vmatprep.subr.bf16.mxu1 %v15234_v25 }
0x1ce9   :  { %12213 = vmatpush1.bf16.msra.mxu0 %v15142_v44  ;;  %12245 = vmatpush1.bf16.msra.mxu1 %v15237_v23 }
0x1cea   :  { %12215 = vmatprep.subr.bf16.mxu0 %v15147_v7  ;;  %12247 = vmatprep.subr.bf16.mxu1 %v15240_v41 }
0x1ced   :  { %12217 = vmatpush1.bf16.msra.mxu0 %v15155_v5  ;;  %12249 = vmatpush1.bf16.msra.mxu1 %v15243_v51 }
0x1cee   :  { %12219 = vmatprep.subr.bf16.mxu0 %v15161_v28  ;;  %12251 = vmatprep.subr.bf16.mxu1 %v15246_v40 }
0x1cf1   :  { %12221 = vmatpush1.bf16.msra.mxu0 %v15170_v20  ;;  %12253 = vmatpush1.bf16.msra.mxu1 %v15144_v60 }
0x1cf2   :  { %12223 = vmatprep.subr.bf16.mxu0 %v15173_v34  ;;  %12255 = vmatprep.subr.bf16.mxu1 %v15150_v17 }
0x1cf5   :  { %12225 = vmatpush1.bf16.msra.mxu0 %v15180_v57  ;;  %12257 = vmatpush1.bf16.msra.mxu1 %v15152_v49 }
0x1cf6   :  { %12227 = vmatprep.subr.bf16.mxu0 %v15183_v3  ;;  %12259 = vmatprep.subr.bf16.mxu1 %v15158_v1  ;;  %v8171_v1 = vld [vmem:[#allocation2 + $0x61] ss:$8 sm:$0xf] }
0x1cf9   :  { %12229 = vmatpush1.bf16.msra.mxu0 %v15187_v27  ;;  %12261 = vmatpush1.bf16.msra.mxu1 %v15164_v22 }
0x1cfa   :  { %12231 = vmatprep.subr.bf16.mxu0 %v15190_v62  ;;  %12263 = vmatprep.subr.bf16.mxu1 %v15167_v39 }
0x1cfd   :  { %12233 = vmatpush1.bf16.msra.mxu0 %v15193_v19  ;;  %12265 = vmatpush1.bf16.msra.mxu1 %v15176_v15 }
0x1cfe   :  { %12299 = vmatprep.subr.bf16.mxu1 %v15223_v37 }
0x1db3   :  { %v8302_v18 = vpop.f32.mrb[50].mxu0  ;;  %v8373_v9 = vpop.f32.mrb[70].mxu1 }
0x1db4   :  { %v8304_v53 = vpop.f32.mrb[51].mxu0  ;;  %v8375_v10 = vpop.f32.mrb[71].mxu1 }
0x1db5   :  { %v8382_v44 = vcombine.low %v8302_v18, %v8304_v53  ;;  %v8383_v60 = vcombine.low %v8373_v9, %v8375_v10  ;;  %v8749_v18 = vld [vmem:[#allocation13 + $0x128] sm:$0xff]  ;;  %v15378_v9 = vpack.c.bf16 %v8759_v14, %v8755_v55  ;;  %v8754_v53 = vld [vmem:[#allocation13 + $0x150] sm:$0xff] }
0x1db6   :  { %v8758_v10 = vld [vmem:[#allocation13 + $0x170] sm:$0xff] }
0x1db7   :  { %v8390_v7 = vrot.slane %v8382_v44, %v13929_v21  ;;  %v8397_v17 = vrot.slane %v8383_v60, %v13929_v21  ;;  %v15380_v44 = vpack.c.bf16 %v8758_v10, %v8754_v53  ;;  %v8763_v60 = vld [vmem:[#allocation13 + $0x198] sm:$0xff] }
0x1db9   :  { %v8398_v49 = vcombine.low %v8390_v7, %v8397_v17  ;;  %v8767_v7 = vld [vmem:[#allocation13 + $0x1b8] sm:$0xff]  ;;  %v15383_v17 = vpack.c.bf16 %v8740_v52, %v8736_v58 }
0x1dba   :  { %v8441_v52 = vld [vmem:[#allocation2 + $0x62] ss:$8 sm:$0xf] }
0x1dbb   :  { %v8405_v5 = vrot.slane %v8398_v49, %v13929_v21  ;;  %v8744_v49 = vld [vmem:[#allocation13 + $0x100] sm:$0xff] }
0x1dbd   :  { %v8407_v28 = vadd.f32 %v8405_v5, %v8171_v1  ;;  %v15386_v5 = vpack.c.bf16 %v8767_v7, %v8763_v60  ;;  %v8762_v1 = vld [vmem:[#allocation13 + $0x190] sm:$0xff] }
0x1dbf   :  { %v10457_v22 = vmul.f32 -1.442695, %v8407_v28  ;;  %v8415_v39 = vrot.slane %v8407_v28, 1  ;;  %v8426_v34 = vrot.slane %v8407_v28, 3  ;;  %v8423_v3 = vrot.slane %v8407_v28, 2 }
0x1dc0   :  { %v15389_v28 = vpack.c.bf16 %v8749_v18, %v8745_v31 }
0x1dc1   :  { %13290 = vpow2.f32 %v10457_v22  ;;  %v10458_v20 = vmul.f32 -1.442695, %v8415_v39  ;;  %v10459_v15 = vmul.f32 -1.442695, %v8426_v34  ;;  %v8748_v22 = vld [vmem:[#allocation13 + $0x120] sm:$0xff]  ;;  %v8753_v39 = vld [vmem:[#allocation13 + $0x148] sm:$0xff] }
0x1dc2   :  { %v8757_v34 = vld [vmem:[#allocation13 + $0x168] sm:$0xff] }
0x1dc3   :  { %13292 = vpow2.f32 %v10458_v20  ;;  %v8766_v20 = vld [vmem:[#allocation13 + $0x1b0] sm:$0xff] }
0x1dc4   :  { %13294 = vpow2.f32 %v10459_v15  ;;  %v15392_v15 = vpack.c.bf16 %v8766_v20, %v8762_v1 }
0x1dcb   :  { %v13291_v57 = vpop.eup %13290 }
0x1dcc   :  { %v8411_v27 = vadd.f32 1.0, %v13291_v57  ;;  %v8771_v57 = vld [vmem:[#allocation13 + $0x1d8] sm:$0xff] }
0x1dcd   :  { %v13293_v62 = vpop.eup %13292 }
0x1dce   :  { %13296 = vrcp.f32 %v8411_v27  ;;  %v8420_v19 = vadd.f32 1.0, %v13293_v62  ;;  %v13295_v37 = vpop.eup %13294  ;;  %v8770_v62 = vld [vmem:[#allocation13 + $0x1d0] sm:$0xff] }
0x1dcf   :  { %13298 = vtanh.f32 %v8423_v3  ;;  %v8431_v26 = vadd.f32 1.0, %v13295_v37  ;;  %v8775_v3 = vld [vmem:[#allocation13 + $0x1f8] sm:$0xff]  ;;  %v15398_v37 = vpack.c.bf16 %v8748_v22, %v8744_v49 }
0x1dd0   :  { %13300 = vrcp.f32 %v8420_v19  ;;  %v15395_v27 = vpack.c.bf16 %v8775_v3, %v8771_v57  ;;  %v8774_v19 = vld [vmem:[#allocation13 + $0x1f0] sm:$0xff] }
0x1dd1   :  { %13302 = vrcp.f32 %v8431_v26  ;;  %v8761_v26 = vld [vmem:[#allocation13 + $0x188] sm:$0xff] }
0x1dd8   :  { %v13297_v8 = vpop.eup %13296 }
0x1dd9   :  { %v13299_v33 = vpop.eup %13298 }
0x1dda   :  { %v13301_v61 = vpop.eup %13300  ;;  %v8435_v45 = vmul.f32 %v13299_v33, %v13297_v8  ;;  %v15401_v8 = vpack.c.bf16 %v8757_v34, %v8753_v39  ;;  %v8752_v33 = vld [vmem:[#allocation13 + $0x140] sm:$0xff] }
0x1ddb   :  { %v8434_v29 = vmul.f32 %v13301_v61, %v15303_v42  ;;  %v13303_v48 = vpop.eup %13302  ;;  %v15375_v42 = vpack.c.bf16 %v8741_v63, %v8737_v59  ;;  %v8756_v61 = vld [vmem:[#allocation13 + $0x160] sm:$0xff] }
0x1ddd   :  { %v15343_v36 = vadd.f32 %v8435_v45, %v8434_v29  ;;  %v8765_v29 = vld [vmem:[#allocation13 + $0x1a8] sm:$0xff]  ;;  %v15404_v45 = vpack.c.bf16 %v8774_v19, %v8770_v62 }
0x1ddf   :  { %13304 = vtanh.f32 %v15343_v36 }
0x1de9   :  { %v13305_v12 = vpop.eup %13304 }
0x1dea   :  { %v8438_v47 = vmul.f32 %v13305_v12, %v13303_v48  ;;  %v15408_v48 = vpack.c.bf16 %v8756_v61, %v8752_v33  ;;  %v15411_v12 = vpack.c.bf16 %v8765_v29, %v8761_v26 }
0x1dec   :  { %8439 = vst [vmem:[#allocation3 + $0x19] sm:$0x1] %v8438_v47  ;;  %8571 = vmatmul.mubr.f32.vlgmr.msra.gmra.mrb[52].mxu0 %v8438_v47  ;;  %8642 = vmatmul.mubr.f32.vlgmr.msra.gmra.mrb[72].mxu1 %v8438_v47  ;;  %v8760_v47 = vld [vmem:[#allocation13 + $0x180] sm:$0xff] }
0x1ded   :  { %12301 = vmatpush1.bf16.msra.mxu1 %v15225_v24  ;;  %8840 = vmatprep.mubr.f32.mxu0 %v13602_v2  ;;  %v8717_v24 = vld [vmem:[#allocation13 + $0x28] sm:$0xff] }
0x1dee   :  { %12303 = vmatprep.subr.bf16.mxu1 %v15228_v54  ;;  %8911 = vmatprep.mubr.f32.mxu1 %v13602_v2  ;;  %v15356_v35 = vpack.c.bf16 %v8717_v24, %v8713_v13  ;;  %v8716_v54 = vld [vmem:[#allocation13 + $0x20] sm:$0xff]  ;;  %v8769_v24 = vld [vmem:[#allocation13 + $0x1c8] sm:$0xff] }
0x1def   :  { %v15358_v6 = vpack.c.bf16 %v8716_v54, %v8712_v4  ;;  %v8764_v13 = vld [vmem:[#allocation13 + $0x1a0] sm:$0xff]  ;;  %v8773_v4 = vld [vmem:[#allocation13 + $0x1e8] sm:$0xff] }
0x1df0   :  { %12267 = vmatprep.subr.bf16.mxu0 %v15356_v35  ;;  %v15415_v54 = vpack.c.bf16 %v8764_v13, %v8760_v47  ;;  %v8989_v13 = vld [vmem:[#allocation13 + $0x38] sm:$0xff] }
0x1df1   :  { %12305 = vmatpush1.bf16.msra.mxu1 %v15231_v30  ;;  %v8725_v30 = vld [vmem:[#allocation13 + $0x68] sm:$0xff]  ;;  %12269 = vmatpush1.bf16.msra.mxu0 %v15358_v6 }
0x1df2   :  { %12307 = vmatprep.subr.bf16.mxu1 %v15234_v25  ;;  %v15361_v25 = vpack.c.bf16 %v8725_v30, %v8721_v50  ;;  %v15418_v50 = vpack.c.bf16 %v8773_v4, %v8769_v24  ;;  %v8768_v30 = vld [vmem:[#allocation13 + $0x1c0] sm:$0xff]  ;;  %v8984_v4 = vld [vmem:[#allocation13 + $0x10] sm:$0xff] }
0x1df4   :  { %12271 = vmatprep.subr.bf16.mxu0 %v15361_v25 }
0x1df5   :  { %12309 = vmatpush1.bf16.msra.mxu1 %v15237_v23  ;;  %v8724_v23 = vld [vmem:[#allocation13 + $0x60] sm:$0xff] }
0x1df6   :  { %12311 = vmatprep.subr.bf16.mxu1 %v15240_v41  ;;  %v8729_v41 = vld [vmem:[#allocation13 + $0x88] sm:$0xff] }
0x1df9   :  { %12313 = vmatpush1.bf16.msra.mxu1 %v15243_v51  ;;  %v8733_v51 = vld [vmem:[#allocation13 + $0xa8] sm:$0xff] }
0x1dfa   :  { %12315 = vmatprep.subr.bf16.mxu1 %v15246_v40  ;;  %v15364_v40 = vpack.c.bf16 %v8724_v23, %v8720_v16  ;;  %v15367_v43 = vpack.c.bf16 %v8733_v51, %v8729_v41  ;;  %v8772_v16 = vld [vmem:[#allocation13 + $0x1e0] sm:$0xff] }
0x1dfb   :  { %v15421_v23 = vpack.c.bf16 %v8772_v16, %v8768_v30  ;;  %v8988_v30 = vld [vmem:[#allocation13 + $0x30] sm:$0xff] }
0x1dfc   :  { %12273 = vmatpush1.bf16.msra.mxu0 %v15364_v40  ;;  %v15453_v16 = vpack.c.bf16 %v8988_v30, %v8984_v4 }
0x1dfd   :  { %12275 = vmatprep.subr.bf16.mxu0 %v15367_v43  ;;  %12317 = vmatpush1.bf16.msra.mxu1 %v15372_v56 }
0x1dfe   :  { %12319 = vmatprep.subr.bf16.mxu1 %v15378_v9 }
0x1e00   :  { %12277 = vmatpush1.bf16.msra.mxu0 %v15370_v38 }
0x1e01   :  { %12279 = vmatprep.subr.bf16.mxu0 %v15375_v42  ;;  %12321 = vmatpush1.bf16.msra.mxu1 %v15380_v44 }
0x1e02   :  { %12323 = vmatprep.subr.bf16.mxu1 %v15386_v5 }
0x1e04   :  { %12281 = vmatpush1.bf16.msra.mxu0 %v15383_v17 }
0x1e05   :  { %12283 = vmatprep.subr.bf16.mxu0 %v15389_v28  ;;  %12325 = vmatpush1.bf16.msra.mxu1 %v15392_v15 }
0x1e06   :  { %12327 = vmatprep.subr.bf16.mxu1 %v15395_v27 }
0x1e08   :  { %12285 = vmatpush1.bf16.msra.mxu0 %v15398_v37 }
0x1e09   :  { %12287 = vmatprep.subr.bf16.mxu0 %v15401_v8  ;;  %12329 = vmatpush1.bf16.msra.mxu1 %v15404_v45 }
0x1e0c   :  { %12289 = vmatpush1.bf16.msra.mxu0 %v15408_v48 }
0x1e0d   :  { %12291 = vmatprep.subr.bf16.mxu0 %v15411_v12 }
0x1e10   :  { %12293 = vmatpush1.bf16.msra.mxu0 %v15415_v54 }
0x1e11   :  { %12295 = vmatprep.subr.bf16.mxu0 %v15418_v50 }
0x1e14   :  { %12297 = vmatpush1.bf16.msra.mxu0 %v15421_v23 }
0x1e15   :  { %12331 = vmatprep.subr.bf16.mxu0 %v15356_v35 }
0x1ebf   :  { %v8572_v41 = vpop.f32.mrb[52].mxu0  ;;  %v8643_v51 = vpop.f32.mrb[72].mxu1 }
0x1ec0   :  { %v8574_v32 = vpop.f32.mrb[53].mxu0  ;;  %v8645_v46 = vpop.f32.mrb[73].mxu1 }
0x1ec1   :  { %v8652_v59 = vcombine.low %v8572_v41, %v8574_v32  ;;  %v8653_v63 = vcombine.low %v8643_v51, %v8645_v46  ;;  %v8993_v41 = vld [vmem:[#allocation13 + $0x58] sm:$0xff]  ;;  %v8992_v32 = vld [vmem:[#allocation13 + $0x50] sm:$0xff] }
0x1ec2   :  { %v8997_v51 = vld [vmem:[#allocation13 + $0x78] sm:$0xff] }
0x1ec3   :  { %v8660_v0 = vrot.slane %v8652_v59, %v13929_v21  ;;  %v8667_v11 = vrot.slane %v8653_v63, %v13929_v21  ;;  %v15456_v46 = vpack.c.bf16 %v8997_v51, %v8993_v41  ;;  %v8996_v59 = vld [vmem:[#allocation13 + $0x70] sm:$0xff]  ;;  %v9001_v63 = vld [vmem:[#allocation13 + $0x98] sm:$0xff] }
0x1ec5   :  { %v8668_v58 = vcombine.low %v8660_v0, %v8667_v11  ;;  %v9005_v0 = vld [vmem:[#allocation13 + $0xb8] sm:$0xff]  ;;  %v15459_v11 = vpack.c.bf16 %v8996_v59, %v8992_v32 }
0x1ec7   :  { %v8675_v55 = vrot.slane %v8668_v58, %v13929_v21  ;;  %v15462_v58 = vpack.c.bf16 %v9005_v0, %v9001_v63 }
0x1ec9   :  { %v8677_v31 = vadd.f32 %v8675_v55, %v8441_v52  ;;  %v9000_v55 = vld [vmem:[#allocation13 + $0x90] sm:$0xff] }
0x1eca   :  { %v9004_v52 = vld [vmem:[#allocation13 + $0xb0] sm:$0xff] }
0x1ecb   :  { %v10460_v14 = vmul.f32 -1.442695, %v8677_v31  ;;  %v8685_v18 = vrot.slane %v8677_v31, 1  ;;  %v8696_v10 = vrot.slane %v8677_v31, 3  ;;  %v8693_v49 = vrot.slane %v8677_v31, 2  ;;  %v9009_v31 = vld [vmem:[#allocation13 + $0xd8] sm:$0xff] }
0x1ecd   :  { %13306 = vpow2.f32 %v10460_v14  ;;  %v10461_v53 = vmul.f32 -1.442695, %v8685_v18  ;;  %v10462_v60 = vmul.f32 -1.442695, %v8696_v10  ;;  %v9013_v14 = vld [vmem:[#allocation13 + $0xf8] sm:$0xff]  ;;  %v15465_v18 = vpack.c.bf16 %v9004_v52, %v9000_v55  ;;  %v9008_v10 = vld [vmem:[#allocation13 + $0xd0] sm:$0xff] }
0x1ecf   :  { %13308 = vpow2.f32 %v10461_v53  ;;  %v15468_v53 = vpack.c.bf16 %v9013_v14, %v9009_v31 }
0x1ed0   :  { %13310 = vpow2.f32 %v10462_v60  ;;  %v9012_v60 = vld [vmem:[#allocation13 + $0xf0] sm:$0xff] }
0x1ed7   :  { %v13307_v7 = vpop.eup %13306 }
0x1ed8   :  { %v8681_v1 = vadd.f32 1.0, %v13307_v7  ;;  %v9017_v7 = vld [vmem:[#allocation13 + $0x118] sm:$0xff] }
0x1ed9   :  { %v13309_v22 = vpop.eup %13308 }
0x1eda   :  { %13312 = vrcp.f32 %v8681_v1  ;;  %v8690_v39 = vadd.f32 1.0, %v13309_v22  ;;  %v13311_v20 = vpop.eup %13310  ;;  %v15471_v1 = vpack.c.bf16 %v9012_v60, %v9008_v10 }
0x1edb   :  { %13314 = vtanh.f32 %v8693_v49  ;;  %v8701_v62 = vadd.f32 1.0, %v13311_v20  ;;  %v9021_v49 = vld [vmem:[#allocation13 + $0x138] sm:$0xff] }
0x1edc   :  { %13316 = vrcp.f32 %v8690_v39  ;;  %v15474_v22 = vpack.c.bf16 %v9021_v49, %v9017_v7 }
0x1edd   :  { %13318 = vrcp.f32 %v8701_v62 }
0x1ee4   :  { %v13313_v34 = vpop.eup %13312 }
0x1ee5   :  { %v13315_v57 = vpop.eup %13314 }
0x1ee6   :  { %v13317_v3 = vpop.eup %13316  ;;  %v8705_v33 = vmul.f32 %v13315_v57, %v13313_v34 }
0x1ee7   :  { %v8704_v19 = vmul.f32 %v13317_v3, %v15343_v36  ;;  %v13319_v26 = vpop.eup %13318  ;;  %v8985_v36 = vld [vmem:[#allocation13 + $0x18] sm:$0xff] }
0x1ee8   :  { %v15451_v24 = vpack.c.bf16 %v8989_v13, %v8985_v36 }
0x1ee9   :  { %v15430_v61 = vadd.f32 %v8705_v33, %v8704_v19 }
0x1eea   :  { %12363 = vmatprep.subr.bf16.mxu1 %v15451_v24 }
0x1eeb   :  { %13320 = vtanh.f32 %v15430_v61 }
0x1ef5   :  { %v13321_v29 = vpop.eup %13320 }
0x1ef6   :  { %v8708_v47 = vmul.f32 %v13321_v29, %v13319_v26 }
0x1ef8   :  { %8709 = vst [vmem:[#allocation3 + $0x1a] sm:$0x1] %v8708_v47  ;;  %8841 = vmatmul.mubr.f32.vlgmr.msra.gmra.mrb[54].mxu0 %v8708_v47  ;;  %8912 = vmatmul.mubr.f32.vlgmr.msra.gmra.mrb[74].mxu1 %v8708_v47  ;;  %v8711_v47 = vld [vmem:[#allocation2 + $0x63] ss:$8 sm:$0xf] }
0x1ef9   :  { %12333 = vmatpush1.bf16.msra.mxu0 %v15358_v6  ;;  %9110 = vmatprep.mubr.f32.mxu0 %v13602_v2 }
0x1efa   :  { %12335 = vmatprep.subr.bf16.mxu0 %v15361_v25  ;;  %9181 = vmatprep.mubr.f32.mxu1 %v13602_v2 }
0x1efb   :  { %12365 = vmatpush1.bf16.msra.mxu1 %v15453_v16 }
0x1efc   :  { %12367 = vmatprep.subr.bf16.mxu1 %v15456_v46 }
0x1efd   :  { %12337 = vmatpush1.bf16.msra.mxu0 %v15364_v40 }
0x1efe   :  { %12339 = vmatprep.subr.bf16.mxu0 %v15367_v43 }
0x1eff   :  { %12369 = vmatpush1.bf16.msra.mxu1 %v15459_v11 }
0x1f00   :  { %12371 = vmatprep.subr.bf16.mxu1 %v15462_v58 }
0x1f01   :  { %12341 = vmatpush1.bf16.msra.mxu0 %v15370_v38 }
0x1f02   :  { %12343 = vmatprep.subr.bf16.mxu0 %v15375_v42 }
0x1f03   :  { %12373 = vmatpush1.bf16.msra.mxu1 %v15465_v18 }
0x1f04   :  { %12375 = vmatprep.subr.bf16.mxu1 %v15468_v53 }
0x1f05   :  { %12345 = vmatpush1.bf16.msra.mxu0 %v15383_v17 }
0x1f06   :  { %12347 = vmatprep.subr.bf16.mxu0 %v15389_v28 }
0x1f07   :  { %12377 = vmatpush1.bf16.msra.mxu1 %v15471_v1 }
0x1f08   :  { %12379 = vmatprep.subr.bf16.mxu1 %v15474_v22 }
0x1f09   :  { %12349 = vmatpush1.bf16.msra.mxu0 %v15398_v37 }
0x1f0a   :  { %12351 = vmatprep.subr.bf16.mxu0 %v15401_v8 }
0x1f0b   :  { %12381 = vmatpush1.bf16.msra.mxu1 %v15372_v56 }
0x1f0c   :  { %12383 = vmatprep.subr.bf16.mxu1 %v15378_v9 }
0x1f0d   :  { %12353 = vmatpush1.bf16.msra.mxu0 %v15408_v48 }
0x1f0e   :  { %12355 = vmatprep.subr.bf16.mxu0 %v15411_v12 }
0x1f0f   :  { %12385 = vmatpush1.bf16.msra.mxu1 %v15380_v44 }
0x1f10   :  { %12387 = vmatprep.subr.bf16.mxu1 %v15386_v5 }
0x1f11   :  { %12357 = vmatpush1.bf16.msra.mxu0 %v15415_v54 }
0x1f12   :  { %12359 = vmatprep.subr.bf16.mxu0 %v15418_v50 }
0x1f13   :  { %12389 = vmatpush1.bf16.msra.mxu1 %v15392_v15 }
0x1f14   :  { %12391 = vmatprep.subr.bf16.mxu1 %v15395_v27 }
0x1f15   :  { %12361 = vmatpush1.bf16.msra.mxu0 %v15421_v23 }
0x1f16   :  { %12395 = vmatprep.subr.bf16.mxu0 %v15356_v35 }
0x1f17   :  { %12393 = vmatpush1.bf16.msra.mxu1 %v15404_v45 }
0x1f18   :  { %12427 = vmatprep.subr.bf16.mxu1 %v15451_v24 }
0x1fcb   :  { %v8842_v39 = vpop.f32.mrb[54].mxu0  ;;  %v8913_v20 = vpop.f32.mrb[74].mxu1 }
0x1fcc   :  { %v8844_v34 = vpop.f32.mrb[55].mxu0  ;;  %v8915_v57 = vpop.f32.mrb[75].mxu1 }
0x1fcd   :  { %v8922_v3 = vcombine.low %v8842_v39, %v8844_v34  ;;  %v8923_v62 = vcombine.low %v8913_v20, %v8915_v57 }
0x1fcf   :  { %v8930_v19 = vrot.slane %v8922_v3, %v13929_v21  ;;  %v8937_v33 = vrot.slane %v8923_v62, %v13929_v21 }
0x1fd1   :  { %v8938_v26 = vcombine.low %v8930_v19, %v8937_v33 }
0x1fd3   :  { %v8945_v29 = vrot.slane %v8938_v26, %v13929_v21 }
0x1fd5   :  { %v8947_v36 = vadd.f32 %v8945_v29, %v8711_v47 }
0x1fd7   :  { %v10463_v13 = vmul.f32 -1.442695, %v8947_v36  ;;  %v8955_v4 = vrot.slane %v8947_v36, 1  ;;  %v8966_v41 = vrot.slane %v8947_v36, 3  ;;  %v8963_v59 = vrot.slane %v8947_v36, 2 }
0x1fd9   :  { %13322 = vpow2.f32 %v10463_v13  ;;  %v10464_v30 = vmul.f32 -1.442695, %v8955_v4  ;;  %v10465_v51 = vmul.f32 -1.442695, %v8966_v41 }
0x1fda   :  { %v8981_v4 = vld [vmem:[#allocation2 + $0x64] ss:$8 sm:$0xf] }
0x1fdb   :  { %13324 = vpow2.f32 %v10464_v30 }
0x1fdc   :  { %13326 = vpow2.f32 %v10465_v51 }
0x1fe3   :  { %v13323_v32 = vpop.eup %13322 }
0x1fe4   :  { %v8951_v63 = vadd.f32 1.0, %v13323_v32 }
0x1fe5   :  { %v13325_v0 = vpop.eup %13324 }
0x1fe6   :  { %13328 = vrcp.f32 %v8951_v63  ;;  %v8960_v55 = vadd.f32 1.0, %v13325_v0  ;;  %v13327_v52 = vpop.eup %13326 }
0x1fe7   :  { %13330 = vtanh.f32 %v8963_v59  ;;  %v8971_v60 = vadd.f32 1.0, %v13327_v52 }
0x1fe8   :  { %13332 = vrcp.f32 %v8960_v55 }
0x1fe9   :  { %13334 = vrcp.f32 %v8971_v60 }
0x1ff0   :  { %v13329_v31 = vpop.eup %13328 }
0x1ff1   :  { %v13331_v14 = vpop.eup %13330 }
0x1ff2   :  { %v13333_v10 = vpop.eup %13332  ;;  %v8975_v49 = vmul.f32 %v13331_v14, %v13329_v31 }
0x1ff3   :  { %v8974_v7 = vmul.f32 %v13333_v10, %v15430_v61  ;;  %v13335_v20 = vpop.eup %13334 }
0x1ff5   :  { %v15490_v39 = vadd.f32 %v8975_v49, %v8974_v7 }
0x1ff7   :  { %13336 = vtanh.f32 %v15490_v39 }
0x2001   :  { %v13337_v34 = vpop.eup %13336 }
0x2002   :  { %v8978_v57 = vmul.f32 %v13337_v34, %v13335_v20 }
0x2004   :  { %8979 = vst [vmem:[#allocation3 + $0x1b] sm:$0x1] %v8978_v57  ;;  %9111 = vmatmul.mubr.f32.vlgmr.msra.gmra.mrb[56].mxu0 %v8978_v57  ;;  %9182 = vmatmul.mubr.f32.vlgmr.msra.gmra.mrb[76].mxu1 %v8978_v57 }
0x2005   :  { %12397 = vmatpush1.bf16.msra.mxu0 %v15358_v6  ;;  %12429 = vmatpush1.bf16.msra.mxu1 %v15453_v16 }
0x2006   :  { %12399 = vmatprep.subr.bf16.mxu0 %v15361_v25  ;;  %12431 = vmatprep.subr.bf16.mxu1 %v15456_v46 }
0x2007   :  { %9380 = vmatprep.mubr.f32.mxu0 %v13602_v2  ;;  %9451 = vmatprep.mubr.f32.mxu1 %v13602_v2 }
0x2009   :  { %12401 = vmatpush1.bf16.msra.mxu0 %v15364_v40  ;;  %12433 = vmatpush1.bf16.msra.mxu1 %v15459_v11 }
0x200a   :  { %12403 = vmatprep.subr.bf16.mxu0 %v15367_v43  ;;  %12435 = vmatprep.subr.bf16.mxu1 %v15462_v58 }
0x200d   :  { %12405 = vmatpush1.bf16.msra.mxu0 %v15370_v38  ;;  %12437 = vmatpush1.bf16.msra.mxu1 %v15465_v18 }
0x200e   :  { %12407 = vmatprep.subr.bf16.mxu0 %v15375_v42  ;;  %12439 = vmatprep.subr.bf16.mxu1 %v15468_v53 }
0x2011   :  { %12409 = vmatpush1.bf16.msra.mxu0 %v15383_v17  ;;  %12441 = vmatpush1.bf16.msra.mxu1 %v15471_v1 }
0x2012   :  { %12411 = vmatprep.subr.bf16.mxu0 %v15389_v28  ;;  %12443 = vmatprep.subr.bf16.mxu1 %v15474_v22 }
0x2015   :  { %12413 = vmatpush1.bf16.msra.mxu0 %v15398_v37  ;;  %12445 = vmatpush1.bf16.msra.mxu1 %v15372_v56 }
0x2016   :  { %12415 = vmatprep.subr.bf16.mxu0 %v15401_v8  ;;  %12447 = vmatprep.subr.bf16.mxu1 %v15378_v9 }
0x2019   :  { %12417 = vmatpush1.bf16.msra.mxu0 %v15408_v48  ;;  %12449 = vmatpush1.bf16.msra.mxu1 %v15380_v44 }
0x201a   :  { %12419 = vmatprep.subr.bf16.mxu0 %v15411_v12  ;;  %12451 = vmatprep.subr.bf16.mxu1 %v15386_v5 }
0x201d   :  { %12421 = vmatpush1.bf16.msra.mxu0 %v15415_v54  ;;  %12453 = vmatpush1.bf16.msra.mxu1 %v15392_v15 }
0x201e   :  { %12423 = vmatprep.subr.bf16.mxu0 %v15418_v50  ;;  %12455 = vmatprep.subr.bf16.mxu1 %v15395_v27 }
0x2021   :  { %12425 = vmatpush1.bf16.msra.mxu0 %v15421_v23  ;;  %12457 = vmatpush1.bf16.msra.mxu1 %v15404_v45 }
0x2022   :  { %12459 = vmatprep.subr.bf16.mxu0 %v15356_v35  ;;  %12491 = vmatprep.subr.bf16.mxu1 %v15451_v24 }
0x20d7   :  { %v9112_v61 = vpop.f32.mrb[56].mxu0  ;;  %v9183_v3 = vpop.f32.mrb[76].mxu1 }
0x20d8   :  { %v9114_v62 = vpop.f32.mrb[57].mxu0  ;;  %v9185_v19 = vpop.f32.mrb[77].mxu1 }
0x20d9   :  { %v9192_v33 = vcombine.low %v9112_v61, %v9114_v62  ;;  %v9193_v26 = vcombine.low %v9183_v3, %v9185_v19 }
0x20db   :  { %v9200_v29 = vrot.slane %v9192_v33, %v13929_v21  ;;  %v9207_v47 = vrot.slane %v9193_v26, %v13929_v21 }
0x20dd   :  { %v9208_v36 = vcombine.low %v9200_v29, %v9207_v47 }
0x20df   :  { %v9215_v13 = vrot.slane %v9208_v36, %v13929_v21 }
0x20e1   :  { %v9217_v30 = vadd.f32 %v9215_v13, %v8981_v4 }
0x20e3   :  { %v10466_v41 = vmul.f32 -1.442695, %v9217_v30  ;;  %v9225_v51 = vrot.slane %v9217_v30, 1  ;;  %v9236_v32 = vrot.slane %v9217_v30, 3  ;;  %v9233_v0 = vrot.slane %v9217_v30, 2 }
0x20e5   :  { %13338 = vpow2.f32 %v10466_v41  ;;  %v10467_v35 = vmul.f32 -1.442695, %v9225_v51  ;;  %v10468_v59 = vmul.f32 -1.442695, %v9236_v32  ;;  %v9793_v41 = vld [vmem:[#allocation13 + $0x8] sm:$0xff]  ;;  %v9796_v32 = vld [vmem:[#allocation13 + $0x20] sm:$0xff] }
0x20e7   :  { %13340 = vpow2.f32 %v10467_v35  ;;  %v9792_v35 = vld [vmem:[#allocation13] sm:$0xff] }
0x20e8   :  { %13342 = vpow2.f32 %v10468_v59  ;;  %v9805_v59 = vld [vmem:[#allocation13 + $0x68] sm:$0xff] }
0x20ef   :  { %v13339_v63 = vpop.eup %13338 }
0x20f0   :  { %v9221_v55 = vadd.f32 1.0, %v13339_v63  ;;  %v9804_v63 = vld [vmem:[#allocation13 + $0x60] sm:$0xff] }
0x20f1   :  { %v13341_v52 = vpop.eup %13340 }
0x20f2   :  { %13344 = vrcp.f32 %v9221_v55  ;;  %v9230_v31 = vadd.f32 1.0, %v13341_v52  ;;  %v13343_v14 = vpop.eup %13342  ;;  %v9812_v52 = vld [vmem:[#allocation13 + $0xa0] sm:$0xff] }
0x20f3   :  { %13346 = vtanh.f32 %v9233_v0  ;;  %v9241_v49 = vadd.f32 1.0, %v13343_v14  ;;  %v9813_v0 = vld [vmem:[#allocation13 + $0xa8] sm:$0xff] }
0x20f4   :  { %13348 = vrcp.f32 %v9230_v31  ;;  %v9821_v31 = vld [vmem:[#allocation13 + $0xe8] sm:$0xff] }
0x20f5   :  { %13350 = vrcp.f32 %v9241_v49  ;;  %v9816_v49 = vld [vmem:[#allocation13 + $0xc0] sm:$0xff] }
0x20fc   :  { %v13345_v10 = vpop.eup %13344 }
0x20fd   :  { %v13347_v60 = vpop.eup %13346 }
0x20fe   :  { %v13349_v7 = vpop.eup %13348  ;;  %v9245_v34 = vmul.f32 %v13347_v60, %v13345_v10  ;;  %v9826_v10 = vld [vmem:[#allocation13 + $0x110] sm:$0xff] }
0x20ff   :  { %v9244_v20 = vmul.f32 %v13349_v7, %v15490_v39  ;;  %v13351_v61 = vpop.eup %13350  ;;  %v9830_v60 = vld [vmem:[#allocation13 + $0x130] sm:$0xff] }
0x2101   :  { %v15531_v57 = vadd.f32 %v9245_v34, %v9244_v20  ;;  %v9820_v20 = vld [vmem:[#allocation13 + $0xe0] sm:$0xff]  ;;  %v9825_v34 = vld [vmem:[#allocation13 + $0x108] sm:$0xff] }
0x2103   :  { %13352 = vtanh.f32 %v15531_v57 }
0x210d   :  { %v13353_v3 = vpop.eup %13352 }
0x210e   :  { %v9248_v62 = vmul.f32 %v13353_v3, %v13351_v61  ;;  %v9829_v61 = vld [vmem:[#allocation13 + $0x128] sm:$0xff]  ;;  %v9835_v3 = vld [vmem:[#allocation13 + $0x158] sm:$0xff] }
0x2110   :  { %9249 = vst [vmem:[#allocation3 + $0x1c] sm:$0x1] %v9248_v62  ;;  %9381 = vmatmul.mubr.f32.vlgmr.msra.gmra.mrb[58].mxu0 %v9248_v62  ;;  %9452 = vmatmul.mubr.f32.vlgmr.msra.gmra.mrb[78].mxu1 %v9248_v62  ;;  %v9839_v62 = vld [vmem:[#allocation13 + $0x178] sm:$0xff] }
0x2111   :  { %12461 = vmatpush1.bf16.msra.mxu0 %v15358_v6  ;;  %12493 = vmatpush1.bf16.msra.mxu1 %v15453_v16 }
0x2112   :  { %12463 = vmatprep.subr.bf16.mxu0 %v15361_v25  ;;  %12495 = vmatprep.subr.bf16.mxu1 %v15456_v46 }
0x2113   :  { %9650 = vmatprep.mubr.f32.mxu0 %v13602_v2  ;;  %9721 = vmatprep.mubr.f32.mxu1 %v13602_v2 }
0x2115   :  { %12465 = vmatpush1.bf16.msra.mxu0 %v15364_v40  ;;  %12497 = vmatpush1.bf16.msra.mxu1 %v15459_v11 }
0x2116   :  { %12467 = vmatprep.subr.bf16.mxu0 %v15367_v43  ;;  %12499 = vmatprep.subr.bf16.mxu1 %v15462_v58 }
0x2119   :  { %12469 = vmatpush1.bf16.msra.mxu0 %v15370_v38  ;;  %12501 = vmatpush1.bf16.msra.mxu1 %v15465_v18 }
0x211a   :  { %12471 = vmatprep.subr.bf16.mxu0 %v15375_v42  ;;  %12503 = vmatprep.subr.bf16.mxu1 %v15468_v53 }
0x211d   :  { %12473 = vmatpush1.bf16.msra.mxu0 %v15383_v17  ;;  %12505 = vmatpush1.bf16.msra.mxu1 %v15471_v1 }
0x211e   :  { %12475 = vmatprep.subr.bf16.mxu0 %v15389_v28  ;;  %12507 = vmatprep.subr.bf16.mxu1 %v15474_v22 }
0x2121   :  { %12477 = vmatpush1.bf16.msra.mxu0 %v15398_v37  ;;  %12509 = vmatpush1.bf16.msra.mxu1 %v15372_v56 }
0x2122   :  { %12479 = vmatprep.subr.bf16.mxu0 %v15401_v8  ;;  %12511 = vmatprep.subr.bf16.mxu1 %v15378_v9 }
0x2125   :  { %12481 = vmatpush1.bf16.msra.mxu0 %v15408_v48  ;;  %12513 = vmatpush1.bf16.msra.mxu1 %v15380_v44 }
0x2126   :  { %12483 = vmatprep.subr.bf16.mxu0 %v15411_v12  ;;  %12515 = vmatprep.subr.bf16.mxu1 %v15386_v5  ;;  %v9251_v5 = vld [vmem:[#allocation2 + $0x65] ss:$8 sm:$0xf] }
0x2129   :  { %12485 = vmatpush1.bf16.msra.mxu0 %v15415_v54  ;;  %12517 = vmatpush1.bf16.msra.mxu1 %v15392_v15 }
0x212a   :  { %12487 = vmatprep.subr.bf16.mxu0 %v15418_v50  ;;  %12519 = vmatprep.subr.bf16.mxu1 %v15395_v27 }
0x212d   :  { %12489 = vmatpush1.bf16.msra.mxu0 %v15421_v23  ;;  %12521 = vmatpush1.bf16.msra.mxu1 %v15404_v45 }
0x212e   :  { %12555 = vmatprep.subr.bf16.mxu1 %v15451_v24 }
0x21e3   :  { %v9382_v6 = vpop.f32.mrb[58].mxu0  ;;  %v9453_v25 = vpop.f32.mrb[78].mxu1 }
0x21e4   :  { %v9384_v40 = vpop.f32.mrb[59].mxu0  ;;  %v9455_v43 = vpop.f32.mrb[79].mxu1 }
0x21e5   :  { %v9462_v38 = vcombine.low %v9382_v6, %v9384_v40  ;;  %v9463_v56 = vcombine.low %v9453_v25, %v9455_v43  ;;  %v12574_v6 = vpack.c.bf16 %v9839_v62, %v9835_v3  ;;  %v9834_v25 = vld [vmem:[#allocation13 + $0x150] sm:$0xff]  ;;  %v12536_v43 = vpack.c.bf16 %v9820_v20, %v9816_v49 }
0x21e6   :  { %v9838_v40 = vld [vmem:[#allocation13 + $0x170] sm:$0xff] }
0x21e7   :  { %v9470_v42 = vrot.slane %v9462_v38, %v13929_v21  ;;  %v9477_v9 = vrot.slane %v9463_v56, %v13929_v21  ;;  %v9824_v38 = vld [vmem:[#allocation13 + $0x100] sm:$0xff] }
0x21e8   :  { %v9828_v56 = vld [vmem:[#allocation13 + $0x120] sm:$0xff] }
0x21e9   :  { %v9478_v44 = vcombine.low %v9470_v42, %v9477_v9  ;;  %v12576_v42 = vpack.c.bf16 %v9838_v40, %v9834_v25  ;;  %v12538_v9 = vpack.c.bf16 %v9829_v61, %v9825_v34 }
0x21eb   :  { %v9485_v17 = vrot.slane %v9478_v44, %v13929_v21  ;;  %v9843_v44 = vld [vmem:[#allocation13 + $0x198] sm:$0xff] }
0x21ed   :  { %v9487_v28 = vadd.f32 %v9485_v17, %v9251_v5  ;;  %v9847_v17 = vld [vmem:[#allocation13 + $0x1b8] sm:$0xff]  ;;  %v9842_v5 = vld [vmem:[#allocation13 + $0x190] sm:$0xff] }
0x21ef   :  { %v10469_v15 = vmul.f32 -1.442695, %v9487_v28  ;;  %v9495_v27 = vrot.slane %v9487_v28, 1  ;;  %v9506_v8 = vrot.slane %v9487_v28, 3  ;;  %v9503_v12 = vrot.slane %v9487_v28, 2  ;;  %v9833_v28 = vld [vmem:[#allocation13 + $0x148] sm:$0xff] }
0x21f1   :  { %13354 = vpow2.f32 %v10469_v15  ;;  %v10470_v37 = vmul.f32 -1.442695, %v9495_v27  ;;  %v10471_v45 = vmul.f32 -1.442695, %v9506_v8  ;;  %v9837_v15 = vld [vmem:[#allocation13 + $0x168] sm:$0xff]  ;;  %v12578_v27 = vpack.c.bf16 %v9847_v17, %v9843_v44 }
0x21f3   :  { %13356 = vpow2.f32 %v10470_v37  ;;  %v9846_v37 = vld [vmem:[#allocation13 + $0x1b0] sm:$0xff] }
0x21f4   :  { %13358 = vpow2.f32 %v10471_v45  ;;  %v12580_v8 = vpack.c.bf16 %v9846_v37, %v9842_v5  ;;  %v9851_v45 = vld [vmem:[#allocation13 + $0x1d8] sm:$0xff]  ;;  %v10066_v5 = vld [vmem:[#allocation14 + $0x10] sm:$0xff] }
0x21fb   :  { %v13355_v48 = vpop.eup %13354 }
0x21fc   :  { %v9491_v54 = vadd.f32 1.0, %v13355_v48  ;;  %v12540_v48 = vpack.c.bf16 %v9828_v56, %v9824_v38 }
0x21fd   :  { %v13357_v50 = vpop.eup %13356 }
0x21fe   :  { %13360 = vrcp.f32 %v9491_v54  ;;  %v9500_v23 = vadd.f32 1.0, %v13357_v50  ;;  %v13359_v24 = vpop.eup %13358  ;;  %v9850_v54 = vld [vmem:[#allocation13 + $0x1d0] sm:$0xff] }
0x21ff   :  { %13362 = vtanh.f32 %v9503_v12  ;;  %v9511_v26 = vadd.f32 1.0, %v13359_v24  ;;  %v9855_v12 = vld [vmem:[#allocation13 + $0x1f8] sm:$0xff]  ;;  %v9854_v50 = vld [vmem:[#allocation13 + $0x1f0] sm:$0xff]  ;;  %v9832_v24 = vld [vmem:[#allocation13 + $0x140] sm:$0xff] }
0x2200   :  { %13364 = vrcp.f32 %v9500_v23  ;;  %v12542_v23 = vpack.c.bf16 %v9837_v15, %v9833_v28  ;;  %v10067_v28 = vld [vmem:[#allocation14 + $0x18] sm:$0xff] }
0x2201   :  { %13366 = vrcp.f32 %v9511_v26  ;;  %v9845_v26 = vld [vmem:[#allocation13 + $0x1a8] sm:$0xff] }
0x2208   :  { %v13361_v39 = vpop.eup %13360 }
0x2209   :  { %v13363_v19 = vpop.eup %13362 }
0x220a   :  { %v13365_v33 = vpop.eup %13364  ;;  %v9515_v47 = vmul.f32 %v13363_v19, %v13361_v39  ;;  %v9836_v39 = vld [vmem:[#allocation13 + $0x160] sm:$0xff]  ;;  %v12582_v19 = vpack.c.bf16 %v9855_v12, %v9851_v45  ;;  %v10060_v12 = vld [vmem:[#allocation3] sm:$0xff] }
0x220b   :  { %v9514_v29 = vmul.f32 %v13365_v33, %v15531_v57  ;;  %v13367_v13 = vpop.eup %13366  ;;  %v12572_v57 = vpack.c.bf16 %v9830_v60, %v9826_v10  ;;  %v9841_v33 = vld [vmem:[#allocation13 + $0x188] sm:$0xff]  ;;  %v10068_v45 = vld [vmem:[#allocation14 + $0x20] sm:$0xff] }
0x220c   :  { %v9521_v10 = vld [vmem:[#allocation2 + $0x66] ss:$8 sm:$0xf] }
0x220d   :  { %v15571_v36 = vadd.f32 %v9515_v47, %v9514_v29  ;;  %v12584_v29 = vpack.c.bf16 %v9854_v50, %v9850_v54  ;;  %v12544_v47 = vpack.c.bf16 %v9836_v39, %v9832_v24  ;;  %v10070_v54 = vld [vmem:[#allocation14 + $0x30] sm:$0xff]  ;;  %v10071_v50 = vld [vmem:[#allocation14 + $0x38] sm:$0xff]  ;;  %v10072_v24 = vld [vmem:[#allocation14 + $0x40] sm:$0xff] }
0x220e   :  { %v10073_v39 = vld [vmem:[#allocation14 + $0x48] sm:$0xff] }
0x220f   :  { %13368 = vtanh.f32 %v15571_v36 }
0x2219   :  { %v13369_v4 = vpop.eup %13368 }
0x221a   :  { %v9518_v30 = vmul.f32 %v13369_v4, %v13367_v13  ;;  %v12546_v13 = vpack.c.bf16 %v9845_v26, %v9841_v33  ;;  %v9840_v4 = vld [vmem:[#allocation13 + $0x180] sm:$0xff]  ;;  %v10074_v33 = vld [vmem:[#allocation14 + $0x50] sm:$0xff]  ;;  %v10075_v26 = vld [vmem:[#allocation14 + $0x58] sm:$0xff] }
0x221c   :  { %9519 = vst [vmem:[#allocation3 + $0x1d] sm:$0x1] %v9518_v30  ;;  %9651 = vmatmul.mubr.f32.vlgmr.msra.gmra.mrb[60].mxu0 %v9518_v30  ;;  %9722 = vmatmul.mubr.f32.vlgmr.msra.gmra.mrb[80].mxu1 %v9518_v30  ;;  %v9844_v30 = vld [vmem:[#allocation13 + $0x1a0] sm:$0xff] }
0x221d   :  { %12557 = vmatpush1.bf16.msra.mxu1 %v15453_v16  ;;  %9920 = vmatprep.mubr.f32.mxu0 %v13602_v2  ;;  %v9797_v16 = vld [vmem:[#allocation13 + $0x28] sm:$0xff] }
0x221e   :  { %12559 = vmatprep.subr.bf16.mxu1 %v15456_v46  ;;  %9991 = vmatprep.mubr.f32.mxu1 %v13602_v2  ;;  %v12522_v51 = vpack.c.bf16 %v9797_v16, %v9793_v41  ;;  %v12524_v46 = vpack.c.bf16 %v9796_v32, %v9792_v35  ;;  %v9801_v2 = vld [vmem:[#allocation13 + $0x48] sm:$0xff]  ;;  %v9848_v32 = vld [vmem:[#allocation13 + $0x1c0] sm:$0xff] }
0x221f   :  { %v9849_v41 = vld [vmem:[#allocation13 + $0x1c8] sm:$0xff] }
0x2220   :  { %12523 = vmatprep.subr.bf16.mxu0 %v12522_v51  ;;  %v9853_v16 = vld [vmem:[#allocation13 + $0x1e8] sm:$0xff]  ;;  %v12548_v51 = vpack.c.bf16 %v9844_v30, %v9840_v4  ;;  %v10078_v30 = vld [vmem:[#allocation14 + $0x70] sm:$0xff] }
0x2221   :  { %12561 = vmatpush1.bf16.msra.mxu1 %v15459_v11  ;;  %v9800_v11 = vld [vmem:[#allocation13 + $0x40] sm:$0xff]  ;;  %12525 = vmatpush1.bf16.msra.mxu0 %v12524_v46  ;;  %v12550_v35 = vpack.c.bf16 %v9853_v16, %v9849_v41  ;;  %v10079_v41 = vld [vmem:[#allocation14 + $0x78] sm:$0xff] }
0x2222   :  { %12563 = vmatprep.subr.bf16.mxu1 %v15462_v58  ;;  %v12526_v58 = vpack.c.bf16 %v9805_v59, %v9801_v2  ;;  %v9852_v46 = vld [vmem:[#allocation13 + $0x1e0] sm:$0xff]  ;;  %v10065_v59 = vld [vmem:[#allocation14 + $0x8] sm:$0xff]  ;;  %v12614_v16 = vpack.c.bf16 %v10079_v41, %v10078_v30 }
0x2223   :  { %v10064_v2 = vld [vmem:[#allocation14] sm:$0xff] }
0x2224   :  { %12527 = vmatprep.subr.bf16.mxu0 %v12526_v58  ;;  %v12586_v58 = vpack.c.bf16 %v10065_v59, %v10064_v2 }
0x2225   :  { %12565 = vmatpush1.bf16.msra.mxu1 %v15465_v18  ;;  %v9809_v18 = vld [vmem:[#allocation13 + $0x88] sm:$0xff] }
0x2226   :  { %12567 = vmatprep.subr.bf16.mxu1 %v15468_v53  ;;  %v12528_v53 = vpack.c.bf16 %v9804_v63, %v9800_v11  ;;  %v12530_v55 = vpack.c.bf16 %v9813_v0, %v9809_v18  ;;  %v12552_v11 = vpack.c.bf16 %v9852_v46, %v9848_v32 }
0x2228   :  { %12529 = vmatpush1.bf16.msra.mxu0 %v12528_v53 }
0x2229   :  { %12569 = vmatpush1.bf16.msra.mxu1 %v15471_v1  ;;  %v9808_v1 = vld [vmem:[#allocation13 + $0x80] sm:$0xff]  ;;  %12531 = vmatprep.subr.bf16.mxu0 %v12530_v55 }
0x222a   :  { %12571 = vmatprep.subr.bf16.mxu1 %v15474_v22  ;;  %v9817_v22 = vld [vmem:[#allocation13 + $0xc8] sm:$0xff]  ;;  %v12532_v14 = vpack.c.bf16 %v9812_v52, %v9808_v1 }
0x222b   :  { %v12534_v7 = vpack.c.bf16 %v9821_v31, %v9817_v22 }
0x222c   :  { %12533 = vmatpush1.bf16.msra.mxu0 %v12532_v14 }
0x222d   :  { %12573 = vmatpush1.bf16.msra.mxu1 %v12572_v57  ;;  %12535 = vmatprep.subr.bf16.mxu0 %v12534_v7 }
0x222e   :  { %12575 = vmatprep.subr.bf16.mxu1 %v12574_v6 }
0x2230   :  { %12537 = vmatpush1.bf16.msra.mxu0 %v12536_v43 }
0x2231   :  { %12577 = vmatpush1.bf16.msra.mxu1 %v12576_v42  ;;  %12539 = vmatprep.subr.bf16.mxu0 %v12538_v9 }
0x2232   :  { %12579 = vmatprep.subr.bf16.mxu1 %v12578_v27 }
0x2234   :  { %12541 = vmatpush1.bf16.msra.mxu0 %v12540_v48  ;;  %v10069_v48 = vld [vmem:[#allocation14 + $0x28] sm:$0xff] }
0x2235   :  { %12581 = vmatpush1.bf16.msra.mxu1 %v12580_v8  ;;  %12543 = vmatprep.subr.bf16.mxu0 %v12542_v23  ;;  %v12590_v8 = vpack.c.bf16 %v10067_v28, %v10066_v5  ;;  %v12598_v23 = vpack.c.bf16 %v10071_v50, %v10070_v54 }
0x2236   :  { %12583 = vmatprep.subr.bf16.mxu1 %v12582_v19  ;;  %v12602_v19 = vpack.c.bf16 %v10073_v39, %v10072_v24 }
0x2238   :  { %12545 = vmatpush1.bf16.msra.mxu0 %v12544_v47  ;;  %v10076_v47 = vld [vmem:[#allocation14 + $0x60] sm:$0xff] }
0x2239   :  { %12585 = vmatpush1.bf16.msra.mxu1 %v12584_v29  ;;  %12547 = vmatprep.subr.bf16.mxu0 %v12546_v13  ;;  %v12606_v29 = vpack.c.bf16 %v10075_v26, %v10074_v33  ;;  %v10077_v13 = vld [vmem:[#allocation14 + $0x68] sm:$0xff] }
0x223a   :  { %v12610_v4 = vpack.c.bf16 %v10077_v13, %v10076_v47 }
0x223c   :  { %12549 = vmatpush1.bf16.msra.mxu0 %v12548_v51  ;;  %v10061_v51 = vld [vmem:[#allocation3 + $0x8] sm:$0xff] }
0x223d   :  { %12551 = vmatprep.subr.bf16.mxu0 %v12550_v35  ;;  %v10062_v35 = vld [vmem:[#allocation3 + $0x10] sm:$0xff] }
0x2240   :  { %12553 = vmatpush1.bf16.msra.mxu0 %v12552_v11 }
0x2241   :  { %12587 = vmatprep.subr.bf16.mxu0 %v12586_v58 }
0x22ef   :  { %v9652_v63 = vpop.f32.mrb[60].mxu0  ;;  %v9723_v18 = vpop.f32.mrb[80].mxu1 }
0x22f0   :  { %v9654_v0 = vpop.f32.mrb[61].mxu0  ;;  %v9725_v53 = vpop.f32.mrb[81].mxu1 }
0x22f1   :  { %v9732_v55 = vcombine.low %v9652_v63, %v9654_v0  ;;  %v9733_v1 = vcombine.low %v9723_v18, %v9725_v53 }
0x22f3   :  { %v9740_v52 = vrot.slane %v9732_v55, %v13929_v21  ;;  %v9747_v22 = vrot.slane %v9733_v1, %v13929_v21  ;;  %v9791_v55 = vld [vmem:[#allocation2 + $0x67] ss:$8 sm:$0xf] }
0x22f5   :  { %v9748_v31 = vcombine.low %v9740_v52, %v9747_v22 }
0x22f7   :  { %v9755_v14 = vrot.slane %v9748_v31, %v13929_v21 }
0x22f9   :  { %v9757_v60 = vadd.f32 %v9755_v14, %v9521_v10 }
0x22fb   :  { %v10472_v7 = vmul.f32 -1.442695, %v9757_v60  ;;  %v9765_v49 = vrot.slane %v9757_v60, 1  ;;  %v9776_v34 = vrot.slane %v9757_v60, 3  ;;  %v9773_v3 = vrot.slane %v9757_v60, 2 }
0x22fd   :  { %13370 = vpow2.f32 %v10472_v7  ;;  %v10473_v20 = vmul.f32 -1.442695, %v9765_v49  ;;  %v10474_v57 = vmul.f32 -1.442695, %v9776_v34 }
0x22ff   :  { %13372 = vpow2.f32 %v10473_v20 }
0x2300   :  { %13374 = vpow2.f32 %v10474_v57 }
0x2307   :  { %v13371_v61 = vpop.eup %13370 }
0x2308   :  { %v9761_v62 = vadd.f32 1.0, %v13371_v61 }
0x2309   :  { %v13373_v6 = vpop.eup %13372 }
0x230a   :  { %13376 = vrcp.f32 %v9761_v62  ;;  %v9770_v25 = vadd.f32 1.0, %v13373_v6  ;;  %v13375_v40 = vpop.eup %13374 }
0x230b   :  { %13378 = vtanh.f32 %v9773_v3  ;;  %v9781_v42 = vadd.f32 1.0, %v13375_v40 }
0x230c   :  { %13380 = vrcp.f32 %v9770_v25 }
0x230d   :  { %13382 = vrcp.f32 %v9781_v42 }
0x2314   :  { %v13377_v43 = vpop.eup %13376 }
0x2315   :  { %v13379_v38 = vpop.eup %13378 }
0x2316   :  { %v13381_v56 = vpop.eup %13380  ;;  %v9785_v44 = vmul.f32 %v13379_v38, %v13377_v43 }
0x2317   :  { %v9784_v9 = vmul.f32 %v13381_v56, %v15571_v36  ;;  %v13383_v15 = vpop.eup %13382  ;;  %v12594_v36 = vpack.c.bf16 %v10069_v48, %v10068_v45 }
0x2319   :  { %v15588_v17 = vadd.f32 %v9785_v44, %v9784_v9 }
0x231b   :  { %13384 = vtanh.f32 %v15588_v17 }
0x2325   :  { %v13385_v27 = vpop.eup %13384 }
0x2326   :  { %v9788_v37 = vmul.f32 %v13385_v27, %v13383_v15 }
0x2328   :  { %9789 = vst [vmem:[#allocation3 + $0x1e] sm:$0x1] %v9788_v37  ;;  %9921 = vmatmul.mubr.f32.vlgmr.msra.gmra.mrb[62].mxu0 %v9788_v37  ;;  %9992 = vmatmul.mubr.f32.vlgmr.msra.gmra.mrb[82].mxu1 %v9788_v37 }
0x2329   :  { %12589 = vmatpush3.bf16.msra.mxu0 %v12586_v58  ;;  %10532 = vmatprep.mubr.f32.mxu0 %v10060_v12 }
0x232a   :  { %12591 = vmatprep.subr.bf16.mxu0 %v12590_v8 }
0x232d   :  { %12593 = vmatpush3.bf16.msra.mxu0 %v12590_v8 }
0x232e   :  { %12595 = vmatprep.subr.bf16.mxu0 %v12594_v36 }
0x2331   :  { %12597 = vmatpush3.bf16.msra.mxu0 %v12594_v36 }
0x2332   :  { %12599 = vmatprep.subr.bf16.mxu0 %v12598_v23 }
0x2335   :  { %12601 = vmatpush3.bf16.msra.mxu0 %v12598_v23 }
0x2336   :  { %12603 = vmatprep.subr.bf16.mxu0 %v12602_v19 }
0x2339   :  { %12605 = vmatpush3.bf16.msra.mxu0 %v12602_v19 }
0x233a   :  { %12607 = vmatprep.subr.bf16.mxu0 %v12606_v29 }
0x233d   :  { %12609 = vmatpush3.bf16.msra.mxu0 %v12606_v29 }
0x233e   :  { %12611 = vmatprep.subr.bf16.mxu0 %v12610_v4 }
0x2341   :  { %12613 = vmatpush3.bf16.msra.mxu0 %v12610_v4 }
0x2342   :  { %12615 = vmatprep.subr.bf16.mxu0 %v12614_v16 }
0x2345   :  { %12617 = vmatpush3.bf16.msra.mxu0 %v12614_v16 }
0x2348   :  { %10533 = vmatmul.mubr.f32.vlgmr.msra.gmra.mrb[64].mxu0 %v10061_v51 }
0x2349   :  { %10535 = vmatprep.mubr.f32.mxu0 %v10062_v35 }
0x23fb   :  { %v9922_v32 = vpop.f32.mrb[62].mxu0  ;;  %v9993_v46 = vpop.f32.mrb[82].mxu1 }
0x23fc   :  { %v9924_v2 = vpop.f32.mrb[63].mxu0  ;;  %v9995_v59 = vpop.f32.mrb[83].mxu1 }
0x23fd   :  { %v10002_v11 = vcombine.low %v9922_v32, %v9924_v2  ;;  %v10003_v58 = vcombine.low %v9993_v46, %v9995_v59 }
0x23ff   :  { %v10010_v63 = vrot.slane %v10002_v11, %v13929_v21  ;;  %v10017_v18 = vrot.slane %v10003_v58, %v13929_v21 }
0x2401   :  { %v10018_v0 = vcombine.low %v10010_v63, %v10017_v18 }
0x2403   :  { %v10025_v53 = vrot.slane %v10018_v0, %v13929_v21  ;;  %v10478_v21 = vld [vmem:[%s15637_s9] ss:$0 sm:$0xff]  ;;  %s13604_s9 = smov [#allocation16]  }
0x2404   :  { %s10181_s18 = sshll.u32 %s13604_s9, 4  ;;  %s10182_s18 = int_to_ptr.vmem [resolvable:$true] %s10181_s18 }
0x2405   :  { %v10027_v1 = vadd.f32 %v10025_v53, %v9791_v55  ;;  %s13534_s24 = scalar_lea.vmem %s10182_s18, 1024  ;;  %p13539_p7 = scmp.lt.s32.totalorder %s10182_s18, %s10182_s18 }
0x2406   :  { %p13535_p6 = scmp.ne.s32.totalorder %s10182_s18, %s13534_s24  ;;  %p13540_p8 = scmp.lt.s32.totalorder %s13534_s24, %s13534_s24 }
0x2407   :  { %v10475_v52 = vmul.f32 -1.442695, %v10027_v1  ;;  %v10035_v22 = vrot.slane %v10027_v1, 1  ;;  %v10046_v14 = vrot.slane %v10027_v1, 3  ;;  %v10043_v7 = vrot.slane %v10027_v1, 2 }
0x2408   :  { %p13541_p9 = por %p13540_p8, %p13539_p7 }
0x2409   :  { %13386 = vpow2.f32 %v10475_v52  ;;  %v10476_v31 = vmul.f32 -1.442695, %v10035_v22  ;;  %v10477_v10 = vmul.f32 -1.442695, %v10046_v14 }
0x240a   :  { %p13542_p10 = pnand %p13541_p9, %p13535_p6 }
0x240b   :  { %13388 = vpow2.f32 %v10476_v31 }
0x240c   :  { %13390 = vpow2.f32 %v10477_v10 }
0x2413   :  { %v13387_v60 = vpop.eup %13386 }
0x2414   :  { %v10031_v49 = vadd.f32 1.0, %v13387_v60 }
0x2415   :  { %v13389_v20 = vpop.eup %13388 }
0x2416   :  { %13392 = vrcp.f32 %v10031_v49  ;;  %v10040_v34 = vadd.f32 1.0, %v13389_v20  ;;  %v13391_v6 = vpop.eup %13390 }
0x2417   :  { %13394 = vtanh.f32 %v10043_v7  ;;  %v10051_v38 = vadd.f32 1.0, %v13391_v6 }
0x2418   :  { %13396 = vrcp.f32 %v10040_v34 }
0x2419   :  { %13398 = vrcp.f32 %v10051_v38 }
0x241b   :  { %v10534_v57 = vpop.f32.mrb[64].mxu0 }
0x241c   :  { %v10159_v61 = vadd.f32 %v10534_v57, %v10478_v21  ;;  %v10153_v3 = vpop.f32.mrb[65].mxu0 }
0x241d   :  { %v10154_v62 = vadd.f32 %v10478_v21, %v10153_v3 }
0x241e   :  { %10173 = vst [vmem:[#allocation17 + $0x8] sm:$0xff] %v10159_v61 }
0x241f   :  { %10172 = vst [vmem:[#allocation17] sm:$0xff] %v10154_v62 }
0x2420   :  { %v13393_v25 = vpop.eup %13392 }
0x2421   :  { %v13395_v40 = vpop.eup %13394 }
0x2422   :  { %v13397_v43 = vpop.eup %13396  ;;  %v10055_v42 = vmul.f32 %v13395_v40, %v13393_v25 }
0x2423   :  { %v10054_v56 = vmul.f32 %v13397_v43, %v15588_v17  ;;  %v13399_v44 = vpop.eup %13398 }
0x2425   :  { %v10056_v9 = vadd.f32 %v10055_v42, %v10054_v56 }
0x2427   :  { %13400 = vtanh.f32 %v10056_v9 }
0x2431   :  { %v13401_v5 = vpop.eup %13400 }
0x2432   :  { %v10058_v28 = vmul.f32 %v13401_v5, %v13399_v44 }
0x2434   :  { %10059 = vst [vmem:[#allocation3 + $0x1f] sm:$0x1] %v10058_v28 }
0x243b   :  { %v10063_v15 = vld [vmem:[#allocation3 + $0x18] sm:$0xff] }
0x243c   :  { %10536 = vmatmul.mubr.f32.gmra.mrb[66].mxu0 %v10063_v15 }
0x243d   :  { %13545 = shalt.err (!%p13542_p10)
}
0x243e   :  { %s13546_s29 = scalar_lea.hbm %s15638_s10, 1024 }
0x243f   :  { %p13547_p11 = scmp.ne.s32.totalorder %s15638_s10, %s13546_s29  ;;  %p13550_p12 = scmp.lt.u32.totalorder %s13546_s29, %s15638_s10 }
0x2441   :  { %p13552_p13 = pnand %p13550_p12, %p13547_p11 }
0x2443   :  { %13555 = shalt.err (!%p13552_p13)
}
0x2444   :  { %10187 = dma.vmem_to_hbm [thread:$0]  %s10182_s18, 1024, %s15638_s10, [#allocation7], %s13591_s27, %s13591_s27, %s13592_s28  }
0x2445   :  { %s13605_s7 = smov [#allocation17]  }
0x2446   :  { %s10193_s14 = sshll.u32 %s13605_s7, 4  ;;  %s10194_s14 = int_to_ptr.vmem [resolvable:$true] %s10193_s14 }
0x2447   :  { %s13556_s8 = scalar_lea.vmem %s10194_s14, 512  ;;  %p13561_p1 = scmp.lt.s32.totalorder %s10194_s14, %s10194_s14 }
0x2448   :  { %p13557_p0 = scmp.ne.s32.totalorder %s10194_s14, %s13556_s8  ;;  %p13562_p2 = scmp.lt.s32.totalorder %s13556_s8, %s13556_s8 }
0x244a   :  { %p13563_p3 = por %p13562_p2, %p13561_p1 }
0x244c   :  { %p13564_p4 = pnand %p13563_p3, %p13557_p0 }
0x250f   :  { %v10537_v17 = vpop.f32.mrb[66].mxu0 }
0x2510   :  { %v10169_v27 = vadd.f32 %v10537_v17, %v10478_v21  ;;  %v10163_v37 = vpop.f32.mrb[67].mxu0 }
0x2511   :  { %v10164_v8 = vadd.f32 %v10478_v21, %v10163_v37 }
0x2512   :  { %10175 = vst [vmem:[#allocation17 + $0x18] sm:$0xff] %v10169_v27 }
0x2513   :  { %10174 = vst [vmem:[#allocation17 + $0x10] sm:$0xff] %v10164_v8 }
0x2514   :  { %13567 = shalt.err (!%p13564_p4)
}
0x2515   :  { %s13568_s10 = scalar_lea.hbm %s15639_s11, 512 }
0x2516   :  { %p13569_p5 = scmp.ne.s32.totalorder %s15639_s11, %s13568_s10  ;;  %p13572_p6 = scmp.lt.u32.totalorder %s13568_s10, %s15639_s11 }
0x2518   :  { %p13574_p7 = pnand %p13572_p6, %p13569_p5 }
0x251a   :  { %13577 = shalt.err (!%p13574_p7)
}
0x251b   :  { %10199 = dma.vmem_to_hbm [thread:$0]  %s10194_s14, 512, %s15639_s11, [#allocation18], %s13596_s1, %s13596_s1, %s13597_s15  }
0x251c   :  { %13586 = dma.done.wait [#allocation7], 1024  }
0x251d   :  { %13587 = vsyncadd [#allocation7], 4294966272 }
0x251e   :  { %13588 = dma.done.wait [#allocation18], 512  }
0x251f   :  { %13589 = vsyncadd [#allocation18], 4294966784 }
0x2520   :  { %10206 = vsyncpa [#allocation6], 1 }
0x2521   :  { %10207 = vsyncpa [#allocation9], 1 }
0x2522   :  { %10208 = vsyncpa [#allocation12], 1 }
0x2523   :  { %10209 = vsyncpa [#allocation15], 1 }
0x2524   :  { %10210 = vsyncpa [#allocation7], 1 }
0x2525   :  { %10211 = vsyncpa [#allocation18], 1 }

</bundles_post_ra>
